<compile_context>
chip_gen: v7x
topology: tpu7x:2x2x1
jax: 0.10.0
libtpu: 0.0.40
codegen_flags: <defaults>
</compile_context>

<pallas_src>
import functools

import jax
import jax.numpy as jnp
from jax.experimental import pallas as pl
from jax.experimental.pallas import tpu as pltpu

LN_EPS = 1e-5  # nn.LayerNorm default eps


def _round_up(x, m):
    return ((x + m - 1) // m) * m


def _layernorm(h, gamma, beta, true_dim, padded_dim):
    # Centered (two-pass) variance for numerical robustness.  h is lane-padded
    # with zeros beyond `true_dim`; the centered deltas are masked to zero there
    # so the statistics over the real features stay exact, and gamma/beta are
    # zero-padded so padded lanes emit exactly 0.
    inv_d = 1.0 / true_dim
    mu = jnp.sum(h, axis=-1, keepdims=True) * inv_d     # padded lanes of h are 0
    d = h - mu
    if padded_dim != true_dim:
        lane = jax.lax.broadcasted_iota(jnp.int32, h.shape, h.ndim - 1)
        d = jnp.where(lane < true_dim, d, 0.0)
    var = jnp.sum(d * d, axis=-1, keepdims=True) * inv_d
    return d * jax.lax.rsqrt(var + LN_EPS) * gamma + beta


# --------------------------- Pallas kernels ---------------------------------


def _phase1_kernel(a_ref, x_ref, scale_ref, w1_ref, b1_ref, g1_ref, be1_ref,
                   w2_ref, g2_ref, be2_ref,
                   x1_ref, hw2_ref, acc_ref, *, hidden, hp):
    k = pl.program_id(1)

    @pl.when(k == 0)
    def _():
        acc_ref[...] = jnp.zeros_like(acc_ref)

    # Streaming spmm: acc[i] += A_q[i, k] @ X[k]  (int8 A upcast to bf16 in
    # VMEM, bf16 X, f32 accumulate on the MXU).
    acc_ref[...] += jnp.dot(a_ref[...].astype(jnp.bfloat16), x_ref[...],
                            preferred_element_type=jnp.float32)

    @pl.when(k == pl.num_programs(1) - 1)
    def _():
        ax = acc_ref[...] * scale_ref[...]            # de-quantize: rows of A_hat @ X
        # layer1 (block='plain'): conv -> norm -> act   ((A@X)@W1 == A@(X@W1))
        h = jnp.dot(ax.astype(jnp.bfloat16), w1_ref[...],
                    preferred_element_type=jnp.float32) + b1_ref[...]
        x1 = jnp.maximum(_layernorm(h, g1_ref[...], be1_ref[...], hidden, hp), 0.0)
        x1_ref[...] = x1.astype(x1_ref.dtype)
        # layer2 (block='res+') prologue: norm -> act -> linear part of conv
        h2 = jnp.maximum(_layernorm(x1, g2_ref[...], be2_ref[...], hidden, hp), 0.0)
        hw2_ref[...] = jnp.dot(h2.astype(jnp.bfloat16), w2_ref[...],
                               preferred_element_type=jnp.float32
                               ).astype(hw2_ref.dtype)


def _phase2_kernel(a_ref, hw2_ref, x1_ref, scale_ref, b2_ref, out_ref, acc_ref):
    k = pl.program_id(1)

    @pl.when(k == 0)
    def _():
        acc_ref[...] = jnp.zeros_like(acc_ref)

    acc_ref[...] += jnp.dot(a_ref[...].astype(jnp.bfloat16), hw2_ref[...],
                            preferred_element_type=jnp.float32)

    @pl.when(k == pl.num_programs(1) - 1)
    def _():
        # res+ residual: out = x1 + (A @ (ReLU(LN(x1)) @ W2) + b2)
        out_ref[...] = (x1_ref[...].astype(jnp.float32)
                        + acc_ref[...] * scale_ref[...] + b2_ref[...])


# ------------------------------ wrappers --------------------------------------


def prepare_adjacency(a_norm, *, tm=512, tk=1024, quantize_int8=True):
    """Pad + quantize the dense gcn-normalized adjacency ONCE.

    The result is reused by every BasicBlockGCN layer (and both streaming
    phases of each layer), hoisting the pad/cast HBM traffic out of the
    per-block path.  Rows pad to a multiple of tm, cols to a multiple of tk
    (rectangular padding, linear waste).  With int8 storage the dominant A
    stream halves vs bf16; the per-matrix scale is applied at finalize.
    """
    n = a_norm.shape[0]
    tm = min(tm, _round_up(n, 128))     # don't over-tile tiny graphs
    tk = min(tk, _round_up(n, 128))
    n_rows = _round_up(n, tm)
    n_cols = _round_up(n, tk)
    a_p = jnp.pad(a_norm.astype(jnp.float32),
                  ((0, n_rows - n), (0, n_cols - n)))
    if quantize_int8:
        scale = jnp.maximum(jnp.max(jnp.abs(a_p)), 1e-30) / 127.0
        a_q = jnp.clip(jnp.round(a_p / scale), -127.0, 127.0).astype(jnp.int8)
        scale = scale.reshape(1, 1).astype(jnp.float32)
    else:
        a_q = a_p.astype(jnp.bfloat16)
        scale = jnp.ones((1, 1), jnp.float32)
    return {"a": a_q, "scale": scale, "n": n, "tm": tm, "tk": tk,
            "n_rows": n_rows, "n_cols": n_cols}


def basic_block_gcn(x, a_prep, params, *, vmem_limit_bytes=48 * 1024 * 1024):
    """x: [N, F_in] f32 node features; a_prep: from prepare_adjacency()."""
    n, f_in = x.shape
    assert n == a_prep["n"], "adjacency was prepared for a different graph size"
    hidden = params["w1"].shape[1]
    tm, tk = a_prep["tm"], a_prep["tk"]
    n_rows, n_cols = a_prep["n_rows"], a_prep["n_cols"]
    a_q, scale = a_prep["a"], a_prep["scale"]

    fp = _round_up(f_in, 128)
    hp = _round_up(hidden, 128)

    # Lane-dense zero padding; padded rows/lanes never feed back into real rows
    # (A is zero there) and are sliced off at the end.
    x_p = jnp.pad(x, ((0, n_cols - n), (0, fp - f_in))).astype(jnp.bfloat16)

    pad2 = lambda w, r, c: jnp.pad(w, ((0, r - w.shape[0]), (0, c - w.shape[1])))
    w1 = pad2(params["w1"], fp, hp).astype(jnp.bfloat16)
    w2 = pad2(params["w2"], hp, hp).astype(jnp.bfloat16)
    b1, g1, be1 = (pad2(params[k_], 1, hp) for k_ in ("b1", "g1", "be1"))
    b2, g2, be2 = (pad2(params[k_], 1, hp) for k_ in ("b2", "g2", "be2"))

    grid = (n_rows // tm, n_cols // tk)
    a_spec = pl.BlockSpec((tm, tk), lambda i, k: (i, k))
    kside_spec = lambda w: pl.BlockSpec((tk, w), lambda i, k: (k, 0))
    row_spec = pl.BlockSpec((tm, hp), lambda i, k: (i, 0))
    const_spec = lambda shape: pl.BlockSpec(shape, lambda i, k: (0, 0))

    cparams = pltpu.CompilerParams(
        dimension_semantics=("parallel", "arbitrary"),
        vmem_limit_bytes=vmem_limit_bytes)

    a_bytes = a_q.dtype.itemsize

    # ---- phase 1: stream A once -> x1 and hw2 = ReLU(LN2(x1)) @ W2 ----
    flops1 = 2 * n_rows * n_cols * fp + n_rows * (2 * fp * hp + 2 * hp * hp)
    bytes1 = (n_rows * n_cols * a_bytes + (n_rows // tm) * n_cols * fp * 2
              + n_rows * hp * (2 + 2) + (fp * hp + hp * hp) * 2 + 6 * hp * 4)
    x1_p, hw2_p = pl.pallas_call(
        functools.partial(_phase1_kernel, hidden=hidden, hp=hp),
        out_shape=(jax.ShapeDtypeStruct((n_rows, hp), jnp.bfloat16),
                   jax.ShapeDtypeStruct((n_rows, hp), jnp.bfloat16)),
        grid_spec=pltpu.PrefetchScalarGridSpec(
            num_scalar_prefetch=0, grid=grid,
            in_specs=[a_spec, kside_spec(fp), const_spec((1, 1)),
                      const_spec((fp, hp)), const_spec((1, hp)),
                      const_spec((1, hp)), const_spec((1, hp)),
                      const_spec((hp, hp)), const_spec((1, hp)),
                      const_spec((1, hp))],
            out_specs=[row_spec, row_spec],
            scratch_shapes=[pltpu.VMEM((tm, fp), jnp.float32)]),
        compiler_params=cparams,
        cost_estimate=pl.CostEstimate(flops=flops1, transcendentals=2 * n_rows,
                                      bytes_accessed=bytes1),
    )(a_q, x_p, scale, w1, b1, g1, be1, w2, g2, be2)

    # hw2 is indexed by A's *columns* in phase 2; match its row count to n_cols.
    if n_cols > n_rows:
        hw2_k = jnp.pad(hw2_p, ((0, n_cols - n_rows), (0, 0)))
    elif n_cols < n_rows:
        hw2_k = hw2_p[:n_cols]
    else:
        hw2_k = hw2_p

    # ---- phase 2: stream A again -> out = x1 + A @ hw2 + b2 ----
    flops2 = 2 * n_rows * n_cols * hp + 2 * n_rows * hp
    bytes2 = (n_rows * n_cols * a_bytes + (n_rows // tm) * n_cols * hp * 2
              + n_rows * hp * (2 + 4) + hp * 4)
    out_p = pl.pallas_call(
        _phase2_kernel,
        out_shape=jax.ShapeDtypeStruct((n_rows, hp), jnp.float32),
        grid_spec=pltpu.PrefetchScalarGridSpec(
            num_scalar_prefetch=0, grid=grid,
            in_specs=[a_spec, kside_spec(hp), row_spec, const_spec((1, 1)),
                      const_spec((1, hp))],
            out_specs=row_spec,
            scratch_shapes=[pltpu.VMEM((tm, hp), jnp.float32)]),
        compiler_params=cparams,
        cost_estimate=pl.CostEstimate(flops=flops2, transcendentals=0,
                                      bytes_accessed=bytes2),
    )(a_q, hw2_k, x1_p, scale, b2)

    return out_p[:n, :hidden]


# --------------------------- plain-JAX glue ----------------------------------


def gcn_norm_dense(edge_index, num_nodes):
    """Dense equivalent of PyG gcn_norm with add_self_loops=True.
    (Assumes edge_index has no duplicate edges, matching the PyG reference.)"""
    src, dst = edge_index[0], edge_index[1]
    a = jnp.zeros((num_nodes, num_nodes), jnp.float32)
    a = a.at[dst, src].add(1.0)                      # A[target, source]
    a = a + jnp.eye(num_nodes, dtype=jnp.float32)    # self loops
    deg = a.sum(axis=1)
    dinv = jnp.where(deg > 0, 1.0 / jnp.sqrt(deg), 0.0)
    return dinv[:, None] * a * dinv[None, :]


def init_params(key, in_features, hidden_features):
    """Synthetic parameters matching the module's shapes.  GCNConv linear weight
    is (out, in) in PyTorch; we store the transpose (in, out).  Bias / LN affine
    params get small random values so every code path is exercised."""
    k1, k2, k3 = jax.random.split(key, 3)
    glorot1 = jnp.sqrt(6.0 / (in_features + hidden_features))
    glorot2 = jnp.sqrt(6.0 / (hidden_features + hidden_features))
    w1 = jax.random.uniform(k1, (in_features, hidden_features), jnp.float32,
                            -glorot1, glorot1)
    w2 = jax.random.uniform(k2, (hidden_features, hidden_features), jnp.float32,
                            -glorot2, glorot2)
    small = 0.1 * jax.random.normal(k3, (6, hidden_features), jnp.float32)
    row = lambda i: small[i][None, :]
    ones = jnp.ones((1, hidden_features), jnp.float32)
    return {"w1": w1, "b1": row(0), "g1": ones + row(1), "be1": row(2),
            "w2": w2, "b2": row(3), "g2": ones + row(4), "be2": row(5)}


def basic_block_gcn_ref(x, a_norm, params):
    """Pure-JAX f32 reference (matches the PyTorch module semantics)."""
    def ln(h, g, b):
        mu = jnp.mean(h, axis=-1, keepdims=True)
        var = jnp.mean((h - mu) ** 2, axis=-1, keepdims=True)
        return (h - mu) * jax.lax.rsqrt(var + LN_EPS) * g + b
    h = a_norm @ (x @ params["w1"]) + params["b1"]
    x1 = jnp.maximum(ln(h, params["g1"], params["be1"]), 0.0)
    h2 = jnp.maximum(ln(x1, params["g2"], params["be2"]), 0.0)
    h2 = a_norm @ (h2 @ params["w2"]) + params["b2"]
    return x1 + h2


if __name__ == "__main__":
    # Matches GCNResnet18.layer1's BasicBlockGCN(64, 64); a 2-block chain
    # (layer1 stacks several identical blocks) to demonstrate adjacency reuse.
    N, F_IN, HIDDEN = 1024, 64, 64

    key = jax.random.PRNGKey(0)
    kx, kp1, kp2 = jax.random.split(key, 3)
    x = jax.random.normal(kx, (N, F_IN), jnp.float32)

    # data.edge_index: bidirectional ring graph, shape [2, 2N] (no duplicates)
    src = jnp.arange(N, dtype=jnp.int32)
    dst = (src + 1) % N
    edge_index = jnp.stack([jnp.concatenate([src, dst]),
                            jnp.concatenate([dst, src])], axis=0)

    a_norm = gcn_norm_dense(edge_index, N)
    params1 = init_params(kp1, F_IN, HIDDEN)
    params2 = init_params(kp2, HIDDEN, HIDDEN)

    # Adjacency padded + int8-quantized ONCE, shared by every block and both
    # streaming phases within a block (defaults tm=512, tk=1024 keep >= 2 row
    # tiles for v7x's two TensorCores and one K tile for this N).
    a_prep = prepare_adjacency(a_norm, tm=512, tk=1024, quantize_int8=True)

    out1 = basic_block_gcn(x, a_prep, params1)
    out2 = basic_block_gcn(out1, a_prep, params2)
    out2 = jax.block_until_ready(out2)
    assert out1.shape == (N, HIDDEN) and out2.shape == (N, HIDDEN)
    assert out2.dtype == jnp.float32
    assert bool(jnp.all(jnp.isfinite(out2)))

    ref1 = basic_block_gcn_ref(x, a_norm, params1)
    ref2 = basic_block_gcn_ref(ref1, a_norm, params2)
    err1 = float(jnp.max(jnp.abs(out1 - ref1)))
    err2 = float(jnp.max(jnp.abs(out2 - ref2)))
    assert err1 < 1e-1, f"block1 max abs err vs f32 reference: {err1}"
    assert err2 < 2e-1, f"2-block chain max abs err vs f32 reference: {err2}"
    print("KERNEL_OK")
</pallas_src>

<mosaic_0001>
module attributes {stable_mosaic.version = 11 : i64} {
  func.func @_phase1_kernel(%arg0: i32, %arg1: i32, %arg2: memref<512x1024xi8, #tpu.memory_space<vmem>>, %arg3: memref<1024x128xbf16, #tpu.memory_space<vmem>>, %arg4: memref<1x1xf32, #tpu.memory_space<vmem>>, %arg5: memref<128x128xbf16, #tpu.memory_space<vmem>>, %arg6: memref<1x128xf32, #tpu.memory_space<vmem>>, %arg7: memref<1x128xf32, #tpu.memory_space<vmem>>, %arg8: memref<1x128xf32, #tpu.memory_space<vmem>>, %arg9: memref<128x128xbf16, #tpu.memory_space<vmem>>, %arg10: memref<1x128xf32, #tpu.memory_space<vmem>>, %arg11: memref<1x128xf32, #tpu.memory_space<vmem>>, %arg12: memref<512x128xbf16, #tpu.memory_space<vmem>>, %arg13: memref<512x128xbf16, #tpu.memory_space<vmem>>, %arg14: memref<512x128xf32, #tpu.memory_space<vmem>>) attributes {dimension_semantics = [#tpu.dimension_semantics<parallel>, #tpu.dimension_semantics<arbitrary>], iteration_bounds = array<i64: 2, 1>, scalar_prefetch = 0 : i64, scratch_operands = 1 : i64, tpu.core_type = #tpu.core_type<tc>, window_params = [{transform_indices = @transform_0, window_bounds = array<i64: 512, 1024>}, {transform_indices = @transform_1, window_bounds = array<i64: 1024, 128>}, {pipeline_mode = #tpu.pipeline_mode<synchronous>, transform_indices = @transform_2, window_bounds = array<i64: 1, 1>}, {pipeline_mode = #tpu.pipeline_mode<synchronous>, transform_indices = @transform_3, window_bounds = array<i64: 128, 128>}, {pipeline_mode = #tpu.pipeline_mode<synchronous>, transform_indices = @transform_4, window_bounds = array<i64: 1, 128>}, {pipeline_mode = #tpu.pipeline_mode<synchronous>, transform_indices = @transform_5, window_bounds = array<i64: 1, 128>}, {pipeline_mode = #tpu.pipeline_mode<synchronous>, transform_indices = @transform_6, window_bounds = array<i64: 1, 128>}, {pipeline_mode = #tpu.pipeline_mode<synchronous>, transform_indices = @transform_7, window_bounds = array<i64: 128, 128>}, {pipeline_mode = #tpu.pipeline_mode<synchronous>, transform_indices = @transform_8, window_bounds = array<i64: 1, 128>}, {pipeline_mode = #tpu.pipeline_mode<synchronous>, transform_indices = @transform_9, window_bounds = array<i64: 1, 128>}, {transform_indices = @transform_10, window_bounds = array<i64: 512, 128>}, {transform_indices = @transform_11, window_bounds = array<i64: 512, 128>}]} {
    %c0_i32 = arith.constant 0 : i32
    %0 = arith.cmpi eq, %arg1, %c0_i32 : i32
    %1 = arith.extui %0 : i1 to i32
    %c0_i32_0 = arith.constant 0 : i32
    %2 = arith.cmpi ne, %1, %c0_i32_0 : i32
    scf.if %2 {
      %cst_10 = arith.constant 0.000000e+00 : f32
      %13 = vector.broadcast %cst_10 : f32 to vector<512x128xf32>
      %c0_11 = arith.constant 0 : index
      %c0_12 = arith.constant 0 : index
      %14 = vector.load %arg14[%c0_11, %c0_12] : memref<512x128xf32, #tpu.memory_space<vmem>>, vector<512x128xf32>
      tpu.vector_store %arg14[%c0_11, %c0_12], %13 {strides = array<i32>} : memref<512x128xf32, #tpu.memory_space<vmem>>, vector<512x128xf32>,
    } else {
    }
    %c0 = arith.constant 0 : index
    %c0_1 = arith.constant 0 : index
    %3 = vector.load %arg14[%c0, %c0_1] : memref<512x128xf32, #tpu.memory_space<vmem>>, vector<512x128xf32>
    %c0_2 = arith.constant 0 : index
    %c0_3 = arith.constant 0 : index
    %4 = vector.load %arg2[%c0_2, %c0_3] : memref<512x1024xi8, #tpu.memory_space<vmem>>, vector<512x1024xi8>
    %5 = arith.sitofp %4 : vector<512x1024xi8> to vector<512x1024xbf16>
    %c0_4 = arith.constant 0 : index
    %c0_5 = arith.constant 0 : index
    %6 = vector.load %arg3[%c0_4, %c0_5] : memref<1024x128xbf16, #tpu.memory_space<vmem>>, vector<1024x128xbf16>
    %cst = arith.constant dense<0.000000e+00> : vector<512x128xf32>
    %7 = tpu.matmul %5, %6, %cst {dimension_numbers = #tpu.dot_dimension_numbers<[1], [0], [0], [1], [0, 0, 1, 1], [], []>} : vector<512x1024xbf16>, vector<1024x128xbf16>, vector<512x128xf32> -> vector<512x128xf32>
    %8 = arith.addf %3, %7 : vector<512x128xf32>
    %c0_6 = arith.constant 0 : index
    %c0_7 = arith.constant 0 : index
    %9 = vector.load %arg14[%c0_6, %c0_7] : memref<512x128xf32, #tpu.memory_space<vmem>>, vector<512x128xf32>
    tpu.vector_store %arg14[%c0_6, %c0_7], %8 {strides = array<i32>} : memref<512x128xf32, #tpu.memory_space<vmem>>, vector<512x128xf32>,
    %c0_i32_8 = arith.constant 0 : i32
    %10 = arith.cmpi eq, %arg1, %c0_i32_8 : i32
    %11 = arith.extui %10 : i1 to i32
    %c0_i32_9 = arith.constant 0 : i32
    %12 = arith.cmpi ne, %11, %c0_i32_9 : i32
    scf.if %12 {
      %c0_10 = arith.constant 0 : index
      %c0_11 = arith.constant 0 : index
      %13 = vector.load %arg14[%c0_10, %c0_11] : memref<512x128xf32, #tpu.memory_space<vmem>>, vector<512x128xf32>
      %c0_12 = arith.constant 0 : index
      %c0_13 = arith.constant 0 : index
      %14 = vector.load %arg4[%c0_12, %c0_13] : memref<1x1xf32, #tpu.memory_space<vmem>>, vector<1x1xf32>
      %15 = vector.broadcast %14 : vector<1x1xf32> to vector<512x128xf32>
      %16 = arith.mulf %13, %15 : vector<512x128xf32>
      %17 = arith.truncf %16 : vector<512x128xf32> to vector<512x128xbf16>
      %c0_14 = arith.constant 0 : index
      %c0_15 = arith.constant 0 : index
      %18 = vector.load %arg5[%c0_14, %c0_15] : memref<128x128xbf16, #tpu.memory_space<vmem>>, vector<128x128xbf16>
      %cst_16 = arith.constant dense<0.000000e+00> : vector<512x128xf32>
      %19 = tpu.matmul %17, %18, %cst_16 {dimension_numbers = #tpu.dot_dimension_numbers<[1], [0], [0], [1], [0, 0, 1, 1], [], []>} : vector<512x128xbf16>, vector<128x128xbf16>, vector<512x128xf32> -> vector<512x128xf32>
      %c0_17 = arith.constant 0 : index
      %c0_18 = arith.constant 0 : index
      %20 = vector.load %arg6[%c0_17, %c0_18] : memref<1x128xf32, #tpu.memory_space<vmem>>, vector<1x128xf32>
      %21 = vector.broadcast %20 : vector<1x128xf32> to vector<512x128xf32>
      %22 = arith.addf %19, %21 : vector<512x128xf32>
      %c0_19 = arith.constant 0 : index
      %c0_20 = arith.constant 0 : index
      %23 = vector.load %arg7[%c0_19, %c0_20] : memref<1x128xf32, #tpu.memory_space<vmem>>, vector<1x128xf32>
      %c0_21 = arith.constant 0 : index
      %c0_22 = arith.constant 0 : index
      %24 = vector.load %arg8[%c0_21, %c0_22] : memref<1x128xf32, #tpu.memory_space<vmem>>, vector<1x128xf32>
      %cst_23 = arith.constant dense<0.000000e+00> : vector<512xf32>
      %25 = vector.multi_reduction <add>, %22, %cst_23 [1] : vector<512x128xf32> to vector<512xf32>
      %26 = vector.shape_cast %25 : vector<512xf32> to vector<512x1xf32>
      %cst_24 = arith.constant 1.562500e-02 : f32
      %27 = vector.broadcast %cst_24 : f32 to vector<512x1xf32>
      %28 = arith.mulf %26, %27 : vector<512x1xf32>
      %29 = vector.broadcast %28 : vector<512x1xf32> to vector<512x128xf32>
      %30 = arith.subf %22, %29 : vector<512x128xf32>
      %31 = tpu.iota {dimensions = array<i32: 1>} : vector<512x128xi32>
      %c64_i32 = arith.constant 64 : i32
      %32 = vector.broadcast %c64_i32 : i32 to vector<512x128xi32>
      %33 = arith.cmpi slt, %31, %32 : vector<512x128xi32>
      %cst_25 = arith.constant 0.000000e+00 : f32
      %34 = vector.broadcast %cst_25 : f32 to vector<512x128xf32>
      %35 = arith.select %33, %30, %34 : vector<512x128xi1>, vector<512x128xf32>
      %36 = arith.mulf %35, %35 : vector<512x128xf32>
      %cst_26 = arith.constant dense<0.000000e+00> : vector<512xf32>
      %37 = vector.multi_reduction <add>, %36, %cst_26 [1] : vector<512x128xf32> to vector<512xf32>
      %38 = vector.shape_cast %37 : vector<512xf32> to vector<512x1xf32>
      %cst_27 = arith.constant 1.562500e-02 : f32
      %39 = vector.broadcast %cst_27 : f32 to vector<512x1xf32>
      %40 = arith.mulf %38, %39 : vector<512x1xf32>
      %cst_28 = arith.constant 9.99999974E-6 : f32
      %41 = vector.broadcast %cst_28 : f32 to vector<512x1xf32>
      %42 = arith.addf %40, %41 : vector<512x1xf32>
      %43 = math.rsqrt %42 : vector<512x1xf32>
      %44 = vector.broadcast %43 : vector<512x1xf32> to vector<512x128xf32>
      %45 = arith.mulf %35, %44 : vector<512x128xf32>
      %46 = vector.broadcast %23 : vector<1x128xf32> to vector<512x128xf32>
      %47 = arith.mulf %45, %46 : vector<512x128xf32>
      %48 = vector.broadcast %24 : vector<1x128xf32> to vector<512x128xf32>
      %49 = arith.addf %47, %48 : vector<512x128xf32>
      %cst_29 = arith.constant 0.000000e+00 : f32
      %50 = vector.broadcast %cst_29 : f32 to vector<512x128xf32>
      %51 = arith.maximumf %49, %50 : vector<512x128xf32>
      %52 = arith.truncf %51 : vector<512x128xf32> to vector<512x128xbf16>
      %c0_30 = arith.constant 0 : index
      %c0_31 = arith.constant 0 : index
      %53 = vector.load %arg12[%c0_30, %c0_31] : memref<512x128xbf16, #tpu.memory_space<vmem>>, vector<512x128xbf16>
      tpu.vector_store %arg12[%c0_30, %c0_31], %52 {strides = array<i32>} : memref<512x128xbf16, #tpu.memory_space<vmem>>, vector<512x128xbf16>,
      %c0_32 = arith.constant 0 : index
      %c0_33 = arith.constant 0 : index
      %54 = vector.load %arg10[%c0_32, %c0_33] : memref<1x128xf32, #tpu.memory_space<vmem>>, vector<1x128xf32>
      %c0_34 = arith.constant 0 : index
      %c0_35 = arith.constant 0 : index
      %55 = vector.load %arg11[%c0_34, %c0_35] : memref<1x128xf32, #tpu.memory_space<vmem>>, vector<1x128xf32>
      %cst_36 = arith.constant dense<0.000000e+00> : vector<512xf32>
      %56 = vector.multi_reduction <add>, %51, %cst_36 [1] : vector<512x128xf32> to vector<512xf32>
      %57 = vector.shape_cast %56 : vector<512xf32> to vector<512x1xf32>
      %cst_37 = arith.constant 1.562500e-02 : f32
      %58 = vector.broadcast %cst_37 : f32 to vector<512x1xf32>
      %59 = arith.mulf %57, %58 : vector<512x1xf32>
      %60 = vector.broadcast %59 : vector<512x1xf32> to vector<512x128xf32>
      %61 = arith.subf %51, %60 : vector<512x128xf32>
      %62 = tpu.iota {dimensions = array<i32: 1>} : vector<512x128xi32>
      %c64_i32_38 = arith.constant 64 : i32
      %63 = vector.broadcast %c64_i32_38 : i32 to vector<512x128xi32>
      %64 = arith.cmpi slt, %62, %63 : vector<512x128xi32>
      %cst_39 = arith.constant 0.000000e+00 : f32
      %65 = vector.broadcast %cst_39 : f32 to vector<512x128xf32>
      %66 = arith.select %64, %61, %65 : vector<512x128xi1>, vector<512x128xf32>
      %67 = arith.mulf %66, %66 : vector<512x128xf32>
      %cst_40 = arith.constant dense<0.000000e+00> : vector<512xf32>
      %68 = vector.multi_reduction <add>, %67, %cst_40 [1] : vector<512x128xf32> to vector<512xf32>
      %69 = vector.shape_cast %68 : vector<512xf32> to vector<512x1xf32>
      %cst_41 = arith.constant 1.562500e-02 : f32
      %70 = vector.broadcast %cst_41 : f32 to vector<512x1xf32>
      %71 = arith.mulf %69, %70 : vector<512x1xf32>
      %cst_42 = arith.constant 9.99999974E-6 : f32
      %72 = vector.broadcast %cst_42 : f32 to vector<512x1xf32>
      %73 = arith.addf %71, %72 : vector<512x1xf32>
      %74 = math.rsqrt %73 : vector<512x1xf32>
      %75 = vector.broadcast %74 : vector<512x1xf32> to vector<512x128xf32>
      %76 = arith.mulf %66, %75 : vector<512x128xf32>
      %77 = vector.broadcast %54 : vector<1x128xf32> to vector<512x128xf32>
      %78 = arith.mulf %76, %77 : vector<512x128xf32>
      %79 = vector.broadcast %55 : vector<1x128xf32> to vector<512x128xf32>
      %80 = arith.addf %78, %79 : vector<512x128xf32>
      %cst_43 = arith.constant 0.000000e+00 : f32
      %81 = vector.broadcast %cst_43 : f32 to vector<512x128xf32>
      %82 = arith.maximumf %80, %81 : vector<512x128xf32>
      %83 = arith.truncf %82 : vector<512x128xf32> to vector<512x128xbf16>
      %c0_44 = arith.constant 0 : index
      %c0_45 = arith.constant 0 : index
      %84 = vector.load %arg9[%c0_44, %c0_45] : memref<128x128xbf16, #tpu.memory_space<vmem>>, vector<128x128xbf16>
      %cst_46 = arith.constant dense<0.000000e+00> : vector<512x128xf32>
      %85 = tpu.matmul %83, %84, %cst_46 {dimension_numbers = #tpu.dot_dimension_numbers<[1], [0], [0], [1], [0, 0, 1, 1], [], []>} : vector<512x128xbf16>, vector<128x128xbf16>, vector<512x128xf32> -> vector<512x128xf32>
      %86 = arith.truncf %85 : vector<512x128xf32> to vector<512x128xbf16>
      %c0_47 = arith.constant 0 : index
      %c0_48 = arith.constant 0 : index
      %87 = vector.load %arg13[%c0_47, %c0_48] : memref<512x128xbf16, #tpu.memory_space<vmem>>, vector<512x128xbf16>
      tpu.vector_store %arg13[%c0_47, %c0_48], %86 {strides = array<i32>} : memref<512x128xbf16, #tpu.memory_space<vmem>>, vector<512x128xbf16>,
    } else {
    }
    return
  }
  func.func @transform_0(%arg0: i32, %arg1: i32) -> (i32, i32) {
    %c0_i32 = arith.constant 0 : i32
    return %arg0, %arg1 : i32, i32
  }
  func.func @transform_1(%arg0: i32, %arg1: i32) -> (i32, i32) {
    %c0_i32 = arith.constant 0 : i32
    %c0_i32_0 = arith.constant 0 : i32
    return %arg1, %c0_i32 : i32, i32
  }
  func.func @transform_2(%arg0: i32, %arg1: i32) -> (i32, i32) {
    %c0_i32 = arith.constant 0 : i32
    %c0_i32_0 = arith.constant 0 : i32
    %c0_i32_1 = arith.constant 0 : i32
    return %c0_i32, %c0_i32_0 : i32, i32
  }
  func.func @transform_3(%arg0: i32, %arg1: i32) -> (i32, i32) {
    %c0_i32 = arith.constant 0 : i32
    %c0_i32_0 = arith.constant 0 : i32
    %c0_i32_1 = arith.constant 0 : i32
    return %c0_i32, %c0_i32_0 : i32, i32
  }
  func.func @transform_4(%arg0: i32, %arg1: i32) -> (i32, i32) {
    %c0_i32 = arith.constant 0 : i32
    %c0_i32_0 = arith.constant 0 : i32
    %c0_i32_1 = arith.constant 0 : i32
    return %c0_i32, %c0_i32_0 : i32, i32
  }
  func.func @transform_5(%arg0: i32, %arg1: i32) -> (i32, i32) {
    %c0_i32 = arith.constant 0 : i32
    %c0_i32_0 = arith.constant 0 : i32
    %c0_i32_1 = arith.constant 0 : i32
    return %c0_i32, %c0_i32_0 : i32, i32
  }
  func.func @transform_6(%arg0: i32, %arg1: i32) -> (i32, i32) {
    %c0_i32 = arith.constant 0 : i32
    %c0_i32_0 = arith.constant 0 : i32
    %c0_i32_1 = arith.constant 0 : i32
    return %c0_i32, %c0_i32_0 : i32, i32
  }
  func.func @transform_7(%arg0: i32, %arg1: i32) -> (i32, i32) {
    %c0_i32 = arith.constant 0 : i32
    %c0_i32_0 = arith.constant 0 : i32
    %c0_i32_1 = arith.constant 0 : i32
    return %c0_i32, %c0_i32_0 : i32, i32
  }
  func.func @transform_8(%arg0: i32, %arg1: i32) -> (i32, i32) {
    %c0_i32 = arith.constant 0 : i32
    %c0_i32_0 = arith.constant 0 : i32
    %c0_i32_1 = arith.constant 0 : i32
    return %c0_i32, %c0_i32_0 : i32, i32
  }
  func.func @transform_9(%arg0: i32, %arg1: i32) -> (i32, i32) {
    %c0_i32 = arith.constant 0 : i32
    %c0_i32_0 = arith.constant 0 : i32
    %c0_i32_1 = arith.constant 0 : i32
    return %c0_i32, %c0_i32_0 : i32, i32
  }
  func.func @transform_10(%arg0: i32, %arg1: i32) -> (i32, i32) {
    %c0_i32 = arith.constant 0 : i32
    %c0_i32_0 = arith.constant 0 : i32
    return %arg0, %c0_i32 : i32, i32
  }
  func.func @transform_11(%arg0: i32, %arg1: i32) -> (i32, i32) {
    %c0_i32 = arith.constant 0 : i32
    %c0_i32_0 = arith.constant 0 : i32
    return %arg0, %c0_i32 : i32, i32
  }
}

</mosaic_0001>

<bundles_post_ra>
// kernel: tpu_custom_call.1
= control target key start
LH: loop header
LB: loop body
LE: loop exit
PB: predicated region body
PF: predicated region fallthrough
CT: control target
= control target key end

     0   :  { %s11387_s0 = inlined_call_operand.hbm [shape: s8[1024,1024], index: 0, kind: input, shape index: {}]   ;;  %s11388_s1 = inlined_call_operand.hbm [shape: bf16[1024,128], index: 1, kind: input, shape index: {}]   ;;  %s11389_s2 = inlined_call_operand.<no memory space> [shape: f32[1,1], index: 2, kind: input, shape index: {}]   ;;  %s11390_s3 = inlined_call_operand.hbm [shape: bf16[128,128], index: 3, kind: input, shape index: {}]   ;;  %s11391_s4 = inlined_call_operand.vmem [shape: f32[1,128], index: 4, kind: input, shape index: {}]   ;;  %s11392_s5 = inlined_call_operand.vmem [shape: f32[1,128], index: 5, kind: input, shape index: {}]   ;;  %s11393_s6 = inlined_call_operand.vmem [shape: f32[1,128], index: 6, kind: input, shape index: {}]   ;;  %s11394_s7 = inlined_call_operand.hbm [shape: bf16[128,128], index: 7, kind: input, shape index: {}]   ;;  %s11395_s8 = inlined_call_operand.vmem [shape: f32[1,128], index: 8, kind: input, shape index: {}]   ;;  %s11396_s9 = inlined_call_operand.vmem [shape: f32[1,128], index: 9, kind: input, shape index: {}]   ;;  %s11397_s10 = inlined_call_operand.hbm [shape: bf16[1024,128], index: 10, kind: output, shape index: {0}]   ;;  %s11398_s11 = inlined_call_operand.hbm [shape: bf16[1024,128], index: 11, kind: output, shape index: {1}]  }
   0x1   :  { %11470 = sst [smem:[#allocation46_spill]] %s11395_s8  ;;  %v17_v0 = vstv %s11389_s2 }
   0x2   :  { %11471 = sst [smem:[#allocation47_spill]] %s11396_s9  ;;  %18 = vst [vmem:[#allocation3] sm:$0x1] %v17_v0 }
   0x3   :  { %11472 = sst [smem:[#allocation48_spill]] %s11397_s10 }
   0x4   :  { %11473 = sst [smem:[#allocation49_spill]] %s11398_s11 }
   0x5   :  { %19 = vsyncpa [#allocation5], 0 }
   0x6   :  { %21 = vsyncpa [#allocation5 + $0x1], 0 }
   0x7   :  { %22 = vsyncpa [#allocation8], 0 }
   0x8   :  { %23 = vsyncpa [#allocation11], 0 }
   0x9   :  { %24 = vsyncpa [#allocation6], 0 }
   0xa   :  { %26 = vsyncpa [#allocation6 + $0x1], 0 }
   0xb   :  { %27 = vsyncpa [#allocation14], 0 }
   0xc   :  { %29 = vsyncpa [#allocation14 + $0x1], 0  ;;  %s8600_s19 = smov 0   ;;  %s8602_s20 = smov 0  }
   0xd   :  { %s8604_s21 = smov 0   ;;  %s8606_s22 = smov 0  }
   0xe   :  { %s8608_s23 = smov 0   ;;  %s8610_s2 = smov 0  }
   0xf LB: > { %11474 = sst [smem:[#allocation20_spill]] %s8503_s19  ;;  %s6496_s24 = sadd.s32 4294967295, %s8523_s2   ;;  %s8523_s2 = sphi %s8610_s2, %s35_s2   ;;  %s8519_s23 = sphi %s8608_s23, %s11649_s23   ;;  %s8515_s22 = sphi %s8606_s22, %s11648_s22   ;;  %s8511_s21 = sphi %s8604_s21, %s11647_s21   ;;  %s8507_s20 = sphi %s8602_s20, %s11646_s20   ;;  %s8503_s19 = sphi %s8600_s19, %s11645_s19  }
  0x10   : > { %11475 = sst [smem:[#allocation21_spill]] %s8515_s22  ;;  %s6497_s25 = sadd.s32 4294967294, %s8523_s2  }
  0x11   : > { %p69_p0 = scmp.ne.s32.totalorder %s8507_s20, %s8503_s19  ;;  %p8634_p1 = scmp.eq.s32.totalorder %s6496_s24, 0 }
  0x12   : > { %p8638_p2 = scmp.eq.s32.totalorder %s6496_s24, 1  ;;  %p293_p3 = scmp.eq.s32.totalorder %s6497_s25, 1 }
  0x13   : > { %s11476_s26 = scalar_select %p8634_p1, 1, 0 }
  0x14   : > { %s11477_s27 = scalar_select %p8638_p2, 1, 0 }
  0x15   : > { %p8644_p4 = por %p8634_p1, %p69_p0  ;;  %p6498_p5 = scmp.ge.s32.totalorder %s8523_s2, 1 }
  0x16   : > { %p8649_p6 = por %p293_p3, %p69_p0  ;;  %p326_p7 = scmp.lt.s32.totalorder %s8523_s2, 3 }
  0x17   : > { %s11478_s28 = scalar_select %p8644_p4, 1, 0 }
  0x18   : > { %s11479_s29 = scalar_select %p8649_p6, 1, 0 }
  0x19   : > { %p8654_p8 = pnand %p6498_p5, %p326_p7  ;;  %s8525_s12 = smov [#allocation7]  }
  0x1a   : > { %11480 = sst [smem:[#allocation22_spill]] %s11479_s29  ;;  %s341_s13 = sshll.u32 %s8525_s12, 4  ;;  %s8658_s13 = int_to_ptr.vmem [resolvable:$true] %s341_s13 }
  0x1b   : > { %s11481_s30 = scalar_select %p8654_p8, 1, 0 }
  0x1c   : > { %p7860_p9 = pneg %p8654_p8  ;;  %s8526_s15 = smov [#allocation9]  }
  0x1d   : > { %s357_s16 = sshll.u32 %s8526_s15, 4  ;;  %s8527_s17 = smov [#allocation10]   ;;  %s8669_s16 = int_to_ptr.vmem [resolvable:$true] %s357_s16 }
  0x1e   : > { %p8665_p11 = pnand %p7860_p9, %p8634_p1  ;;  %s8671_s18 = sshll.u32 %s8527_s17, 4  ;;  %s380_s18 = int_to_ptr.vmem [resolvable:$true] %s8671_s18 }
  0x1f   : > { %s8287_s12 = scalar_lea.hbm %s11388_s1, 8192 }
  0x20   : > { %p8288_p12 = scmp.ne.s32.totalorder %s11388_s1, %s8287_s12  ;;  %p8681_p13 = pneg %p8665_p11 }
  0x21   : > { %p8294_p5 = scmp.lt.u32.totalorder %s8287_s12, %s11388_s1 }
  0x22   : > { %p8290_p0 = pnand %p8681_p13, %p8288_p12 }
  0x24   : > { %p8291_p3 = pneg %p8290_p0 }
  0x26   : > { %p8296_p7 = pnand %p8294_p5, %p8291_p3 }
  0x28   : > { %8299 = shalt.err (!%p8296_p7)
}
  0x29   : > { %s8300_s19 = scalar_lea.vmem %s8658_s13, 8192  ;;  %p8308_p1 = scmp.lt.s32.totalorder %s8658_s13, %s8658_s13 }
  0x2a   : > { %p8301_p9 = scmp.ne.s32.totalorder %s8658_s13, %s8300_s19  ;;  %p8309_p4 = scmp.lt.s32.totalorder %s8300_s19, %s8300_s19 }
  0x2c   : > { %p8303_p10 = pnand %p8301_p9, %p8681_p13  ;;  %p8310_p12 = por %p8309_p4, %p8308_p1 }
  0x2e   : > { %p8304_p6 = pneg %p8303_p10 }
  0x30   : > { %p8311_p0 = pnand %p8310_p12, %p8304_p6 }
  0x32   : > { %8314 = shalt.err (!%p8311_p0)
}
  0x33   : > { %s8528_s29 = smov 64   ;;  %s8529_s24 = smov 4  }
  0x34   : > { %7863 = dma.hbm_to_vmem [thread:$0]  (!%p8665_p11), %s11388_s1, 8192, %s8658_s13, [#allocation8], %s8528_s29, %s8528_s29, %s8529_s24  }
  0x35   : > { %s8315_s19 = scalar_lea.hbm %s11390_s3, 1024 }
  0x36   : > { %p8316_p1 = scmp.ne.s32.totalorder %s11390_s3, %s8315_s19  ;;  %p8322_p10 = scmp.lt.u32.totalorder %s8315_s19, %s11390_s3 }
  0x38   : > { %p8318_p4 = pnand %p8316_p1, %p8681_p13 }
  0x3a   : > { %p8319_p6 = pneg %p8318_p4 }
  0x3c   : > { %p8324_p3 = pnand %p8322_p10, %p8319_p6 }
  0x3e   : > { %8327 = shalt.err (!%p8324_p3)
}
  0x3f   : > { %s8328_s13 = scalar_lea.vmem %s8669_s16, 1024  ;;  %p8336_p12 = scmp.lt.s32.totalorder %s8669_s16, %s8669_s16 }
  0x40   : > { %p8329_p5 = scmp.ne.s32.totalorder %s8669_s16, %s8328_s13  ;;  %p8337_p0 = scmp.lt.s32.totalorder %s8328_s13, %s8328_s13 }
  0x42   : > { %p8331_p7 = pnand %p8329_p5, %p8681_p13  ;;  %p8338_p1 = por %p8337_p0, %p8336_p12 }
  0x44   : > { %p8332_p9 = pneg %p8331_p7 }
  0x46   : > { %p8339_p4 = pnand %p8338_p1, %p8332_p9 }
  0x48   : > { %8342 = shalt.err (!%p8339_p4)
}
  0x49   : > { %7866 = dma.hbm_to_vmem [thread:$0]  (!%p8665_p11), %s11390_s3, 1024, %s8669_s16, [#allocation8], %s8528_s29, %s8528_s29, %s8529_s24  }
  0x4a   : > { %s8343_s25 = scalar_lea.hbm %s11394_s7, 1024 }
  0x4b   : > { %p8344_p6 = scmp.ne.s32.totalorder %s11394_s7, %s8343_s25  ;;  %p8350_p5 = scmp.lt.u32.totalorder %s8343_s25, %s11394_s7 }
  0x4d   : > { %p8346_p10 = pnand %p8344_p6, %p8681_p13 }
  0x4f   : > { %p8347_p3 = pneg %p8346_p10 }
  0x51   : > { %p8352_p7 = pnand %p8350_p5, %p8347_p3 }
  0x53   : > { %8355 = shalt.err (!%p8352_p7)
}
  0x54   : > { %s8356_s13 = scalar_lea.vmem %s380_s18, 1024  ;;  %p8364_p1 = scmp.lt.s32.totalorder %s380_s18, %s380_s18 }
  0x55   : > { %p8357_p9 = scmp.ne.s32.totalorder %s380_s18, %s8356_s13  ;;  %p8365_p4 = scmp.lt.s32.totalorder %s8356_s13, %s8356_s13 }
  0x57   : > { %p8359_p12 = pnand %p8357_p9, %p8681_p13  ;;  %p8366_p8 = por %p8365_p4, %p8364_p1 }
  0x59   : > { %p8360_p0 = pneg %p8359_p12 }
  0x5b   : > { %p8367_p2 = pnand %p8366_p8, %p8360_p0 }
  0x5d   : > { %8370 = shalt.err (!%p8367_p2)
}
  0x5e   : > { %7869 = dma.hbm_to_vmem [thread:$0]  (!%p8665_p11), %s11394_s7, 1024, %s380_s18, [#allocation11], %s8528_s29, %s8528_s29, %s8529_s24  }
  0x5f   : > { %s56_s11 = sadd.s32 1, %s8511_s21  ;;  %s47_s14 = sadd.s32 1, %s8519_s23 }
  0x60   : > { %p63_p2 = scmp.ne.s32.totalorder %s8511_s21, %s8507_s20  ;;  %p49_p8 = scmp.ge.s32.totalorder %s47_s14, 2 }
  0x61   : > { %p64_p13 = scmp.eq.s32.totalorder %s8523_s2, 0  ;;  %p11484_p6 = scmp.ne.s32.totalorder %s11477_s27, 0 }
  0x62   : > { %p7884_p3 = scmp.lt.s32.totalorder %s8523_s2, 2  ;;  %s11651_s14 = smov (%p49_p8, %s47_s14), 0 }
  0x63   : > { %p8760_p10 = por %p11484_p6, %p63_p2  ;;  %p65_p5 = por %p64_p13, %p63_p2 }
  0x64   : > { %s399_s10 = sand.u32 1, %s8511_s21   ;;  %s51_s22 = ssub.s32 %s8519_s23, %s11651_s14 }
  0x65   : > { %p54_p7 = scmp.eq.s32.totalorder %s51_s22, 0  ;;  %s6503_s18 = sshll.u32 %s399_s10, 10 }
  0x66   : > { %s6737_s24 = sshll.u32 %s8519_s23, 14  ;;  %s403_s17 = scalar_lea.vmem [#allocation4], %s6503_s18 }
  0x67   : > { %s8772_s25 = scalar_select %p54_p7, %s8511_s21, %s56_s11  }
  0x68   : > { %s8777_s27 = scalar_lea.hbm %s11387_s0, %s6737_s24  ;;  %s413_s19 = sshll.u32 %s403_s17, 4  ;;  %s8779_s19 = int_to_ptr.vmem [resolvable:$true] %s413_s19 }
  0x69   : > { %p8783_p11 = pnand %p7884_p3, %p65_p5  ;;  %s8787_s16 = scalar_lea.sflag [#allocation5], %s399_s10 }
  0x6a   : > { %s8371_s8 = scalar_lea.hbm %s8777_s27, 16384  ;;  %s8376_s18 = scalar_lea.hbm %s11387_s0, 32768 }
  0x6b   : > { %p8372_p9 = scmp.ne.s32.totalorder %s8777_s27, %s8371_s8  ;;  %p8373_p12 = pneg %p8783_p11 }
  0x6c   : > { %p8377_p4 = scmp.lt.u32.totalorder %s8777_s27, %s11387_s0  ;;  %p8378_p2 = scmp.lt.u32.totalorder %s8376_s18, %s8371_s8 }
  0x6d   : > { %p8374_p0 = pnand %p8373_p12, %p8372_p9  ;;  %p8380_p13 = scmp.lt.u32.totalorder %s8371_s8, %s8777_s27 }
  0x6e   : > { %p8379_p8 = por %p8378_p2, %p8377_p4 }
  0x6f   : > { %p8375_p1 = pneg %p8374_p0 }
  0x70   : > { %p8381_p6 = por %p8380_p13, %p8379_p8 }
  0x72   : > { %p8382_p3 = pnand %p8381_p6, %p8375_p1 }
  0x74   : > { %8385 = shalt.err (!%p8382_p3)
}
  0x75   : > { %s8386_s10 = scalar_lea.vmem %s8779_s19, 16384  ;;  %s8530_s15 = smov [#allocation4]  }
  0x76   : > { %p8387_p5 = scmp.ne.s32.totalorder %s8779_s19, %s8386_s10  ;;  %s8391_s17 = sshll.u32 %s8530_s15, 4  ;;  %s8392_s17 = int_to_ptr.vmem [resolvable:$false] %s8391_s17 }
  0x77   : > { %s8393_s11 = scalar_lea.vmem %s8392_s17, 32768  ;;  %p8394_p0 = scmp.lt.s32.totalorder %s8779_s19, %s8392_s17 }
  0x78   : > { %p8389_p7 = pnand %p8387_p5, %p8373_p12  ;;  %p8395_p4 = scmp.lt.s32.totalorder %s8393_s11, %s8386_s10 }
  0x7a   : > { %p8390_p9 = pneg %p8389_p7  ;;  %p8396_p2 = por %p8395_p4, %p8394_p0 }
  0x7c   : > { %p8397_p8 = pnand %p8396_p2, %p8390_p9 }
  0x7e   : > { %8400 = shalt.err (!%p8397_p8)
}
  0x7f   : > { %s8531_s8 = smov 1024   ;;  %p11487_p12 = scmp.ne.s32.totalorder %s11481_s30, 0 }
  0x80   : > { %7873 = dma.hbm_to_vmem [thread:$0]  (!%p8783_p11), %s8777_s27, 16384, %s8779_s19, %s8787_s16, %s8531_s8, %s8531_s8, %s8528_s29  }
  0x81   : > { %425 = sbr.rel (%p11487_p12) target bundleno = 2152 (0x868), region = 60 }
  0x88   : > { %s8819_s22 = sand.u32 1, %s8507_s20   ;;  %p11488_p1 = scmp.ne.s32.totalorder %s11478_s28, 0 }
  0x89   : > { %s6508_s18 = sshll.u32 %s8819_s22, 10  ;;  %s428_s24 = scalar_lea.sflag [#allocation5], %s8819_s22 }
  0x8a   : > { %s8823_s12 = scalar_lea.vmem [#allocation4], %s6508_s18 }
  0x8b   : > { %8482 = dma.done.wait (%p11488_p1), %s428_s24, 16384  }
  0x8c   : > { %8484 = vsyncadd (%p11488_p1), %s428_s24, 4294950912  ;;  %p11489_p11 = scmp.ne.s32.totalorder %s11476_s26, 0 }
  0x8e   : > { %8486 = dma.done.wait (%p11489_p11), [#allocation8], 9216  }
  0x8f   : > { %8488 = vsyncadd (%p11489_p11), [#allocation8], 4294958080 }
  0x90   : > { %8490 = dma.done.wait (%p11489_p11), [#allocation11], 1024  }
  0x91   : > { %8492 = vsyncadd (%p11489_p11), [#allocation11], 4294966272  ;;  %v8532_v1 = vmov 0   ;;  %v8840_v2 = vld [vmem:[#allocation7 + $0x80] sm:$0xff]   ;;  %v8843_v3 = vld [vmem:[#allocation7 + $0x88] sm:$0xff]   ;;  %s6512_s13 = sshll.u32 %s8819_s22, 8 }
  0x92   : > { %1810 = vmatprep.subr.bf16.mxu0 %v8532_v1  ;;  %1521 = vmatprep.subr.bf16.mxu1 %v8532_v1  ;;  %v8847_v4 = vld [vmem:[#allocation7 + $0x90] sm:$0xff]   ;;  %v8851_v5 = vld [vmem:[#allocation7 + $0x98] sm:$0xff]   ;;  %v8855_v6 = vld [vmem:[#allocation7 + $0xa0] sm:$0xff]   ;;  %s9984_s16 = scalar_lea.vmem [#allocation12], %s6512_s13  ;;  %s11611_s24 = sld [smem:[#allocation46_spill]] }
  0x93   : > { %7946 = vset.pattern.permute.xlu0 %v8532_v1  ;;  %1811 = vmatpush1.bf16.msra.mxu0 %v8840_v2  ;;  %v8859_v7 = vld [vmem:[%s8823_s12 + $0x18] sm:$0xff]  ;;  %v8863_v9 = vld [vmem:[#allocation7 + $0xa8] sm:$0xff]   ;;  %v8867_v10 = vld [vmem:[#allocation7 + $0xb0] sm:$0xff]   ;;  %s11614_s28 = sld [smem:[#allocation47_spill]]  ;;  %s11238_s10 = scalar_lea.vmem [#allocation13], %s6512_s13 }
  0x94   : > { %1812 = vmatprep.subr.bf16.mxu0 %v8532_v1  ;;  %v756_v8 = vunpack.c.l.s8.bf16 %v8859_v7  ;;  %v7968_v11 = vld [vmem:[#allocation7] sm:$0xff]   ;;  %v7970_v12 = vld [vmem:[#allocation7 + $0x8] sm:$0xff]   ;;  %v8871_v13 = vld [vmem:[#allocation7 + $0xb8] sm:$0xff]   ;;  %v764_v36 = vunpack.c.h.s8.bf16 %v8859_v7  ;;  %s11636_s13 = sld [smem:[#allocation21_spill]]  ;;  %s11637_s8 = sld [smem:[#allocation48_spill]] }
  0x95   : > { %1522 = vmatpush1.bf16.msra.mxu1 %v7968_v11  ;;  %v7971_v14 = vld [vmem:[#allocation7 + $0x10] sm:$0xff]   ;;  %v8876_v15 = vld [vmem:[#allocation7 + $0xc0] sm:$0xff]   ;;  %v7973_v16 = vld [vmem:[#allocation7 + $0x18] sm:$0xff]   ;;  %s6315_s26 = scalar_lea.sflag [#allocation6], %s8819_s22  ;;  %s8533_s29 = smov [#allocation12]  }
  0x96   : > { %1842 = vmatprep.mubr.bf16.mxu0 %v756_v8  ;;  %1523 = vmatprep.subr.bf16.mxu1 %v8532_v1  ;;  %v8881_v17 = vld [vmem:[#allocation7 + $0xc8] sm:$0xff]   ;;  %v7974_v18 = vld [vmem:[#allocation7 + $0x20] sm:$0xff]   ;;  %v8886_v19 = vld [vmem:[#allocation7 + $0xd0] sm:$0xff]   ;;  %s8405_s27 = sshll.u32 %s8533_s29, 4  ;;  %s8406_s27 = int_to_ptr.vmem [resolvable:$false] %s8405_s27 }
  0x97   : > { %1813 = vmatpush1.bf16.msra.mxu0 %v8843_v3  ;;  %v7976_v20 = vld [vmem:[#allocation7 + $0x28] sm:$0xff]   ;;  %v8891_v21 = vld [vmem:[#allocation7 + $0xd8] sm:$0xff]   ;;  %v7977_v22 = vld [vmem:[#allocation7 + $0x30] sm:$0xff]   ;;  %s8407_s19 = scalar_lea.vmem %s8406_s27, 8192 }
  0x98   : > { %1814 = vmatprep.subr.bf16.mxu0 %v8532_v1  ;;  %v8896_v23 = vld [vmem:[#allocation7 + $0xe0] sm:$0xff]   ;;  %v7979_v24 = vld [vmem:[#allocation7 + $0x38] sm:$0xff]   ;;  %v8901_v25 = vld [vmem:[%s8823_s12 + $0x8] sm:$0xff] }
  0x99   : > { %1524 = vmatpush1.bf16.msra.mxu1 %v7970_v12  ;;  %v8904_v26 = vld [vmem:[#allocation7 + $0xe8] sm:$0xff]   ;;  %v754_v27 = vunpack.c.l.s8.bf16 %v8901_v25  ;;  %v8909_v28 = vld [vmem:[#allocation7 + $0xf0] sm:$0xff]   ;;  %v7980_v29 = vld [vmem:[#allocation7 + $0x40] sm:$0xff]   ;;  %v762_v57 = vunpack.c.h.s8.bf16 %v8901_v25 }
  0x9a   : > { %1525 = vmatprep.subr.bf16.mxu1 %v8532_v1  ;;  %v8914_v30 = vld [vmem:[#allocation7 + $0xf8] sm:$0xff]   ;;  %v7982_v31 = vld [vmem:[#allocation7 + $0x48] sm:$0xff]   ;;  %v627_v32 = vld [vmem:[%s8823_s12 + $0x10] sm:$0xff]  ;;  %s11468_s15 = sshll.u32 %s11636_s13, 12 }
  0x9b   : > { %1815 = vmatpush1.bf16.msra.mxu0 %v8847_v4  ;;  %1553 = vmatprep.mubr.bf16.mxu1 %v754_v27  ;;  %v7983_v33 = vld [vmem:[#allocation7 + $0x50] sm:$0xff]   ;;  %v7963_v34 = vld [vmem:[#allocation7 + $0x100] sm:$0xff]   ;;  %v755_v35 = vunpack.c.l.s8.bf16 %v627_v32  ;;  %v7985_v37 = vld [vmem:[#allocation7 + $0x58] sm:$0xff]   ;;  %v763_v42 = vunpack.c.h.s8.bf16 %v627_v32  ;;  %s11279_s18 = scalar_lea.hbm %s11637_s8, %s11468_s15 }
  0x9c   : > { %1816 = vmatprep.subr.bf16.mxu0 %v8532_v1  ;;  %v7964_v38 = vld [vmem:[#allocation7 + $0x108] sm:$0xff]   ;;  %v636_v39 = vld [vmem:[%s8823_s12 + $0x58] sm:$0xff]  ;;  %v7986_v40 = vld [vmem:[#allocation7 + $0x60] sm:$0xff]  }
  0x9d   : > { %1526 = vmatpush1.bf16.msra.mxu1 %v7971_v14  ;;  %v7965_v41 = vld [vmem:[#allocation7 + $0x110] sm:$0xff]   ;;  %v772_v43 = vunpack.c.l.s8.bf16 %v636_v39  ;;  %v7988_v45 = vld [vmem:[#allocation7 + $0x68] sm:$0xff]   ;;  %v7966_v46 = vld [vmem:[#allocation7 + $0x118] sm:$0xff]   ;;  %v780_v49 = vunpack.c.h.s8.bf16 %v636_v39 }
  0x9e   : > { %1527 = vmatprep.subr.bf16.mxu1 %v8532_v1  ;;  %v635_v44 = vld [vmem:[%s8823_s12 + $0x50] sm:$0xff]  ;;  %v7967_v50 = vld [vmem:[#allocation7 + $0x120] sm:$0xff]   ;;  %v7991_v51 = vld [vmem:[#allocation7 + $0x78] sm:$0xff]  }
  0x9f   : > { %1817 = vmatpush1.bf16.msra.mxu0 %v8851_v5  ;;  %v7989_v47 = vld [vmem:[#allocation7 + $0x70] sm:$0xff]   ;;  %v771_v48 = vunpack.c.l.s8.bf16 %v635_v44  ;;  %v625_v52 = vld [vmem:[%s8823_s12] sm:$0xff]  ;;  %v7969_v53 = vld [vmem:[#allocation7 + $0x128] sm:$0xff]   ;;  %v779_v56 = vunpack.c.h.s8.bf16 %v635_v44 }
  0xa0   : > { %1818 = vmatprep.subr.bf16.mxu0 %v8532_v1  ;;  %v644_v54 = vld [vmem:[%s8823_s12 + $0x98] sm:$0xff]  ;;  %v753_v55 = vunpack.c.l.s8.bf16 %v625_v52  ;;  %v7972_v59 = vld [vmem:[#allocation7 + $0x130] sm:$0xff]   ;;  %v634_v62 = vld [vmem:[%s8823_s12 + $0x48] sm:$0xff]  ;;  %v761_v63 = vunpack.c.h.s8.bf16 %v625_v52 }
  0xa1   : > { %1528 = vmatpush1.bf16.msra.mxu1 %v7973_v16  ;;  %v788_v58 = vunpack.c.l.s8.bf16 %v644_v54  ;;  %v643_v60 = vld [vmem:[%s8823_s12 + $0x90] sm:$0xff]  ;;  %v7975_v61 = vld [vmem:[#allocation7 + $0x138] sm:$0xff]   ;;  %v770_v7 = vunpack.c.l.s8.bf16 %v634_v62  ;;  %v796_v8 = vunpack.c.h.s8.bf16 %v644_v54  ;;  %v7978_v11 = vld [vmem:[#allocation7 + $0x140] sm:$0xff]  }
  0xa2   : > { %1529 = vmatprep.subr.bf16.mxu1 %v8532_v1  ;;  %v787_v0 = vunpack.c.l.s8.bf16 %v643_v60  ;;  %v633_v12 = vld [vmem:[%s8823_s12 + $0x40] sm:$0xff]  ;;  %v652_v14 = vld [vmem:[%s8823_s12 + $0xd8] sm:$0xff]  ;;  %v642_v25 = vld [vmem:[%s8823_s12 + $0x88] sm:$0xff] }
  0xa3   : > { %1819 = vmatpush1.bf16.msra.mxu0 %v8855_v6  ;;  %v769_v16 = vunpack.c.l.s8.bf16 %v633_v12  ;;  %v777_v27 = vunpack.c.h.s8.bf16 %v633_v12  ;;  %v7990_v32 = vld [vmem:[#allocation7 + $0x160] sm:$0xff]   ;;  %v7994_v39 = vld [vmem:[#allocation7 + $0x178] sm:$0xff]  }
  0xa4   : > { %1820 = vmatprep.subr.bf16.mxu0 %v8532_v1  ;;  %v649_v44 = vld [vmem:[%s8823_s12 + $0xc0] sm:$0xff] }
  0xa5   : > { %1530 = vmatpush1.bf16.msra.mxu1 %v7974_v18  ;;  %v778_v18 = vunpack.c.h.s8.bf16 %v634_v62  ;;  %v684_v62 = vld [vmem:[%s8823_s12 + $0x1d8] sm:$0xff] }
  0xa6   : > { %1531 = vmatprep.subr.bf16.mxu1 %v8532_v1 }
  0xa7   : > { %1821 = vmatpush1.bf16.msra.mxu0 %v8863_v9 }
  0xa8   : > { %1822 = vmatprep.subr.bf16.mxu0 %v8532_v1 }
  0xa9   : > { %1532 = vmatpush1.bf16.msra.mxu1 %v7976_v20  ;;  %v804_v20 = vunpack.c.l.s8.bf16 %v652_v14 }
  0xaa   : > { %1533 = vmatprep.subr.bf16.mxu1 %v8532_v1 }
  0xab   : > { %1823 = vmatpush1.bf16.msra.mxu0 %v8867_v10 }
  0xac   : > { %1824 = vmatprep.subr.bf16.mxu0 %v8532_v1 }
  0xad   : > { %1534 = vmatpush1.bf16.msra.mxu1 %v7977_v22  ;;  %v7984_v22 = vld [vmem:[#allocation7 + $0x150] sm:$0xff]  }
  0xae   : > { %1535 = vmatprep.subr.bf16.mxu1 %v8532_v1 }
  0xaf   : > { %1825 = vmatpush1.bf16.msra.mxu0 %v8871_v13 }
  0xb0   : > { %1826 = vmatprep.subr.bf16.mxu0 %v8532_v1 }
  0xb1   : > { %1536 = vmatpush1.bf16.msra.mxu1 %v7979_v24  ;;  %v7987_v24 = vld [vmem:[#allocation7 + $0x158] sm:$0xff]  }
  0xb2   : > { %1537 = vmatprep.subr.bf16.mxu1 %v8532_v1 }
  0xb3   : > { %1827 = vmatpush1.bf16.msra.mxu0 %v8876_v15 }
  0xb4   : > { %1828 = vmatprep.subr.bf16.mxu0 %v8532_v1 }
  0xb5   : > { %1538 = vmatpush1.bf16.msra.mxu1 %v7980_v29  ;;  %v786_v29 = vunpack.c.l.s8.bf16 %v642_v25 }
  0xb6   : > { %1539 = vmatprep.subr.bf16.mxu1 %v8532_v1 }
  0xb7   : > { %1829 = vmatpush1.bf16.msra.mxu0 %v8881_v17 }
  0xb8   : > { %1830 = vmatprep.subr.bf16.mxu0 %v8532_v1 }
  0xb9   : > { %1540 = vmatpush1.bf16.msra.mxu1 %v7982_v31  ;;  %v812_v31 = vunpack.c.h.s8.bf16 %v652_v14 }
  0xba   : > { %1541 = vmatprep.subr.bf16.mxu1 %v8532_v1 }
  0xbb   : > { %1831 = vmatpush1.bf16.msra.mxu0 %v8886_v19 }
  0xbc   : > { %1832 = vmatprep.subr.bf16.mxu0 %v8532_v1 }
  0xbd   : > { %1542 = vmatpush1.bf16.msra.mxu1 %v7983_v33  ;;  %v641_v33 = vld [vmem:[%s8823_s12 + $0x80] sm:$0xff] }
  0xbe   : > { %1543 = vmatprep.subr.bf16.mxu1 %v8532_v1 }
  0xbf   : > { %1833 = vmatpush1.bf16.msra.mxu0 %v8891_v21 }
  0xc0   : > { %1834 = vmatprep.subr.bf16.mxu0 %v8532_v1 }
  0xc1   : > { %1544 = vmatpush1.bf16.msra.mxu1 %v7985_v37 }
  0xc2   : > { %1545 = vmatprep.subr.bf16.mxu1 %v8532_v1 }
  0xc3   : > { %1835 = vmatpush1.bf16.msra.mxu0 %v8896_v23 }
  0xc4   : > { %1836 = vmatprep.subr.bf16.mxu0 %v8532_v1 }
  0xc5   : > { %1546 = vmatpush1.bf16.msra.mxu1 %v7986_v40  ;;  %v650_v40 = vld [vmem:[%s8823_s12 + $0xc8] sm:$0xff] }
  0xc6   : > { %1547 = vmatprep.subr.bf16.mxu1 %v8532_v1 }
  0xc7   : > { %1837 = vmatpush1.bf16.msra.mxu0 %v8904_v26 }
  0xc8   : > { %1838 = vmatprep.subr.bf16.mxu0 %v8532_v1 }
  0xc9   : > { %1548 = vmatpush1.bf16.msra.mxu1 %v7988_v45  ;;  %v801_v45 = vunpack.c.l.s8.bf16 %v649_v44 }
  0xca   : > { %1549 = vmatprep.subr.bf16.mxu1 %v8532_v1 }
  0xcb   : > { %1839 = vmatpush1.bf16.msra.mxu0 %v8909_v28 }
  0xcc   : > { %1840 = vmatprep.subr.bf16.mxu0 %v8532_v1 }
  0xcd   : > { %1550 = vmatpush1.bf16.msra.mxu1 %v7989_v47  ;;  %v810_v47 = vunpack.c.h.s8.bf16 %v650_v40 }
  0xce   : > { %1551 = vmatprep.subr.bf16.mxu1 %v8532_v1 }
  0xcf   : > { %1841 = vmatpush1.bf16.msra.mxu0 %v8914_v30 }
  0xd0   : > { %2099 = vmatprep.subr.bf16.mxu0 %v8532_v1 }
  0xd1   : > { %1552 = vmatpush1.bf16.msra.mxu1 %v7991_v51 }
  0xd2   : > { %1843 = vmatmul.mubr.bf16.vlgmr.msra.gmra.mrb[0].mxu0 %v755_v35  ;;  %7490 = vmatprep.subr.bf16.mxu1 %v8532_v1  ;;  %v785_v35 = vunpack.c.l.s8.bf16 %v641_v33 }
  0xd3   : > { %2100 = vmatpush1.bf16.msra.mxu0 %v7963_v34  ;;  %1850 = vmatprep.mubr.bf16.mxu0 %v764_v36  ;;  %v660_v34 = vld [vmem:[%s8823_s12 + $0x118] sm:$0xff]  ;;  %v794_v36 = vunpack.c.h.s8.bf16 %v642_v25  ;;  %v629_v25 = vld [vmem:[%s8823_s12 + $0x20] sm:$0xff] }
  0xd4   : > { %2101 = vmatprep.subr.bf16.mxu0 %v8532_v1  ;;  %1554 = vmatmul.mubr.bf16.vlgmr.msra.gmra.mrb[0].mxu1 %v753_v55  ;;  %v820_v37 = vunpack.c.l.s8.bf16 %v660_v34 }
  0xd5   : > { %1561 = vmatprep.mubr.bf16.mxu1 %v762_v57  ;;  %7506 = vmatpush1.bf16.msra.mxu1 %v8840_v2  ;;  %v7981_v2 = vld [vmem:[#allocation7 + $0x148] sm:$0xff]  }
  0xd6   : > { %7491 = vmatprep.subr.bf16.mxu1 %v8532_v1  ;;  %v666_v57 = vld [vmem:[%s8823_s12 + $0x148] sm:$0xff] }
  0xd7   : > { %2102 = vmatpush1.bf16.msra.mxu0 %v7964_v38  ;;  %v7993_v38 = vld [vmem:[#allocation7 + $0x170] sm:$0xff]  }
  0xd8   : > { %2103 = vmatprep.subr.bf16.mxu0 %v8532_v1 }
  0xd9   : > { %7507 = vmatpush1.bf16.msra.mxu1 %v8843_v3  ;;  %v795_v3 = vunpack.c.h.s8.bf16 %v643_v60  ;;  %v834_v60 = vunpack.c.l.s8.bf16 %v666_v57 }
  0xda   : > { %1851 = vmatmul.mubr.bf16.gmra.mrb[4].mxu0 %v763_v42  ;;  %7492 = vmatprep.subr.bf16.mxu1 %v8532_v1  ;;  %v802_v42 = vunpack.c.l.s8.bf16 %v650_v40  ;;  %v7998_v40 = vld [vmem:[#allocation7 + $0x198] sm:$0xff]  }
  0xdb   : > { %1858 = vmatprep.mubr.bf16.mxu0 %v772_v43  ;;  %2104 = vmatpush1.bf16.msra.mxu0 %v7965_v41  ;;  %v793_v41 = vunpack.c.h.s8.bf16 %v641_v33  ;;  %v828_v43 = vunpack.c.h.s8.bf16 %v660_v34  ;;  %v7996_v34 = vld [vmem:[#allocation7 + $0x188] sm:$0xff]  }
  0xdc   : > { %2105 = vmatprep.subr.bf16.mxu0 %v8532_v1  ;;  %1562 = vmatmul.mubr.bf16.gmra.mrb[4].mxu1 %v761_v63 }
  0xdd   : > { %1569 = vmatprep.mubr.bf16.mxu1 %v770_v7  ;;  %7508 = vmatpush1.bf16.msra.mxu1 %v8847_v4  ;;  %v651_v4 = vld [vmem:[%s8823_s12 + $0xd0] sm:$0xff]  ;;  %v868_v7 = vunpack.c.l.s8.bf16 %v684_v62 }
  0xde   : > { %7493 = vmatprep.subr.bf16.mxu1 %v8532_v1 }
  0xdf   : > { %2106 = vmatpush1.bf16.msra.mxu0 %v7966_v46 }
  0xe0   : > { %2107 = vmatprep.subr.bf16.mxu0 %v8532_v1 }
  0xe1   : > { %7509 = vmatpush1.bf16.msra.mxu1 %v8851_v5  ;;  %v803_v5 = vunpack.c.l.s8.bf16 %v651_v4 }
  0xe2   : > { %1859 = vmatmul.mubr.bf16.gmra.mrb[8].mxu0 %v771_v48  ;;  %7494 = vmatprep.subr.bf16.mxu1 %v8532_v1 }
  0xe3   : > { %1866 = vmatprep.mubr.bf16.mxu0 %v780_v49  ;;  %2108 = vmatpush1.bf16.msra.mxu0 %v7967_v50  ;;  %v658_v49 = vld [vmem:[%s8823_s12 + $0x108] sm:$0xff] }
  0xe4   : > { %2109 = vmatprep.subr.bf16.mxu0 %v8532_v1  ;;  %1570 = vmatmul.mubr.bf16.gmra.mrb[8].mxu1 %v769_v16  ;;  %v818_v51 = vunpack.c.l.s8.bf16 %v658_v49  ;;  %v826_v55 = vunpack.c.h.s8.bf16 %v658_v49  ;;  %v876_v16 = vunpack.c.h.s8.bf16 %v684_v62  ;;  %v8005_v62 = vld [vmem:[#allocation7 + $0x1d0] sm:$0xff]  }
  0xe5   : > { %1577 = vmatprep.mubr.bf16.mxu1 %v778_v18  ;;  %7510 = vmatpush1.bf16.msra.mxu1 %v8855_v6  ;;  %v7992_v6 = vld [vmem:[#allocation7 + $0x168] sm:$0xff]  }
  0xe6   : > { %7495 = vmatprep.subr.bf16.mxu1 %v8532_v1  ;;  %v630_v18 = vld [vmem:[%s8823_s12 + $0x28] sm:$0xff] }
  0xe7   : > { %2110 = vmatpush1.bf16.msra.mxu0 %v7969_v53  ;;  %v676_v53 = vld [vmem:[%s8823_s12 + $0x198] sm:$0xff]  ;;  %v766_v33 = vunpack.c.h.s8.bf16 %v630_v18 }
  0xe8   : > { %2111 = vmatprep.subr.bf16.mxu0 %v8532_v1 }
  0xe9   : > { %7511 = vmatpush1.bf16.msra.mxu1 %v8863_v9  ;;  %v811_v9 = vunpack.c.h.s8.bf16 %v651_v4 }
  0xea   : > { %1867 = vmatmul.mubr.bf16.gmra.mrb[12].mxu0 %v779_v56  ;;  %7496 = vmatprep.subr.bf16.mxu1 %v8532_v1  ;;  %v852_v56 = vunpack.c.l.s8.bf16 %v676_v53 }
  0xeb   : > { %1874 = vmatprep.mubr.bf16.mxu0 %v788_v58  ;;  %2112 = vmatpush1.bf16.msra.mxu0 %v7972_v59 }
  0xec   : > { %2113 = vmatprep.subr.bf16.mxu0 %v8532_v1  ;;  %1578 = vmatmul.mubr.bf16.gmra.mrb[12].mxu1 %v777_v27  ;;  %v682_v27 = vld [vmem:[%s8823_s12 + $0x1c8] sm:$0xff] }
  0xed   : > { %1585 = vmatprep.mubr.bf16.mxu1 %v786_v29  ;;  %7512 = vmatpush1.bf16.msra.mxu1 %v8867_v10  ;;  %v659_v10 = vld [vmem:[%s8823_s12 + $0x110] sm:$0xff]  ;;  %v757_v29 = vunpack.c.l.s8.bf16 %v629_v25 }
  0xee   : > { %7497 = vmatprep.subr.bf16.mxu1 %v8532_v1  ;;  %v827_v46 = vunpack.c.h.s8.bf16 %v659_v10 }
  0xef   : > { %2114 = vmatpush1.bf16.msra.mxu0 %v7975_v61  ;;  %v665_v61 = vld [vmem:[%s8823_s12 + $0x140] sm:$0xff] }
  0xf0   : > { %2115 = vmatprep.subr.bf16.mxu0 %v8532_v1  ;;  %v841_v12 = vunpack.c.h.s8.bf16 %v665_v61 }
  0xf1   : > { %7513 = vmatpush1.bf16.msra.mxu1 %v8871_v13  ;;  %v819_v13 = vunpack.c.l.s8.bf16 %v659_v10  ;;  %v7997_v10 = vld [vmem:[#allocation7 + $0x190] sm:$0xff]  }
  0xf2   : > { %1875 = vmatmul.mubr.bf16.gmra.mrb[16].mxu0 %v787_v0  ;;  %7498 = vmatprep.subr.bf16.mxu1 %v8532_v1  ;;  %v842_v0 = vunpack.c.h.s8.bf16 %v666_v57  ;;  %v8004_v57 = vld [vmem:[#allocation7 + $0x1c8] sm:$0xff]  }
  0xf3   : > { %1882 = vmatprep.mubr.bf16.mxu0 %v796_v8  ;;  %2116 = vmatpush1.bf16.msra.mxu0 %v7978_v11  ;;  %v683_v8 = vld [vmem:[%s8823_s12 + $0x1d0] sm:$0xff]  ;;  %v674_v11 = vld [vmem:[%s8823_s12 + $0x188] sm:$0xff] }
  0xf4   : > { %2117 = vmatprep.subr.bf16.mxu0 %v8532_v1  ;;  %1586 = vmatmul.mubr.bf16.gmra.mrb[16].mxu1 %v785_v35  ;;  %v850_v14 = vunpack.c.l.s8.bf16 %v674_v11  ;;  %v858_v4 = vunpack.c.h.s8.bf16 %v674_v11  ;;  %v638_v35 = vld [vmem:[%s8823_s12 + $0x68] sm:$0xff] }
  0xf5   : > { %1593 = vmatprep.mubr.bf16.mxu1 %v794_v36  ;;  %7514 = vmatpush1.bf16.msra.mxu1 %v8876_v15  ;;  %v668_v15 = vld [vmem:[%s8823_s12 + $0x158] sm:$0xff]  ;;  %v765_v36 = vunpack.c.h.s8.bf16 %v629_v25 }
  0xf6   : > { %7499 = vmatprep.subr.bf16.mxu1 %v8532_v1  ;;  %v836_v48 = vunpack.c.l.s8.bf16 %v668_v15  ;;  %v844_v52 = vunpack.c.h.s8.bf16 %v668_v15  ;;  %v7999_v15 = vld [vmem:[#allocation7 + $0x1a0] sm:$0xff]  }
  0xf7   : > { %2118 = vmatpush1.bf16.msra.mxu0 %v7981_v2  ;;  %v867_v2 = vunpack.c.l.s8.bf16 %v683_v8 }
  0xf8   : > { %2119 = vmatprep.subr.bf16.mxu0 %v8532_v1 }
  0xf9   : > { %7515 = vmatpush1.bf16.msra.mxu1 %v8881_v17  ;;  %v667_v17 = vld [vmem:[%s8823_s12 + $0x150] sm:$0xff] }
  0xfa   : > { %1883 = vmatmul.mubr.bf16.gmra.mrb[20].mxu0 %v795_v3  ;;  %7500 = vmatprep.subr.bf16.mxu1 %v8532_v1  ;;  %v835_v50 = vunpack.c.l.s8.bf16 %v667_v17  ;;  %v843_v54 = vunpack.c.h.s8.bf16 %v667_v17  ;;  %v673_v3 = vld [vmem:[%s8823_s12 + $0x180] sm:$0xff] }
  0xfb   : > { %1890 = vmatprep.mubr.bf16.mxu0 %v804_v20  ;;  %2120 = vmatpush1.bf16.msra.mxu0 %v7984_v22  ;;  %v849_v20 = vunpack.c.l.s8.bf16 %v673_v3  ;;  %v875_v22 = vunpack.c.h.s8.bf16 %v683_v8 }
  0xfc   : > { %2121 = vmatprep.subr.bf16.mxu0 %v8532_v1  ;;  %1594 = vmatmul.mubr.bf16.gmra.mrb[20].mxu1 %v793_v41  ;;  %v690_v41 = vld [vmem:[%s8823_s12 + $0x208] sm:$0xff] }
  0xfd   : > { %1601 = vmatprep.mubr.bf16.mxu1 %v802_v42  ;;  %7516 = vmatpush1.bf16.msra.mxu1 %v8886_v19  ;;  %v809_v19 = vunpack.c.h.s8.bf16 %v649_v44  ;;  %v782_v44 = vunpack.c.h.s8.bf16 %v638_v35  ;;  %v890_v49 = vunpack.c.h.s8.bf16 %v690_v41 }
  0xfe   : > { %7501 = vmatprep.subr.bf16.mxu1 %v8532_v1 }
  0xff   : > { %2122 = vmatpush1.bf16.msra.mxu0 %v7987_v24  ;;  %v758_v24 = vunpack.c.l.s8.bf16 %v630_v18 }
 0x100   : > { %2123 = vmatprep.subr.bf16.mxu0 %v8532_v1 }
 0x101   : > { %7517 = vmatpush1.bf16.msra.mxu1 %v8891_v21  ;;  %v657_v21 = vld [vmem:[%s8823_s12 + $0x100] sm:$0xff] }
 0x102   : > { %1891 = vmatmul.mubr.bf16.gmra.mrb[24].mxu0 %v803_v5  ;;  %7502 = vmatprep.subr.bf16.mxu1 %v8532_v1  ;;  %v825_v58 = vunpack.c.h.s8.bf16 %v657_v21  ;;  %v857_v5 = vunpack.c.h.s8.bf16 %v673_v3 }
 0x103   : > { %1898 = vmatprep.mubr.bf16.mxu0 %v812_v31  ;;  %2124 = vmatpush1.bf16.msra.mxu0 %v7990_v32  ;;  %v866_v31 = vunpack.c.l.s8.bf16 %v682_v27  ;;  %v7995_v32 = vld [vmem:[#allocation7 + $0x180] sm:$0xff]  }
 0x104   : > { %2125 = vmatprep.subr.bf16.mxu0 %v8532_v1  ;;  %1602 = vmatmul.mubr.bf16.gmra.mrb[24].mxu1 %v801_v45  ;;  %v689_v45 = vld [vmem:[%s8823_s12 + $0x200] sm:$0xff] }
 0x105   : > { %1609 = vmatprep.mubr.bf16.mxu1 %v810_v47  ;;  %7518 = vmatpush1.bf16.msra.mxu1 %v8896_v23  ;;  %v817_v23 = vunpack.c.l.s8.bf16 %v657_v21  ;;  %v646_v47 = vld [vmem:[%s8823_s12 + $0xa8] sm:$0xff] }
 0x106   : > { %7503 = vmatprep.subr.bf16.mxu1 %v8532_v1  ;;  %v698_v21 = vld [vmem:[%s8823_s12 + $0x248] sm:$0xff] }
 0x107   : > { %2126 = vmatpush1.bf16.msra.mxu0 %v7992_v6  ;;  %v681_v6 = vld [vmem:[%s8823_s12 + $0x1c0] sm:$0xff] }
 0x108   : > { %2127 = vmatprep.subr.bf16.mxu0 %v8532_v1 }
 0x109   : > { %7519 = vmatpush1.bf16.msra.mxu1 %v8904_v26  ;;  %v675_v26 = vld [vmem:[%s8823_s12 + $0x190] sm:$0xff] }
 0x10a   : > { %1899 = vmatmul.mubr.bf16.gmra.mrb[28].mxu0 %v811_v9  ;;  %7504 = vmatprep.subr.bf16.mxu1 %v8532_v1  ;;  %v851_v59 = vunpack.c.l.s8.bf16 %v675_v26  ;;  %v859_v63 = vunpack.c.h.s8.bf16 %v675_v26  ;;  %v865_v9 = vunpack.c.l.s8.bf16 %v681_v6  ;;  %v697_v26 = vld [vmem:[%s8823_s12 + $0x240] sm:$0xff] }
 0x10b   : > { %1906 = vmatprep.mubr.bf16.mxu0 %v820_v37  ;;  %2128 = vmatpush1.bf16.msra.mxu0 %v7993_v38  ;;  %v874_v37 = vunpack.c.h.s8.bf16 %v682_v27  ;;  %v774_v38 = vunpack.c.l.s8.bf16 %v638_v35 }
 0x10c   : > { %2129 = vmatprep.subr.bf16.mxu0 %v8532_v1  ;;  %1610 = vmatmul.mubr.bf16.gmra.mrb[28].mxu1 %v809_v19  ;;  %v790_v19 = vunpack.c.l.s8.bf16 %v646_v47 }
 0x10d   : > { %1617 = vmatprep.mubr.bf16.mxu1 %v818_v51  ;;  %7520 = vmatpush1.bf16.msra.mxu1 %v8909_v28  ;;  %v860_v28 = vunpack.c.h.s8.bf16 %v676_v53  ;;  %v645_v51 = vld [vmem:[%s8823_s12 + $0xa0] sm:$0xff]  ;;  %v889_v53 = vunpack.c.h.s8.bf16 %v689_v45 }
 0x10e   : > { %7505 = vmatprep.subr.bf16.mxu1 %v8532_v1 }
 0x10f   : > { %2130 = vmatpush1.bf16.msra.mxu0 %v7994_v39  ;;  %v637_v39 = vld [vmem:[%s8823_s12 + $0x60] sm:$0xff] }
 0x110   : > { %2388 = vmatprep.subr.bf16.mxu0 %v8532_v1  ;;  %v773_v42 = vunpack.c.l.s8.bf16 %v637_v39  ;;  %v781_v17 = vunpack.c.h.s8.bf16 %v637_v39 }
 0x111   : > { %7521 = vmatpush1.bf16.msra.mxu1 %v8914_v30  ;;  %v833_v30 = vunpack.c.l.s8.bf16 %v665_v61 }
 0x112   : > { %1907 = vmatmul.mubr.bf16.gmra.mrb[32].mxu0 %v819_v13  ;;  %v873_v13 = vunpack.c.h.s8.bf16 %v681_v6 }
 0x113   : > { %1914 = vmatprep.mubr.bf16.mxu0 %v828_v43  ;;  %v882_v43 = vunpack.c.l.s8.bf16 %v690_v41  ;;  %v8008_v41 = vld [vmem:[#allocation7 + $0x1e8] sm:$0xff]  }
 0x114   : > { %1618 = vmatmul.mubr.bf16.gmra.mrb[32].mxu1 %v817_v23  ;;  %v789_v23 = vunpack.c.l.s8.bf16 %v645_v51 }
 0x115   : > { %1625 = vmatprep.mubr.bf16.mxu1 %v826_v55  ;;  %v798_v55 = vunpack.c.h.s8.bf16 %v646_v47 }
 0x11a   : > { %1915 = vmatmul.mubr.bf16.gmra.mrb[36].mxu0 %v827_v46  ;;  %v8000_v46 = vld [vmem:[#allocation7 + $0x1a8] sm:$0xff]  }
 0x11b   : > { %1922 = vmatprep.mubr.bf16.mxu0 %v836_v48  ;;  %v881_v48 = vunpack.c.l.s8.bf16 %v689_v45  ;;  %v677_v45 = vld [vmem:[%s8823_s12 + $0x1a0] sm:$0xff] }
 0x11c   : > { %1626 = vmatmul.mubr.bf16.gmra.mrb[36].mxu1 %v825_v58  ;;  %v654_v58 = vld [vmem:[%s8823_s12 + $0xe8] sm:$0xff] }
 0x11d   : > { %1633 = vmatprep.mubr.bf16.mxu1 %v834_v60  ;;  %v797_v60 = vunpack.c.h.s8.bf16 %v645_v51  ;;  %v806_v61 = vunpack.c.l.s8.bf16 %v654_v58  ;;  %v814_v11 = vunpack.c.h.s8.bf16 %v654_v58  ;;  %v686_v51 = vld [vmem:[%s8823_s12 + $0x1e8] sm:$0xff] }
 0x11e   : > { %v878_v58 = vunpack.c.h.s8.bf16 %v686_v51 }
 0x122   : > { %1923 = vmatmul.mubr.bf16.gmra.mrb[40].mxu0 %v835_v50  ;;  %v8001_v50 = vld [vmem:[#allocation7 + $0x1b0] sm:$0xff]  }
 0x123   : > { %1930 = vmatprep.mubr.bf16.mxu0 %v844_v52  ;;  %v8002_v52 = vld [vmem:[#allocation7 + $0x1b8] sm:$0xff]  }
 0x124   : > { %1634 = vmatmul.mubr.bf16.gmra.mrb[40].mxu1 %v833_v30  ;;  %v653_v30 = vld [vmem:[%s8823_s12 + $0xe0] sm:$0xff] }
 0x125   : > { %1641 = vmatprep.mubr.bf16.mxu1 %v842_v0  ;;  %v905_v0 = vunpack.c.h.s8.bf16 %v697_v26  ;;  %v813_v3 = vunpack.c.h.s8.bf16 %v653_v30 }
 0x12a   : > { %1931 = vmatmul.mubr.bf16.gmra.mrb[44].mxu0 %v843_v54  ;;  %v898_v54 = vunpack.c.l.s8.bf16 %v698_v21 }
 0x12b   : > { %1938 = vmatprep.mubr.bf16.mxu0 %v852_v56  ;;  %v8003_v56 = vld [vmem:[#allocation7 + $0x1c0] sm:$0xff]  }
 0x12c   : > { %1642 = vmatmul.mubr.bf16.gmra.mrb[44].mxu1 %v841_v12  ;;  %v705_v12 = vld [vmem:[%s8823_s12 + $0x280] sm:$0xff] }
 0x12d   : > { %1649 = vmatprep.mubr.bf16.mxu1 %v850_v14  ;;  %v662_v14 = vld [vmem:[%s8823_s12 + $0x128] sm:$0xff] }
 0x132   : > { %1939 = vmatmul.mubr.bf16.gmra.mrb[48].mxu0 %v851_v59  ;;  %v897_v59 = vunpack.c.l.s8.bf16 %v697_v26 }
 0x133   : > { %1946 = vmatprep.mubr.bf16.mxu0 %v860_v28  ;;  %v906_v28 = vunpack.c.h.s8.bf16 %v698_v21  ;;  %v861_v21 = vunpack.c.h.s8.bf16 %v677_v45 }
 0x134   : > { %1650 = vmatmul.mubr.bf16.gmra.mrb[48].mxu1 %v849_v20  ;;  %v822_v20 = vunpack.c.l.s8.bf16 %v662_v14 }
 0x135   : > { %1657 = vmatprep.mubr.bf16.mxu1 %v858_v4  ;;  %v714_v4 = vld [vmem:[%s8823_s12 + $0x2c8] sm:$0xff] }
 0x136   : > { %v930_v27 = vunpack.c.l.s8.bf16 %v714_v4 }
 0x13a   : > { %1947 = vmatmul.mubr.bf16.gmra.mrb[52].mxu0 %v859_v63  ;;  %v706_v63 = vld [vmem:[%s8823_s12 + $0x288] sm:$0xff] }
 0x13b   : > { %1954 = vmatprep.mubr.bf16.mxu0 %v868_v7  ;;  %v805_v7 = vunpack.c.l.s8.bf16 %v653_v30  ;;  %v914_v8 = vunpack.c.l.s8.bf16 %v706_v63  ;;  %v922_v18 = vunpack.c.h.s8.bf16 %v706_v63  ;;  %v693_v63 = vld [vmem:[%s8823_s12 + $0x220] sm:$0xff] }
 0x13c   : > { %1658 = vmatmul.mubr.bf16.gmra.mrb[52].mxu1 %v857_v5  ;;  %v830_v5 = vunpack.c.h.s8.bf16 %v662_v14  ;;  %v702_v14 = vld [vmem:[%s8823_s12 + $0x268] sm:$0xff] }
 0x13d   : > { %1665 = vmatprep.mubr.bf16.mxu1 %v866_v31  ;;  %v8007_v31 = vld [vmem:[#allocation7 + $0x1e0] sm:$0xff]  }
 0x142   : > { %1955 = vmatmul.mubr.bf16.gmra.mrb[56].mxu0 %v867_v2  ;;  %v8006_v2 = vld [vmem:[#allocation7 + $0x1d8] sm:$0xff]  }
 0x143   : > { %1962 = vmatprep.mubr.bf16.mxu0 %v876_v16  ;;  %v913_v16 = vunpack.c.l.s8.bf16 %v705_v12 }
 0x144   : > { %1666 = vmatmul.mubr.bf16.gmra.mrb[56].mxu1 %v865_v9  ;;  %v669_v9 = vld [vmem:[%s8823_s12 + $0x160] sm:$0xff] }
 0x145   : > { %1673 = vmatprep.mubr.bf16.mxu1 %v874_v37 }
 0x14a   : > { %1963 = vmatmul.mubr.bf16.gmra.mrb[60].mxu0 %v875_v22  ;;  %v661_v22 = vld [vmem:[%s8823_s12 + $0x120] sm:$0xff] }
 0x14b   : > { %2131 = vmatprep.mubr.bf16.mxu0 %v758_v24  ;;  %v921_v24 = vunpack.c.h.s8.bf16 %v705_v12  ;;  %v821_v25 = vunpack.c.l.s8.bf16 %v661_v22  ;;  %v829_v6 = vunpack.c.h.s8.bf16 %v661_v22  ;;  %v701_v22 = vld [vmem:[%s8823_s12 + $0x260] sm:$0xff] }
 0x14c   : > { %1674 = vmatmul.mubr.bf16.gmra.mrb[60].mxu1 %v873_v13  ;;  %v678_v13 = vld [vmem:[%s8823_s12 + $0x1a8] sm:$0xff] }
 0x14d   : > { %1681 = vmatprep.mubr.bf16.mxu1 %v882_v43  ;;  %v845_v43 = vunpack.c.h.s8.bf16 %v669_v9 }
 0x152   : > { %2132 = vmatmul.mubr.bf16.vlgmr.msra.gmra.mrb[0].mxu0 %v757_v29  ;;  %v713_v29 = vld [vmem:[%s8823_s12 + $0x2c0] sm:$0xff] }
 0x153   : > { %2389 = vmatpush1.bf16.msra.mxu0 %v7995_v32  ;;  %2139 = vmatprep.mubr.bf16.mxu0 %v766_v33  ;;  %v670_v32 = vld [vmem:[%s8823_s12 + $0x168] sm:$0xff]  ;;  %v929_v33 = vunpack.c.l.s8.bf16 %v713_v29  ;;  %v937_v37 = vunpack.c.h.s8.bf16 %v713_v29  ;;  %v691_v29 = vld [vmem:[%s8823_s12 + $0x210] sm:$0xff] }
 0x154   : > { %2390 = vmatprep.subr.bf16.mxu0 %v8532_v1  ;;  %1682 = vmatmul.mubr.bf16.gmra.mrb[64].mxu1 %v881_v48  ;;  %v838_v35 = vunpack.c.l.s8.bf16 %v670_v32  ;;  %v846_v39 = vunpack.c.h.s8.bf16 %v670_v32  ;;  %v853_v48 = vunpack.c.l.s8.bf16 %v677_v45  ;;  %v883_v32 = vunpack.c.l.s8.bf16 %v691_v29 }
 0x155   : > { %1689 = vmatprep.mubr.bf16.mxu1 %v890_v49  ;;  %v862_v49 = vunpack.c.h.s8.bf16 %v678_v13 }
 0x157   : > { %2391 = vmatpush1.bf16.msra.mxu0 %v7996_v34  ;;  %v938_v34 = vunpack.c.h.s8.bf16 %v714_v4  ;;  %v692_v4 = vld [vmem:[%s8823_s12 + $0x218] sm:$0xff] }
 0x158   : > { %2392 = vmatprep.subr.bf16.mxu0 %v8532_v1 }
 0x15a   : > { %2140 = vmatmul.mubr.bf16.gmra.mrb[4].mxu0 %v765_v36  ;;  %v722_v36 = vld [vmem:[%s8823_s12 + $0x308] sm:$0xff] }
 0x15b   : > { %2147 = vmatprep.mubr.bf16.mxu0 %v774_v38  ;;  %2393 = vmatpush1.bf16.msra.mxu0 %v7997_v10  ;;  %v837_v38 = vunpack.c.l.s8.bf16 %v669_v9  ;;  %v946_v10 = vunpack.c.l.s8.bf16 %v722_v36  ;;  %v700_v9 = vld [vmem:[%s8823_s12 + $0x258] sm:$0xff] }
 0x15c   : > { %2394 = vmatprep.subr.bf16.mxu0 %v8532_v1  ;;  %1690 = vmatmul.mubr.bf16.gmra.mrb[68].mxu1 %v889_v53 }
 0x15d   : > { %1697 = vmatprep.mubr.bf16.mxu1 %v898_v54  ;;  %v685_v54 = vld [vmem:[%s8823_s12 + $0x1e0] sm:$0xff] }
 0x15e   : > { %v869_v26 = vunpack.c.l.s8.bf16 %v685_v54 }
 0x15f   : > { %2395 = vmatpush1.bf16.msra.mxu0 %v7998_v40  ;;  %v721_v40 = vld [vmem:[%s8823_s12 + $0x300] sm:$0xff] }
 0x160   : > { %2396 = vmatprep.subr.bf16.mxu0 %v8532_v1  ;;  %v953_v47 = vunpack.c.h.s8.bf16 %v721_v40 }
 0x162   : > { %2148 = vmatmul.mubr.bf16.gmra.mrb[8].mxu0 %v773_v42  ;;  %v945_v42 = vunpack.c.l.s8.bf16 %v721_v40  ;;  %v718_v40 = vld [vmem:[%s8823_s12 + $0x2e8] sm:$0xff] }
 0x163   : > { %2155 = vmatprep.mubr.bf16.mxu0 %v782_v44  ;;  %2397 = vmatpush1.bf16.msra.mxu0 %v7999_v15  ;;  %v954_v44 = vunpack.c.h.s8.bf16 %v722_v36  ;;  %v854_v15 = vunpack.c.l.s8.bf16 %v678_v13  ;;  %v891_v36 = vunpack.c.h.s8.bf16 %v691_v29  ;;  %v742_v29 = vld [vmem:[%s8823_s12 + $0x3a8] sm:$0xff] }
 0x164   : > { %2398 = vmatprep.subr.bf16.mxu0 %v8532_v1  ;;  %1698 = vmatmul.mubr.bf16.gmra.mrb[72].mxu1 %v897_v59  ;;  %v8010_v59 = vld [vmem:[#allocation7 + $0x1f8] sm:$0xff]  }
 0x165   : > { %1705 = vmatprep.mubr.bf16.mxu1 %v906_v28 }
 0x167   : > { %2399 = vmatpush1.bf16.msra.mxu0 %v8000_v46  ;;  %v730_v46 = vld [vmem:[%s8823_s12 + $0x348] sm:$0xff] }
 0x168   : > { %2400 = vmatprep.subr.bf16.mxu0 %v8532_v1  ;;  %v970_v53 = vunpack.c.h.s8.bf16 %v730_v46 }
 0x16a   : > { %2156 = vmatmul.mubr.bf16.gmra.mrb[12].mxu0 %v781_v17  ;;  %v962_v17 = vunpack.c.l.s8.bf16 %v730_v46 }
 0x16b   : > { %2163 = vmatprep.mubr.bf16.mxu0 %v790_v19  ;;  %2401 = vmatpush1.bf16.msra.mxu0 %v8001_v50  ;;  %v729_v19 = vld [vmem:[%s8823_s12 + $0x340] sm:$0xff]  ;;  %v8009_v50 = vld [vmem:[#allocation7 + $0x1f0] sm:$0xff]  }
 0x16c   : > { %2402 = vmatprep.subr.bf16.mxu0 %v8532_v1  ;;  %1706 = vmatmul.mubr.bf16.gmra.mrb[76].mxu1 %v905_v0  ;;  %v746_v0 = vld [vmem:[%s8823_s12 + $0x3c8] sm:$0xff] }
 0x16d   : > { %1713 = vmatprep.mubr.bf16.mxu1 %v914_v8  ;;  %v885_v8 = vunpack.c.l.s8.bf16 %v693_v63 }
 0x16f   : > { %2403 = vmatpush1.bf16.msra.mxu0 %v8002_v52  ;;  %v961_v52 = vunpack.c.l.s8.bf16 %v729_v19 }
 0x170   : > { %2404 = vmatprep.subr.bf16.mxu0 %v8532_v1 }
 0x172   : > { %2164 = vmatmul.mubr.bf16.gmra.mrb[16].mxu0 %v789_v23  ;;  %v870_v23 = vunpack.c.l.s8.bf16 %v686_v51 }
 0x173   : > { %2171 = vmatprep.mubr.bf16.mxu0 %v798_v55  ;;  %2405 = vmatpush1.bf16.msra.mxu0 %v8003_v56  ;;  %v738_v55 = vld [vmem:[%s8823_s12 + $0x388] sm:$0xff]  ;;  %v969_v56 = vunpack.c.h.s8.bf16 %v729_v19 }
 0x174   : > { %2406 = vmatprep.subr.bf16.mxu0 %v8532_v1  ;;  %1714 = vmatmul.mubr.bf16.gmra.mrb[80].mxu1 %v913_v16 }
 0x175   : > { %1721 = vmatprep.mubr.bf16.mxu1 %v922_v18  ;;  %v1002_v18 = vunpack.c.h.s8.bf16 %v746_v0 }
 0x177   : > { %2407 = vmatpush1.bf16.msra.mxu0 %v8004_v57  ;;  %v978_v57 = vunpack.c.l.s8.bf16 %v738_v55 }
 0x178   : > { %2408 = vmatprep.subr.bf16.mxu0 %v8532_v1 }
 0x17a   : > { %2172 = vmatmul.mubr.bf16.gmra.mrb[20].mxu0 %v797_v60  ;;  %v694_v60 = vld [vmem:[%s8823_s12 + $0x228] sm:$0xff] }
 0x17b   : > { %2179 = vmatprep.mubr.bf16.mxu0 %v806_v61  ;;  %2409 = vmatpush1.bf16.msra.mxu0 %v8005_v62  ;;  %v877_v61 = vunpack.c.h.s8.bf16 %v685_v54  ;;  %v986_v62 = vunpack.c.h.s8.bf16 %v738_v55  ;;  %v886_v30 = vunpack.c.l.s8.bf16 %v694_v60  ;;  %v894_v12 = vunpack.c.h.s8.bf16 %v694_v60 }
 0x17c   : > { %2410 = vmatprep.subr.bf16.mxu0 %v8532_v1  ;;  %1722 = vmatmul.mubr.bf16.gmra.mrb[84].mxu1 %v921_v24 }
 0x17d   : > { %1729 = vmatprep.mubr.bf16.mxu1 %v930_v27  ;;  %v884_v27 = vunpack.c.l.s8.bf16 %v692_v4 }
 0x17f   : > { %2411 = vmatpush1.bf16.msra.mxu0 %v8006_v2  ;;  %v745_v2 = vld [vmem:[%s8823_s12 + $0x3c0] sm:$0xff] }
 0x180   : > { %2412 = vmatprep.subr.bf16.mxu0 %v8532_v1  ;;  %v993_v16 = vunpack.c.l.s8.bf16 %v745_v2  ;;  %v1001_v24 = vunpack.c.h.s8.bf16 %v745_v2  ;;  %v724_v2 = vld [vmem:[%s8823_s12 + $0x318] sm:$0xff] }
 0x182   : > { %2180 = vmatmul.mubr.bf16.gmra.mrb[24].mxu0 %v805_v7 }
 0x183   : > { %2187 = vmatprep.mubr.bf16.mxu0 %v814_v11  ;;  %2413 = vmatpush1.bf16.msra.mxu0 %v8007_v31  ;;  %v994_v11 = vunpack.c.l.s8.bf16 %v746_v0  ;;  %v710_v31 = vld [vmem:[%s8823_s12 + $0x2a8] sm:$0xff] }
 0x184   : > { %2414 = vmatprep.subr.bf16.mxu0 %v8532_v1  ;;  %1730 = vmatmul.mubr.bf16.gmra.mrb[88].mxu1 %v929_v33  ;;  %v909_v33 = vunpack.c.h.s8.bf16 %v701_v22 }
 0x185   : > { %1737 = vmatprep.mubr.bf16.mxu1 %v938_v34  ;;  %v918_v34 = vunpack.c.l.s8.bf16 %v710_v31 }
 0x187   : > { %2415 = vmatpush1.bf16.msra.mxu0 %v8008_v41 }
 0x188   : > { %2416 = vmatprep.subr.bf16.mxu0 %v8532_v1 }
 0x18a   : > { %2188 = vmatmul.mubr.bf16.gmra.mrb[28].mxu0 %v813_v3  ;;  %v893_v3 = vunpack.c.h.s8.bf16 %v693_v63 }
 0x18b   : > { %2195 = vmatprep.mubr.bf16.mxu0 %v822_v20  ;;  %2417 = vmatpush1.bf16.msra.mxu0 %v8009_v50  ;;  %v902_v20 = vunpack.c.l.s8.bf16 %v702_v14 }
 0x18c   : > { %1738 = vmatmul.mubr.bf16.gmra.mrb[92].mxu1 %v937_v37  ;;  %2418 = vmatprep.subr.bf16.mxu0 %v8532_v1  ;;  %v737_v1 = vld [vmem:[%s8823_s12 + $0x380] sm:$0xff] }
 0x18d   : > { %1745 = vmatprep.mubr.bf16.mxu1 %v946_v10  ;;  %v977_v28 = vunpack.c.l.s8.bf16 %v737_v1  ;;  %v985_v7 = vunpack.c.h.s8.bf16 %v737_v1  ;;  %v926_v10 = vunpack.c.h.s8.bf16 %v710_v31 }
 0x18f   : > { %2419 = vmatpush1.bf16.msra.mxu0 %v8010_v59  ;;  %v715_v59 = vld [vmem:[%s8823_s12 + $0x2d0] sm:$0xff] }
 0x192   : > { %2196 = vmatmul.mubr.bf16.gmra.mrb[32].mxu0 %v821_v25  ;;  %v901_v25 = vunpack.c.l.s8.bf16 %v701_v22  ;;  %v948_v22 = vunpack.c.l.s8.bf16 %v724_v2 }
 0x193   : > { %2203 = vmatprep.mubr.bf16.mxu0 %v830_v5  ;;  %v910_v5 = vunpack.c.h.s8.bf16 %v702_v14 }
 0x194   : > { %1746 = vmatmul.mubr.bf16.gmra.mrb[96].mxu1 %v945_v42  ;;  %v908_v42 = vunpack.c.h.s8.bf16 %v700_v9 }
 0x195   : > { %1753 = vmatprep.mubr.bf16.mxu1 %v954_v44  ;;  %v717_v44 = vld [vmem:[%s8823_s12 + $0x2e0] sm:$0xff] }
 0x196   : > { %v933_v46 = vunpack.c.l.s8.bf16 %v717_v44  ;;  %v941_v50 = vunpack.c.h.s8.bf16 %v717_v44 }
 0x19a   : > { %2204 = vmatmul.mubr.bf16.gmra.mrb[36].mxu0 %v829_v6  ;;  %v892_v6 = vunpack.c.h.s8.bf16 %v692_v4 }
 0x19b   : > { %2211 = vmatprep.mubr.bf16.mxu0 %v838_v35  ;;  %v709_v35 = vld [vmem:[%s8823_s12 + $0x2a0] sm:$0xff] }
 0x19c   : > { %1754 = vmatmul.mubr.bf16.gmra.mrb[100].mxu1 %v953_v47  ;;  %v917_v37 = vunpack.c.l.s8.bf16 %v709_v35  ;;  %v925_v13 = vunpack.c.h.s8.bf16 %v709_v35  ;;  %v982_v35 = vunpack.c.l.s8.bf16 %v742_v29 }
 0x19d   : > { %1761 = vmatprep.mubr.bf16.mxu1 %v962_v17  ;;  %v707_v17 = vld [vmem:[%s8823_s12 + $0x290] sm:$0xff] }
 0x19e   : > { %v915_v19 = vunpack.c.l.s8.bf16 %v707_v17 }
 0x1a2   : > { %2212 = vmatmul.mubr.bf16.gmra.mrb[40].mxu0 %v837_v38  ;;  %v900_v38 = vunpack.c.l.s8.bf16 %v700_v9 }
 0x1a3   : > { %2219 = vmatprep.mubr.bf16.mxu0 %v846_v39  ;;  %v699_v39 = vld [vmem:[%s8823_s12 + $0x250] sm:$0xff] }
 0x1a4   : > { %1762 = vmatmul.mubr.bf16.gmra.mrb[104].mxu1 %v961_v52  ;;  %v899_v41 = vunpack.c.l.s8.bf16 %v699_v39  ;;  %v907_v45 = vunpack.c.h.s8.bf16 %v699_v39 }
 0x1a5   : > { %1769 = vmatprep.mubr.bf16.mxu1 %v970_v53  ;;  %v725_v53 = vld [vmem:[%s8823_s12 + $0x320] sm:$0xff] }
 0x1a6   : > { %v957_v0 = vunpack.c.h.s8.bf16 %v725_v53 }
 0x1aa   : > { %2220 = vmatmul.mubr.bf16.gmra.mrb[44].mxu0 %v845_v43  ;;  %v934_v43 = vunpack.c.l.s8.bf16 %v718_v40 }
 0x1ab   : > { %2227 = vmatprep.mubr.bf16.mxu0 %v854_v15  ;;  %v708_v15 = vld [vmem:[%s8823_s12 + $0x298] sm:$0xff] }
 0x1ac   : > { %1770 = vmatmul.mubr.bf16.gmra.mrb[108].mxu1 %v969_v56  ;;  %v916_v47 = vunpack.c.l.s8.bf16 %v708_v15  ;;  %v924_v51 = vunpack.c.h.s8.bf16 %v708_v15  ;;  %v923_v56 = vunpack.c.h.s8.bf16 %v707_v17 }
 0x1ad   : > { %1777 = vmatprep.mubr.bf16.mxu1 %v978_v57  ;;  %v949_v57 = vunpack.c.l.s8.bf16 %v725_v53  ;;  %v740_v53 = vld [vmem:[%s8823_s12 + $0x398] sm:$0xff] }
 0x1b2   : > { %2228 = vmatmul.mubr.bf16.gmra.mrb[48].mxu0 %v853_v48  ;;  %v942_v48 = vunpack.c.h.s8.bf16 %v718_v40 }
 0x1b3   : > { %2235 = vmatprep.mubr.bf16.mxu0 %v862_v49  ;;  %v726_v49 = vld [vmem:[%s8823_s12 + $0x328] sm:$0xff] }
 0x1b4   : > { %1778 = vmatmul.mubr.bf16.gmra.mrb[112].mxu1 %v977_v28  ;;  %v950_v52 = vunpack.c.l.s8.bf16 %v726_v49  ;;  %v958_v1 = vunpack.c.h.s8.bf16 %v726_v49 }
 0x1b5   : > { %1785 = vmatprep.mubr.bf16.mxu1 %v986_v62 }
 0x1ba   : > { %2236 = vmatmul.mubr.bf16.gmra.mrb[52].mxu0 %v861_v21  ;;  %v9069_v21 = vpop.f32.mrb[0].mxu1 }
 0x1bb   : > { %2243 = vmatprep.mubr.bf16.mxu0 %v870_v23  ;;  %v716_v23 = vld [vmem:[%s8823_s12 + $0x2d8] sm:$0xff]  ;;  %v1557_v54 = vpop.f32.mrb[1].mxu1 }
 0x1bc   : > { %1786 = vmatmul.mubr.bf16.gmra.mrb[116].mxu1 %v985_v7  ;;  %v9073_v55 = vpop.f32.mrb[2].mxu1  ;;  %v940_v7 = vunpack.c.h.s8.bf16 %v716_v23 }
 0x1bd   : > { %1793 = vmatprep.mubr.bf16.mxu1 %v994_v11 }
 0x1c2   : > { %2244 = vmatmul.mubr.bf16.gmra.mrb[56].mxu0 %v869_v26  ;;  %v1560_v26 = vpop.f32.mrb[3].mxu1 }
 0x1c3   : > { %2251 = vmatprep.mubr.bf16.mxu0 %v878_v58  ;;  %v932_v58 = vunpack.c.l.s8.bf16 %v716_v23  ;;  %v9076_v60 = vpop.f32.mrb[4].mxu1 }
 0x1c4   : > { %1794 = vmatmul.mubr.bf16.gmra.mrb[120].mxu1 %v993_v16  ;;  %v1565_v28 = vpop.f32.mrb[5].mxu1 }
 0x1c5   : > { %1801 = vmatprep.mubr.bf16.mxu1 %v1002_v18  ;;  %v9079_v62 = vpop.f32.mrb[6].mxu1 }
 0x1c6   : > { %v1568_v63 = vpop.f32.mrb[7].mxu1 }
 0x1c7   : > { %v9081_v11 = vpop.f32.mrb[8].mxu1 }
 0x1c8   : > { %v1573_v14 = vpop.f32.mrb[9].mxu1 }
 0x1c9   : > { %v9085_v16 = vpop.f32.mrb[10].mxu1  ;;  %v8012_v14 = vld [vmem:[#allocation9 + $0x8] sm:$0xff]  }
 0x1ca   : > { %2252 = vmatmul.mubr.bf16.gmra.mrb[60].mxu0 %v877_v61  ;;  %v734_v61 = vld [vmem:[%s8823_s12 + $0x368] sm:$0xff]  ;;  %v1576_v18 = vpop.f32.mrb[11].mxu1 }
 0x1cb   : > { %2259 = vmatprep.mubr.bf16.mxu0 %v886_v30  ;;  %v931_v30 = vunpack.c.l.s8.bf16 %v715_v59  ;;  %v974_v4 = vunpack.c.h.s8.bf16 %v734_v61  ;;  %v631_v18 = vld [vmem:[%s8823_s12 + $0x30] sm:$0xff] }
 0x1cc   : > { %1802 = vmatmul.mubr.bf16.gmra.mrb[124].mxu1 %v1001_v24  ;;  %v723_v24 = vld [vmem:[%s8823_s12 + $0x310] sm:$0xff] }
 0x1cd   : > { %1970 = vmatprep.mubr.bf16.mxu1 %v884_v27  ;;  %v6578_v27 = vld [vmem:[#allocation3] ss:$0 sm:$0xff]  ;;  %v955_v39 = vunpack.c.h.s8.bf16 %v723_v24 }
 0x1ce   : > { %2879 = vperm.xlu0 %7946, %v6578_v27  }
 0x1d2   : > { %2260 = vmatmul.mubr.bf16.gmra.mrb[64].mxu0 %v885_v8  ;;  %v966_v8 = vunpack.c.l.s8.bf16 %v734_v61 }
 0x1d3   : > { %2267 = vmatprep.mubr.bf16.mxu0 %v894_v12  ;;  %v733_v12 = vld [vmem:[%s8823_s12 + $0x360] sm:$0xff] }
 0x1d4   : > { %1971 = vmatmul.mubr.bf16.vlgmr.msra.gmra.mrb[64].mxu1 %v883_v32  ;;  %v947_v32 = vunpack.c.l.s8.bf16 %v723_v24 }
 0x1d5   : > { %1978 = vmatprep.mubr.bf16.mxu1 %v892_v6  ;;  %v973_v6 = vunpack.c.h.s8.bf16 %v733_v12 }
 0x1da   : > { %2268 = vmatmul.mubr.bf16.gmra.mrb[68].mxu0 %v893_v3  ;;  %v939_v3 = vunpack.c.h.s8.bf16 %v715_v59  ;;  %v739_v59 = vld [vmem:[%s8823_s12 + $0x390] sm:$0xff] }
 0x1db   : > { %2275 = vmatprep.mubr.bf16.mxu0 %v902_v20  ;;  %v965_v20 = vunpack.c.l.s8.bf16 %v733_v12  ;;  %v988_v12 = vunpack.c.h.s8.bf16 %v740_v53  ;;  %v987_v24 = vunpack.c.h.s8.bf16 %v739_v59 }
 0x1dc   : > { %1979 = vmatmul.mubr.bf16.gmra.mrb[68].mxu1 %v891_v36  ;;  %v741_v36 = vld [vmem:[%s8823_s12 + $0x3a0] sm:$0xff] }
 0x1dd   : > { %1986 = vmatprep.mubr.bf16.mxu1 %v900_v38  ;;  %v989_v17 = vunpack.c.h.s8.bf16 %v741_v36 }
 0x1e2   : > { %2276 = vmatmul.mubr.bf16.gmra.mrb[72].mxu0 %v901_v25  ;;  %v9088_v25 = vpop.f32.mrb[12].mxu1 }
 0x1e3   : > { %2283 = vmatprep.mubr.bf16.mxu0 %v910_v5  ;;  %v1581_v5 = vpop.f32.mrb[13].mxu1 }
 0x1e4   : > { %1987 = vmatmul.mubr.bf16.gmra.mrb[72].mxu1 %v899_v41  ;;  %v9091_v31 = vpop.f32.mrb[14].mxu1  ;;  %v981_v41 = vunpack.c.l.s8.bf16 %v741_v36  ;;  %v759_v5 = vunpack.c.l.s8.bf16 %v631_v18 }
 0x1e5   : > { %1994 = vmatprep.mubr.bf16.mxu1 %v908_v42  ;;  %v990_v42 = vunpack.c.h.s8.bf16 %v742_v29 }
 0x1ea   : > { %2284 = vmatmul.mubr.bf16.gmra.mrb[76].mxu0 %v909_v33  ;;  %v1584_v33 = vpop.f32.mrb[15].mxu1 }
 0x1eb   : > { %2291 = vmatprep.mubr.bf16.mxu0 %v918_v34  ;;  %v956_v34 = vunpack.c.h.s8.bf16 %v724_v2  ;;  %v9093_v9 = vpop.f32.mrb[16].mxu1  ;;  %v747_v33 = vld [vmem:[%s8823_s12 + $0x3d0] sm:$0xff] }
 0x1ec   : > { %1995 = vmatmul.mubr.bf16.gmra.mrb[76].mxu1 %v907_v45  ;;  %v1589_v38 = vpop.f32.mrb[17].mxu1  ;;  %v750_v45 = vld [vmem:[%s8823_s12 + $0x3e8] sm:$0xff] }
 0x1ed   : > { %2002 = vmatprep.mubr.bf16.mxu1 %v916_v47 }
 0x1f2   : > { %2292 = vmatmul.mubr.bf16.gmra.mrb[80].mxu0 %v917_v37  ;;  %v732_v37 = vld [vmem:[%s8823_s12 + $0x358] sm:$0xff] }
 0x1f3   : > { %2299 = vmatprep.mubr.bf16.mxu0 %v926_v10  ;;  %v9097_v10 = vpop.f32.mrb[18].mxu1  ;;  %v972_v49 = vunpack.c.h.s8.bf16 %v732_v37 }
 0x1f4   : > { %2003 = vmatmul.mubr.bf16.gmra.mrb[80].mxu1 %v915_v19  ;;  %v1592_v40 = vpop.f32.mrb[19].mxu1  ;;  %v998_v19 = vunpack.c.l.s8.bf16 %v750_v45 }
 0x1f5   : > { %2010 = vmatprep.mubr.bf16.mxu1 %v924_v51  ;;  %v9100_v44 = vpop.f32.mrb[20].mxu1 }
 0x1f6   : > { %v1597_v15 = vpop.f32.mrb[21].mxu1 }
 0x1fa   : > { %2300 = vmatmul.mubr.bf16.gmra.mrb[84].mxu0 %v925_v13  ;;  %v964_v13 = vunpack.c.l.s8.bf16 %v732_v37  ;;  %v995_v37 = vunpack.c.l.s8.bf16 %v747_v33 }
 0x1fb   : > { %2307 = vmatprep.mubr.bf16.mxu0 %v934_v43  ;;  %v731_v43 = vld [vmem:[%s8823_s12 + $0x350] sm:$0xff] }
 0x1fc   : > { %2011 = vmatmul.mubr.bf16.gmra.mrb[84].mxu1 %v923_v56  ;;  %v963_v47 = vunpack.c.l.s8.bf16 %v731_v43  ;;  %v971_v56 = vunpack.c.h.s8.bf16 %v731_v43  ;;  %v639_v43 = vld [vmem:[%s8823_s12 + $0x70] sm:$0xff] }
 0x1fd   : > { %2018 = vmatprep.mubr.bf16.mxu1 %v932_v58  ;;  %v980_v58 = vunpack.c.l.s8.bf16 %v740_v53 }
 0x202   : > { %2308 = vmatmul.mubr.bf16.gmra.mrb[88].mxu0 %v933_v46  ;;  %v9103_v46 = vpop.f32.mrb[22].mxu1 }
 0x203   : > { %2315 = vmatprep.mubr.bf16.mxu0 %v942_v48  ;;  %v1600_v48 = vpop.f32.mrb[23].mxu1 }
 0x204   : > { %2019 = vmatmul.mubr.bf16.gmra.mrb[88].mxu1 %v931_v30  ;;  %v9105_v51 = vpop.f32.mrb[24].mxu1  ;;  %v632_v30 = vld [vmem:[%s8823_s12 + $0x38] sm:$0xff] }
 0x205   : > { %2026 = vmatprep.mubr.bf16.mxu1 %v940_v7  ;;  %v1605_v23 = vpop.f32.mrb[25].mxu1  ;;  %v760_v2 = vunpack.c.l.s8.bf16 %v632_v30 }
 0x206   : > { %v9109_v54 = vpop.f32.mrb[26].mxu1 }
 0x207   : > { %v1608_v26 = vpop.f32.mrb[27].mxu1 }
 0x208   : > { %v9112_v28 = vpop.f32.mrb[28].mxu1 }
 0x209   : > { %v1613_v61 = vpop.f32.mrb[29].mxu1 }
 0x20a   : > { %2316 = vmatmul.mubr.bf16.gmra.mrb[92].mxu0 %v941_v50  ;;  %v8011_v50 = vld [vmem:[#allocation9] sm:$0xff]   ;;  %v9115_v63 = vpop.f32.mrb[30].mxu1 }
 0x20b   : > { %2323 = vmatprep.mubr.bf16.mxu0 %v950_v52  ;;  %v749_v52 = vld [vmem:[%s8823_s12 + $0x3e0] sm:$0xff]  ;;  %7330 = vmatprep.subr.bf16.mxu1 %v8011_v50  ;;  %v1616_v7 = vpop.f32.mrb[31].mxu1 }
 0x20c   : > { %2027 = vmatmul.mubr.bf16.gmra.mrb[92].mxu1 %v939_v3  ;;  %v9117_v3 = vpop.f32.mrb[32].mxu1 }
 0x20d   : > { %2034 = vmatprep.mubr.bf16.mxu1 %v948_v22  ;;  %7331 = vmatpush3.bf16.msra.mxu1 %v8011_v50  ;;  %v1621_v22 = vpop.f32.mrb[33].mxu1 }
 0x20e   : > { %7332 = vmatprep.subr.bf16.mxu1 %v8012_v14 }
 0x211   : > { %7333 = vmatpush3.bf16.msra.mxu1 %v8012_v14 }
 0x212   : > { %2324 = vmatmul.mubr.bf16.gmra.mrb[96].mxu0 %v949_v57  ;;  %v997_v57 = vunpack.c.l.s8.bf16 %v749_v52 }
 0x213   : > { %2331 = vmatprep.mubr.bf16.mxu0 %v958_v1  ;;  %v1006_v1 = vunpack.c.h.s8.bf16 %v750_v45 }
 0x214   : > { %2035 = vmatmul.mubr.bf16.gmra.mrb[96].mxu1 %v947_v32  ;;  %v768_v32 = vunpack.c.h.s8.bf16 %v632_v30 }
 0x215   : > { %2042 = vmatprep.mubr.bf16.mxu1 %v956_v34 }
 0x21a   : > { %2332 = vmatmul.mubr.bf16.gmra.mrb[100].mxu0 %v957_v0  ;;  %v979_v0 = vunpack.c.l.s8.bf16 %v739_v59 }
 0x21b   : > { %2339 = vmatprep.mubr.bf16.mxu0 %v966_v8  ;;  %v1005_v8 = vunpack.c.h.s8.bf16 %v749_v52  ;;  %v648_v52 = vld [vmem:[%s8823_s12 + $0xb8] sm:$0xff] }
 0x21c   : > { %2043 = vmatmul.mubr.bf16.gmra.mrb[100].mxu1 %v955_v39  ;;  %v767_v39 = vunpack.c.h.s8.bf16 %v631_v18  ;;  %v792_v26 = vunpack.c.l.s8.bf16 %v648_v52  ;;  %v800_v7 = vunpack.c.h.s8.bf16 %v648_v52 }
 0x21d   : > { %2050 = vmatprep.mubr.bf16.mxu1 %v964_v13  ;;  %v8013_v13 = vld [vmem:[#allocation9 + $0x10] sm:$0xff]  }
 0x21e   : > { %7334 = vmatprep.subr.bf16.mxu1 %v8013_v13 }
 0x21f   : > { %7335 = vmatpush3.bf16.msra.mxu1 %v8013_v13 }
 0x222   : > { %2340 = vmatmul.mubr.bf16.gmra.mrb[104].mxu0 %v965_v20  ;;  %v748_v20 = vld [vmem:[%s8823_s12 + $0x3d8] sm:$0xff] }
 0x223   : > { %2347 = vmatprep.mubr.bf16.mxu0 %v974_v4  ;;  %v9121_v4 = vpop.f32.mrb[34].mxu1  ;;  %v996_v29 = vunpack.c.l.s8.bf16 %v748_v20  ;;  %v1004_v40 = vunpack.c.h.s8.bf16 %v748_v20 }
 0x224   : > { %2051 = vmatmul.mubr.bf16.gmra.mrb[104].mxu1 %v963_v47  ;;  %v1624_v27 = vpop.f32.mrb[35].mxu1  ;;  %v1003_v47 = vunpack.c.h.s8.bf16 %v747_v33 }
 0x225   : > { %2058 = vmatprep.mubr.bf16.mxu1 %v972_v49 }
 0x22a   : > { %2348 = vmatmul.mubr.bf16.gmra.mrb[108].mxu0 %v973_v6  ;;  %v9124_v6 = vpop.f32.mrb[36].mxu1 }
 0x22b   : > { %2355 = vmatprep.mubr.bf16.mxu0 %v982_v35  ;;  %v1629_v34 = vpop.f32.mrb[37].mxu1  ;;  %v640_v35 = vld [vmem:[%s8823_s12 + $0x78] sm:$0xff] }
 0x22c   : > { %2059 = vmatmul.mubr.bf16.gmra.mrb[108].mxu1 %v971_v56  ;;  %v9127_v36 = vpop.f32.mrb[38].mxu1  ;;  %v784_v49 = vunpack.c.h.s8.bf16 %v640_v35  ;;  %v783_v56 = vunpack.c.h.s8.bf16 %v639_v43 }
 0x22d   : > { %2066 = vmatprep.mubr.bf16.mxu1 %v980_v58  ;;  %v1632_v38 = vpop.f32.mrb[39].mxu1 }
 0x232   : > { %2356 = vmatmul.mubr.bf16.gmra.mrb[112].mxu0 %v981_v41  ;;  %v776_v41 = vunpack.c.l.s8.bf16 %v640_v35 }
 0x233   : > { %2363 = vmatprep.mubr.bf16.mxu0 %v990_v42  ;;  %v9129_v42 = vpop.f32.mrb[40].mxu1 }
 0x234   : > { %2067 = vmatmul.mubr.bf16.gmra.mrb[112].mxu1 %v979_v0  ;;  %v1637_v15 = vpop.f32.mrb[41].mxu1 }
 0x235   : > { %2074 = vmatprep.mubr.bf16.mxu1 %v988_v12  ;;  %v9132_v45 = vpop.f32.mrb[42].mxu1  ;;  %v8016_v15 = vld [vmem:[#allocation9 + $0x28] sm:$0xff]  }
 0x236   : > { %v1640_v48 = vpop.f32.mrb[43].mxu1 }
 0x23a   : > { %2364 = vmatmul.mubr.bf16.gmra.mrb[116].mxu0 %v989_v17  ;;  %v775_v17 = vunpack.c.l.s8.bf16 %v639_v43 }
 0x23b   : > { %2371 = vmatprep.mubr.bf16.mxu0 %v998_v19  ;;  %v9134_v19 = vpop.f32.mrb[44].mxu1 }
 0x23c   : > { %2075 = vmatmul.mubr.bf16.gmra.mrb[116].mxu1 %v987_v24  ;;  %v1645_v50 = vpop.f32.mrb[45].mxu1  ;;  %v8015_v24 = vld [vmem:[#allocation9 + $0x20] sm:$0xff]  }
 0x23d   : > { %2082 = vmatprep.mubr.bf16.mxu1 %v996_v29  ;;  %v9137_v53 = vpop.f32.mrb[46].mxu1 }
 0x23e   : > { %v1648_v23 = vpop.f32.mrb[47].mxu1 }
 0x23f   : > { %v9139_v58 = vpop.f32.mrb[48].mxu1  ;;  %v8017_v23 = vld [vmem:[#allocation9 + $0x30] sm:$0xff]  }
 0x240   : > { %v1653_v59 = vpop.f32.mrb[49].mxu1 }
 0x241   : > { %v9142_v61 = vpop.f32.mrb[50].mxu1 }
 0x242   : > { %2372 = vmatmul.mubr.bf16.gmra.mrb[120].mxu0 %v997_v57  ;;  %v8014_v57 = vld [vmem:[#allocation9 + $0x18] sm:$0xff]   ;;  %v1656_v30 = vpop.f32.mrb[51].mxu1 }
 0x243   : > { %2379 = vmatprep.mubr.bf16.mxu0 %v1006_v1  ;;  %v647_v1 = vld [vmem:[%s8823_s12 + $0xb0] sm:$0xff]  ;;  %7336 = vmatprep.subr.bf16.mxu1 %v8014_v57 }
 0x244   : > { %2083 = vmatmul.mubr.bf16.gmra.mrb[120].mxu1 %v995_v37  ;;  %v791_v0 = vunpack.c.l.s8.bf16 %v647_v1  ;;  %v799_v20 = vunpack.c.h.s8.bf16 %v647_v1  ;;  %v680_v1 = vld [vmem:[%s8823_s12 + $0x1b8] sm:$0xff] }
 0x245   : > { %2090 = vmatprep.mubr.bf16.mxu1 %v1004_v40  ;;  %7337 = vmatpush3.bf16.msra.mxu1 %v8014_v57  ;;  %v856_v30 = vunpack.c.l.s8.bf16 %v680_v1 }
 0x246   : > { %7338 = vmatprep.subr.bf16.mxu1 %v8015_v24 }
 0x249   : > { %7339 = vmatpush3.bf16.msra.mxu1 %v8015_v24  ;;  %v687_v24 = vld [vmem:[%s8823_s12 + $0x1f0] sm:$0xff] }
 0x24a   : > { %2380 = vmatmul.mubr.bf16.gmra.mrb[124].mxu0 %v1005_v8  ;;  %v9144_v8 = vpop.f32.mrb[52].mxu1  ;;  %7340 = vmatprep.subr.bf16.mxu1 %v8016_v15 }
 0x24b   : > { %2420 = vmatprep.mubr.bf16.mxu0 %v760_v2  ;;  %v1661_v12 = vpop.f32.mrb[53].mxu1  ;;  %v656_v2 = vld [vmem:[%s8823_s12 + $0xf8] sm:$0xff] }
 0x24c   : > { %2091 = vmatmul.mubr.bf16.gmra.mrb[124].mxu1 %v1003_v47  ;;  %v9147_v14 = vpop.f32.mrb[54].mxu1  ;;  %v808_v22 = vunpack.c.l.s8.bf16 %v656_v2  ;;  %v816_v35 = vunpack.c.h.s8.bf16 %v656_v2  ;;  %v663_v47 = vld [vmem:[%s8823_s12 + $0x130] sm:$0xff]  ;;  %v864_v2 = vunpack.c.h.s8.bf16 %v680_v1 }
 0x24d   : > { %v1664_v18 = vpop.f32.mrb[55].mxu1  ;;  %7341 = vmatpush3.bf16.msra.mxu1 %v8016_v15  ;;  %v823_v48 = vunpack.c.l.s8.bf16 %v663_v47  ;;  %v831_v50 = vunpack.c.h.s8.bf16 %v663_v47 }
 0x24e   : > { %v9149_v27 = vpop.f32.mrb[56].mxu1  ;;  %7342 = vmatprep.subr.bf16.mxu1 %v8017_v23  ;;  %v688_v18 = vld [vmem:[%s8823_s12 + $0x1f8] sm:$0xff] }
 0x24f   : > { %v1669_v29 = vpop.f32.mrb[57].mxu1 }
 0x251   : > { %7343 = vmatpush3.bf16.msra.mxu1 %v8017_v23 }
 0x252   : > { %2421 = vmatmul.mubr.bf16.vlgmr.msra.gmra.mrb[0].mxu0 %v759_v5  ;;  %v655_v5 = vld [vmem:[%s8823_s12 + $0xf0] sm:$0xff] }
 0x253   : > { %2428 = vmatprep.mubr.bf16.mxu0 %v768_v32  ;;  %v9152_v32 = vpop.f32.mrb[58].mxu1  ;;  %v807_v34 = vunpack.c.l.s8.bf16 %v655_v5  ;;  %v815_v13 = vunpack.c.h.s8.bf16 %v655_v5 }
 0x254   : > { %v1672_v33 = vpop.f32.mrb[59].mxu1 }
 0x255   : > { %v9154_v37 = vpop.f32.mrb[60].mxu1  ;;  %v871_v33 = vunpack.c.l.s8.bf16 %v687_v24 }
 0x256   : > { %v1677_v38 = vpop.f32.mrb[61].mxu1 }
 0x257   : > { %v9157_v40 = vpop.f32.mrb[62].mxu1 }
 0x25a   : > { %2429 = vmatmul.mubr.bf16.gmra.mrb[4].mxu0 %v767_v39  ;;  %v664_v39 = vld [vmem:[%s8823_s12 + $0x138] sm:$0xff] }
 0x25b   : > { %2436 = vmatprep.mubr.bf16.mxu0 %v776_v41  ;;  %v1680_v41 = vpop.f32.mrb[63].mxu1  ;;  %v824_v43 = vunpack.c.l.s8.bf16 %v664_v39 }
 0x262   : > { %2437 = vmatmul.mubr.bf16.gmra.mrb[8].mxu0 %v775_v17  ;;  %v832_v17 = vunpack.c.h.s8.bf16 %v664_v39  ;;  %v696_v39 = vld [vmem:[%s8823_s12 + $0x238] sm:$0xff] }
 0x263   : > { %2444 = vmatprep.mubr.bf16.mxu0 %v784_v49  ;;  %v672_v49 = vld [vmem:[%s8823_s12 + $0x178] sm:$0xff]  ;;  %v888_v47 = vunpack.c.l.s8.bf16 %v696_v39 }
 0x264   : > { %v840_v52 = vunpack.c.l.s8.bf16 %v672_v49  ;;  %v848_v57 = vunpack.c.h.s8.bf16 %v672_v49 }
 0x26a   : > { %2445 = vmatmul.mubr.bf16.gmra.mrb[12].mxu0 %v783_v56  ;;  %v671_v56 = vld [vmem:[%s8823_s12 + $0x170] sm:$0xff] }
 0x26b   : > { %2452 = vmatprep.mubr.bf16.mxu0 %v792_v26  ;;  %v839_v26 = vunpack.c.l.s8.bf16 %v671_v56  ;;  %v847_v59 = vunpack.c.h.s8.bf16 %v671_v56  ;;  %v896_v56 = vunpack.c.h.s8.bf16 %v696_v39 }
 0x272   : > { %2453 = vmatmul.mubr.bf16.gmra.mrb[16].mxu0 %v791_v0  ;;  %v8018_v0 = vld [vmem:[#allocation9 + $0x38] sm:$0xff]  }
 0x273   : > { %2460 = vmatprep.mubr.bf16.mxu0 %v800_v7  ;;  %v679_v7 = vld [vmem:[%s8823_s12 + $0x1b0] sm:$0xff]  ;;  %7344 = vmatprep.subr.bf16.mxu1 %v8018_v0 }
 0x274   : > { %7345 = vmatpush3.bf16.msra.mxu1 %v8018_v0  ;;  %v855_v12 = vunpack.c.l.s8.bf16 %v679_v7 }
 0x27a   : > { %2461 = vmatmul.mubr.bf16.gmra.mrb[20].mxu0 %v799_v20  ;;  %v863_v20 = vunpack.c.h.s8.bf16 %v679_v7 }
 0x27b   : > { %2468 = vmatprep.mubr.bf16.mxu0 %v808_v22  ;;  %v872_v22 = vunpack.c.l.s8.bf16 %v688_v18 }
 0x282   : > { %2469 = vmatmul.mubr.bf16.gmra.mrb[24].mxu0 %v807_v34 }
 0x283   : > { %2476 = vmatprep.mubr.bf16.mxu0 %v816_v35  ;;  %v880_v35 = vunpack.c.h.s8.bf16 %v688_v18 }
 0x28a   : > { %2477 = vmatmul.mubr.bf16.gmra.mrb[28].mxu0 %v815_v13 }
 0x28b   : > { %2484 = vmatprep.mubr.bf16.mxu0 %v824_v43  ;;  %v879_v43 = vunpack.c.h.s8.bf16 %v687_v24 }
 0x292   : > { %2485 = vmatmul.mubr.bf16.gmra.mrb[32].mxu0 %v823_v48 }
 0x293   : > { %2492 = vmatprep.mubr.bf16.mxu0 %v832_v17  ;;  %v695_v17 = vld [vmem:[%s8823_s12 + $0x230] sm:$0xff] }
 0x29a   : > { %2493 = vmatmul.mubr.bf16.gmra.mrb[36].mxu0 %v831_v50 }
 0x29b   : > { %2500 = vmatprep.mubr.bf16.mxu0 %v840_v52  ;;  %v887_v52 = vunpack.c.l.s8.bf16 %v695_v17 }
 0x2a2   : > { %2501 = vmatmul.mubr.bf16.gmra.mrb[40].mxu0 %v839_v26 }
 0x2a3   : > { %2508 = vmatprep.mubr.bf16.mxu0 %v848_v57  ;;  %v704_v57 = vld [vmem:[%s8823_s12 + $0x278] sm:$0xff] }
 0x2a4   : > { %v904_v7 = vunpack.c.l.s8.bf16 %v704_v57 }
 0x2a7   : > { %v9166_v5 = vpop.f32.mrb[64].mxu1 }
 0x2a8   : > { %v1974_v29 = vpop.f32.mrb[65].mxu1 }
 0x2a9   : > { %v9168_v34 = vpop.f32.mrb[66].mxu1  ;;  %v912_v29 = vunpack.c.h.s8.bf16 %v704_v57 }
 0x2aa   : > { %2509 = vmatmul.mubr.bf16.gmra.mrb[44].mxu0 %v847_v59  ;;  %v1977_v38 = vpop.f32.mrb[67].mxu1 }
 0x2ab   : > { %2516 = vmatprep.mubr.bf16.mxu0 %v856_v30  ;;  %v895_v30 = vunpack.c.h.s8.bf16 %v695_v17  ;;  %v711_v17 = vld [vmem:[%s8823_s12 + $0x2b0] sm:$0xff] }
 0x2af   : > { %v9171_v41 = vpop.f32.mrb[68].mxu1 }
 0x2b0   : > { %v1982_v13 = vpop.f32.mrb[69].mxu1 }
 0x2b1   : > { %v9173_v15 = vpop.f32.mrb[70].mxu1 }
 0x2b2   : > { %2517 = vmatmul.mubr.bf16.gmra.mrb[48].mxu0 %v855_v12  ;;  %v1985_v48 = vpop.f32.mrb[71].mxu1 }
 0x2b3   : > { %2524 = vmatprep.mubr.bf16.mxu0 %v864_v2  ;;  %v703_v2 = vld [vmem:[%s8823_s12 + $0x270] sm:$0xff] }
 0x2b4   : > { %v911_v13 = vunpack.c.h.s8.bf16 %v703_v2 }
 0x2b7   : > { %v9176_v49 = vpop.f32.mrb[72].mxu1 }
 0x2b8   : > { %v1990_v50 = vpop.f32.mrb[73].mxu1 }
 0x2b9   : > { %v9178_v23 = vpop.f32.mrb[74].mxu1 }
 0x2ba   : > { %2525 = vmatmul.mubr.bf16.gmra.mrb[52].mxu0 %v863_v20  ;;  %v1993_v26 = vpop.f32.mrb[75].mxu1 }
 0x2bb   : > { %2532 = vmatprep.mubr.bf16.mxu0 %v872_v22  ;;  %v903_v22 = vunpack.c.l.s8.bf16 %v703_v2  ;;  %v927_v2 = vunpack.c.h.s8.bf16 %v711_v17 }
 0x2bf   : > { %v9181_v1 = vpop.f32.mrb[76].mxu1 }
 0x2c0   : > { %v1998_v59 = vpop.f32.mrb[77].mxu1 }
 0x2c1   : > { %v9183_v0 = vpop.f32.mrb[78].mxu1 }
 0x2c2   : > { %2533 = vmatmul.mubr.bf16.gmra.mrb[56].mxu0 %v871_v33  ;;  %v2001_v12 = vpop.f32.mrb[79].mxu1 }
 0x2c3   : > { %2540 = vmatprep.mubr.bf16.mxu0 %v880_v35  ;;  %v712_v35 = vld [vmem:[%s8823_s12 + $0x2b8] sm:$0xff] }
 0x2c4   : > { %v928_v57 = vunpack.c.h.s8.bf16 %v712_v35 }
 0x2c7   : > { %v9186_v18 = vpop.f32.mrb[80].mxu1 }
 0x2c8   : > { %v2006_v20 = vpop.f32.mrb[81].mxu1 }
 0x2c9   : > { %v9188_v24 = vpop.f32.mrb[82].mxu1 }
 0x2ca   : > { %2541 = vmatmul.mubr.bf16.gmra.mrb[60].mxu0 %v879_v43  ;;  %v2009_v33 = vpop.f32.mrb[83].mxu1 }
 0x2cb   : > { %2548 = vmatprep.mubr.bf16.mxu0 %v888_v47  ;;  %v920_v47 = vunpack.c.l.s8.bf16 %v712_v35  ;;  %v719_v33 = vld [vmem:[%s8823_s12 + $0x2f0] sm:$0xff] }
 0x2cc   : > { %v935_v35 = vunpack.c.l.s8.bf16 %v719_v33 }
 0x2cf   : > { %v9191_v38 = vpop.f32.mrb[84].mxu1 }
 0x2d0   : > { %v2014_v39 = vpop.f32.mrb[85].mxu1 }
 0x2d1   : > { %v9193_v43 = vpop.f32.mrb[86].mxu1 }
 0x2d2   : > { %2549 = vmatmul.mubr.bf16.gmra.mrb[64].mxu0 %v887_v52  ;;  %v2017_v48 = vpop.f32.mrb[87].mxu1 }
 0x2d3   : > { %2556 = vmatprep.mubr.bf16.mxu0 %v896_v56  ;;  %v919_v56 = vunpack.c.l.s8.bf16 %v711_v17 }
 0x2d7   : > { %v9196_v50 = vpop.f32.mrb[88].mxu1 }
 0x2d8   : > { %v2022_v52 = vpop.f32.mrb[89].mxu1 }
 0x2d9   : > { %v9198_v26 = vpop.f32.mrb[90].mxu1 }
 0x2da   : > { %2557 = vmatmul.mubr.bf16.gmra.mrb[68].mxu0 %v895_v30  ;;  %v2025_v59 = vpop.f32.mrb[91].mxu1  ;;  %v720_v30 = vld [vmem:[%s8823_s12 + $0x2f8] sm:$0xff] }
 0x2db   : > { %2564 = vmatprep.mubr.bf16.mxu0 %v904_v7  ;;  %v944_v48 = vunpack.c.h.s8.bf16 %v720_v30  ;;  %v943_v59 = vunpack.c.h.s8.bf16 %v719_v33 }
 0x2df   : > { %v9201_v7 = vpop.f32.mrb[92].mxu1 }
 0x2e0   : > { %11490 = vst [vmem:[#allocation23_spill] sm:$0xff] %v9201_v7  ;;  %v2030_v12 = vpop.f32.mrb[93].mxu1 }
 0x2e1   : > { %v9203_v20 = vpop.f32.mrb[94].mxu1 }
 0x2e2   : > { %2565 = vmatmul.mubr.bf16.gmra.mrb[72].mxu0 %v903_v22  ;;  %11491 = vst [vmem:[#allocation24_spill] sm:$0xff] %v9203_v20  ;;  %v936_v22 = vunpack.c.l.s8.bf16 %v720_v30  ;;  %v743_v20 = vld [vmem:[%s8823_s12 + $0x3b0] sm:$0xff] }
 0x2e3   : > { %2572 = vmatprep.mubr.bf16.mxu0 %v912_v29  ;;  %v2033_v29 = vpop.f32.mrb[95].mxu1 }
 0x2e4   : > { %v727_v29 = vld [vmem:[%s8823_s12 + $0x330] sm:$0xff] }
 0x2e5   : > { %v951_v30 = vunpack.c.l.s8.bf16 %v727_v29 }
 0x2e7   : > { %v9206_v39 = vpop.f32.mrb[96].mxu1 }
 0x2e8   : > { %11492 = vst [vmem:[#allocation25_spill] sm:$0xff] %v9206_v39 }
 0x2ea   : > { %2573 = vmatmul.mubr.bf16.gmra.mrb[76].mxu0 %v911_v13  ;;  %v2038_v13 = vpop.f32.mrb[97].mxu1 }
 0x2eb   : > { %2580 = vmatprep.mubr.bf16.mxu0 %v920_v47  ;;  %v9208_v47 = vpop.f32.mrb[98].mxu1 }
 0x2ec   : > { %11493 = vst [vmem:[#allocation26_spill] sm:$0xff] %v9208_v47  ;;  %v2041_v52 = vpop.f32.mrb[99].mxu1 }
 0x2ef   : > { %v9211_v17 = vpop.f32.mrb[100].mxu1 }
 0x2f0   : > { %11494 = vst [vmem:[#allocation27_spill] sm:$0xff] %v9211_v17  ;;  %v959_v17 = vunpack.c.h.s8.bf16 %v727_v29  ;;  %v744_v29 = vld [vmem:[%s8823_s12 + $0x3b8] sm:$0xff] }
 0x2f2   : > { %2581 = vmatmul.mubr.bf16.gmra.mrb[80].mxu0 %v919_v56  ;;  %v728_v56 = vld [vmem:[%s8823_s12 + $0x338] sm:$0xff] }
 0x2f3   : > { %2588 = vmatprep.mubr.bf16.mxu0 %v928_v57  ;;  %v2046_v57 = vpop.f32.mrb[101].mxu1 }
 0x2f4   : > { %v9213_v12 = vpop.f32.mrb[102].mxu1  ;;  %v736_v57 = vld [vmem:[%s8823_s12 + $0x378] sm:$0xff] }
 0x2f5   : > { %11495 = vst [vmem:[#allocation28_spill] sm:$0xff] %v9213_v12 }
 0x2fa   : > { %2589 = vmatmul.mubr.bf16.gmra.mrb[84].mxu0 %v927_v2  ;;  %v952_v2 = vunpack.c.l.s8.bf16 %v728_v56 }
 0x2fb   : > { %2596 = vmatprep.mubr.bf16.mxu0 %v936_v22  ;;  %v2049_v22 = vpop.f32.mrb[103].mxu1 }
 0x2fc   : > { %v9216_v13 = vpop.f32.mrb[104].mxu1 }
 0x2fd   : > { %11496 = vst [vmem:[#allocation29_spill] sm:$0xff] %v9216_v13  ;;  %v2054_v47 = vpop.f32.mrb[105].mxu1 }
 0x2fe   : > { %v735_v47 = vld [vmem:[%s8823_s12 + $0x370] sm:$0xff] }
 0x302   : > { %2597 = vmatmul.mubr.bf16.gmra.mrb[88].mxu0 %v935_v35  ;;  %v9218_v35 = vpop.f32.mrb[106].mxu1 }
 0x303   : > { %2604 = vmatprep.mubr.bf16.mxu0 %v944_v48  ;;  %11497 = vst [vmem:[#allocation30_spill] sm:$0xff] %v9218_v35  ;;  %v960_v48 = vunpack.c.h.s8.bf16 %v728_v56  ;;  %v2057_v52 = vpop.f32.mrb[107].mxu1  ;;  %v967_v56 = vunpack.c.l.s8.bf16 %v735_v47 }
 0x304   : > { %v9221_v33 = vpop.f32.mrb[108].mxu1 }
 0x305   : > { %11498 = vst [vmem:[#allocation31_spill] sm:$0xff] %v9221_v33  ;;  %v2062_v12 = vpop.f32.mrb[109].mxu1 }
 0x306   : > { %v9230_v12 = vpop.permute.xlu0 %2879 }
 0x30a   : > { %2605 = vmatmul.mubr.bf16.gmra.mrb[92].mxu0 %v943_v59  ;;  %v9223_v59 = vpop.f32.mrb[110].mxu1 }
 0x30b   : > { %2612 = vmatprep.mubr.bf16.mxu0 %v952_v2  ;;  %11499 = vst [vmem:[#allocation32_spill] sm:$0xff] %v9223_v59  ;;  %v968_v2 = vunpack.c.l.s8.bf16 %v736_v57  ;;  %v2065_v22 = vpop.f32.mrb[111].mxu1 }
 0x30c   : > { %v9226_v13 = vpop.f32.mrb[112].mxu1 }
 0x30d   : > { %11500 = vst [vmem:[#allocation33_spill] sm:$0xff] %v9226_v13  ;;  %v2070_v35 = vpop.f32.mrb[113].mxu1  ;;  %v975_v13 = vunpack.c.h.s8.bf16 %v735_v47 }
 0x30e   : > { %v9228_v52 = vpop.f32.mrb[114].mxu1 }
 0x30f   : > { %11501 = vst [vmem:[#allocation34_spill] sm:$0xff] %v9228_v52  ;;  %v984_v52 = vunpack.c.l.s8.bf16 %v744_v29 }
 0x312   : > { %2613 = vmatmul.mubr.bf16.gmra.mrb[96].mxu0 %v951_v30  ;;  %v976_v30 = vunpack.c.h.s8.bf16 %v736_v57 }
 0x313   : > { %2620 = vmatprep.mubr.bf16.mxu0 %v960_v48  ;;  %v2073_v48 = vpop.f32.mrb[115].mxu1 }
 0x314   : > { %v9233_v33 = vpop.f32.mrb[116].mxu1 }
 0x315   : > { %11502 = vst [vmem:[#allocation35_spill] sm:$0xff] %v9233_v33 }
 0x31a   : > { %2621 = vmatmul.mubr.bf16.gmra.mrb[100].mxu0 %v959_v17  ;;  %v2078_v17 = vpop.f32.mrb[117].mxu1 }
 0x31b   : > { %2628 = vmatprep.mubr.bf16.mxu0 %v968_v2  ;;  %v9236_v35 = vpop.f32.mrb[118].mxu1 }
 0x31c   : > { %v2081_v57 = vpop.f32.mrb[119].mxu1 }
 0x31d   : > { %v9242_v7 = vpop.f32.mrb[120].mxu1  ;;  %v983_v57 = vunpack.c.l.s8.bf16 %v743_v20 }
 0x322   : > { %2629 = vmatmul.mubr.bf16.gmra.mrb[104].mxu0 %v967_v56 }
 0x323   : > { %2636 = vmatprep.mubr.bf16.mxu0 %v976_v30 }
 0x325   : > { %v2422_v22 = vpop.f32.mrb[0].mxu0 }
 0x326   : > { %v7522_v2 = vadd.f32 %v2422_v22, %v9069_v21  ;;  %v2424_v59 = vpop.f32.mrb[1].mxu0 }
 0x327   : > { %v2425_v39 = vpop.f32.mrb[2].mxu0  ;;  %v2086_v59 = vpop.f32.mrb[121].mxu1 }
 0x328   : > { %v7523_v56 = vadd.f32 %v2425_v39, %v9073_v55  ;;  %v2427_v30 = vpop.f32.mrb[3].mxu0  ;;  %v2882_v33 = vmul.f32 %v7522_v2, %v9230_v12  ;;  %v9245_v55 = vpop.f32.mrb[122].mxu1  ;;  %v752_v59 = vld [vmem:[%s8823_s12 + $0x3f8] sm:$0xff] }
 0x32a   : > { %v2883_v48 = vmul.f32 %v7523_v56, %v9230_v12  ;;  %2637 = vmatmul.mubr.bf16.gmra.mrb[108].mxu0 %v975_v13  ;;  %v992_v56 = vunpack.c.h.s8.bf16 %v744_v29  ;;  %v2089_v13 = vpop.f32.mrb[123].mxu1 }
 0x32b   : > { %2644 = vmatprep.mubr.bf16.mxu0 %v984_v52  ;;  %v991_v13 = vunpack.c.h.s8.bf16 %v743_v20 }
 0x32c   : > { %v2946_v17 = vpack.c.bf16 %v2883_v48, %v2882_v33 }
 0x32d   : > { %v2430_v21 = vpop.f32.mrb[4].mxu0 }
 0x32e   : > { %v7524_v47 = vadd.f32 %v2430_v21, %v9076_v60  ;;  %v2432_v22 = vpop.f32.mrb[5].mxu0  ;;  %7346 = vmatprep.mubr.bf16.mxu1 %v2946_v17  ;;  %v9251_v60 = vpop.f32.mrb[124].mxu1 }
 0x32f   : > { %v2433_v39 = vpop.f32.mrb[6].mxu0  ;;  %v2094_v21 = vpop.f32.mrb[125].mxu1 }
 0x330   : > { %v7525_v2 = vadd.f32 %v2433_v39, %v9079_v62  ;;  %v2435_v52 = vpop.f32.mrb[7].mxu0  ;;  %v2884_v33 = vmul.f32 %v7524_v47, %v9230_v12  ;;  %v9254_v62 = vpop.f32.mrb[126].mxu1  ;;  %v1000_v47 = vunpack.c.l.s8.bf16 %v752_v59 }
 0x331   : > { %11503 = vst [vmem:[#allocation36_spill] sm:$0xff] %v9254_v62  ;;  %v2097_v52 = vpop.f32.mrb[127].mxu1  ;;  %v1008_v62 = vunpack.c.h.s8.bf16 %v752_v59 }
 0x332   : > { %v2885_v30 = vmul.f32 %v7525_v2, %v9230_v12  ;;  %2645 = vmatmul.mubr.bf16.gmra.mrb[112].mxu0 %v983_v57 }
 0x333   : > { %2652 = vmatprep.mubr.bf16.mxu0 %v992_v56 }
 0x334   : > { %v2947_v48 = vpack.c.bf16 %v2885_v30, %v2884_v33  ;;  %v751_v30 = vld [vmem:[%s8823_s12 + $0x3f0] sm:$0xff]  ;;  %s6333_s12 = sshll.u32 %s9984_s16, 4  ;;  %s11282_s12 = int_to_ptr.vmem [resolvable:$true] %s6333_s12 }
 0x335   : > { %v2438_v17 = vpop.f32.mrb[8].mxu0  ;;  %s8401_s30 = scalar_lea.vmem %s11282_s12, 4096  ;;  %p8408_p5 = scmp.lt.s32.totalorder %s11282_s12, %s8406_s27 }
 0x336   : > { %v7526_v22 = vadd.f32 %v2438_v17, %v9081_v11  ;;  %v2440_v29 = vpop.f32.mrb[9].mxu0  ;;  %7347 = vmatmul.mubr.bf16.vlgmr.msra.gmra.mrb[128].mxu1 %v2947_v48  ;;  %v999_v17 = vunpack.c.l.s8.bf16 %v751_v30  ;;  %p8402_p13 = scmp.ne.s32.totalorder %s11282_s12, %s8401_s30  ;;  %p8409_p7 = scmp.lt.s32.totalorder %s8407_s19, %s8401_s30 }
 0x337   : > { %v2441_v39 = vpop.f32.mrb[10].mxu0 }
 0x338   : > { %v7527_v57 = vadd.f32 %v2441_v39, %v9085_v16  ;;  %v2443_v56 = vpop.f32.mrb[11].mxu0  ;;  %v2886_v2 = vmul.f32 %v7526_v22, %v9230_v12  ;;  %p8403_p6 = pnand %p8402_p13, %p8760_p10  ;;  %p8410_p9 = por %p8409_p7, %p8408_p5 }
 0x33a   : > { %v2887_v33 = vmul.f32 %v7527_v57, %v9230_v12  ;;  %2653 = vmatmul.mubr.bf16.gmra.mrb[116].mxu0 %v991_v13  ;;  %p8404_p3 = pneg %p8403_p6 }
 0x33b   : > { %2660 = vmatprep.mubr.bf16.mxu0 %v1000_v47 }
 0x33c   : > { %v2948_v21 = vpack.c.bf16 %v2887_v33, %v2886_v2  ;;  %p8411_p0 = pnand %p8410_p9, %p8404_p3 }
 0x33d   : > { %v2446_v11 = vpop.f32.mrb[12].mxu0 }
 0x33e   : > { %v7528_v48 = vadd.f32 %v2446_v11, %v9088_v25  ;;  %v2448_v20 = vpop.f32.mrb[13].mxu0  ;;  %7350 = vmatprep.mubr.bf16.mxu1 %v2948_v21  ;;  %v1007_v25 = vunpack.c.h.s8.bf16 %v751_v30 }
 0x33f   : > { %v2449_v29 = vpop.f32.mrb[14].mxu0 }
 0x340   : > { %v7529_v52 = vadd.f32 %v2449_v29, %v9091_v31  ;;  %v2451_v16 = vpop.f32.mrb[15].mxu0  ;;  %v2888_v39 = vmul.f32 %v7528_v48, %v9230_v12 }
 0x342   : > { %v2889_v22 = vmul.f32 %v7529_v52, %v9230_v12  ;;  %2661 = vmatmul.mubr.bf16.gmra.mrb[120].mxu0 %v999_v17 }
 0x343   : > { %2668 = vmatprep.mubr.bf16.mxu0 %v1008_v62 }
 0x344   : > { %v2949_v13 = vpack.c.bf16 %v2889_v22, %v2888_v39 }
 0x345   : > { %v2454_v47 = vpop.f32.mrb[16].mxu0 }
 0x346   : > { %v7530_v57 = vadd.f32 %v2454_v47, %v9093_v9  ;;  %v2456_v56 = vpop.f32.mrb[17].mxu0  ;;  %7351 = vmatmul.mubr.bf16.gmra.mrb[132].mxu1 %v2949_v13 }
 0x347   : > { %v2457_v2 = vpop.f32.mrb[18].mxu0 }
 0x348   : > { %v7531_v33 = vadd.f32 %v2457_v2, %v9097_v10  ;;  %v2459_v59 = vpop.f32.mrb[19].mxu0  ;;  %v2890_v31 = vmul.f32 %v7530_v57, %v9230_v12 }
 0x34a   : > { %v2891_v21 = vmul.f32 %v7531_v33, %v9230_v12  ;;  %2669 = vmatmul.mubr.bf16.gmra.mrb[124].mxu0 %v1007_v25 }
 0x34c   : > { %v2950_v11 = vpack.c.bf16 %v2891_v21, %v2890_v31 }
 0x34d   : > { %v2462_v48 = vpop.f32.mrb[20].mxu0 }
 0x34e   : > { %v7532_v62 = vadd.f32 %v2462_v48, %v9100_v44  ;;  %v2464_v20 = vpop.f32.mrb[21].mxu0  ;;  %7354 = vmatprep.mubr.bf16.mxu1 %v2950_v11 }
 0x34f   : > { %v2465_v17 = vpop.f32.mrb[22].mxu0 }
 0x350   : > { %v7533_v9 = vadd.f32 %v2465_v17, %v9103_v46  ;;  %v2467_v29 = vpop.f32.mrb[23].mxu0  ;;  %v2892_v30 = vmul.f32 %v7532_v62, %v9230_v12 }
 0x352   : > { %v2893_v10 = vmul.f32 %v7533_v9, %v9230_v12 }
 0x354   : > { %v2951_v52 = vpack.c.bf16 %v2893_v10, %v2892_v30 }
 0x355   : > { %v2470_v16 = vpop.f32.mrb[24].mxu0 }
 0x356   : > { %v7534_v39 = vadd.f32 %v2470_v16, %v9105_v51  ;;  %v2472_v22 = vpop.f32.mrb[25].mxu0  ;;  %7355 = vmatmul.mubr.bf16.gmra.mrb[136].mxu1 %v2951_v52 }
 0x357   : > { %v2473_v13 = vpop.f32.mrb[26].mxu0 }
 0x358   : > { %v7535_v47 = vadd.f32 %v2473_v13, %v9109_v54  ;;  %v2475_v44 = vpop.f32.mrb[27].mxu0  ;;  %v2894_v57 = vmul.f32 %v7534_v39, %v9230_v12 }
 0x35a   : > { %v2895_v56 = vmul.f32 %v7535_v47, %v9230_v12 }
 0x35c   : > { %v2952_v46 = vpack.c.bf16 %v2895_v56, %v2894_v57 }
 0x35d   : > { %v2478_v25 = vpop.f32.mrb[28].mxu0 }
 0x35e   : > { %v7536_v2 = vadd.f32 %v2478_v25, %v9112_v28  ;;  %v2480_v33 = vpop.f32.mrb[29].mxu0  ;;  %7358 = vmatprep.mubr.bf16.mxu1 %v2952_v46 }
 0x35f   : > { %v2481_v59 = vpop.f32.mrb[30].mxu0 }
 0x360   : > { %v7537_v31 = vadd.f32 %v2481_v59, %v9115_v63  ;;  %v2483_v51 = vpop.f32.mrb[31].mxu0  ;;  %v2896_v21 = vmul.f32 %v7536_v2, %v9230_v12 }
 0x362   : > { %v2897_v11 = vmul.f32 %v7537_v31, %v9230_v12 }
 0x364   : > { %v2953_v54 = vpack.c.bf16 %v2897_v11, %v2896_v21 }
 0x365   : > { %v2486_v48 = vpop.f32.mrb[32].mxu0 }
 0x366   : > { %v7538_v62 = vadd.f32 %v2486_v48, %v9117_v3  ;;  %v2488_v20 = vpop.f32.mrb[33].mxu0  ;;  %7359 = vmatmul.mubr.bf16.gmra.mrb[140].mxu1 %v2953_v54 }
 0x367   : > { %v2489_v17 = vpop.f32.mrb[34].mxu0 }
 0x368   : > { %v7539_v9 = vadd.f32 %v2489_v17, %v9121_v4  ;;  %v2491_v28 = vpop.f32.mrb[35].mxu0  ;;  %v2898_v29 = vmul.f32 %v7538_v62, %v9230_v12 }
 0x36a   : > { %v2899_v30 = vmul.f32 %v7539_v9, %v9230_v12 }
 0x36c   : > { %v2954_v63 = vpack.c.bf16 %v2899_v30, %v2898_v29 }
 0x36d   : > { %v2494_v10 = vpop.f32.mrb[36].mxu0 }
 0x36e   : > { %v7540_v52 = vadd.f32 %v2494_v10, %v9124_v6  ;;  %v2496_v16 = vpop.f32.mrb[37].mxu0  ;;  %7362 = vmatprep.mubr.bf16.mxu1 %v2954_v63 }
 0x36f   : > { %v2497_v39 = vpop.f32.mrb[38].mxu0 }
 0x370   : > { %v7541_v22 = vadd.f32 %v2497_v39, %v9127_v36  ;;  %v2499_v3 = vpop.f32.mrb[39].mxu0  ;;  %v2900_v13 = vmul.f32 %v7540_v52, %v9230_v12 }
 0x372   : > { %v2901_v47 = vmul.f32 %v7541_v22, %v9230_v12 }
 0x374   : > { %v2955_v4 = vpack.c.bf16 %v2901_v47, %v2900_v13 }
 0x375   : > { %v2502_v44 = vpop.f32.mrb[40].mxu0 }
 0x376   : > { %v7542_v57 = vadd.f32 %v2502_v44, %v9129_v42  ;;  %v2504_v56 = vpop.f32.mrb[41].mxu0  ;;  %7363 = vmatmul.mubr.bf16.gmra.mrb[144].mxu1 %v2955_v4 }
 0x377   : > { %v2505_v46 = vpop.f32.mrb[42].mxu0 }
 0x378   : > { %v7543_v25 = vadd.f32 %v2505_v46, %v9132_v45  ;;  %v2507_v6 = vpop.f32.mrb[43].mxu0  ;;  %v2902_v2 = vmul.f32 %v7542_v57, %v9230_v12 }
 0x37a   : > { %v2903_v33 = vmul.f32 %v7543_v25, %v9230_v12 }
 0x37c   : > { %v2956_v36 = vpack.c.bf16 %v2903_v33, %v2902_v2 }
 0x37d   : > { %v2510_v59 = vpop.f32.mrb[44].mxu0 }
 0x37e   : > { %v7544_v31 = vadd.f32 %v2510_v59, %v9134_v19  ;;  %v2512_v51 = vpop.f32.mrb[45].mxu0  ;;  %7366 = vmatprep.mubr.bf16.mxu1 %v2956_v36 }
 0x37f   : > { %v2513_v21 = vpop.f32.mrb[46].mxu0 }
 0x380   : > { %v7545_v11 = vadd.f32 %v2513_v21, %v9137_v53  ;;  %v2515_v42 = vpop.f32.mrb[47].mxu0  ;;  %v2904_v54 = vmul.f32 %v7544_v31, %v9230_v12 }
 0x382   : > { %v2905_v48 = vmul.f32 %v7545_v11, %v9230_v12 }
 0x384   : > { %v2957_v45 = vpack.c.bf16 %v2905_v48, %v2904_v54 }
 0x385   : > { %v2518_v62 = vpop.f32.mrb[48].mxu0 }
 0x386   : > { %v7546_v20 = vadd.f32 %v2518_v62, %v9139_v58  ;;  %v2520_v17 = vpop.f32.mrb[49].mxu0  ;;  %7367 = vmatmul.mubr.bf16.gmra.mrb[148].mxu1 %v2957_v45 }
 0x387   : > { %v2521_v9 = vpop.f32.mrb[50].mxu0 }
 0x388   : > { %v7547_v28 = vadd.f32 %v2521_v9, %v9142_v61  ;;  %v2523_v19 = vpop.f32.mrb[51].mxu0  ;;  %v2906_v29 = vmul.f32 %v7546_v20, %v9230_v12 }
 0x38a   : > { %v2907_v30 = vmul.f32 %v7547_v28, %v9230_v12 }
 0x38c   : > { %v2958_v53 = vpack.c.bf16 %v2907_v30, %v2906_v29 }
 0x38d   : > { %v2526_v63 = vpop.f32.mrb[52].mxu0 }
 0x38e   : > { %v7548_v10 = vadd.f32 %v2526_v63, %v9144_v8  ;;  %v2528_v52 = vpop.f32.mrb[53].mxu0  ;;  %7370 = vmatprep.mubr.bf16.mxu1 %v2958_v53 }
 0x38f   : > { %v2529_v16 = vpop.f32.mrb[54].mxu0 }
 0x390   : > { %v7549_v39 = vadd.f32 %v2529_v16, %v9147_v14  ;;  %v2531_v58 = vpop.f32.mrb[55].mxu0  ;;  %v2908_v22 = vmul.f32 %v7548_v10, %v9230_v12 }
 0x392   : > { %v2909_v3 = vmul.f32 %v7549_v39, %v9230_v12 }
 0x394   : > { %v2959_v61 = vpack.c.bf16 %v2909_v3, %v2908_v22 }
 0x395   : > { %v2534_v13 = vpop.f32.mrb[56].mxu0 }
 0x396   : > { %v7550_v47 = vadd.f32 %v2534_v13, %v9149_v27  ;;  %v2536_v4 = vpop.f32.mrb[57].mxu0  ;;  %7371 = vmatmul.mubr.bf16.gmra.mrb[152].mxu1 %v2959_v61 }
 0x397   : > { %v2537_v44 = vpop.f32.mrb[58].mxu0 }
 0x398   : > { %v7551_v57 = vadd.f32 %v2537_v44, %v9152_v32  ;;  %v2539_v8 = vpop.f32.mrb[59].mxu0  ;;  %v2910_v56 = vmul.f32 %v7550_v47, %v9230_v12 }
 0x39a   : > { %v2911_v46 = vmul.f32 %v7551_v57, %v9230_v12 }
 0x39c   : > { %v2960_v14 = vpack.c.bf16 %v2911_v46, %v2910_v56 }
 0x39d   : > { %v2542_v25 = vpop.f32.mrb[60].mxu0 }
 0x39e   : > { %v7552_v6 = vadd.f32 %v2542_v25, %v9154_v37  ;;  %v2544_v2 = vpop.f32.mrb[61].mxu0  ;;  %7374 = vmatprep.mubr.bf16.mxu1 %v2960_v14 }
 0x39f   : > { %v2545_v33 = vpop.f32.mrb[62].mxu0 }
 0x3a0   : > { %v7553_v36 = vadd.f32 %v2545_v33, %v9157_v40  ;;  %v2547_v27 = vpop.f32.mrb[63].mxu0  ;;  %v2912_v59 = vmul.f32 %v7552_v6, %v9230_v12 }
 0x3a2   : > { %v2913_v31 = vmul.f32 %v7553_v36, %v9230_v12 }
 0x3a4   : > { %v2961_v32 = vpack.c.bf16 %v2913_v31, %v2912_v59 }
 0x3a5   : > { %v2550_v51 = vpop.f32.mrb[64].mxu0 }
 0x3a6   : > { %v7554_v21 = vadd.f32 %v2550_v51, %v9166_v5  ;;  %v2552_v11 = vpop.f32.mrb[65].mxu0  ;;  %7375 = vmatmul.mubr.bf16.gmra.mrb[156].mxu1 %v2961_v32 }
 0x3a7   : > { %v2553_v42 = vpop.f32.mrb[66].mxu0 }
 0x3a8   : > { %v7555_v54 = vadd.f32 %v2553_v42, %v9168_v34  ;;  %v2555_v37 = vpop.f32.mrb[67].mxu0  ;;  %v2914_v48 = vmul.f32 %v7554_v21, %v9230_v12 }
 0x3aa   : > { %v2915_v45 = vmul.f32 %v7555_v54, %v9230_v12 }
 0x3ac   : > { %v2962_v40 = vpack.c.bf16 %v2915_v45, %v2914_v48  ;;  %v11504_v45 = vld [vmem:[#allocation23_spill] sm:$0xff] }
 0x3ad   : > { %v2558_v62 = vpop.f32.mrb[68].mxu0 }
 0x3ae   : > { %v7556_v20 = vadd.f32 %v2558_v62, %v9171_v41  ;;  %v2560_v17 = vpop.f32.mrb[69].mxu0  ;;  %7378 = vmatprep.mubr.bf16.mxu1 %v2962_v40 }
 0x3af   : > { %v2561_v9 = vpop.f32.mrb[70].mxu0  ;;  %v11505_v17 = vld [vmem:[#allocation24_spill] sm:$0xff] }
 0x3b0   : > { %v7557_v28 = vadd.f32 %v2561_v9, %v9173_v15  ;;  %v2563_v5 = vpop.f32.mrb[71].mxu0  ;;  %v2916_v19 = vmul.f32 %v7556_v20, %v9230_v12 }
 0x3b2   : > { %v2917_v29 = vmul.f32 %v7557_v28, %v9230_v12 }
 0x3b4   : > { %v2963_v34 = vpack.c.bf16 %v2917_v29, %v2916_v19  ;;  %v11506_v29 = vld [vmem:[#allocation25_spill] sm:$0xff] }
 0x3b5   : > { %v2566_v30 = vpop.f32.mrb[72].mxu0 }
 0x3b6   : > { %v7558_v53 = vadd.f32 %v2566_v30, %v9176_v49  ;;  %v2568_v63 = vpop.f32.mrb[73].mxu0  ;;  %7379 = vmatmul.mubr.bf16.gmra.mrb[160].mxu1 %v2963_v34 }
 0x3b7   : > { %v2569_v10 = vpop.f32.mrb[74].mxu0  ;;  %v11507_v63 = vld [vmem:[#allocation26_spill] sm:$0xff] }
 0x3b8   : > { %v7559_v52 = vadd.f32 %v2569_v10, %v9178_v23  ;;  %v2571_v41 = vpop.f32.mrb[75].mxu0  ;;  %v2918_v16 = vmul.f32 %v7558_v53, %v9230_v12 }
 0x3ba   : > { %v2919_v39 = vmul.f32 %v7559_v52, %v9230_v12 }
 0x3bc   : > { %v2964_v15 = vpack.c.bf16 %v2919_v39, %v2918_v16 }
 0x3bd   : > { %v2574_v58 = vpop.f32.mrb[76].mxu0 }
 0x3be   : > { %v7560_v22 = vadd.f32 %v2574_v58, %v9181_v1  ;;  %v2576_v3 = vpop.f32.mrb[77].mxu0  ;;  %7382 = vmatprep.mubr.bf16.mxu1 %v2964_v15  ;;  %v11508_v58 = vld [vmem:[#allocation27_spill] sm:$0xff] }
 0x3bf   : > { %v2577_v61 = vpop.f32.mrb[78].mxu0 }
 0x3c0   : > { %v7561_v13 = vadd.f32 %v2577_v61, %v9183_v0  ;;  %v2579_v49 = vpop.f32.mrb[79].mxu0  ;;  %v2920_v47 = vmul.f32 %v7560_v22, %v9230_v12 }
 0x3c2   : > { %v2921_v4 = vmul.f32 %v7561_v13, %v9230_v12  ;;  %v11509_v13 = vld [vmem:[#allocation28_spill] sm:$0xff] }
 0x3c4   : > { %v2965_v23 = vpack.c.bf16 %v2921_v4, %v2920_v47 }
 0x3c5   : > { %v2582_v44 = vpop.f32.mrb[80].mxu0 }
 0x3c6   : > { %v7562_v57 = vadd.f32 %v2582_v44, %v9186_v18  ;;  %v2584_v8 = vpop.f32.mrb[81].mxu0  ;;  %7383 = vmatmul.mubr.bf16.gmra.mrb[164].mxu1 %v2965_v23 }
 0x3c7   : > { %v2585_v56 = vpop.f32.mrb[82].mxu0  ;;  %v11510_v8 = vld [vmem:[#allocation29_spill] sm:$0xff] }
 0x3c8   : > { %v7563_v46 = vadd.f32 %v2585_v56, %v9188_v24  ;;  %v2587_v1 = vpop.f32.mrb[83].mxu0  ;;  %v2922_v14 = vmul.f32 %v7562_v57, %v9230_v12 }
 0x3ca   : > { %v2923_v25 = vmul.f32 %v7563_v46, %v9230_v12 }
 0x3cc   : > { %v2966_v0 = vpack.c.bf16 %v2923_v25, %v2922_v14  ;;  %v11511_v14 = vld [vmem:[#allocation30_spill] sm:$0xff] }
 0x3cd   : > { %v2590_v6 = vpop.f32.mrb[84].mxu0 }
 0x3ce   : > { %v7564_v2 = vadd.f32 %v2590_v6, %v9191_v38  ;;  %v2592_v33 = vpop.f32.mrb[85].mxu0  ;;  %7386 = vmatprep.mubr.bf16.mxu1 %v2966_v0 }
 0x3cf   : > { %v2593_v36 = vpop.f32.mrb[86].mxu0 }
 0x3d0   : > { %v7565_v27 = vadd.f32 %v2593_v36, %v9193_v43  ;;  %v2595_v18 = vpop.f32.mrb[87].mxu0  ;;  %v2924_v59 = vmul.f32 %v7564_v2, %v9230_v12 }
 0x3d2   : > { %v2925_v31 = vmul.f32 %v7565_v27, %v9230_v12  ;;  %v11512_v27 = vld [vmem:[#allocation31_spill] sm:$0xff] }
 0x3d4   : > { %v2967_v24 = vpack.c.bf16 %v2925_v31, %v2924_v59 }
 0x3d5   : > { %v2598_v32 = vpop.f32.mrb[88].mxu0 }
 0x3d6   : > { %v7566_v51 = vadd.f32 %v2598_v32, %v9196_v50  ;;  %v2600_v21 = vpop.f32.mrb[89].mxu0  ;;  %7387 = vmatmul.mubr.bf16.gmra.mrb[168].mxu1 %v2967_v24  ;;  %v11513_v24 = vld [vmem:[#allocation32_spill] sm:$0xff] }
 0x3d7   : > { %v2601_v11 = vpop.f32.mrb[90].mxu0 }
 0x3d8   : > { %v7567_v42 = vadd.f32 %v2601_v11, %v9198_v26  ;;  %v2603_v38 = vpop.f32.mrb[91].mxu0  ;;  %v2926_v54 = vmul.f32 %v7566_v51, %v9230_v12 }
 0x3da   : > { %v2927_v37 = vmul.f32 %v7567_v42, %v9230_v12 }
 0x3dc   : > { %v2968_v43 = vpack.c.bf16 %v2927_v37, %v2926_v54  ;;  %v11514_v54 = vld [vmem:[#allocation33_spill] sm:$0xff] }
 0x3dd   : > { %v2606_v48 = vpop.f32.mrb[92].mxu0 }
 0x3de   : > { %v7568_v40 = vadd.f32 %v2606_v48, %v11504_v45  ;;  %v2608_v62 = vpop.f32.mrb[93].mxu0  ;;  %7390 = vmatprep.mubr.bf16.mxu1 %v2968_v43  ;;  %v9364_v45 = vld [vmem:[%s11391_s4] ss:$0 sm:$0xff] }
 0x3df   : > { %v2609_v20 = vpop.f32.mrb[94].mxu0 }
 0x3e0   : > { %v7569_v9 = vadd.f32 %v2609_v20, %v11505_v17  ;;  %v2611_v50 = vpop.f32.mrb[95].mxu0  ;;  %v2928_v28 = vmul.f32 %v7568_v40, %v9230_v12  ;;  %v11515_v40 = vld [vmem:[#allocation34_spill] sm:$0xff] }
 0x3e2   : > { %v2929_v5 = vmul.f32 %v7569_v9, %v9230_v12 }
 0x3e4   : > { %v2969_v26 = vpack.c.bf16 %v2929_v5, %v2928_v28 }
 0x3e5   : > { %v2614_v19 = vpop.f32.mrb[96].mxu0 }
 0x3e6   : > { %v7570_v34 = vadd.f32 %v2614_v19, %v11506_v29  ;;  %v2616_v30 = vpop.f32.mrb[97].mxu0  ;;  %7391 = vmatmul.mubr.bf16.gmra.mrb[172].mxu1 %v2969_v26 }
 0x3e7   : > { %v2617_v53 = vpop.f32.mrb[98].mxu0 }
 0x3e8   : > { %v7571_v10 = vadd.f32 %v2617_v53, %v11507_v63  ;;  %v2619_v52 = vpop.f32.mrb[99].mxu0  ;;  %v2930_v41 = vmul.f32 %v7570_v34, %v9230_v12  ;;  %v11516_v63 = vld [vmem:[#allocation35_spill] sm:$0xff] }
 0x3ea   : > { %v2931_v16 = vmul.f32 %v7571_v10, %v9230_v12 }
 0x3ec   : > { %v2970_v39 = vpack.c.bf16 %v2931_v16, %v2930_v41 }
 0x3ed   : > { %v2622_v15 = vpop.f32.mrb[100].mxu0 }
 0x3ee   : > { %v7572_v22 = vadd.f32 %v2622_v15, %v11508_v58  ;;  %v2624_v3 = vpop.f32.mrb[101].mxu0  ;;  %7394 = vmatprep.mubr.bf16.mxu1 %v2970_v39 }
 0x3ef   : > { %v2625_v61 = vpop.f32.mrb[102].mxu0 }
 0x3f0   : > { %v7573_v49 = vadd.f32 %v2625_v61, %v11509_v13  ;;  %v2627_v47 = vpop.f32.mrb[103].mxu0  ;;  %v2932_v4 = vmul.f32 %v7572_v22, %v9230_v12 }
 0x3f2   : > { %v2933_v23 = vmul.f32 %v7573_v49, %v9230_v12 }
 0x3f4   : > { %v2971_v44 = vpack.c.bf16 %v2933_v23, %v2932_v4 }
 0x3f5   : > { %v2630_v57 = vpop.f32.mrb[104].mxu0 }
 0x3f6   : > { %v7574_v56 = vadd.f32 %v2630_v57, %v11510_v8  ;;  %v2632_v46 = vpop.f32.mrb[105].mxu0  ;;  %7395 = vmatmul.mubr.bf16.gmra.mrb[176].mxu1 %v2971_v44 }
 0x3f7   : > { %v2633_v1 = vpop.f32.mrb[106].mxu0 }
 0x3f8   : > { %v7575_v25 = vadd.f32 %v2633_v1, %v11511_v14  ;;  %v2635_v0 = vpop.f32.mrb[107].mxu0  ;;  %v2934_v6 = vmul.f32 %v7574_v56, %v9230_v12 }
 0x3fa   : > { %v2935_v2 = vmul.f32 %v7575_v25, %v9230_v12 }
 0x3fc   : > { %v2972_v33 = vpack.c.bf16 %v2935_v2, %v2934_v6  ;;  %v11517_v2 = vld [vmem:[#allocation36_spill] sm:$0xff] }
 0x3fd   : > { %v2638_v36 = vpop.f32.mrb[108].mxu0 }
 0x3fe   : > { %v7576_v18 = vadd.f32 %v2638_v36, %v11512_v27  ;;  %v2640_v59 = vpop.f32.mrb[109].mxu0  ;;  %7398 = vmatprep.mubr.bf16.mxu1 %v2972_v33 }
 0x3ff   : > { %v2641_v31 = vpop.f32.mrb[110].mxu0 }
 0x400   : > { %v7577_v32 = vadd.f32 %v2641_v31, %v11513_v24  ;;  %v2643_v51 = vpop.f32.mrb[111].mxu0  ;;  %v2936_v21 = vmul.f32 %v7576_v18, %v9230_v12 }
 0x402   : > { %v2937_v11 = vmul.f32 %v7577_v32, %v9230_v12 }
 0x404   : > { %v2973_v42 = vpack.c.bf16 %v2937_v11, %v2936_v21 }
 0x405   : > { %v2646_v38 = vpop.f32.mrb[112].mxu0 }
 0x406   : > { %v7578_v37 = vadd.f32 %v2646_v38, %v11514_v54  ;;  %v2648_v43 = vpop.f32.mrb[113].mxu0  ;;  %7399 = vmatmul.mubr.bf16.gmra.mrb[180].mxu1 %v2973_v42 }
 0x407   : > { %v2649_v48 = vpop.f32.mrb[114].mxu0 }
 0x408   : > { %v7579_v62 = vadd.f32 %v2649_v48, %v11515_v40  ;;  %v2651_v20 = vpop.f32.mrb[115].mxu0  ;;  %v2938_v9 = vmul.f32 %v7578_v37, %v9230_v12 }
 0x409   : > { %v7348_v17 = vpop.f32.mrb[128].mxu1 }
 0x40a   : > { %v2939_v50 = vmul.f32 %v7579_v62, %v9230_v12  ;;  %v9370_v28 = vadd.f32 %v7348_v17, %v9364_v45  ;;  %v3083_v5 = vpop.f32.mrb[129].mxu1 }
 0x40b   : > { %v9373_v26 = vadd.f32 %v9364_v45, %v3083_v5  ;;  %v7349_v19 = vpop.f32.mrb[130].mxu1 }
 0x40c   : > { %3344 = vadd.xlane.f32.xlu1 %v9370_v28  ;;  %v3086_v29 = vpop.f32.mrb[131].mxu1  ;;  %v2974_v34 = vpack.c.bf16 %v2939_v50, %v2938_v9  ;;  %v9378_v53 = vadd.f32 %v7349_v19, %v9364_v45 }
 0x40d   : > { %v2654_v30 = vpop.f32.mrb[116].mxu0  ;;  %3340 = vadd.xlane.f32.xlu0 %v9373_v26  ;;  %v9384_v15 = vadd.f32 %v9364_v45, %v3086_v29 }
 0x40e   : > { %v7580_v10 = vadd.f32 %v2654_v30, %v11516_v63  ;;  %v2656_v52 = vpop.f32.mrb[117].mxu0  ;;  %7402 = vmatprep.mubr.bf16.mxu1 %v2974_v34 }
 0x40f   : > { %v2657_v41 = vpop.f32.mrb[118].mxu0 }
 0x410   : > { %v7581_v16 = vadd.f32 %v2657_v41, %v9236_v35  ;;  %v2659_v39 = vpop.f32.mrb[119].mxu0  ;;  %3346 = vadd.xlane.f32.xlu1 %v9378_v53  ;;  %v2940_v58 = vmul.f32 %v7580_v10, %v9230_v12 }
 0x412   : > { %v2941_v22 = vmul.f32 %v7581_v16, %v9230_v12 }
 0x414   : > { %3342 = vadd.xlane.f32.xlu1 %v9384_v15  ;;  %v2975_v3 = vpack.c.bf16 %v2941_v22, %v2940_v58 }
 0x415   : > { %v2662_v61 = vpop.f32.mrb[120].mxu0 }
 0x416   : > { %v7582_v13 = vadd.f32 %v2662_v61, %v9242_v7  ;;  %v2664_v49 = vpop.f32.mrb[121].mxu0  ;;  %7403 = vmatmul.mubr.bf16.gmra.mrb[184].mxu1 %v2975_v3 }
 0x417   : > { %v2665_v47 = vpop.f32.mrb[122].mxu0 }
 0x418   : > { %v7583_v35 = vadd.f32 %v2665_v47, %v9245_v55  ;;  %v2667_v4 = vpop.f32.mrb[123].mxu0  ;;  %v2942_v44 = vmul.f32 %v7582_v13, %v9230_v12 }
 0x419   : > { %v7352_v23 = vpop.f32.mrb[132].mxu1 }
 0x41a   : > { %v2943_v57 = vmul.f32 %v7583_v35, %v9230_v12  ;;  %v9394_v8 = vadd.f32 %v7352_v23, %v9364_v45  ;;  %v3099_v56 = vpop.f32.mrb[133].mxu1 }
 0x41b   : > { %v7353_v46 = vpop.f32.mrb[134].mxu1  ;;  %v9398_v25 = vadd.f32 %v9364_v45, %v3099_v56 }
 0x41c   : > { %v3102_v1 = vpop.f32.mrb[135].mxu1  ;;  %3352 = vadd.xlane.f32.xlu1 %v9394_v8  ;;  %v2976_v7 = vpack.c.bf16 %v2943_v57, %v2942_v44  ;;  %v9404_v27 = vadd.f32 %v7353_v46, %v9364_v45 }
 0x41d   : > { %v2670_v14 = vpop.f32.mrb[124].mxu0 }
 0x41e   : > { %v7584_v55 = vadd.f32 %v2670_v14, %v9251_v60  ;;  %v2672_v0 = vpop.f32.mrb[125].mxu0  ;;  %7406 = vmatprep.mubr.bf16.mxu1 %v2976_v7  ;;  %v9410_v60 = vadd.f32 %v9364_v45, %v3102_v1 }
 0x41f   : > { %v2673_v6 = vpop.f32.mrb[126].mxu0 }
 0x420   : > { %v7585_v33 = vadd.f32 %v2673_v6, %v11517_v2  ;;  %v2675_v36 = vpop.f32.mrb[127].mxu0  ;;  %3348 = vadd.xlane.f32.xlu1 %v9398_v25  ;;  %v2944_v18 = vmul.f32 %v7584_v55, %v9230_v12 }
 0x422   : > { %v2945_v59 = vmul.f32 %v7585_v33, %v9230_v12 }
 0x424   : > { %3354 = vadd.xlane.f32.xlu1 %v9404_v27  ;;  %v2977_v31 = vpack.c.bf16 %v2945_v59, %v2944_v18 }
 0x426   : > { %7407 = vmatmul.mubr.bf16.gmra.mrb[188].mxu1 %v2977_v31 }
 0x428   : > { %3350 = vadd.xlane.f32.xlu1 %v9410_v60 }
 0x429   : > { %v7356_v24 = vpop.f32.mrb[136].mxu1 }
 0x42a   : > { %v9414_v32 = vadd.f32 %v7356_v24, %v9364_v45  ;;  %v3115_v51 = vpop.f32.mrb[137].mxu1 }
 0x42b   : > { %v9417_v21 = vadd.f32 %v9364_v45, %v3115_v51  ;;  %v7357_v11 = vpop.f32.mrb[138].mxu1  ;;  %v3596_v51 = vlaneseq }
 0x42c   : > { %v3118_v42 = vpop.f32.mrb[139].mxu1  ;;  %3360 = vadd.xlane.f32.xlu0 %v9414_v32  ;;  %v9422_v12 = vadd.f32 %v7357_v11, %v9364_v45 }
 0x42d   : > { %3356 = vadd.xlane.f32.xlu1 %v9417_v21  ;;  %v9426_v38 = vadd.f32 %v9364_v45, %v3118_v42  ;;  %v9525_v11 = vand.u32 127, %v3596_v51 }
 0x42f   : > { %vm3598_vm0 = vcmp.lt.s32.totalorder %v9525_v11, 64 }
 0x431   : > { %3362 = vadd.xlane.f32.xlu1 %v9422_v12 }
 0x435   : > { %3358 = vadd.xlane.f32.xlu1 %v9426_v38 }
 0x439   : > { %v7360_v54 = vpop.f32.mrb[140].mxu1 }
 0x43a   : > { %v9430_v37 = vadd.f32 %v7360_v54, %v9364_v45  ;;  %v3131_v43 = vpop.f32.mrb[141].mxu1 }
 0x43b   : > { %v7361_v48 = vpop.f32.mrb[142].mxu1  ;;  %v9437_v20 = vadd.f32 %v9364_v45, %v3131_v43 }
 0x43c   : > { %v9433_v40 = vadd.f32 %v7361_v48, %v9364_v45  ;;  %v3134_v62 = vpop.f32.mrb[143].mxu1  ;;  %3368 = vadd.xlane.f32.xlu0 %v9430_v37 }
 0x43d   : > { %v9441_v17 = vadd.f32 %v9364_v45, %v3134_v62 }
 0x43e   : > { %3370 = vadd.xlane.f32.xlu1 %v9433_v40 }
 0x440   : > { %3364 = vadd.xlane.f32.xlu0 %v9437_v20 }
 0x442   : > { %3366 = vadd.xlane.f32.xlu1 %v9441_v17 }
 0x449   : > { %v7364_v9 = vpop.f32.mrb[144].mxu1 }
 0x44a   : > { %v9446_v50 = vadd.f32 %v7364_v9, %v9364_v45  ;;  %v3147_v5 = vpop.f32.mrb[145].mxu1 }
 0x44b   : > { %v7365_v19 = vpop.f32.mrb[146].mxu1  ;;  %v9453_v30 = vadd.f32 %v9364_v45, %v3147_v5 }
 0x44c   : > { %v9449_v29 = vadd.f32 %v7365_v19, %v9364_v45  ;;  %v3150_v34 = vpop.f32.mrb[147].mxu1  ;;  %3376 = vadd.xlane.f32.xlu0 %v9446_v50 }
 0x44d   : > { %v9457_v63 = vadd.f32 %v9364_v45, %v3150_v34 }
 0x44e   : > { %3378 = vadd.xlane.f32.xlu1 %v9449_v29 }
 0x450   : > { %3372 = vadd.xlane.f32.xlu0 %v9453_v30 }
 0x452   : > { %3374 = vadd.xlane.f32.xlu1 %v9457_v63 }
 0x459   : > { %v7368_v10 = vpop.f32.mrb[148].mxu1 }
 0x45a   : > { %v9462_v52 = vadd.f32 %v7368_v10, %v9364_v45  ;;  %v3163_v41 = vpop.f32.mrb[149].mxu1 }
 0x45b   : > { %v7369_v16 = vpop.f32.mrb[150].mxu1  ;;  %v9469_v22 = vadd.f32 %v9364_v45, %v3163_v41 }
 0x45c   : > { %v9465_v39 = vadd.f32 %v7369_v16, %v9364_v45  ;;  %v3166_v58 = vpop.f32.mrb[151].mxu1  ;;  %3384 = vadd.xlane.f32.xlu0 %v9462_v52 }
 0x45d   : > { %v9473_v3 = vadd.f32 %v9364_v45, %v3166_v58 }
 0x45e   : > { %3386 = vadd.xlane.f32.xlu1 %v9465_v39 }
 0x460   : > { %3380 = vadd.xlane.f32.xlu0 %v9469_v22 }
 0x462   : > { %3382 = vadd.xlane.f32.xlu1 %v9473_v3 }
 0x469   : > { %v7372_v61 = vpop.f32.mrb[152].mxu1 }
 0x46a   : > { %v9478_v13 = vadd.f32 %v7372_v61, %v9364_v45  ;;  %v3179_v49 = vpop.f32.mrb[153].mxu1 }
 0x46b   : > { %v7373_v47 = vpop.f32.mrb[154].mxu1  ;;  %v9485_v23 = vadd.f32 %v9364_v45, %v3179_v49 }
 0x46c   : > { %v9481_v35 = vadd.f32 %v7373_v47, %v9364_v45  ;;  %v3182_v4 = vpop.f32.mrb[155].mxu1  ;;  %3392 = vadd.xlane.f32.xlu0 %v9478_v13 }
 0x46d   : > { %v9489_v44 = vadd.f32 %v9364_v45, %v3182_v4 }
 0x46e   : > { %3394 = vadd.xlane.f32.xlu1 %v9481_v35 }
 0x470   : > { %3388 = vadd.xlane.f32.xlu0 %v9485_v23 }
 0x472   : > { %3390 = vadd.xlane.f32.xlu1 %v9489_v44 }
 0x479   : > { %v7376_v57 = vpop.f32.mrb[156].mxu1 }
 0x47a   : > { %v9494_v56 = vadd.f32 %v7376_v57, %v9364_v45  ;;  %v3195_v46 = vpop.f32.mrb[157].mxu1 }
 0x47b   : > { %v7377_v1 = vpop.f32.mrb[158].mxu1  ;;  %v9501_v55 = vadd.f32 %v9364_v45, %v3195_v46 }
 0x47c   : > { %v9497_v7 = vadd.f32 %v7377_v1, %v9364_v45  ;;  %v3198_v14 = vpop.f32.mrb[159].mxu1  ;;  %3400 = vadd.xlane.f32.xlu0 %v9494_v56 }
 0x47d   : > { %v9505_v0 = vadd.f32 %v9364_v45, %v3198_v14 }
 0x47e   : > { %3402 = vadd.xlane.f32.xlu1 %v9497_v7 }
 0x480   : > { %3396 = vadd.xlane.f32.xlu0 %v9501_v55 }
 0x482   : > { %3398 = vadd.xlane.f32.xlu1 %v9505_v0 }
 0x489   : > { %v7380_v6 = vpop.f32.mrb[160].mxu1 }
 0x48a   : > { %v9510_v2 = vadd.f32 %v7380_v6, %v9364_v45  ;;  %v3211_v33 = vpop.f32.mrb[161].mxu1 }
 0x48b   : > { %v7381_v36 = vpop.f32.mrb[162].mxu1  ;;  %v9517_v31 = vadd.f32 %v9364_v45, %v3211_v33 }
 0x48c   : > { %v9513_v18 = vadd.f32 %v7381_v36, %v9364_v45  ;;  %v3214_v59 = vpop.f32.mrb[163].mxu1  ;;  %3408 = vadd.xlane.f32.xlu0 %v9510_v2 }
 0x48d   : > { %v9521_v24 = vadd.f32 %v9364_v45, %v3214_v59 }
 0x48e   : > { %3410 = vadd.xlane.f32.xlu1 %v9513_v18 }
 0x490   : > { %3404 = vadd.xlane.f32.xlu0 %v9517_v31 }
 0x492   : > { %3406 = vadd.xlane.f32.xlu1 %v9521_v24 }
 0x499   : > { %v3345_v42 = vpop.xlane.xlu1 %3344  ;;  %v7384_v54 = vpop.f32.mrb[164].mxu1 }
 0x49a   : > { %v3470_v43 = vmul.f32 0.015625, %v3345_v42  ;;  %v9528_v48 = vadd.f32 %v7384_v54, %v9364_v45  ;;  %v3227_v62 = vpop.f32.mrb[165].mxu1  ;;  %v3341_v9 = vpop.xlane.xlu0 %3340 }
 0x49b   : > { %v3468_v5 = vmul.f32 0.015625, %v3341_v9  ;;  %v7385_v19 = vpop.f32.mrb[166].mxu1  ;;  %v9537_v58 = vadd.f32 %v9364_v45, %v3227_v62 }
 0x49c   : > { %v3534_v34 = vsub.f32 %v9370_v28, %v3470_v43  ;;  %v9532_v10 = vadd.f32 %v7385_v19, %v9364_v45  ;;  %v3230_v41 = vpop.f32.mrb[167].mxu1  ;;  %3416 = vadd.xlane.f32.xlu0 %v9528_v48 }
 0x49d   : > { %v3347_v16 = vpop.xlane.xlu1 %3346  ;;  %v3532_v49 = vsub.f32 %v9373_v26, %v3468_v5  ;;  %v9546_v47 = vadd.f32 %v9364_v45, %v3230_v41 }
 0x49e   : > { %v3471_v61 = vmul.f32 0.015625, %v3347_v16  ;;  %3418 = vadd.xlane.f32.xlu1 %v9532_v10  ;;  %v9543_v28 = vsel %vm3598_vm0, %v3534_v34, 0.0 }
 0x49f   : > { %v3665_v1 = vmul.f32 %v9543_v28, %v9543_v28  ;;  %v9561_v6 = vsel %vm3598_vm0, %v3532_v49, 0.0 }
 0x4a0   : > { %v3535_v4 = vsub.f32 %v9378_v53, %v3471_v61  ;;  %3412 = vadd.xlane.f32.xlu0 %v9537_v58  ;;  %v3663_v33 = vmul.f32 %v9561_v6, %v9561_v6 }
 0x4a1   : > { %v3343_v57 = vpop.xlane.xlu1 %3342 }
 0x4a2   : > { %v3469_v46 = vmul.f32 0.015625, %v3343_v57  ;;  %3414 = vadd.xlane.f32.xlu1 %v9546_v47  ;;  %v9555_v26 = vsel %vm3598_vm0, %v3535_v4, 0.0 }
 0x4a3   : > { %v3666_v14 = vmul.f32 %v9555_v26, %v9555_v26 }
 0x4a4   : > { %v3533_v53 = vsub.f32 %v9384_v15, %v3469_v46  ;;  %3731 = vadd.xlane.f32.xlu0 %v3665_v1 }
 0x4a6   : > { %3733 = vadd.xlane.f32.xlu1 %v3666_v14  ;;  %v9568_v36 = vsel %vm3598_vm0, %v3533_v53, 0.0 }
 0x4a7   : > { %v3664_v59 = vmul.f32 %v9568_v36, %v9568_v36 }
 0x4a8   : > { %3727 = vadd.xlane.f32.xlu0 %v3663_v33 }
 0x4a9   : > { %v7388_v51 = vpop.f32.mrb[168].mxu1  ;;  %v3353_v42 = vpop.xlane.xlu1 %3352 }
 0x4aa   : > { %v9573_v54 = vadd.f32 %v7388_v51, %v9364_v45  ;;  %v3474_v43 = vmul.f32 0.015625, %v3353_v42  ;;  %v3243_v15 = vpop.f32.mrb[169].mxu1  ;;  %3729 = vadd.xlane.f32.xlu1 %v3664_v59 }
 0x4ab   : > { %v7389_v62 = vpop.f32.mrb[170].mxu1  ;;  %v9581_v41 = vadd.f32 %v9364_v45, %v3243_v15 }
 0x4ac   : > { %v3538_v9 = vsub.f32 %v9394_v8, %v3474_v43  ;;  %v9577_v5 = vadd.f32 %v7389_v62, %v9364_v45  ;;  %v3246_v19 = vpop.f32.mrb[171].mxu1  ;;  %3424 = vadd.xlane.f32.xlu0 %v9573_v54 }
 0x4ad   : > { %v3349_v34 = vpop.xlane.xlu1 %3348  ;;  %v9589_v49 = vadd.f32 %v9364_v45, %v3246_v19 }
 0x4ae   : > { %v3472_v16 = vmul.f32 0.015625, %v3349_v34  ;;  %3426 = vadd.xlane.f32.xlu1 %v9577_v5  ;;  %v9586_v61 = vsel %vm3598_vm0, %v3538_v9, 0.0 }
 0x4af   : > { %v3669_v46 = vmul.f32 %v9586_v61, %v9586_v61 }
 0x4b0   : > { %v3536_v8 = vsub.f32 %v9398_v25, %v3472_v16  ;;  %3420 = vadd.xlane.f32.xlu0 %v9581_v41 }
 0x4b1   : > { %v3355_v4 = vpop.xlane.xlu1 %3354 }
 0x4b2   : > { %v3475_v57 = vmul.f32 0.015625, %v3355_v4  ;;  %3422 = vadd.xlane.f32.xlu1 %v9589_v49  ;;  %v9598_v1 = vsel %vm3598_vm0, %v3536_v8, 0.0 }
 0x4b3   : > { %v3667_v25 = vmul.f32 %v9598_v1, %v9598_v1 }
 0x4b4   : > { %v3539_v14 = vsub.f32 %v9404_v27, %v3475_v57  ;;  %3739 = vadd.xlane.f32.xlu0 %v3669_v46 }
 0x4b5   : > { %v3351_v53 = vpop.xlane.xlu1 %3350 }
 0x4b6   : > { %v3473_v33 = vmul.f32 0.015625, %v3351_v53  ;;  %v9605_v59 = vsel %vm3598_vm0, %v3539_v14, 0.0 }
 0x4b7   : > { %v3670_v51 = vmul.f32 %v9605_v59, %v9605_v59 }
 0x4b8   : > { %v3537_v42 = vsub.f32 %v9410_v60, %v3473_v33  ;;  %3735 = vadd.xlane.f32.xlu0 %v3667_v25 }
 0x4b9   : > { %v7392_v43 = vpop.f32.mrb[172].mxu1  ;;  %3741 = vadd.xlane.f32.xlu1 %v3670_v51  ;;  %v3361_v15 = vpop.xlane.xlu0 %3360 }
 0x4ba   : > { %v9611_v27 = vadd.f32 %v7392_v43, %v9364_v45  ;;  %v3478_v62 = vmul.f32 0.015625, %v3361_v15  ;;  %v3259_v9 = vpop.f32.mrb[173].mxu1  ;;  %v3357_v19 = vpop.xlane.xlu1 %3356  ;;  %v9615_v34 = vsel %vm3598_vm0, %v3537_v42, 0.0 }
 0x4bb   : > { %v3476_v16 = vmul.f32 0.015625, %v3357_v19  ;;  %v7393_v8 = vpop.f32.mrb[174].mxu1  ;;  %v3668_v4 = vmul.f32 %v9615_v34, %v9615_v34  ;;  %v9622_v46 = vadd.f32 %v9364_v45, %v3259_v9 }
 0x4bc   : > { %v3542_v60 = vsub.f32 %v9414_v32, %v3478_v62  ;;  %v3262_v57 = vpop.f32.mrb[175].mxu1  ;;  %3432 = vadd.xlane.f32.xlu0 %v9611_v27  ;;  %v9626_v33 = vadd.f32 %v7393_v8, %v9364_v45 }
 0x4bd   : > { %3737 = vadd.xlane.f32.xlu1 %v3668_v4  ;;  %v3540_v53 = vsub.f32 %v9417_v21, %v3476_v16  ;;  %v9638_v21 = vadd.f32 %v9364_v45, %v3262_v57 }
 0x4be   : > { %v3363_v14 = vpop.xlane.xlu1 %3362  ;;  %v9630_v51 = vsel %vm3598_vm0, %v3542_v60, 0.0 }
 0x4bf   : > { %v3479_v25 = vmul.f32 0.015625, %v3363_v14  ;;  %v3673_v43 = vmul.f32 %v9630_v51, %v9630_v51  ;;  %v9642_v62 = vsel %vm3598_vm0, %v3540_v53, 0.0 }
 0x4c0   : > { %3428 = vadd.xlane.f32.xlu0 %v9622_v46  ;;  %v3671_v19 = vmul.f32 %v9642_v62, %v9642_v62 }
 0x4c1   : > { %v3543_v32 = vsub.f32 %v9422_v12, %v3479_v25  ;;  %3434 = vadd.xlane.f32.xlu1 %v9626_v33 }
 0x4c2   : > { %v3359_v42 = vpop.xlane.xlu1 %3358 }
 0x4c3   : > { %v3477_v15 = vmul.f32 0.015625, %v3359_v42  ;;  %v9646_v9 = vsel %vm3598_vm0, %v3543_v32, 0.0 }
 0x4c4   : > { %3747 = vadd.xlane.f32.xlu0 %v3673_v43  ;;  %11518 = vst [vmem:[#allocation23_spill] sm:$0xff] %v9646_v9  ;;  %v3674_v16 = vmul.f32 %v9646_v9, %v9646_v9 }
 0x4c5   : > { %v3541_v12 = vsub.f32 %v9426_v38, %v3477_v15  ;;  %3430 = vadd.xlane.f32.xlu1 %v9638_v21 }
 0x4c7   : > { %v9656_v8 = vsel %vm3598_vm0, %v3541_v12, 0.0 }
 0x4c8   : > { %3743 = vadd.xlane.f32.xlu0 %v3671_v19  ;;  %11519 = vst [vmem:[#allocation24_spill] sm:$0xff] %v9656_v8  ;;  %v3672_v32 = vmul.f32 %v9656_v8, %v9656_v8 }
 0x4c9   : > { %v7396_v4 = vpop.f32.mrb[176].mxu1  ;;  %3749 = vadd.xlane.f32.xlu1 %v3674_v16  ;;  %v3369_v60 = vpop.xlane.xlu0 %3368 }
 0x4ca   : > { %v9659_v57 = vadd.f32 %v7396_v4, %v9364_v45  ;;  %v3482_v38 = vmul.f32 0.015625, %v3369_v60  ;;  %v3275_v14 = vpop.f32.mrb[177].mxu1 }
 0x4cb   : > { %v7397_v53 = vpop.f32.mrb[178].mxu1  ;;  %v3371_v25 = vpop.xlane.xlu1 %3370  ;;  %v9666_v19 = vadd.f32 %v9364_v45, %v3275_v14 }
 0x4cc   : > { %v3546_v42 = vsub.f32 %v9430_v37, %v3482_v38  ;;  %v3483_v43 = vmul.f32 0.015625, %v3371_v25  ;;  %v3278_v15 = vpop.f32.mrb[179].mxu1  ;;  %3440 = vadd.xlane.f32.xlu0 %v9659_v57  ;;  %v9669_v4 = vadd.f32 %v7397_v53, %v9364_v45 }
 0x4cd   : > { %3745 = vadd.xlane.f32.xlu1 %v3672_v32  ;;  %v3365_v12 = vpop.xlane.xlu0 %3364  ;;  %v9682_v53 = vadd.f32 %v9364_v45, %v3278_v15 }
 0x4ce   : > { %v3480_v16 = vmul.f32 0.015625, %v3365_v12  ;;  %v9673_v9 = vsel %vm3598_vm0, %v3546_v42, 0.0  ;;  %v3547_v37 = vsub.f32 %v9433_v40, %v3483_v43 }
 0x4cf   : > { %v3367_v60 = vpop.xlane.xlu1 %3366  ;;  %11520 = vst [vmem:[#allocation25_spill] sm:$0xff] %v9673_v9  ;;  %v3677_v14 = vmul.f32 %v9673_v9, %v9673_v9 }
 0x4d0   : > { %v3544_v38 = vsub.f32 %v9437_v20, %v3480_v16  ;;  %v3481_v25 = vmul.f32 0.015625, %v3367_v60  ;;  %3436 = vadd.xlane.f32.xlu0 %v9666_v19  ;;  %v9691_v40 = vsel %vm3598_vm0, %v3547_v37, 0.0 }
 0x4d1   : > { %3442 = vadd.xlane.f32.xlu1 %v9669_v4  ;;  %11522 = vst [vmem:[#allocation27_spill] sm:$0xff] %v9691_v40  ;;  %v3678_v43 = vmul.f32 %v9691_v40, %v9691_v40 }
 0x4d2   : > { %v9686_v32 = vsel %vm3598_vm0, %v3544_v38, 0.0  ;;  %v3545_v42 = vsub.f32 %v9441_v17, %v3481_v25 }
 0x4d3   : > { %11521 = vst [vmem:[#allocation26_spill] sm:$0xff] %v9686_v32  ;;  %v3675_v20 = vmul.f32 %v9686_v32, %v9686_v32 }
 0x4d4   : > { %3755 = vadd.xlane.f32.xlu0 %v3677_v14  ;;  %v9700_v15 = vsel %vm3598_vm0, %v3545_v42, 0.0 }
 0x4d5   : > { %3438 = vadd.xlane.f32.xlu1 %v9682_v53  ;;  %11523 = vst [vmem:[#allocation28_spill] sm:$0xff] %v9700_v15  ;;  %v3676_v14 = vmul.f32 %v9700_v15, %v9700_v15 }
 0x4d8   : > { %3751 = vadd.xlane.f32.xlu0 %v3675_v20 }
 0x4d9   : > { %v7400_v12 = vpop.f32.mrb[180].mxu1  ;;  %3757 = vadd.xlane.f32.xlu1 %v3678_v43  ;;  %v3377_v17 = vpop.xlane.xlu0 %3376 }
 0x4da   : > { %v9703_v16 = vadd.f32 %v7400_v12, %v9364_v45  ;;  %v3486_v60 = vmul.f32 0.015625, %v3377_v17  ;;  %v3291_v37 = vpop.f32.mrb[181].mxu1 }
 0x4db   : > { %v7401_v38 = vpop.f32.mrb[182].mxu1  ;;  %v3379_v25 = vpop.xlane.xlu1 %3378  ;;  %v9710_v43 = vadd.f32 %v9364_v45, %v3291_v37 }
 0x4dc   : > { %v3550_v40 = vsub.f32 %v9446_v50, %v3486_v60  ;;  %v3487_v20 = vmul.f32 0.015625, %v3379_v25  ;;  %v3294_v32 = vpop.f32.mrb[183].mxu1  ;;  %3448 = vadd.xlane.f32.xlu0 %v9703_v16  ;;  %v9713_v17 = vadd.f32 %v7401_v38, %v9364_v45 }
 0x4dd   : > { %3753 = vadd.xlane.f32.xlu1 %v3676_v14  ;;  %v3373_v42 = vpop.xlane.xlu0 %3372  ;;  %v9726_v38 = vadd.f32 %v9364_v45, %v3294_v32 }
 0x4de   : > { %v3484_v12 = vmul.f32 0.015625, %v3373_v42  ;;  %v9717_v8 = vsel %vm3598_vm0, %v3550_v40, 0.0  ;;  %v3551_v50 = vsub.f32 %v9449_v29, %v3487_v20 }
 0x4df   : > { %v3375_v9 = vpop.xlane.xlu1 %3374  ;;  %11524 = vst [vmem:[#allocation29_spill] sm:$0xff] %v9717_v8  ;;  %v3681_v37 = vmul.f32 %v9717_v8, %v9717_v8 }
 0x4e0   : > { %v3548_v60 = vsub.f32 %v9453_v30, %v3484_v12  ;;  %v3485_v25 = vmul.f32 0.015625, %v3375_v9  ;;  %3444 = vadd.xlane.f32.xlu0 %v9710_v43  ;;  %v9735_v29 = vsel %vm3598_vm0, %v3551_v50, 0.0 }
 0x4e1   : > { %3450 = vadd.xlane.f32.xlu1 %v9713_v17  ;;  %11526 = vst [vmem:[#allocation31_spill] sm:$0xff] %v9735_v29  ;;  %v3682_v9 = vmul.f32 %v9735_v29, %v9735_v29 }
 0x4e2   : > { %v9730_v14 = vsel %vm3598_vm0, %v3548_v60, 0.0  ;;  %v3549_v40 = vsub.f32 %v9457_v63, %v3485_v25 }
 0x4e3   : > { %11525 = vst [vmem:[#allocation30_spill] sm:$0xff] %v9730_v14  ;;  %v3679_v30 = vmul.f32 %v9730_v14, %v9730_v14 }
 0x4e4   : > { %3763 = vadd.xlane.f32.xlu0 %v3681_v37  ;;  %v9744_v32 = vsel %vm3598_vm0, %v3549_v40, 0.0 }
 0x4e5   : > { %3446 = vadd.xlane.f32.xlu1 %v9726_v38  ;;  %11527 = vst [vmem:[#allocation32_spill] sm:$0xff] %v9744_v32  ;;  %v3680_v37 = vmul.f32 %v9744_v32, %v9744_v32 }
 0x4e8   : > { %3759 = vadd.xlane.f32.xlu0 %v3679_v30 }
 0x4e9   : > { %v7404_v20 = vpop.f32.mrb[184].mxu1  ;;  %3765 = vadd.xlane.f32.xlu1 %v3682_v9  ;;  %v3385_v63 = vpop.xlane.xlu0 %3384 }
 0x4ea   : > { %v9747_v42 = vadd.f32 %v7404_v20, %v9364_v45  ;;  %v3490_v12 = vmul.f32 0.015625, %v3385_v63  ;;  %v3307_v50 = vpop.f32.mrb[185].mxu1 }
 0x4eb   : > { %v7405_v60 = vpop.f32.mrb[186].mxu1  ;;  %v3387_v25 = vpop.xlane.xlu1 %3386  ;;  %v9754_v9 = vadd.f32 %v9364_v45, %v3307_v50 }
 0x4ec   : > { %v3554_v29 = vsub.f32 %v9462_v52, %v3490_v12  ;;  %v3491_v30 = vmul.f32 0.015625, %v3387_v25  ;;  %v3310_v14 = vpop.f32.mrb[187].mxu1  ;;  %3456 = vadd.xlane.f32.xlu0 %v9747_v42  ;;  %v9757_v63 = vadd.f32 %v7405_v60, %v9364_v45 }
 0x4ed   : > { %3761 = vadd.xlane.f32.xlu1 %v3680_v37  ;;  %v3381_v40 = vpop.xlane.xlu0 %3380  ;;  %v9770_v60 = vadd.f32 %v9364_v45, %v3310_v14 }
 0x4ee   : > { %v3488_v20 = vmul.f32 0.015625, %v3381_v40  ;;  %v9761_v15 = vsel %vm3598_vm0, %v3554_v29, 0.0  ;;  %v3555_v52 = vsub.f32 %v9465_v39, %v3491_v30 }
 0x4ef   : > { %v3383_v8 = vpop.xlane.xlu1 %3382  ;;  %11528 = vst [vmem:[#allocation33_spill] sm:$0xff] %v9761_v15  ;;  %v3685_v50 = vmul.f32 %v9761_v15, %v9761_v15 }
 0x4f0   : > { %v3552_v12 = vsub.f32 %v9469_v22, %v3488_v20  ;;  %v3489_v25 = vmul.f32 0.015625, %v3383_v8  ;;  %3452 = vadd.xlane.f32.xlu0 %v9754_v9  ;;  %v9779_v39 = vsel %vm3598_vm0, %v3555_v52, 0.0 }
 0x4f1   : > { %3458 = vadd.xlane.f32.xlu1 %v9757_v63  ;;  %11530 = vst [vmem:[#allocation35_spill] sm:$0xff] %v9779_v39  ;;  %v3686_v8 = vmul.f32 %v9779_v39, %v9779_v39 }
 0x4f2   : > { %v9774_v37 = vsel %vm3598_vm0, %v3552_v12, 0.0  ;;  %v3553_v29 = vsub.f32 %v9473_v3, %v3489_v25 }
 0x4f3   : > { %11529 = vst [vmem:[#allocation34_spill] sm:$0xff] %v9774_v37  ;;  %v3683_v22 = vmul.f32 %v9774_v37, %v9774_v37 }
 0x4f4   : > { %3771 = vadd.xlane.f32.xlu0 %v3685_v50  ;;  %v9788_v14 = vsel %vm3598_vm0, %v3553_v29, 0.0 }
 0x4f5   : > { %3454 = vadd.xlane.f32.xlu1 %v9770_v60  ;;  %v3684_v50 = vmul.f32 %v9788_v14, %v9788_v14 }
 0x4f8   : > { %3767 = vadd.xlane.f32.xlu0 %v3683_v22 }
 0x4f9   : > { %v7408_v30 = vpop.f32.mrb[188].mxu1  ;;  %3773 = vadd.xlane.f32.xlu1 %v3686_v8  ;;  %v3393_v3 = vpop.xlane.xlu0 %3392 }
 0x4fa   : > { %v9791_v40 = vadd.f32 %v7408_v30, %v9364_v45  ;;  %v3494_v20 = vmul.f32 0.015625, %v3393_v3  ;;  %v3323_v52 = vpop.f32.mrb[189].mxu1 }
 0x4fb   : > { %v7409_v12 = vpop.f32.mrb[190].mxu1  ;;  %v3395_v25 = vpop.xlane.xlu1 %3394  ;;  %v9798_v8 = vadd.f32 %v9364_v45, %v3323_v52 }
 0x4fc   : > { %v3558_v39 = vsub.f32 %v9478_v13, %v3494_v20  ;;  %v3495_v22 = vmul.f32 0.015625, %v3395_v25  ;;  %v3326_v37 = vpop.f32.mrb[191].mxu1  ;;  %3464 = vadd.xlane.f32.xlu0 %v9791_v40  ;;  %v9801_v3 = vadd.f32 %v7409_v12, %v9364_v45 }
 0x4fd   : > { %3769 = vadd.xlane.f32.xlu1 %v3684_v50  ;;  %v3389_v29 = vpop.xlane.xlu0 %3388  ;;  %v9814_v12 = vadd.f32 %v9364_v45, %v3326_v37 }
 0x4fe   : > { %v3492_v30 = vmul.f32 0.015625, %v3389_v29  ;;  %v9805_v32 = vsel %vm3598_vm0, %v3558_v39, 0.0  ;;  %v3559_v13 = vsub.f32 %v9481_v35, %v3495_v22 }
 0x4ff   : > { %v3391_v15 = vpop.xlane.xlu1 %3390  ;;  %v3689_v52 = vmul.f32 %v9805_v32, %v9805_v32 }
 0x500   : > { %v3556_v20 = vsub.f32 %v9485_v23, %v3492_v30  ;;  %v3493_v25 = vmul.f32 0.015625, %v3391_v15  ;;  %3460 = vadd.xlane.f32.xlu0 %v9798_v8  ;;  %v9823_v35 = vsel %vm3598_vm0, %v3559_v13, 0.0 }
 0x501   : > { %3466 = vadd.xlane.f32.xlu1 %v9801_v3  ;;  %11531 = vst [vmem:[#allocation36_spill] sm:$0xff] %v9823_v35  ;;  %v3690_v45 = vmul.f32 %v9823_v35, %v9823_v35 }
 0x502   : > { %v9818_v50 = vsel %vm3598_vm0, %v3556_v20, 0.0  ;;  %v3557_v39 = vsub.f32 %v9489_v44, %v3493_v25 }
 0x503   : > { %v3687_v23 = vmul.f32 %v9818_v50, %v9818_v50 }
 0x504   : > { %3779 = vadd.xlane.f32.xlu0 %v3689_v52  ;;  %v9832_v15 = vsel %vm3598_vm0, %v3557_v39, 0.0 }
 0x505   : > { %3462 = vadd.xlane.f32.xlu1 %v9814_v12  ;;  %v3688_v29 = vmul.f32 %v9832_v15, %v9832_v15 }
 0x508   : > { %3775 = vadd.xlane.f32.xlu0 %v3687_v23 }
 0x509   : > { %3781 = vadd.xlane.f32.xlu1 %v3690_v45  ;;  %v3401_v44 = vpop.xlane.xlu0 %3400 }
 0x50a   : > { %v3498_v37 = vmul.f32 0.015625, %v3401_v44 }
 0x50b   : > { %v3403_v22 = vpop.xlane.xlu1 %3402 }
 0x50c   : > { %v3562_v30 = vsub.f32 %v9494_v56, %v3498_v37  ;;  %v3499_v13 = vmul.f32 0.015625, %v3403_v22 }
 0x50d   : > { %3777 = vadd.xlane.f32.xlu1 %v3688_v29  ;;  %v3397_v20 = vpop.xlane.xlu0 %3396 }
 0x50e   : > { %v3563_v25 = vsub.f32 %v9497_v7, %v3499_v13  ;;  %v3496_v52 = vmul.f32 0.015625, %v3397_v20  ;;  %v9840_v23 = vsel %vm3598_vm0, %v3562_v30, 0.0 }
 0x50f   : > { %v3399_v39 = vpop.xlane.xlu1 %3398  ;;  %v3693_v45 = vmul.f32 %v9840_v23, %v9840_v23 }
 0x510   : > { %v3560_v44 = vsub.f32 %v9501_v55, %v3496_v52  ;;  %v3497_v35 = vmul.f32 0.015625, %v3399_v39  ;;  %v9847_v56 = vsel %vm3598_vm0, %v3563_v25, 0.0 }
 0x511   : > { %3787 = vadd.xlane.f32.xlu0 %v3693_v45  ;;  %v3694_v7 = vmul.f32 %v9847_v56, %v9847_v56 }
 0x512   : > { %v3561_v37 = vsub.f32 %v9505_v0, %v3497_v35  ;;  %v9854_v22 = vsel %vm3598_vm0, %v3560_v44, 0.0 }
 0x513   : > { %3789 = vadd.xlane.f32.xlu1 %v3694_v7  ;;  %v3691_v29 = vmul.f32 %v9854_v22, %v9854_v22 }
 0x514   : > { %v9860_v55 = vsel %vm3598_vm0, %v3561_v37, 0.0 }
 0x515   : > { %3783 = vadd.xlane.f32.xlu0 %v3691_v29  ;;  %v3692_v30 = vmul.f32 %v9860_v55, %v9860_v55 }
 0x517   : > { %3785 = vadd.xlane.f32.xlu1 %v3692_v30 }
 0x519   : > { %v3409_v13 = vpop.xlane.xlu0 %3408 }
 0x51a   : > { %v3502_v20 = vmul.f32 0.015625, %v3409_v13 }
 0x51b   : > { %v3411_v0 = vpop.xlane.xlu1 %3410 }
 0x51c   : > { %v3566_v35 = vsub.f32 %v9510_v2, %v3502_v20  ;;  %v3503_v25 = vmul.f32 0.015625, %v3411_v0 }
 0x51d   : > { %v3405_v52 = vpop.xlane.xlu0 %3404 }
 0x51e   : > { %v3567_v39 = vsub.f32 %v9513_v18, %v3503_v25  ;;  %v3500_v45 = vmul.f32 0.015625, %v3405_v52  ;;  %v9868_v44 = vsel %vm3598_vm0, %v3566_v35, 0.0 }
 0x51f   : > { %v3407_v7 = vpop.xlane.xlu1 %3406  ;;  %v3697_v37 = vmul.f32 %v9868_v44, %v9868_v44 }
 0x520   : > { %v3564_v29 = vsub.f32 %v9517_v31, %v3500_v45  ;;  %v3501_v30 = vmul.f32 0.015625, %v3407_v7  ;;  %v9875_v13 = vsel %vm3598_vm0, %v3567_v39, 0.0 }
 0x521   : > { %3795 = vadd.xlane.f32.xlu0 %v3697_v37  ;;  %v3698_v2 = vmul.f32 %v9875_v13, %v9875_v13 }
 0x522   : > { %v3565_v18 = vsub.f32 %v9521_v24, %v3501_v30  ;;  %v9882_v20 = vsel %vm3598_vm0, %v3564_v29, 0.0 }
 0x523   : > { %3797 = vadd.xlane.f32.xlu1 %v3698_v2  ;;  %v3695_v0 = vmul.f32 %v9882_v20, %v9882_v20 }
 0x524   : > { %v9888_v31 = vsel %vm3598_vm0, %v3565_v18, 0.0 }
 0x525   : > { %3791 = vadd.xlane.f32.xlu0 %v3695_v0  ;;  %v3696_v35 = vmul.f32 %v9888_v31, %v9888_v31 }
 0x527   : > { %3793 = vadd.xlane.f32.xlu1 %v3696_v35 }
 0x529   : > { %v3417_v25 = vpop.xlane.xlu0 %3416 }
 0x52a   : > { %v3506_v52 = vmul.f32 0.015625, %v3417_v25 }
 0x52b   : > { %v3419_v24 = vpop.xlane.xlu1 %3418 }
 0x52c   : > { %v3570_v39 = vsub.f32 %v9528_v48, %v3506_v52  ;;  %v3507_v45 = vmul.f32 0.015625, %v3419_v24 }
 0x52d   : > { %v3413_v7 = vpop.xlane.xlu0 %3412 }
 0x52e   : > { %v3571_v37 = vsub.f32 %v9532_v10, %v3507_v45  ;;  %v3504_v29 = vmul.f32 0.015625, %v3413_v7  ;;  %v9896_v30 = vsel %vm3598_vm0, %v3570_v39, 0.0 }
 0x52f   : > { %11532 = vst [vmem:[#allocation37_spill] sm:$0xff] %v9896_v30  ;;  %v3415_v2 = vpop.xlane.xlu1 %3414  ;;  %v3701_v18 = vmul.f32 %v9896_v30, %v9896_v30 }
 0x530   : > { %v3568_v0 = vsub.f32 %v9537_v58, %v3504_v29  ;;  %v3505_v35 = vmul.f32 0.015625, %v3415_v2  ;;  %v9903_v25 = vsel %vm3598_vm0, %v3571_v37, 0.0 }
 0x531   : > { %11533 = vst [vmem:[#allocation38_spill] sm:$0xff] %v9903_v25  ;;  %3803 = vadd.xlane.f32.xlu0 %v3701_v18  ;;  %v3732_v48 = vpop.xlane.xlu0 %3731  ;;  %v3702_v10 = vmul.f32 %v9903_v25, %v9903_v25 }
 0x532   : > { %v3569_v52 = vsub.f32 %v9546_v47, %v3505_v35  ;;  %v3857_v24 = vmul.f32 0.015625, %v3732_v48  ;;  %v9910_v39 = vsel %vm3598_vm0, %v3568_v0, 0.0 }
 0x533   : > { %11534 = vst [vmem:[#allocation39_spill] sm:$0xff] %v9910_v39  ;;  %3805 = vadd.xlane.f32.xlu1 %v3702_v10  ;;  %v3734_v45 = vpop.xlane.xlu1 %3733  ;;  %v3699_v58 = vmul.f32 %v9910_v39, %v9910_v39 }
 0x534   : > { %v3921_v7 = vadd.f32 1e-05, %v3857_v24  ;;  %v3858_v37 = vmul.f32 0.015625, %v3734_v45  ;;  %v9916_v29 = vsel %vm3598_vm0, %v3569_v52, 0.0 }
 0x535   : > { %11535 = vst [vmem:[#allocation40_spill] sm:$0xff] %v9916_v29  ;;  %3799 = vadd.xlane.f32.xlu0 %v3699_v58  ;;  %v3728_v2 = vpop.xlane.xlu0 %3727  ;;  %v3700_v47 = vmul.f32 %v9916_v29, %v9916_v29 }
 0x536   : > { %8027 = vrsqrt.f32 %v3921_v7  ;;  %v3922_v18 = vadd.f32 1e-05, %v3858_v37  ;;  %v3855_v0 = vmul.f32 0.015625, %v3728_v2 }
 0x537   : > { %3801 = vadd.xlane.f32.xlu1 %v3700_v47  ;;  %v3730_v35 = vpop.xlane.xlu1 %3729 }
 0x538   : > { %8029 = vrsqrt.f32 %v3922_v18  ;;  %v3919_v48 = vadd.f32 1e-05, %v3855_v0  ;;  %v3856_v10 = vmul.f32 0.015625, %v3730_v35 }
 0x539   : > { %v3425_v39 = vpop.xlane.xlu0 %3424 }
 0x53a   : > { %8031 = vrsqrt.f32 %v3919_v48  ;;  %v3920_v24 = vadd.f32 1e-05, %v3856_v10  ;;  %v3510_v45 = vmul.f32 0.015625, %v3425_v39 }
 0x53b   : > { %v3427_v25 = vpop.xlane.xlu1 %3426 }
 0x53c   : > { %8033 = vrsqrt.f32 %v3920_v24  ;;  %v3574_v52 = vsub.f32 %v9573_v54, %v3510_v45  ;;  %v3511_v58 = vmul.f32 0.015625, %v3427_v25  ;;  %v9949_v24 = vld [vmem:[%s11393_s6] ss:$0 sm:$0xff] }
 0x53d   : > { %v3421_v30 = vpop.xlane.xlu0 %3420 }
 0x53e   : > { %v3575_v29 = vsub.f32 %v9577_v5, %v3511_v58  ;;  %v3508_v7 = vmul.f32 0.015625, %v3421_v30  ;;  %v9924_v37 = vsel %vm3598_vm0, %v3574_v52, 0.0  ;;  %v9936_v5 = vld [vmem:[%s11392_s5] ss:$0 sm:$0xff] }
 0x53f   : > { %v3423_v2 = vpop.xlane.xlu1 %3422  ;;  %v3705_v47 = vmul.f32 %v9924_v37, %v9924_v37 }
 0x540   : > { %v8028_v18 = vpop.eup %8027  ;;  %v3572_v39 = vsub.f32 %v9581_v41, %v3508_v7  ;;  %v3509_v0 = vmul.f32 0.015625, %v3423_v2  ;;  %v9931_v54 = vsel %vm3598_vm0, %v3575_v29, 0.0 }
 0x541   : > { %3811 = vadd.xlane.f32.xlu0 %v3705_v47  ;;  %v3740_v30 = vpop.xlane.xlu0 %3739  ;;  %v3706_v25 = vmul.f32 %v9931_v54, %v9931_v54  ;;  %v4049_v35 = vmul.f32 %v8028_v18, %v9543_v28 }
 0x542   : > { %v8030_v48 = vpop.eup %8029  ;;  %v3573_v41 = vsub.f32 %v9589_v49, %v3509_v0  ;;  %v3861_v10 = vmul.f32 0.015625, %v3740_v30  ;;  %v9944_v29 = vsel %vm3598_vm0, %v3572_v39, 0.0 }
 0x543   : > { %3813 = vadd.xlane.f32.xlu1 %v3706_v25  ;;  %v3703_v45 = vmul.f32 %v9944_v29, %v9944_v29  ;;  %v4119_v52 = vmul.f32 %v9936_v5, %v4049_v35  ;;  %v4050_v28 = vmul.f32 %v8030_v48, %v9555_v26 }
 0x544   : > { %v8032_v58 = vpop.eup %8031  ;;  %v3925_v49 = vadd.f32 1e-05, %v3861_v10  ;;  %v9957_v7 = vsel %vm3598_vm0, %v3573_v41, 0.0 }
 0x545   : > { %11536 = vst [vmem:[#allocation41_spill] sm:$0xff] %v9957_v7  ;;  %3807 = vadd.xlane.f32.xlu0 %v3703_v45  ;;  %v3736_v2 = vpop.xlane.xlu0 %3735  ;;  %v3704_v47 = vmul.f32 %v9957_v7, %v9957_v7  ;;  %v4189_v18 = vadd.f32 %v9949_v24, %v4119_v52  ;;  %v4120_v39 = vmul.f32 %v9936_v5, %v4050_v28 }
 0x546   : > { %v4047_v0 = vmul.f32 %v8032_v58, %v9561_v6  ;;  %v8034_v30 = vpop.eup %8033  ;;  %8035 = vrsqrt.f32 %v3925_v49  ;;  %v3859_v26 = vmul.f32 0.015625, %v3736_v2  ;;  %v3742_v25 = vpop.xlane.xlu1 %3741 }
 0x547   : > { %v3862_v35 = vmul.f32 0.015625, %v3742_v25  ;;  %3809 = vadd.xlane.f32.xlu1 %v3704_v47  ;;  %v9964_v48 = vmax.f32 %v4189_v18, 0.0  ;;  %v4190_v41 = vadd.f32 %v9949_v24, %v4120_v39  ;;  %v4048_v52 = vmul.f32 %v8034_v30, %v9568_v36 }
 0x548   : > { %v4117_v10 = vmul.f32 %v9936_v5, %v4047_v0  ;;  %v3923_v45 = vadd.f32 1e-05, %v3859_v26 }
 0x549   : > { %v3926_v7 = vadd.f32 1e-05, %v3862_v35  ;;  %4641 = vadd.xlane.f32.xlu0 %v9964_v48  ;;  %v3433_v6 = vpop.xlane.xlu0 %3432  ;;  %v9971_v28 = vmax.f32 %v4190_v41, 0.0  ;;  %v4118_v47 = vmul.f32 %v9936_v5, %v4048_v52 }
 0x54a   : > { %v4187_v58 = vadd.f32 %v9949_v24, %v4117_v10  ;;  %8037 = vrsqrt.f32 %v3923_v45  ;;  %v3514_v49 = vmul.f32 0.015625, %v3433_v6  ;;  %v3738_v2 = vpop.xlane.xlu1 %3737 }
 0x54b   : > { %8039 = vrsqrt.f32 %v3926_v7  ;;  %v3860_v18 = vmul.f32 0.015625, %v3738_v2  ;;  %4643 = vadd.xlane.f32.xlu1 %v9971_v28  ;;  %v6876_v36 = vpack.c.bf16 %v9971_v28, %v9964_v48  ;;  %v4188_v30 = vadd.f32 %v9949_v24, %v4118_v47 }
 0x54c   : > { %v9978_v39 = vmax.f32 %v4187_v58, 0.0  ;;  %v3578_v0 = vsub.f32 %v9611_v27, %v3514_v49 }
 0x54d   : > { %v3924_v26 = vadd.f32 1e-05, %v3860_v18  ;;  %7188 = vst [vmem:[%s9984_s16 + $0x8] sm:$0xff] %v6876_v36   ;;  %v3429_v7 = vpop.xlane.xlu0 %3428  ;;  %v9988_v41 = vmax.f32 %v4188_v30, 0.0 }
 0x54e   : > { %4637 = vadd.xlane.f32.xlu0 %v9978_v39  ;;  %v3512_v25 = vmul.f32 0.015625, %v3429_v7  ;;  %v3435_v35 = vpop.xlane.xlu1 %3434  ;;  %v9992_v10 = vsel %vm3598_vm0, %v3578_v0, 0.0 }
 0x54f   : > { %8041 = vrsqrt.f32 %v3924_v26  ;;  %v3515_v27 = vmul.f32 0.015625, %v3435_v35  ;;  %v3709_v45 = vmul.f32 %v9992_v10, %v9992_v10  ;;  %4639 = vadd.xlane.f32.xlu1 %v9988_v41  ;;  %v6871_v58 = vpack.c.bf16 %v9988_v41, %v9978_v39 }
 0x550   : > { %v8036_v52 = vpop.eup %8035  ;;  %v3576_v6 = vsub.f32 %v9622_v46, %v3512_v25 }
 0x551   : > { %v3579_v49 = vsub.f32 %v9626_v33, %v3515_v27  ;;  %v3748_v2 = vpop.xlane.xlu0 %3747  ;;  %v4053_v47 = vmul.f32 %v8036_v52, %v9586_v61  ;;  %6872 = vst [vmem:[%s9984_s16] sm:$0xff] %v6871_v58  }
 0x552   : > { %3819 = vadd.xlane.f32.xlu0 %v3709_v45  ;;  %v3865_v18 = vmul.f32 0.015625, %v3748_v2  ;;  %v3431_v36 = vpop.xlane.xlu1 %3430  ;;  %v10005_v0 = vsel %vm3598_vm0, %v3576_v6, 0.0 }
 0x553   : > { %v3513_v30 = vmul.f32 0.015625, %v3431_v36  ;;  %v3707_v46 = vmul.f32 %v10005_v0, %v10005_v0  ;;  %v10011_v26 = vsel %vm3598_vm0, %v3579_v49, 0.0  ;;  %v4123_v33 = vmul.f32 %v9936_v5, %v4053_v47 }
 0x554   : > { %v8038_v7 = vpop.eup %8037  ;;  %v3929_v25 = vadd.f32 1e-05, %v3865_v18  ;;  %v3710_v61 = vmul.f32 %v10011_v26, %v10011_v26 }
 0x555   : > { %v8040_v35 = vpop.eup %8039  ;;  %v3577_v27 = vsub.f32 %v9638_v21, %v3513_v30  ;;  %v3744_v45 = vpop.xlane.xlu0 %3743  ;;  %v4193_v52 = vadd.f32 %v9949_v24, %v4123_v33  ;;  %v4051_v6 = vmul.f32 %v8038_v7, %v9598_v1 }
 0x556   : > { %3815 = vadd.xlane.f32.xlu0 %v3707_v46  ;;  %8043 = vrsqrt.f32 %v3929_v25  ;;  %v3863_v58 = vmul.f32 0.015625, %v3744_v45  ;;  %3821 = vadd.xlane.f32.xlu1 %v3710_v61  ;;  %v3750_v49 = vpop.xlane.xlu1 %3749  ;;  %v4054_v2 = vmul.f32 %v8040_v35, %v9605_v59 }
 0x557   : > { %v3866_v47 = vmul.f32 0.015625, %v3750_v49  ;;  %v10020_v18 = vmax.f32 %v4193_v52, 0.0  ;;  %v10024_v36 = vsel %vm3598_vm0, %v3577_v27, 0.0  ;;  %v4121_v21 = vmul.f32 %v9936_v5, %v4051_v6 }
 0x558   : > { %v3927_v30 = vadd.f32 1e-05, %v3863_v58  ;;  %v3708_v46 = vmul.f32 %v10024_v36, %v10024_v36  ;;  %v4124_v1 = vmul.f32 %v9936_v5, %v4054_v2 }
 0x559   : > { %v8042_v33 = vpop.eup %8041  ;;  %v3930_v7 = vadd.f32 1e-05, %v3866_v47  ;;  %v3441_v59 = vpop.xlane.xlu0 %3440  ;;  %v4191_v25 = vadd.f32 %v9949_v24, %v4121_v21 }
 0x55a   : > { %4649 = vadd.xlane.f32.xlu0 %v10020_v18  ;;  %8045 = vrsqrt.f32 %v3927_v30  ;;  %v3518_v61 = vmul.f32 0.015625, %v3441_v59  ;;  %3817 = vadd.xlane.f32.xlu1 %v3708_v46  ;;  %v3746_v35 = vpop.xlane.xlu1 %3745  ;;  %v4194_v27 = vadd.f32 %v9949_v24, %v4124_v1  ;;  %v4052_v45 = vmul.f32 %v8042_v33, %v9615_v34 }
 0x55b   : > { %8047 = vrsqrt.f32 %v3930_v7  ;;  %v3864_v52 = vmul.f32 0.015625, %v3746_v35  ;;  %v10034_v6 = vmax.f32 %v4191_v25, 0.0 }
 0x55c   : > { %v3582_v58 = vsub.f32 %v9659_v57, %v3518_v61  ;;  %v10037_v49 = vmax.f32 %v4194_v27, 0.0  ;;  %v4122_v2 = vmul.f32 %v9936_v5, %v4052_v45 }
 0x55d   : > { %v3928_v47 = vadd.f32 1e-05, %v3864_v52  ;;  %v3437_v21 = vpop.xlane.xlu0 %3436 }
 0x55e   : > { %4645 = vadd.xlane.f32.xlu0 %v10034_v6  ;;  %v3516_v30 = vmul.f32 0.015625, %v3437_v21  ;;  %4651 = vadd.xlane.f32.xlu1 %v10037_v49  ;;  %v6886_v34 = vpack.c.bf16 %v10037_v49, %v10020_v18  ;;  %v3443_v46 = vpop.xlane.xlu1 %3442  ;;  %v10046_v1 = vsel %vm3598_vm0, %v3582_v58, 0.0  ;;  %v4192_v57 = vadd.f32 %v9949_v24, %v4122_v2 }
 0x55f   : > { %8049 = vrsqrt.f32 %v3928_v47  ;;  %v3519_v33 = vmul.f32 0.015625, %v3443_v46  ;;  %v3713_v7 = vmul.f32 %v10046_v1, %v10046_v1 }
 0x560   : > { %v8044_v59 = vpop.eup %8043  ;;  %v3580_v25 = vsub.f32 %v9666_v19, %v3516_v30  ;;  %7190 = vst [vmem:[%s9984_s16 + $0x18] sm:$0xff] %v6886_v34   ;;  %v10053_v61 = vmax.f32 %v4192_v57, 0.0 }
 0x561   : > { %v3583_v35 = vsub.f32 %v9669_v4, %v3519_v33  ;;  %v3756_v27 = vpop.xlane.xlu0 %3755  ;;  %v4057_v45 = vmul.f32 %v8044_v59, %v9630_v51 }
 0x562   : > { %3827 = vadd.xlane.f32.xlu0 %v3713_v7  ;;  %v3869_v52 = vmul.f32 0.015625, %v3756_v27  ;;  %4647 = vadd.xlane.f32.xlu1 %v10053_v61  ;;  %v6881_v58 = vpack.c.bf16 %v10053_v61, %v10034_v6  ;;  %v3439_v2 = vpop.xlane.xlu1 %3438  ;;  %v10062_v19 = vsel %vm3598_vm0, %v3580_v25, 0.0 }
 0x563   : > { %v3517_v47 = vmul.f32 0.015625, %v3439_v2  ;;  %v3711_v21 = vmul.f32 %v10062_v19, %v10062_v19  ;;  %v10068_v4 = vsel %vm3598_vm0, %v3583_v35, 0.0  ;;  %v4127_v51 = vmul.f32 %v9936_v5, %v4057_v45  ;;  %v11538_v45 = vld [vmem:[#allocation23_spill] sm:$0xff] }
 0x564   : > { %11537 = vst [vmem:[#allocation42_spill] sm:$0xff] %v10068_v4  ;;  %v8046_v30 = vpop.eup %8045  ;;  %v3933_v34 = vadd.f32 1e-05, %v3869_v52  ;;  %7189 = vst [vmem:[%s9984_s16 + $0x10] sm:$0xff] %v6881_v58   ;;  %v3714_v46 = vmul.f32 %v10068_v4, %v10068_v4 }
 0x565   : > { %v8048_v57 = vpop.eup %8047  ;;  %v3581_v33 = vsub.f32 %v9682_v53, %v3517_v47  ;;  %v3752_v7 = vpop.xlane.xlu0 %3751  ;;  %v4197_v59 = vadd.f32 %v9949_v24, %v4127_v51  ;;  %v4055_v25 = vmul.f32 %v8046_v30, %v9642_v62 }
 0x566   : > { %3823 = vadd.xlane.f32.xlu0 %v3711_v21  ;;  %8051 = vrsqrt.f32 %v3933_v34  ;;  %v3867_v35 = vmul.f32 0.015625, %v3752_v7  ;;  %3829 = vadd.xlane.f32.xlu1 %v3714_v46  ;;  %v3758_v27 = vpop.xlane.xlu1 %3757  ;;  %v4058_v2 = vmul.f32 %v8048_v57, %v11538_v45 }
 0x567   : > { %v3870_v52 = vmul.f32 0.015625, %v3758_v27  ;;  %v10078_v58 = vmax.f32 %v4197_v59, 0.0  ;;  %v10082_v4 = vsel %vm3598_vm0, %v3581_v33, 0.0  ;;  %v4125_v53 = vmul.f32 %v9936_v5, %v4055_v25  ;;  %v11540_v59 = vld [vmem:[#allocation24_spill] sm:$0xff] }
 0x568   : > { %11539 = vst [vmem:[#allocation23_spill] sm:$0xff] %v10082_v4  ;;  %v3931_v47 = vadd.f32 1e-05, %v3867_v35  ;;  %v3712_v21 = vmul.f32 %v10082_v4, %v10082_v4  ;;  %v4128_v62 = vmul.f32 %v9936_v5, %v4058_v2 }
 0x569   : > { %v8050_v51 = vpop.eup %8049  ;;  %v3934_v30 = vadd.f32 1e-05, %v3870_v52  ;;  %v3449_v34 = vpop.xlane.xlu0 %3448  ;;  %v4195_v46 = vadd.f32 %v9949_v24, %v4125_v53 }
 0x56a   : > { %4657 = vadd.xlane.f32.xlu0 %v10078_v58  ;;  %8053 = vrsqrt.f32 %v3931_v47  ;;  %v3522_v57 = vmul.f32 0.015625, %v3449_v34  ;;  %3825 = vadd.xlane.f32.xlu1 %v3712_v21  ;;  %v3754_v33 = vpop.xlane.xlu1 %3753  ;;  %v4198_v7 = vadd.f32 %v9949_v24, %v4128_v62  ;;  %v4056_v25 = vmul.f32 %v8050_v51, %v11540_v59 }
 0x56b   : > { %8055 = vrsqrt.f32 %v3934_v30  ;;  %v3868_v35 = vmul.f32 0.015625, %v3754_v33  ;;  %v10092_v27 = vmax.f32 %v4195_v46, 0.0 }
 0x56c   : > { %v3586_v45 = vsub.f32 %v9703_v16, %v3522_v57  ;;  %v10095_v2 = vmax.f32 %v4198_v7, 0.0  ;;  %v4126_v52 = vmul.f32 %v9936_v5, %v4056_v25 }
 0x56d   : > { %v3932_v53 = vadd.f32 1e-05, %v3868_v35  ;;  %v3445_v47 = vpop.xlane.xlu0 %3444  ;;  %v11542_v35 = vld [vmem:[#allocation25_spill] sm:$0xff] }
 0x56e   : > { %4653 = vadd.xlane.f32.xlu0 %v10092_v27  ;;  %v3520_v21 = vmul.f32 0.015625, %v3445_v47  ;;  %4659 = vadd.xlane.f32.xlu1 %v10095_v2  ;;  %v6896_v62 = vpack.c.bf16 %v10095_v2, %v10078_v58  ;;  %v3451_v51 = vpop.xlane.xlu1 %3450  ;;  %v10104_v30 = vsel %vm3598_vm0, %v3586_v45, 0.0  ;;  %v4196_v16 = vadd.f32 %v9949_v24, %v4126_v52 }
 0x56f   : > { %11541 = vst [vmem:[#allocation24_spill] sm:$0xff] %v10104_v30  ;;  %8057 = vrsqrt.f32 %v3932_v53  ;;  %v3523_v34 = vmul.f32 0.015625, %v3451_v51  ;;  %v3717_v46 = vmul.f32 %v10104_v30, %v10104_v30 }
 0x570   : > { %v8052_v57 = vpop.eup %8051  ;;  %v3584_v33 = vsub.f32 %v9710_v43, %v3520_v21  ;;  %7192 = vst [vmem:[%s9984_s16 + $0x28] sm:$0xff] %v6896_v62   ;;  %v10111_v7 = vmax.f32 %v4196_v16, 0.0 }
 0x571   : > { %v3587_v59 = vsub.f32 %v9713_v17, %v3523_v34  ;;  %v3764_v25 = vpop.xlane.xlu0 %3763  ;;  %v4061_v45 = vmul.f32 %v8052_v57, %v11542_v35 }
 0x572   : > { %3835 = vadd.xlane.f32.xlu0 %v3717_v46  ;;  %v3873_v47 = vmul.f32 0.015625, %v3764_v25  ;;  %4655 = vadd.xlane.f32.xlu1 %v10111_v7  ;;  %v6891_v52 = vpack.c.bf16 %v10111_v7, %v10092_v27  ;;  %v3447_v53 = vpop.xlane.xlu1 %3446  ;;  %v10120_v43 = vsel %vm3598_vm0, %v3584_v33, 0.0 }
 0x573   : > { %11543 = vst [vmem:[#allocation25_spill] sm:$0xff] %v10120_v43  ;;  %v3521_v21 = vmul.f32 0.015625, %v3447_v53  ;;  %v3715_v62 = vmul.f32 %v10120_v43, %v10120_v43  ;;  %v10126_v17 = vsel %vm3598_vm0, %v3587_v59, 0.0  ;;  %v4131_v51 = vmul.f32 %v9936_v5, %v4061_v45  ;;  %v11545_v53 = vld [vmem:[#allocation26_spill] sm:$0xff]  ;;  %v11546_v45 = vld [vmem:[#allocation27_spill] sm:$0xff] }
 0x574   : > { %11544 = vst [vmem:[#allocation43_spill] sm:$0xff] %v10126_v17  ;;  %v8054_v16 = vpop.eup %8053  ;;  %v3937_v34 = vadd.f32 1e-05, %v3873_v47  ;;  %7191 = vst [vmem:[%s9984_s16 + $0x20] sm:$0xff] %v6891_v52   ;;  %v3718_v46 = vmul.f32 %v10126_v17, %v10126_v17 }
 0x575   : > { %v8056_v57 = vpop.eup %8055  ;;  %v3585_v33 = vsub.f32 %v9726_v38, %v3521_v21  ;;  %v3760_v25 = vpop.xlane.xlu0 %3759  ;;  %v4201_v35 = vadd.f32 %v9949_v24, %v4131_v51  ;;  %v4059_v43 = vmul.f32 %v8054_v16, %v11545_v53 }
 0x576   : > { %3831 = vadd.xlane.f32.xlu0 %v3715_v62  ;;  %8059 = vrsqrt.f32 %v3937_v34  ;;  %v3871_v59 = vmul.f32 0.015625, %v3760_v25  ;;  %3837 = vadd.xlane.f32.xlu1 %v3718_v46  ;;  %v3766_v30 = vpop.xlane.xlu1 %3765  ;;  %v4062_v4 = vmul.f32 %v8056_v57, %v11546_v45 }
 0x577   : > { %v3874_v47 = vmul.f32 0.015625, %v3766_v30  ;;  %v10136_v52 = vmax.f32 %v4201_v35, 0.0  ;;  %v10140_v17 = vsel %vm3598_vm0, %v3585_v33, 0.0  ;;  %v4129_v38 = vmul.f32 %v9936_v5, %v4059_v43  ;;  %v11548_v43 = vld [vmem:[#allocation28_spill] sm:$0xff] }
 0x578   : > { %11547 = vst [vmem:[#allocation26_spill] sm:$0xff] %v10140_v17  ;;  %v3935_v21 = vadd.f32 1e-05, %v3871_v59  ;;  %v3716_v62 = vmul.f32 %v10140_v17, %v10140_v17  ;;  %v4132_v51 = vmul.f32 %v9936_v5, %v4062_v4 }
 0x579   : > { %v8058_v16 = vpop.eup %8057  ;;  %v3938_v34 = vadd.f32 1e-05, %v3874_v47  ;;  %v3457_v46 = vpop.xlane.xlu0 %3456  ;;  %v4199_v30 = vadd.f32 %v9949_v24, %v4129_v38 }
 0x57a   : > { %4665 = vadd.xlane.f32.xlu0 %v10136_v52  ;;  %8061 = vrsqrt.f32 %v3935_v21  ;;  %v3526_v57 = vmul.f32 0.015625, %v3457_v46  ;;  %3833 = vadd.xlane.f32.xlu1 %v3716_v62  ;;  %v3762_v33 = vpop.xlane.xlu1 %3761  ;;  %v4202_v25 = vadd.f32 %v9949_v24, %v4132_v51  ;;  %v4060_v35 = vmul.f32 %v8058_v16, %v11548_v43 }
 0x57b   : > { %8063 = vrsqrt.f32 %v3938_v34  ;;  %v3872_v53 = vmul.f32 0.015625, %v3762_v33  ;;  %v10150_v59 = vmax.f32 %v4199_v30, 0.0 }
 0x57c   : > { %v3590_v4 = vsub.f32 %v9747_v42, %v3526_v57  ;;  %v10153_v45 = vmax.f32 %v4202_v25, 0.0  ;;  %v4130_v47 = vmul.f32 %v9936_v5, %v4060_v35 }
 0x57d   : > { %v3936_v38 = vadd.f32 1e-05, %v3872_v53  ;;  %v3453_v21 = vpop.xlane.xlu0 %3452  ;;  %v11550_v53 = vld [vmem:[#allocation29_spill] sm:$0xff] }
 0x57e   : > { %4661 = vadd.xlane.f32.xlu0 %v10150_v59  ;;  %v3524_v62 = vmul.f32 0.015625, %v3453_v21  ;;  %4667 = vadd.xlane.f32.xlu1 %v10153_v45  ;;  %v6906_v51 = vpack.c.bf16 %v10153_v45, %v10136_v52  ;;  %v3459_v16 = vpop.xlane.xlu1 %3458  ;;  %v10162_v34 = vsel %vm3598_vm0, %v3590_v4, 0.0  ;;  %v4200_v42 = vadd.f32 %v9949_v24, %v4130_v47 }
 0x57f   : > { %11549 = vst [vmem:[#allocation27_spill] sm:$0xff] %v10162_v34  ;;  %8065 = vrsqrt.f32 %v3936_v38  ;;  %v3527_v46 = vmul.f32 0.015625, %v3459_v16  ;;  %v3721_v30 = vmul.f32 %v10162_v34, %v10162_v34 }
 0x580   : > { %v8060_v57 = vpop.eup %8059  ;;  %v3588_v33 = vsub.f32 %v9754_v9, %v3524_v62  ;;  %7194 = vst [vmem:[%s9984_s16 + $0x38] sm:$0xff] %v6906_v51   ;;  %v10169_v25 = vmax.f32 %v4200_v42, 0.0 }
 0x581   : > { %v3591_v43 = vsub.f32 %v9757_v63, %v3527_v46  ;;  %v3772_v35 = vpop.xlane.xlu0 %3771  ;;  %v4065_v4 = vmul.f32 %v8060_v57, %v11550_v53 }
 0x582   : > { %3843 = vadd.xlane.f32.xlu0 %v3721_v30  ;;  %v3877_v21 = vmul.f32 0.015625, %v3772_v35  ;;  %4663 = vadd.xlane.f32.xlu1 %v10169_v25  ;;  %v6901_v47 = vpack.c.bf16 %v10169_v25, %v10150_v59  ;;  %v3455_v38 = vpop.xlane.xlu1 %3454  ;;  %v10178_v9 = vsel %vm3598_vm0, %v3588_v33, 0.0 }
 0x583   : > { %11551 = vst [vmem:[#allocation28_spill] sm:$0xff] %v10178_v9  ;;  %v3525_v62 = vmul.f32 0.015625, %v3455_v38  ;;  %v3719_v51 = vmul.f32 %v10178_v9, %v10178_v9  ;;  %v10184_v63 = vsel %vm3598_vm0, %v3591_v43, 0.0  ;;  %v4135_v16 = vmul.f32 %v9936_v5, %v4065_v4  ;;  %v11553_v38 = vld [vmem:[#allocation30_spill] sm:$0xff]  ;;  %v11554_v4 = vld [vmem:[#allocation31_spill] sm:$0xff] }
 0x584   : > { %11552 = vst [vmem:[#allocation29_spill] sm:$0xff] %v10184_v63  ;;  %v8062_v42 = vpop.eup %8061  ;;  %v3941_v46 = vadd.f32 1e-05, %v3877_v21  ;;  %7193 = vst [vmem:[%s9984_s16 + $0x30] sm:$0xff] %v6901_v47   ;;  %v3722_v30 = vmul.f32 %v10184_v63, %v10184_v63 }
 0x585   : > { %v8064_v57 = vpop.eup %8063  ;;  %v3589_v33 = vsub.f32 %v9770_v60, %v3525_v62  ;;  %v3768_v35 = vpop.xlane.xlu0 %3767  ;;  %v4205_v53 = vadd.f32 %v9949_v24, %v4135_v16  ;;  %v4063_v9 = vmul.f32 %v8062_v42, %v11553_v38 }
 0x586   : > { %3839 = vadd.xlane.f32.xlu0 %v3719_v51  ;;  %8067 = vrsqrt.f32 %v3941_v46  ;;  %v3875_v43 = vmul.f32 0.015625, %v3768_v35  ;;  %3845 = vadd.xlane.f32.xlu1 %v3722_v30  ;;  %v3774_v34 = vpop.xlane.xlu1 %3773  ;;  %v4066_v17 = vmul.f32 %v8064_v57, %v11554_v4 }
 0x587   : > { %v3878_v21 = vmul.f32 0.015625, %v3774_v34  ;;  %v10194_v47 = vmax.f32 %v4205_v53, 0.0  ;;  %v10198_v63 = vsel %vm3598_vm0, %v3589_v33, 0.0  ;;  %v4133_v60 = vmul.f32 %v9936_v5, %v4063_v9  ;;  %v11556_v9 = vld [vmem:[#allocation32_spill] sm:$0xff] }
 0x588   : > { %11555 = vst [vmem:[#allocation30_spill] sm:$0xff] %v10198_v63  ;;  %v3939_v62 = vadd.f32 1e-05, %v3875_v43  ;;  %v3720_v51 = vmul.f32 %v10198_v63, %v10198_v63  ;;  %v4136_v16 = vmul.f32 %v9936_v5, %v4066_v17 }
 0x589   : > { %v8066_v42 = vpop.eup %8065  ;;  %v3942_v46 = vadd.f32 1e-05, %v3878_v21  ;;  %v3465_v30 = vpop.xlane.xlu0 %3464  ;;  %v4203_v34 = vadd.f32 %v9949_v24, %v4133_v60 }
 0x58a   : > { %4673 = vadd.xlane.f32.xlu0 %v10194_v47  ;;  %8069 = vrsqrt.f32 %v3939_v62  ;;  %v3530_v57 = vmul.f32 0.015625, %v3465_v30  ;;  %3841 = vadd.xlane.f32.xlu1 %v3720_v51  ;;  %v3770_v33 = vpop.xlane.xlu1 %3769  ;;  %v4206_v35 = vadd.f32 %v9949_v24, %v4136_v16  ;;  %v4064_v53 = vmul.f32 %v8066_v42, %v11556_v9 }
 0x58b   : > { %8071 = vrsqrt.f32 %v3942_v46  ;;  %v3876_v38 = vmul.f32 0.015625, %v3770_v33  ;;  %v10208_v43 = vmax.f32 %v4203_v34, 0.0 }
 0x58c   : > { %v3594_v17 = vsub.f32 %v9791_v40, %v3530_v57  ;;  %v10211_v4 = vmax.f32 %v4206_v35, 0.0  ;;  %v4134_v21 = vmul.f32 %v9936_v5, %v4064_v53 }
 0x58d   : > { %v3940_v60 = vadd.f32 1e-05, %v3876_v38  ;;  %v3461_v62 = vpop.xlane.xlu0 %3460  ;;  %v11558_v38 = vld [vmem:[#allocation33_spill] sm:$0xff] }
 0x58e   : > { %4669 = vadd.xlane.f32.xlu0 %v10208_v43  ;;  %v3528_v51 = vmul.f32 0.015625, %v3461_v62  ;;  %4675 = vadd.xlane.f32.xlu1 %v10211_v4  ;;  %v6916_v16 = vpack.c.bf16 %v10211_v4, %v10194_v47  ;;  %v3467_v42 = vpop.xlane.xlu1 %3466  ;;  %v10220_v46 = vsel %vm3598_vm0, %v3594_v17, 0.0  ;;  %v4204_v40 = vadd.f32 %v9949_v24, %v4134_v21 }
 0x58f   : > { %11557 = vst [vmem:[#allocation31_spill] sm:$0xff] %v10220_v46  ;;  %8073 = vrsqrt.f32 %v3940_v60  ;;  %v3531_v30 = vmul.f32 0.015625, %v3467_v42  ;;  %v3725_v34 = vmul.f32 %v10220_v46, %v10220_v46 }
 0x590   : > { %v8068_v57 = vpop.eup %8067  ;;  %v3592_v33 = vsub.f32 %v9798_v8, %v3528_v51  ;;  %7196 = vst [vmem:[%s9984_s16 + $0x48] sm:$0xff] %v6916_v16   ;;  %v10227_v35 = vmax.f32 %v4204_v40, 0.0 }
 0x591   : > { %v3595_v9 = vsub.f32 %v9801_v3, %v3531_v30  ;;  %v3780_v53 = vpop.xlane.xlu0 %3779  ;;  %v4069_v17 = vmul.f32 %v8068_v57, %v11558_v38 }
 0x592   : > { %3851 = vadd.xlane.f32.xlu0 %v3725_v34  ;;  %v3881_v62 = vmul.f32 0.015625, %v3780_v53  ;;  %4671 = vadd.xlane.f32.xlu1 %v10227_v35  ;;  %v6911_v21 = vpack.c.bf16 %v10227_v35, %v10208_v43  ;;  %v3463_v60 = vpop.xlane.xlu1 %3462  ;;  %v10236_v8 = vsel %vm3598_vm0, %v3592_v33, 0.0 }
 0x593   : > { %11559 = vst [vmem:[#allocation32_spill] sm:$0xff] %v10236_v8  ;;  %v3529_v51 = vmul.f32 0.015625, %v3463_v60  ;;  %v3723_v16 = vmul.f32 %v10236_v8, %v10236_v8  ;;  %v10242_v3 = vsel %vm3598_vm0, %v3595_v9, 0.0  ;;  %v4139_v42 = vmul.f32 %v9936_v5, %v4069_v17  ;;  %v11561_v60 = vld [vmem:[#allocation34_spill] sm:$0xff]  ;;  %v11562_v17 = vld [vmem:[#allocation35_spill] sm:$0xff] }
 0x594   : > { %11560 = vst [vmem:[#allocation33_spill] sm:$0xff] %v10242_v3  ;;  %v8070_v40 = vpop.eup %8069  ;;  %v3945_v30 = vadd.f32 1e-05, %v3881_v62  ;;  %7195 = vst [vmem:[%s9984_s16 + $0x40] sm:$0xff] %v6911_v21   ;;  %v3726_v34 = vmul.f32 %v10242_v3, %v10242_v3 }
 0x595   : > { %v8072_v57 = vpop.eup %8071  ;;  %v3593_v33 = vsub.f32 %v9814_v12, %v3529_v51  ;;  %v3776_v53 = vpop.xlane.xlu0 %3775  ;;  %v4209_v38 = vadd.f32 %v9949_v24, %v4139_v42  ;;  %v4067_v8 = vmul.f32 %v8070_v40, %v11561_v60 }
 0x596   : > { %3847 = vadd.xlane.f32.xlu0 %v3723_v16  ;;  %8075 = vrsqrt.f32 %v3945_v30  ;;  %v3879_v9 = vmul.f32 0.015625, %v3776_v53  ;;  %3853 = vadd.xlane.f32.xlu1 %v3726_v34  ;;  %v3782_v46 = vpop.xlane.xlu1 %3781  ;;  %v4070_v63 = vmul.f32 %v8072_v57, %v11562_v17 }
 0x597   : > { %v3882_v62 = vmul.f32 0.015625, %v3782_v46  ;;  %v10252_v21 = vmax.f32 %v4209_v38, 0.0  ;;  %v10256_v3 = vsel %vm3598_vm0, %v3593_v33, 0.0  ;;  %v4137_v12 = vmul.f32 %v9936_v5, %v4067_v8 }
 0x598   : > { %11563 = vst [vmem:[#allocation34_spill] sm:$0xff] %v10256_v3  ;;  %v3943_v51 = vadd.f32 1e-05, %v3879_v9  ;;  %v3724_v16 = vmul.f32 %v10256_v3, %v10256_v3  ;;  %v4140_v42 = vmul.f32 %v9936_v5, %v4070_v63 }
 0x599   : > { %v8074_v40 = vpop.eup %8073  ;;  %v3946_v30 = vadd.f32 1e-05, %v3882_v62  ;;  %v4207_v46 = vadd.f32 %v9949_v24, %v4137_v12 }
 0x59a   : > { %4681 = vadd.xlane.f32.xlu0 %v10252_v21  ;;  %8077 = vrsqrt.f32 %v3943_v51  ;;  %3849 = vadd.xlane.f32.xlu1 %v3724_v16  ;;  %v3778_v34 = vpop.xlane.xlu1 %3777  ;;  %v4210_v57 = vadd.f32 %v9949_v24, %v4140_v42  ;;  %v4068_v8 = vmul.f32 %v8074_v40, %v9788_v14 }
 0x59b   : > { %8079 = vrsqrt.f32 %v3946_v30  ;;  %v3880_v33 = vmul.f32 0.015625, %v3778_v34  ;;  %v10266_v53 = vmax.f32 %v4207_v46, 0.0 }
 0x59c   : > { %v10268_v38 = vmax.f32 %v4210_v57, 0.0  ;;  %v4138_v63 = vmul.f32 %v9936_v5, %v4068_v8 }
 0x59d   : > { %v3944_v60 = vadd.f32 1e-05, %v3880_v33 }
 0x59e   : > { %4677 = vadd.xlane.f32.xlu0 %v10266_v53  ;;  %4683 = vadd.xlane.f32.xlu1 %v10268_v38  ;;  %v6926_v9 = vpack.c.bf16 %v10268_v38, %v10252_v21  ;;  %v3788_v17 = vpop.xlane.xlu0 %3787  ;;  %v4208_v62 = vadd.f32 %v9949_v24, %v4138_v63 }
 0x59f   : > { %8081 = vrsqrt.f32 %v3944_v60  ;;  %v3885_v14 = vmul.f32 0.015625, %v3788_v17 }
 0x5a0   : > { %v8076_v12 = vpop.eup %8075  ;;  %7198 = vst [vmem:[%s9984_s16 + $0x58] sm:$0xff] %v6926_v9   ;;  %v3790_v51 = vpop.xlane.xlu1 %3789  ;;  %v10277_v16 = vmax.f32 %v4208_v62, 0.0 }
 0x5a1   : > { %v3949_v42 = vadd.f32 1e-05, %v3885_v14  ;;  %v3886_v40 = vmul.f32 0.015625, %v3790_v51  ;;  %v4073_v30 = vmul.f32 %v8076_v12, %v9805_v32  ;;  %v11564_v12 = vld [vmem:[#allocation36_spill] sm:$0xff] }
 0x5a2   : > { %4679 = vadd.xlane.f32.xlu1 %v10277_v16  ;;  %v6921_v46 = vpack.c.bf16 %v10277_v16, %v10266_v53  ;;  %v3784_v34 = vpop.xlane.xlu0 %3783 }
 0x5a3   : > { %8083 = vrsqrt.f32 %v3949_v42  ;;  %v3950_v57 = vadd.f32 1e-05, %v3886_v40  ;;  %v3883_v8 = vmul.f32 0.015625, %v3784_v34  ;;  %v4143_v33 = vmul.f32 %v9936_v5, %v4073_v30 }
 0x5a4   : > { %v8078_v63 = vpop.eup %8077  ;;  %7197 = vst [vmem:[%s9984_s16 + $0x50] sm:$0xff] %v6921_v46   ;;  %v3786_v60 = vpop.xlane.xlu1 %3785 }
 0x5a5   : > { %v8080_v9 = vpop.eup %8079  ;;  %8085 = vrsqrt.f32 %v3950_v57  ;;  %v3947_v17 = vadd.f32 1e-05, %v3883_v8  ;;  %v3884_v62 = vmul.f32 0.015625, %v3786_v60  ;;  %v4213_v32 = vadd.f32 %v9949_v24, %v4143_v33 }
 0x5a6   : > { %v4071_v14 = vmul.f32 %v8078_v63, %v9818_v50  ;;  %v4074_v51 = vmul.f32 %v8080_v9, %v11564_v12 }
 0x5a7   : > { %8087 = vrsqrt.f32 %v3947_v17  ;;  %v3948_v3 = vadd.f32 1e-05, %v3884_v62  ;;  %v10288_v42 = vmax.f32 %v4213_v32, 0.0 }
 0x5a8   : > { %v4141_v40 = vmul.f32 %v9936_v5, %v4071_v14  ;;  %v4144_v30 = vmul.f32 %v9936_v5, %v4074_v51 }
 0x5a9   : > { %v8082_v46 = vpop.eup %8081  ;;  %8089 = vrsqrt.f32 %v3948_v3  ;;  %4689 = vadd.xlane.f32.xlu0 %v10288_v42 }
 0x5aa   : > { %v4211_v34 = vadd.f32 %v9949_v24, %v4141_v40  ;;  %v4214_v57 = vadd.f32 %v9949_v24, %v4144_v30  ;;  %v4072_v50 = vmul.f32 %v8082_v46, %v9832_v15 }
 0x5ac   : > { %v10296_v8 = vmax.f32 %v4211_v34, 0.0  ;;  %v10298_v33 = vmax.f32 %v4214_v57, 0.0  ;;  %v4142_v63 = vmul.f32 %v9936_v5, %v4072_v50 }
 0x5ad   : > { %v8084_v60 = vpop.eup %8083 }
 0x5ae   : > { %4685 = vadd.xlane.f32.xlu0 %v10296_v8  ;;  %4691 = vadd.xlane.f32.xlu1 %v10298_v33  ;;  %v6936_v3 = vpack.c.bf16 %v10298_v33, %v10288_v42  ;;  %v3796_v9 = vpop.xlane.xlu0 %3795  ;;  %v4212_v17 = vadd.f32 %v9949_v24, %v4142_v63  ;;  %v4077_v62 = vmul.f32 %v8084_v60, %v9840_v23 }
 0x5af   : > { %v8086_v15 = vpop.eup %8085  ;;  %v3889_v32 = vmul.f32 0.015625, %v3796_v9 }
 0x5b0   : > { %7200 = vst [vmem:[%s9984_s16 + $0x68] sm:$0xff] %v6936_v3   ;;  %v3798_v14 = vpop.xlane.xlu1 %3797  ;;  %v10308_v12 = vmax.f32 %v4212_v17, 0.0  ;;  %v4147_v51 = vmul.f32 %v9936_v5, %v4077_v62  ;;  %v4078_v40 = vmul.f32 %v8086_v15, %v9847_v56 }
 0x5b1   : > { %v8088_v30 = vpop.eup %8087  ;;  %v3953_v46 = vadd.f32 1e-05, %v3889_v32  ;;  %v3890_v34 = vmul.f32 0.015625, %v3798_v14 }
 0x5b2   : > { %4687 = vadd.xlane.f32.xlu1 %v10308_v12  ;;  %v6931_v57 = vpack.c.bf16 %v10308_v12, %v10296_v8  ;;  %v3792_v23 = vpop.xlane.xlu0 %3791  ;;  %v4217_v50 = vadd.f32 %v9949_v24, %v4147_v51  ;;  %v4148_v63 = vmul.f32 %v9936_v5, %v4078_v40  ;;  %v4075_v60 = vmul.f32 %v8088_v30, %v9854_v22 }
 0x5b3   : > { %v8090_v3 = vpop.eup %8089  ;;  %8091 = vrsqrt.f32 %v3953_v46  ;;  %v3954_v9 = vadd.f32 1e-05, %v3890_v34  ;;  %v3887_v17 = vmul.f32 0.015625, %v3792_v23 }
 0x5b4   : > { %7199 = vst [vmem:[%s9984_s16 + $0x60] sm:$0xff] %v6931_v57   ;;  %v3794_v56 = vpop.xlane.xlu1 %3793  ;;  %v10319_v62 = vmax.f32 %v4217_v50, 0.0  ;;  %v4218_v15 = vadd.f32 %v9949_v24, %v4148_v63  ;;  %v4145_v32 = vmul.f32 %v9936_v5, %v4075_v60  ;;  %v4076_v14 = vmul.f32 %v8090_v3, %v9860_v55 }
 0x5b5   : > { %8093 = vrsqrt.f32 %v3954_v9  ;;  %v3951_v51 = vadd.f32 1e-05, %v3887_v17  ;;  %v3888_v40 = vmul.f32 0.015625, %v3794_v56 }
 0x5b6   : > { %4697 = vadd.xlane.f32.xlu0 %v10319_v62  ;;  %v10325_v22 = vmax.f32 %v4218_v15, 0.0  ;;  %v4215_v30 = vadd.f32 %v9949_v24, %v4145_v32  ;;  %v4146_v46 = vmul.f32 %v9936_v5, %v4076_v14 }
 0x5b7   : > { %8095 = vrsqrt.f32 %v3951_v51  ;;  %v3952_v34 = vadd.f32 1e-05, %v3888_v40 }
 0x5b8   : > { %4699 = vadd.xlane.f32.xlu1 %v10325_v22  ;;  %v6946_v57 = vpack.c.bf16 %v10325_v22, %v10319_v62  ;;  %v10332_v55 = vmax.f32 %v4215_v30, 0.0  ;;  %v4216_v23 = vadd.f32 %v9949_v24, %v4146_v46 }
 0x5b9   : > { %8097 = vrsqrt.f32 %v3952_v34 }
 0x5ba   : > { %7202 = vst [vmem:[%s9984_s16 + $0x78] sm:$0xff] %v6946_v57   ;;  %4693 = vadd.xlane.f32.xlu0 %v10332_v55  ;;  %v10337_v50 = vmax.f32 %v4216_v23, 0.0 }
 0x5bc   : > { %11565 = vst [vmem:[#allocation35_spill] sm:$0xff] %v10337_v50  ;;  %4695 = vadd.xlane.f32.xlu1 %v10337_v50  ;;  %v6941_v63 = vpack.c.bf16 %v10337_v50, %v10332_v55 }
 0x5bd   : > { %v8092_v60 = vpop.eup %8091 }
 0x5be   : > { %7201 = vst [vmem:[%s9984_s16 + $0x70] sm:$0xff] %v6941_v63   ;;  %v3804_v3 = vpop.xlane.xlu0 %3803  ;;  %v4081_v9 = vmul.f32 %v8092_v60, %v9868_v44 }
 0x5bf   : > { %v8094_v17 = vpop.eup %8093  ;;  %v3893_v56 = vmul.f32 0.015625, %v3804_v3 }
 0x5c0   : > { %v3806_v15 = vpop.xlane.xlu1 %3805  ;;  %v4151_v32 = vmul.f32 %v9936_v5, %v4081_v9  ;;  %v4082_v14 = vmul.f32 %v8094_v17, %v9875_v13 }
 0x5c1   : > { %v8096_v51 = vpop.eup %8095  ;;  %v3957_v40 = vadd.f32 1e-05, %v3893_v56  ;;  %v3894_v30 = vmul.f32 0.015625, %v3806_v15 }
 0x5c2   : > { %v3800_v46 = vpop.xlane.xlu0 %3799  ;;  %v4221_v34 = vadd.f32 %v9949_v24, %v4151_v32  ;;  %v4152_v57 = vmul.f32 %v9936_v5, %v4082_v14  ;;  %v4079_v23 = vmul.f32 %v8096_v51, %v9882_v20  ;;  %v10361_v14 = vld [vmem:[%s11392_s5] ss:$0 sm:$0xff] }
 0x5c3   : > { %v8098_v63 = vpop.eup %8097  ;;  %8099 = vrsqrt.f32 %v3957_v40  ;;  %v3958_v44 = vadd.f32 1e-05, %v3894_v30  ;;  %v3891_v60 = vmul.f32 0.015625, %v3800_v46 }
 0x5c4   : > { %v3802_v3 = vpop.xlane.xlu1 %3801  ;;  %v10349_v50 = vmax.f32 %v4221_v34, 0.0  ;;  %v4222_v9 = vadd.f32 %v9949_v24, %v4152_v57  ;;  %v4149_v13 = vmul.f32 %v9936_v5, %v4079_v23  ;;  %v4080_v17 = vmul.f32 %v8098_v63, %v9888_v31  ;;  %v11569_v63 = vld [vmem:[#allocation37_spill] sm:$0xff] }
 0x5c5   : > { %8101 = vrsqrt.f32 %v3958_v44  ;;  %v3955_v56 = vadd.f32 1e-05, %v3891_v60  ;;  %v3892_v15 = vmul.f32 0.015625, %v3802_v3 }
 0x5c6   : > { %4705 = vadd.xlane.f32.xlu0 %v10349_v50  ;;  %v10355_v20 = vmax.f32 %v4222_v9, 0.0  ;;  %v4219_v32 = vadd.f32 %v9949_v24, %v4149_v13  ;;  %v4150_v5 = vmul.f32 %v10361_v14, %v4080_v17  ;;  %v10372_v24 = vld [vmem:[%s11393_s6] ss:$0 sm:$0xff] }
 0x5c7   : > { %8103 = vrsqrt.f32 %v3955_v56  ;;  %v3956_v31 = vadd.f32 1e-05, %v3892_v15  ;;  %v11570_v17 = vld [vmem:[#allocation38_spill] sm:$0xff] }
 0x5c8   : > { %11566 = vst [vmem:[#allocation36_spill] sm:$0xff] %v10355_v20  ;;  %4707 = vadd.xlane.f32.xlu1 %v10355_v20  ;;  %v6956_v51 = vpack.c.bf16 %v10355_v20, %v10349_v50  ;;  %v10367_v40 = vmax.f32 %v4219_v32, 0.0  ;;  %v4220_v30 = vadd.f32 %v10372_v24, %v4150_v5 }
 0x5c9   : > { %8105 = vrsqrt.f32 %v3956_v31 }
 0x5ca   : > { %11567 = vst [vmem:[#allocation44_spill] sm:$0xff] %v10367_v40  ;;  %7204 = vst [vmem:[%s9984_s16 + $0x88] sm:$0xff] %v6956_v51   ;;  %4701 = vadd.xlane.f32.xlu0 %v10367_v40  ;;  %v10377_v46 = vmax.f32 %v4220_v30, 0.0 }
 0x5cc   : > { %11568 = vst [vmem:[#allocation45_spill] sm:$0xff] %v10377_v46  ;;  %4703 = vadd.xlane.f32.xlu1 %v10377_v46  ;;  %v6951_v34 = vpack.c.bf16 %v10377_v46, %v10367_v40  ;;  %v11571_v46 = vld [vmem:[#allocation39_spill] sm:$0xff] }
 0x5cd   : > { %v8100_v57 = vpop.eup %8099 }
 0x5ce   : > { %7203 = vst [vmem:[%s9984_s16 + $0x80] sm:$0xff] %v6951_v34   ;;  %v3812_v23 = vpop.xlane.xlu0 %3811  ;;  %v4085_v44 = vmul.f32 %v8100_v57, %v11569_v63 }
 0x5cf   : > { %v8102_v60 = vpop.eup %8101  ;;  %v3897_v3 = vmul.f32 0.015625, %v3812_v23 }
 0x5d0   : > { %v3814_v9 = vpop.xlane.xlu1 %3813  ;;  %v4155_v13 = vmul.f32 %v10361_v14, %v4085_v44  ;;  %v4086_v56 = vmul.f32 %v8102_v60, %v11570_v17 }
 0x5d1   : > { %v8104_v15 = vpop.eup %8103  ;;  %v3961_v32 = vadd.f32 1e-05, %v3897_v3  ;;  %v3898_v5 = vmul.f32 0.015625, %v3814_v9  ;;  %v11572_v3 = vld [vmem:[#allocation40_spill] sm:$0xff] }
 0x5d2   : > { %v3808_v31 = vpop.xlane.xlu0 %3807  ;;  %v4225_v51 = vadd.f32 %v10372_v24, %v4155_v13  ;;  %v4156_v30 = vmul.f32 %v10361_v14, %v4086_v56  ;;  %v4083_v34 = vmul.f32 %v8104_v15, %v11571_v46 }
 0x5d3   : > { %v8106_v20 = vpop.eup %8105  ;;  %8107 = vrsqrt.f32 %v3961_v32  ;;  %v3962_v57 = vadd.f32 1e-05, %v3898_v5  ;;  %v3895_v63 = vmul.f32 0.015625, %v3808_v31 }
 0x5d4   : > { %v3810_v23 = vpop.xlane.xlu1 %3809  ;;  %v10389_v40 = vmax.f32 %v4225_v51, 0.0  ;;  %v4226_v44 = vadd.f32 %v10372_v24, %v4156_v30  ;;  %v4153_v60 = vmul.f32 %v10361_v14, %v4083_v34  ;;  %v4084_v9 = vmul.f32 %v8106_v20, %v11572_v3 }
 0x5d5   : > { %8109 = vrsqrt.f32 %v3962_v57  ;;  %v3959_v17 = vadd.f32 1e-05, %v3895_v63  ;;  %v3896_v13 = vmul.f32 0.015625, %v3810_v23 }
 0x5d6   : > { %4713 = vadd.xlane.f32.xlu0 %v10389_v40  ;;  %v4642_v46 = vpop.xlane.xlu0 %4641  ;;  %v10395_v56 = vmax.f32 %v4226_v44, 0.0  ;;  %v4223_v15 = vadd.f32 %v10372_v24, %v4153_v60  ;;  %v4154_v32 = vmul.f32 %v10361_v14, %v4084_v9 }
 0x5d7   : > { %8111 = vrsqrt.f32 %v3959_v17  ;;  %v3960_v5 = vadd.f32 1e-05, %v3896_v13  ;;  %v4767_v31 = vmul.f32 0.015625, %v4642_v46 }
 0x5d8   : > { %4715 = vadd.xlane.f32.xlu1 %v10395_v56  ;;  %v6966_v20 = vpack.c.bf16 %v10395_v56, %v10389_v40  ;;  %v4644_v51 = vpop.xlane.xlu1 %4643  ;;  %v10402_v30 = vmax.f32 %v4223_v15, 0.0  ;;  %v4224_v34 = vadd.f32 %v10372_v24, %v4154_v32 }
 0x5d9   : > { %8113 = vrsqrt.f32 %v3960_v5  ;;  %v4831_v57 = vsub.f32 %v9964_v48, %v4767_v31  ;;  %v4768_v63 = vmul.f32 0.015625, %v4644_v51 }
 0x5da   : > { %7206 = vst [vmem:[%s9984_s16 + $0x98] sm:$0xff] %v6966_v20   ;;  %4709 = vadd.xlane.f32.xlu0 %v10402_v30  ;;  %v10408_v44 = vmax.f32 %v4224_v34, 0.0 }
 0x5db   : > { %v4638_v23 = vpop.xlane.xlu0 %4637  ;;  %v4832_v60 = vsub.f32 %v9971_v28, %v4768_v63  ;;  %v10413_v9 = vsel %vm3598_vm0, %v4831_v57, 0.0 }
 0x5dc   : > { %v4765_v3 = vmul.f32 0.015625, %v4638_v23  ;;  %4711 = vadd.xlane.f32.xlu1 %v10408_v44  ;;  %v6961_v48 = vpack.c.bf16 %v10408_v44, %v10402_v30  ;;  %v4959_v17 = vmul.f32 %v10413_v9, %v10413_v9  ;;  %v4640_v15 = vpop.xlane.xlu1 %4639 }
 0x5dd   : > { %v8108_v13 = vpop.eup %8107  ;;  %v10423_v28 = vsel %vm3598_vm0, %v4832_v60, 0.0  ;;  %v4766_v32 = vmul.f32 0.015625, %v4640_v15 }
 0x5de   : > { %v4829_v46 = vsub.f32 %v9978_v39, %v4765_v3  ;;  %7205 = vst [vmem:[%s9984_s16 + $0x90] sm:$0xff] %v6961_v48   ;;  %5025 = vadd.xlane.f32.xlu0 %v4959_v17  ;;  %v4960_v31 = vmul.f32 %v10423_v28, %v10423_v28  ;;  %v4089_v20 = vmul.f32 %v8108_v13, %v9924_v37 }
 0x5df   : > { %v3820_v5 = vpop.xlane.xlu0 %3819  ;;  %v8110_v51 = vpop.eup %8109  ;;  %v4830_v39 = vsub.f32 %v9988_v41, %v4766_v32 }
 0x5e0   : > { %v3901_v34 = vmul.f32 0.015625, %v3820_v5  ;;  %v10431_v57 = vsel %vm3598_vm0, %v4829_v46, 0.0  ;;  %5027 = vadd.xlane.f32.xlu1 %v4960_v31  ;;  %v4159_v23 = vmul.f32 %v10361_v14, %v4089_v20  ;;  %v4090_v60 = vmul.f32 %v8110_v51, %v9931_v54 }
 0x5e1   : > { %v4957_v63 = vmul.f32 %v10431_v57, %v10431_v57  ;;  %v8112_v3 = vpop.eup %8111  ;;  %v10440_v17 = vsel %vm3598_vm0, %v4830_v39, 0.0 }
 0x5e2   : > { %v3965_v48 = vadd.f32 1e-05, %v3901_v34  ;;  %v4229_v13 = vadd.f32 %v10372_v24, %v4159_v23  ;;  %v4160_v41 = vmul.f32 %v10361_v14, %v4090_v60  ;;  %v4087_v46 = vmul.f32 %v8112_v3, %v9944_v29 }
 0x5e3   : > { %5021 = vadd.xlane.f32.xlu0 %v4957_v63  ;;  %v3816_v37 = vpop.xlane.xlu0 %3815  ;;  %v8114_v15 = vpop.eup %8113  ;;  %v4958_v54 = vmul.f32 %v10440_v17, %v10440_v17  ;;  %v11573_v63 = vld [vmem:[#allocation41_spill] sm:$0xff] }
 0x5e4   : > { %8115 = vrsqrt.f32 %v3965_v48  ;;  %v3899_v32 = vmul.f32 0.015625, %v3816_v37  ;;  %v3822_v5 = vpop.xlane.xlu1 %3821  ;;  %v10447_v20 = vmax.f32 %v4229_v13, 0.0  ;;  %v4230_v51 = vadd.f32 %v10372_v24, %v4160_v41 }
 0x5e5   : > { %v3902_v31 = vmul.f32 0.015625, %v3822_v5  ;;  %v4157_v34 = vmul.f32 %v10361_v14, %v4087_v46  ;;  %5023 = vadd.xlane.f32.xlu1 %v4958_v54  ;;  %v4088_v23 = vmul.f32 %v8114_v15, %v11573_v63 }
 0x5e6   : > { %v3963_v39 = vadd.f32 1e-05, %v3899_v32  ;;  %v10453_v3 = vmax.f32 %v4230_v51, 0.0 }
 0x5e7   : > { %v3966_v60 = vadd.f32 1e-05, %v3902_v31  ;;  %4721 = vadd.xlane.f32.xlu0 %v10447_v20  ;;  %v4650_v29 = vpop.xlane.xlu0 %4649  ;;  %v4227_v48 = vadd.f32 %v10372_v24, %v4157_v34  ;;  %v4158_v41 = vmul.f32 %v10361_v14, %v4088_v23 }
 0x5e8   : > { %8117 = vrsqrt.f32 %v3963_v39  ;;  %v4771_v37 = vmul.f32 0.015625, %v4650_v29  ;;  %v3818_v13 = vpop.xlane.xlu1 %3817  ;;  %v6976_v32 = vpack.c.bf16 %v10453_v3, %v10447_v20 }
 0x5e9   : > { %8119 = vrsqrt.f32 %v3966_v60  ;;  %v3900_v46 = vmul.f32 0.015625, %v3818_v13  ;;  %v10459_v15 = vmax.f32 %v4227_v48, 0.0  ;;  %4723 = vadd.xlane.f32.xlu1 %v10453_v3  ;;  %v4228_v54 = vadd.f32 %v10372_v24, %v4158_v41  ;;  %v8019_v60 = vld [vmem:[#allocation10] sm:$0xff]  }
 0x5ea   : > { %v4835_v5 = vsub.f32 %v10020_v18, %v4771_v37  ;;  %7208 = vst [vmem:[%s9984_s16 + $0xa8] sm:$0xff] %v6976_v32   ;;  %7410 = vmatprep.subr.bf16.mxu1 %v8019_v60 }
 0x5eb   : > { %v3964_v31 = vadd.f32 1e-05, %v3900_v46  ;;  %4717 = vadd.xlane.f32.xlu0 %v10459_v15  ;;  %v4646_v51 = vpop.xlane.xlu0 %4645  ;;  %v10466_v63 = vmax.f32 %v4228_v54, 0.0  ;;  %7411 = vmatpush3.bf16.msra.mxu1 %v8019_v60 }
 0x5ec   : > { %v4769_v34 = vmul.f32 0.015625, %v4646_v51  ;;  %v4652_v39 = vpop.xlane.xlu1 %4651  ;;  %v10470_v23 = vsel %vm3598_vm0, %v4835_v5, 0.0 }
 0x5ed   : > { %11574 = vst [vmem:[#allocation37_spill] sm:$0xff] %v10470_v23  ;;  %8121 = vrsqrt.f32 %v3964_v31  ;;  %v4772_v18 = vmul.f32 0.015625, %v4652_v39  ;;  %v4963_v29 = vmul.f32 %v10470_v23, %v10470_v23  ;;  %4719 = vadd.xlane.f32.xlu1 %v10466_v63  ;;  %v6971_v13 = vpack.c.bf16 %v10466_v63, %v10459_v15 }
 0x5ee   : > { %v8116_v48 = vpop.eup %8115  ;;  %v4833_v37 = vsub.f32 %v10034_v6, %v4769_v34  ;;  %v8020_v6 = vld [vmem:[#allocation10 + $0x8] sm:$0xff]  }
 0x5ef   : > { %v4836_v41 = vsub.f32 %v10037_v49, %v4772_v18  ;;  %5033 = vadd.xlane.f32.xlu0 %v4963_v29  ;;  %v3828_v46 = vpop.xlane.xlu0 %3827  ;;  %v4093_v32 = vmul.f32 %v8116_v48, %v9992_v10  ;;  %7207 = vst [vmem:[%s9984_s16 + $0xa0] sm:$0xff] %v6971_v13   ;;  %7412 = vmatprep.subr.bf16.mxu1 %v8020_v6 }
 0x5f0   : > { %v3905_v5 = vmul.f32 0.015625, %v3828_v46  ;;  %v4648_v54 = vpop.xlane.xlu1 %4647  ;;  %v10483_v31 = vsel %vm3598_vm0, %v4833_v37, 0.0  ;;  %7413 = vmatpush3.bf16.msra.mxu1 %v8020_v6 }
 0x5f1   : > { %v4770_v51 = vmul.f32 0.015625, %v4648_v54  ;;  %v4961_v34 = vmul.f32 %v10483_v31, %v10483_v31  ;;  %v10489_v49 = vsel %vm3598_vm0, %v4836_v41, 0.0  ;;  %v4163_v39 = vmul.f32 %v10361_v14, %v4093_v32  ;;  %v8021_v54 = vld [vmem:[#allocation10 + $0x10] sm:$0xff]  }
 0x5f2   : > { %11575 = vst [vmem:[#allocation38_spill] sm:$0xff] %v10489_v49  ;;  %v8118_v10 = vpop.eup %8117  ;;  %v3969_v60 = vadd.f32 1e-05, %v3905_v5  ;;  %v4964_v18 = vmul.f32 %v10489_v49, %v10489_v49  ;;  %7414 = vmatprep.subr.bf16.mxu1 %v8021_v54 }
 0x5f3   : > { %v8120_v29 = vpop.eup %8119  ;;  %v4834_v48 = vsub.f32 %v10053_v61, %v4770_v51  ;;  %5029 = vadd.xlane.f32.xlu0 %v4961_v34  ;;  %v3824_v37 = vpop.xlane.xlu0 %3823  ;;  %v4233_v13 = vadd.f32 %v10372_v24, %v4163_v39  ;;  %v4091_v46 = vmul.f32 %v8118_v10, %v10005_v0 }
 0x5f4   : > { %8123 = vrsqrt.f32 %v3969_v60  ;;  %v3903_v41 = vmul.f32 0.015625, %v3824_v37  ;;  %5035 = vadd.xlane.f32.xlu1 %v4964_v18  ;;  %v3830_v32 = vpop.xlane.xlu1 %3829  ;;  %v4094_v5 = vmul.f32 %v8120_v29, %v10011_v26  ;;  %7415 = vmatpush3.bf16.msra.mxu1 %v8021_v54 }
 0x5f5   : > { %v3906_v23 = vmul.f32 0.015625, %v3830_v32  ;;  %v10498_v49 = vmax.f32 %v4233_v13, 0.0  ;;  %v10502_v61 = vsel %vm3598_vm0, %v4834_v48, 0.0  ;;  %v4161_v51 = vmul.f32 %v10361_v14, %v4091_v46  ;;  %v8022_v13 = vld [vmem:[#allocation10 + $0x18] sm:$0xff]  }
 0x5f6   : > { %v3967_v34 = vadd.f32 1e-05, %v3903_v41  ;;  %v4962_v0 = vmul.f32 %v10502_v61, %v10502_v61  ;;  %v4164_v6 = vmul.f32 %v10361_v14, %v4094_v5  ;;  %7416 = vmatprep.subr.bf16.mxu1 %v8022_v13 }
 0x5f7   : > { %v8122_v39 = vpop.eup %8121  ;;  %v3970_v10 = vadd.f32 1e-05, %v3906_v23  ;;  %4729 = vadd.xlane.f32.xlu0 %v10498_v49  ;;  %v4658_v26 = vpop.xlane.xlu0 %4657  ;;  %v4231_v60 = vadd.f32 %v10372_v24, %v4161_v51 }
 0x5f8   : > { %8125 = vrsqrt.f32 %v3967_v34  ;;  %v4775_v18 = vmul.f32 0.015625, %v4658_v26  ;;  %5031 = vadd.xlane.f32.xlu1 %v4962_v0  ;;  %v3826_v29 = vpop.xlane.xlu1 %3825  ;;  %v4234_v48 = vadd.f32 %v10372_v24, %v4164_v6  ;;  %v4092_v37 = vmul.f32 %v8122_v39, %v10024_v36  ;;  %7417 = vmatpush3.bf16.msra.mxu1 %v8022_v13  ;;  %v8023_v39 = vld [vmem:[#allocation10 + $0x20] sm:$0xff]  }
 0x5f9   : > { %8127 = vrsqrt.f32 %v3970_v10  ;;  %v3904_v46 = vmul.f32 0.015625, %v3826_v29  ;;  %v10512_v41 = vmax.f32 %v4231_v60, 0.0  ;;  %7418 = vmatprep.subr.bf16.mxu1 %v8023_v39 }
 0x5fa   : > { %v4839_v23 = vsub.f32 %v10078_v58, %v4775_v18  ;;  %v10515_v32 = vmax.f32 %v4234_v48, 0.0  ;;  %v4162_v5 = vmul.f32 %v10361_v14, %v4092_v37 }
 0x5fb   : > { %v3968_v54 = vadd.f32 1e-05, %v3904_v46  ;;  %4725 = vadd.xlane.f32.xlu0 %v10512_v41  ;;  %v4654_v51 = vpop.xlane.xlu0 %4653 }
 0x5fc   : > { %v4773_v34 = vmul.f32 0.015625, %v4654_v51  ;;  %4731 = vadd.xlane.f32.xlu1 %v10515_v32  ;;  %v6986_v36 = vpack.c.bf16 %v10515_v32, %v10498_v49  ;;  %v4660_v0 = vpop.xlane.xlu1 %4659  ;;  %v10524_v58 = vsel %vm3598_vm0, %v4839_v23, 0.0  ;;  %v4232_v6 = vadd.f32 %v10372_v24, %v4162_v5  ;;  %7419 = vmatpush3.bf16.msra.mxu1 %v8023_v39 }
 0x5fd   : > { %8129 = vrsqrt.f32 %v3968_v54  ;;  %v4776_v10 = vmul.f32 0.015625, %v4660_v0  ;;  %v4967_v26 = vmul.f32 %v10524_v58, %v10524_v58  ;;  %v8024_v54 = vld [vmem:[#allocation10 + $0x28] sm:$0xff]  }
 0x5fe   : > { %v8124_v60 = vpop.eup %8123  ;;  %v4837_v18 = vsub.f32 %v10092_v27, %v4773_v34  ;;  %7210 = vst [vmem:[%s9984_s16 + $0xb8] sm:$0xff] %v6986_v36   ;;  %v10531_v29 = vmax.f32 %v4232_v6, 0.0  ;;  %7420 = vmatprep.subr.bf16.mxu1 %v8024_v54 }
 0x5ff   : > { %v4840_v48 = vsub.f32 %v10095_v2, %v4776_v10  ;;  %5041 = vadd.xlane.f32.xlu0 %v4967_v26  ;;  %v3836_v37 = vpop.xlane.xlu0 %3835  ;;  %v4097_v13 = vmul.f32 %v8124_v60, %v10046_v1 }
 0x600   : > { %v3909_v46 = vmul.f32 0.015625, %v3836_v37  ;;  %4727 = vadd.xlane.f32.xlu1 %v10531_v29  ;;  %v6981_v23 = vpack.c.bf16 %v10531_v29, %v10512_v41  ;;  %v4656_v5 = vpop.xlane.xlu1 %4655  ;;  %v10540_v27 = vsel %vm3598_vm0, %v4837_v18, 0.0  ;;  %7421 = vmatpush3.bf16.msra.mxu1 %v8024_v54 }
 0x601   : > { %v4774_v51 = vmul.f32 0.015625, %v4656_v5  ;;  %v4965_v2 = vmul.f32 %v10540_v27, %v10540_v27  ;;  %v10546_v1 = vsel %vm3598_vm0, %v4840_v48, 0.0  ;;  %v4167_v34 = vmul.f32 %v10361_v14, %v4097_v13  ;;  %v11577_v13 = vld [vmem:[#allocation42_spill] sm:$0xff] }
 0x602   : > { %11576 = vst [vmem:[#allocation39_spill] sm:$0xff] %v10546_v1  ;;  %v8126_v36 = vpop.eup %8125  ;;  %v3973_v0 = vadd.f32 1e-05, %v3909_v46  ;;  %7209 = vst [vmem:[%s9984_s16 + $0xb0] sm:$0xff] %v6981_v23   ;;  %v4968_v6 = vmul.f32 %v10546_v1, %v10546_v1  ;;  %v8025_v23 = vld [vmem:[#allocation10 + $0x30] sm:$0xff]  }
 0x603   : > { %v8128_v39 = vpop.eup %8127  ;;  %v4838_v10 = vsub.f32 %v10111_v7, %v4774_v51  ;;  %5037 = vadd.xlane.f32.xlu0 %v4965_v2  ;;  %v3832_v26 = vpop.xlane.xlu0 %3831  ;;  %v4237_v60 = vadd.f32 %v10372_v24, %v4167_v34  ;;  %v4095_v18 = vmul.f32 %v8126_v36, %v10062_v19  ;;  %7422 = vmatprep.subr.bf16.mxu1 %v8025_v23 }
 0x604   : > { %8131 = vrsqrt.f32 %v3973_v0  ;;  %v3907_v48 = vmul.f32 0.015625, %v3832_v26  ;;  %5043 = vadd.xlane.f32.xlu1 %v4968_v6  ;;  %v3838_v37 = vpop.xlane.xlu1 %3837  ;;  %v4098_v46 = vmul.f32 %v8128_v39, %v11577_v13  ;;  %7423 = vmatpush3.bf16.msra.mxu1 %v8025_v23 }
 0x605   : > { %v3910_v5 = vmul.f32 0.015625, %v3838_v37  ;;  %v10556_v1 = vmax.f32 %v4237_v60, 0.0  ;;  %v10560_v7 = vsel %vm3598_vm0, %v4838_v10, 0.0  ;;  %v4165_v51 = vmul.f32 %v10361_v14, %v4095_v18  ;;  %v11578_v60 = vld [vmem:[#allocation23_spill] sm:$0xff] }
 0x606   : > { %v3971_v2 = vadd.f32 1e-05, %v3907_v48  ;;  %v4966_v19 = vmul.f32 %v10560_v7, %v10560_v7  ;;  %v4168_v54 = vmul.f32 %v10361_v14, %v4098_v46  ;;  %v8026_v48 = vld [vmem:[#allocation10 + $0x38] sm:$0xff]  }
 0x607   : > { %v8130_v34 = vpop.eup %8129  ;;  %v3974_v36 = vadd.f32 1e-05, %v3910_v5  ;;  %4737 = vadd.xlane.f32.xlu0 %v10556_v1  ;;  %v4666_v0 = vpop.xlane.xlu0 %4665  ;;  %v4235_v6 = vadd.f32 %v10372_v24, %v4165_v51  ;;  %7424 = vmatprep.subr.bf16.mxu1 %v8026_v48 }
 0x608   : > { %8133 = vrsqrt.f32 %v3971_v2  ;;  %v4779_v39 = vmul.f32 0.015625, %v4666_v0  ;;  %5039 = vadd.xlane.f32.xlu1 %v4966_v19  ;;  %v3834_v10 = vpop.xlane.xlu1 %3833  ;;  %v4238_v26 = vadd.f32 %v10372_v24, %v4168_v54  ;;  %v4096_v18 = vmul.f32 %v8130_v34, %v11578_v60  ;;  %7425 = vmatpush3.bf16.msra.mxu1 %v8026_v48  ;;  %v11580_v48 = vld [vmem:[#allocation24_spill] sm:$0xff] }
 0x609   : > { %8135 = vrsqrt.f32 %v3974_v36  ;;  %v3908_v37 = vmul.f32 0.015625, %v3834_v10  ;;  %v10570_v13 = vmax.f32 %v4235_v6, 0.0 }
 0x60a   : > { %v4843_v46 = vsub.f32 %v10136_v52, %v4779_v39  ;;  %v10573_v5 = vmax.f32 %v4238_v26, 0.0  ;;  %v4166_v51 = vmul.f32 %v10361_v14, %v4096_v18 }
 0x60b   : > { %v3972_v23 = vadd.f32 1e-05, %v3908_v37  ;;  %4733 = vadd.xlane.f32.xlu0 %v10570_v13  ;;  %v4662_v2 = vpop.xlane.xlu0 %4661 }
 0x60c   : > { %v4777_v19 = vmul.f32 0.015625, %v4662_v2  ;;  %4739 = vadd.xlane.f32.xlu1 %v10573_v5  ;;  %v6996_v54 = vpack.c.bf16 %v10573_v5, %v10556_v1  ;;  %v4668_v34 = vpop.xlane.xlu1 %4667  ;;  %v10582_v52 = vsel %vm3598_vm0, %v4843_v46, 0.0  ;;  %v4236_v36 = vadd.f32 %v10372_v24, %v4166_v51 }
 0x60d   : > { %11579 = vst [vmem:[#allocation40_spill] sm:$0xff] %v10582_v52  ;;  %8137 = vrsqrt.f32 %v3972_v23  ;;  %v4780_v0 = vmul.f32 0.015625, %v4668_v34  ;;  %v4971_v6 = vmul.f32 %v10582_v52, %v10582_v52 }
 0x60e   : > { %v8132_v39 = vpop.eup %8131  ;;  %v4841_v10 = vsub.f32 %v10150_v59, %v4777_v19  ;;  %7212 = vst [vmem:[%s9984_s16 + $0xc8] sm:$0xff] %v6996_v54   ;;  %v10589_v26 = vmax.f32 %v4236_v36, 0.0 }
 0x60f   : > { %v4844_v60 = vsub.f32 %v10153_v45, %v4780_v0  ;;  %5049 = vadd.xlane.f32.xlu0 %v4971_v6  ;;  %v3844_v18 = vpop.xlane.xlu0 %3843  ;;  %v4101_v37 = vmul.f32 %v8132_v39, %v11580_v48  ;;  %v11583_v48 = vld [vmem:[#allocation25_spill] sm:$0xff] }
 0x610   : > { %v3913_v46 = vmul.f32 0.015625, %v3844_v18  ;;  %4735 = vadd.xlane.f32.xlu1 %v10589_v26  ;;  %v6991_v51 = vpack.c.bf16 %v10589_v26, %v10570_v13  ;;  %v4664_v23 = vpop.xlane.xlu1 %4663  ;;  %v10598_v59 = vsel %vm3598_vm0, %v4841_v10, 0.0 }
 0x611   : > { %11581 = vst [vmem:[#allocation41_spill] sm:$0xff] %v10598_v59  ;;  %v4778_v2 = vmul.f32 0.015625, %v4664_v23  ;;  %v4969_v19 = vmul.f32 %v10598_v59, %v10598_v59  ;;  %v10604_v45 = vsel %vm3598_vm0, %v4844_v60, 0.0  ;;  %v4171_v54 = vmul.f32 %v10361_v14, %v4101_v37  ;;  %v11584_v37 = vld [vmem:[#allocation43_spill] sm:$0xff] }
 0x612   : > { %11582 = vst [vmem:[#allocation42_spill] sm:$0xff] %v10604_v45  ;;  %v8134_v34 = vpop.eup %8133  ;;  %v3977_v36 = vadd.f32 1e-05, %v3913_v46  ;;  %7211 = vst [vmem:[%s9984_s16 + $0xc0] sm:$0xff] %v6991_v51   ;;  %v4972_v0 = vmul.f32 %v10604_v45, %v10604_v45 }
 0x613   : > { %v8136_v6 = vpop.eup %8135  ;;  %v4842_v39 = vsub.f32 %v10169_v25, %v4778_v2  ;;  %5045 = vadd.xlane.f32.xlu0 %v4969_v19  ;;  %v3840_v10 = vpop.xlane.xlu0 %3839  ;;  %v4241_v18 = vadd.f32 %v10372_v24, %v4171_v54  ;;  %v4099_v23 = vmul.f32 %v8134_v34, %v11583_v48 }
 0x614   : > { %8139 = vrsqrt.f32 %v3977_v36  ;;  %v3911_v60 = vmul.f32 0.015625, %v3840_v10  ;;  %5051 = vadd.xlane.f32.xlu1 %v4972_v0  ;;  %v3846_v52 = vpop.xlane.xlu1 %3845  ;;  %v4102_v59 = vmul.f32 %v8136_v6, %v11584_v37 }
 0x615   : > { %v3914_v46 = vmul.f32 0.015625, %v3846_v52  ;;  %v10614_v51 = vmax.f32 %v4241_v18, 0.0  ;;  %v10618_v45 = vsel %vm3598_vm0, %v4842_v39, 0.0  ;;  %v4169_v25 = vmul.f32 %v10361_v14, %v4099_v23  ;;  %v11586_v18 = vld [vmem:[#allocation26_spill] sm:$0xff] }
 0x616   : > { %11585 = vst [vmem:[#allocation23_spill] sm:$0xff] %v10618_v45  ;;  %v3975_v2 = vadd.f32 1e-05, %v3911_v60  ;;  %v4970_v19 = vmul.f32 %v10618_v45, %v10618_v45  ;;  %v4172_v54 = vmul.f32 %v10361_v14, %v4102_v59 }
 0x617   : > { %v8138_v34 = vpop.eup %8137  ;;  %v3978_v36 = vadd.f32 1e-05, %v3914_v46  ;;  %4745 = vadd.xlane.f32.xlu0 %v10614_v51  ;;  %v4674_v0 = vpop.xlane.xlu0 %4673  ;;  %v4239_v52 = vadd.f32 %v10372_v24, %v4169_v25 }
 0x618   : > { %8141 = vrsqrt.f32 %v3975_v2  ;;  %v4783_v6 = vmul.f32 0.015625, %v4674_v0  ;;  %5047 = vadd.xlane.f32.xlu1 %v4970_v19  ;;  %v3842_v39 = vpop.xlane.xlu1 %3841  ;;  %v4242_v10 = vadd.f32 %v10372_v24, %v4172_v54  ;;  %v4100_v48 = vmul.f32 %v8138_v34, %v11586_v18 }
 0x619   : > { %8143 = vrsqrt.f32 %v3978_v36  ;;  %v3912_v23 = vmul.f32 0.015625, %v3842_v39  ;;  %v10628_v60 = vmax.f32 %v4239_v52, 0.0 }
 0x61a   : > { %v4847_v59 = vsub.f32 %v10194_v47, %v4783_v6  ;;  %v10631_v37 = vmax.f32 %v4242_v10, 0.0  ;;  %v4170_v46 = vmul.f32 %v10361_v14, %v4100_v48 }
 0x61b   : > { %v3976_v25 = vadd.f32 1e-05, %v3912_v23  ;;  %4741 = vadd.xlane.f32.xlu0 %v10628_v60  ;;  %v4670_v2 = vpop.xlane.xlu0 %4669  ;;  %v11588_v23 = vld [vmem:[#allocation27_spill] sm:$0xff] }
 0x61c   : > { %v4781_v19 = vmul.f32 0.015625, %v4670_v2  ;;  %4747 = vadd.xlane.f32.xlu1 %v10631_v37  ;;  %v7006_v54 = vpack.c.bf16 %v10631_v37, %v10614_v51  ;;  %v4676_v34 = vpop.xlane.xlu1 %4675  ;;  %v10640_v36 = vsel %vm3598_vm0, %v4847_v59, 0.0  ;;  %v4240_v47 = vadd.f32 %v10372_v24, %v4170_v46 }
 0x61d   : > { %11587 = vst [vmem:[#allocation24_spill] sm:$0xff] %v10640_v36  ;;  %8145 = vrsqrt.f32 %v3976_v25  ;;  %v4784_v0 = vmul.f32 0.015625, %v4676_v34  ;;  %v4975_v52 = vmul.f32 %v10640_v36, %v10640_v36 }
 0x61e   : > { %v8140_v6 = vpop.eup %8139  ;;  %v4845_v39 = vsub.f32 %v10208_v43, %v4781_v19  ;;  %7214 = vst [vmem:[%s9984_s16 + $0xd8] sm:$0xff] %v7006_v54   ;;  %v10647_v10 = vmax.f32 %v4240_v47, 0.0 }
 0x61f   : > { %v4848_v18 = vsub.f32 %v10211_v4, %v4784_v0  ;;  %5057 = vadd.xlane.f32.xlu0 %v4975_v52  ;;  %v3852_v48 = vpop.xlane.xlu0 %3851  ;;  %v4105_v59 = vmul.f32 %v8140_v6, %v11588_v23 }
 0x620   : > { %v3917_v2 = vmul.f32 0.015625, %v3852_v48  ;;  %4743 = vadd.xlane.f32.xlu1 %v10647_v10  ;;  %v7001_v46 = vpack.c.bf16 %v10647_v10, %v10628_v60  ;;  %v4672_v25 = vpop.xlane.xlu1 %4671  ;;  %v10656_v43 = vsel %vm3598_vm0, %v4845_v39, 0.0 }
 0x621   : > { %11589 = vst [vmem:[#allocation25_spill] sm:$0xff] %v10656_v43  ;;  %v4782_v19 = vmul.f32 0.015625, %v4672_v25  ;;  %v4973_v54 = vmul.f32 %v10656_v43, %v10656_v43  ;;  %v10662_v4 = vsel %vm3598_vm0, %v4848_v18, 0.0  ;;  %v4175_v34 = vmul.f32 %v10361_v14, %v4105_v59  ;;  %v11591_v25 = vld [vmem:[#allocation28_spill] sm:$0xff]  ;;  %v11592_v59 = vld [vmem:[#allocation29_spill] sm:$0xff] }
 0x622   : > { %11590 = vst [vmem:[#allocation43_spill] sm:$0xff] %v10662_v4  ;;  %v8142_v47 = vpop.eup %8141  ;;  %v3981_v0 = vadd.f32 1e-05, %v3917_v2  ;;  %7213 = vst [vmem:[%s9984_s16 + $0xd0] sm:$0xff] %v7001_v46   ;;  %v4976_v52 = vmul.f32 %v10662_v4, %v10662_v4 }
 0x623   : > { %v8144_v6 = vpop.eup %8143  ;;  %v4846_v39 = vsub.f32 %v10227_v35, %v4782_v19  ;;  %5053 = vadd.xlane.f32.xlu0 %v4973_v54  ;;  %v3848_v48 = vpop.xlane.xlu0 %3847  ;;  %v4245_v23 = vadd.f32 %v10372_v24, %v4175_v34  ;;  %v4103_v36 = vmul.f32 %v8142_v47, %v11591_v25 }
 0x624   : > { %8147 = vrsqrt.f32 %v3981_v0  ;;  %v3915_v18 = vmul.f32 0.015625, %v3848_v48  ;;  %5059 = vadd.xlane.f32.xlu1 %v4976_v52  ;;  %v3854_v43 = vpop.xlane.xlu1 %3853  ;;  %v4106_v45 = vmul.f32 %v8144_v6, %v11592_v59 }
 0x625   : > { %v3918_v2 = vmul.f32 0.015625, %v3854_v43  ;;  %v10672_v46 = vmax.f32 %v4245_v23, 0.0  ;;  %v10676_v4 = vsel %vm3598_vm0, %v4846_v39, 0.0  ;;  %v4173_v35 = vmul.f32 %v10361_v14, %v4103_v36  ;;  %v11593_v36 = vld [vmem:[#allocation30_spill] sm:$0xff] }
 0x626   : > { %v3979_v19 = vadd.f32 1e-05, %v3915_v18  ;;  %v4974_v54 = vmul.f32 %v10676_v4, %v10676_v4  ;;  %v4176_v34 = vmul.f32 %v10361_v14, %v4106_v45 }
 0x627   : > { %v8146_v47 = vpop.eup %8145  ;;  %v3982_v0 = vadd.f32 1e-05, %v3918_v2  ;;  %4753 = vadd.xlane.f32.xlu0 %v10672_v46  ;;  %v4682_v52 = vpop.xlane.xlu0 %4681  ;;  %v4243_v43 = vadd.f32 %v10372_v24, %v4173_v35 }
 0x628   : > { %8149 = vrsqrt.f32 %v3979_v19  ;;  %v4787_v6 = vmul.f32 0.015625, %v4682_v52  ;;  %5055 = vadd.xlane.f32.xlu1 %v4974_v54  ;;  %v3850_v39 = vpop.xlane.xlu1 %3849  ;;  %v4246_v48 = vadd.f32 %v10372_v24, %v4176_v34  ;;  %v4104_v23 = vmul.f32 %v8146_v47, %v11593_v36 }
 0x629   : > { %8151 = vrsqrt.f32 %v3982_v0  ;;  %v3916_v25 = vmul.f32 0.015625, %v3850_v39  ;;  %v10686_v18 = vmax.f32 %v4243_v43, 0.0 }
 0x62a   : > { %v4851_v45 = vsub.f32 %v10252_v21, %v4787_v6  ;;  %v10689_v59 = vmax.f32 %v4246_v48, 0.0  ;;  %v4174_v2 = vmul.f32 %v10361_v14, %v4104_v23  ;;  %v11594_v23 = vld [vmem:[#allocation31_spill] sm:$0xff] }
 0x62b   : > { %v3980_v35 = vadd.f32 1e-05, %v3916_v25  ;;  %4749 = vadd.xlane.f32.xlu0 %v10686_v18  ;;  %v4678_v19 = vpop.xlane.xlu0 %4677 }
 0x62c   : > { %v4785_v54 = vmul.f32 0.015625, %v4678_v19  ;;  %4755 = vadd.xlane.f32.xlu1 %v10689_v59  ;;  %v7016_v34 = vpack.c.bf16 %v10689_v59, %v10672_v46  ;;  %v4684_v47 = vpop.xlane.xlu1 %4683  ;;  %v10698_v0 = vsel %vm3598_vm0, %v4851_v45, 0.0  ;;  %v4244_v21 = vadd.f32 %v10372_v24, %v4174_v2 }
 0x62d   : > { %8153 = vrsqrt.f32 %v3980_v35  ;;  %v4788_v52 = vmul.f32 0.015625, %v4684_v47  ;;  %v4979_v43 = vmul.f32 %v10698_v0, %v10698_v0 }
 0x62e   : > { %v8148_v6 = vpop.eup %8147  ;;  %v4849_v39 = vsub.f32 %v10266_v53, %v4785_v54  ;;  %7216 = vst [vmem:[%s9984_s16 + $0xe8] sm:$0xff] %v7016_v34   ;;  %v10705_v48 = vmax.f32 %v4244_v21, 0.0 }
 0x62f   : > { %v4852_v36 = vsub.f32 %v10268_v38, %v4788_v52  ;;  %5065 = vadd.xlane.f32.xlu0 %v4979_v43  ;;  %v4109_v25 = vmul.f32 %v8148_v6, %v11594_v23  ;;  %v11596_v6 = vld [vmem:[#allocation32_spill] sm:$0xff]  ;;  %v11597_v23 = vld [vmem:[#allocation33_spill] sm:$0xff] }
 0x630   : > { %4751 = vadd.xlane.f32.xlu1 %v10705_v48  ;;  %v7011_v45 = vpack.c.bf16 %v10705_v48, %v10686_v18  ;;  %v4680_v2 = vpop.xlane.xlu1 %4679  ;;  %v10714_v35 = vsel %vm3598_vm0, %v4849_v39, 0.0 }
 0x631   : > { %v4786_v19 = vmul.f32 0.015625, %v4680_v2  ;;  %v4977_v53 = vmul.f32 %v10714_v35, %v10714_v35  ;;  %v10720_v38 = vsel %vm3598_vm0, %v4852_v36, 0.0  ;;  %v4179_v54 = vmul.f32 %v10361_v14, %v4109_v25 }
 0x632   : > { %11595 = vst [vmem:[#allocation26_spill] sm:$0xff] %v10720_v38  ;;  %v8150_v34 = vpop.eup %8149  ;;  %7215 = vst [vmem:[%s9984_s16 + $0xe0] sm:$0xff] %v7011_v45   ;;  %v4980_v47 = vmul.f32 %v10720_v38, %v10720_v38 }
 0x633   : > { %v8152_v21 = vpop.eup %8151  ;;  %v4850_v52 = vsub.f32 %v10277_v16, %v4786_v19  ;;  %5061 = vadd.xlane.f32.xlu0 %v4977_v53  ;;  %v4249_v43 = vadd.f32 %v10372_v24, %v4179_v54  ;;  %v4107_v39 = vmul.f32 %v8150_v34, %v11596_v6 }
 0x634   : > { %5067 = vadd.xlane.f32.xlu1 %v4980_v47  ;;  %v4110_v2 = vmul.f32 %v8152_v21, %v11597_v23  ;;  %v11599_v47 = vld [vmem:[#allocation34_spill] sm:$0xff] }
 0x635   : > { %v10730_v36 = vmax.f32 %v4249_v43, 0.0  ;;  %v10734_v25 = vsel %vm3598_vm0, %v4850_v52, 0.0  ;;  %v4177_v45 = vmul.f32 %v10361_v14, %v4107_v39 }
 0x636   : > { %11598 = vst [vmem:[#allocation27_spill] sm:$0xff] %v10734_v25  ;;  %v4978_v38 = vmul.f32 %v10734_v25, %v10734_v25  ;;  %v4180_v16 = vmul.f32 %v10361_v14, %v4110_v2  ;;  %v4690_v53 = vpop.xlane.xlu0 %4689 }
 0x637   : > { %v8154_v19 = vpop.eup %8153  ;;  %4761 = vadd.xlane.f32.xlu0 %v10730_v36  ;;  %v4247_v54 = vadd.f32 %v10372_v24, %v4177_v45  ;;  %v4791_v39 = vmul.f32 0.015625, %v4690_v53 }
 0x638   : > { %5063 = vadd.xlane.f32.xlu1 %v4978_v38  ;;  %v4250_v34 = vadd.f32 %v10372_v24, %v4180_v16  ;;  %v4108_v21 = vmul.f32 %v8154_v19, %v11599_v47 }
 0x639   : > { %v10744_v52 = vmax.f32 %v4247_v54, 0.0  ;;  %v4855_v54 = vsub.f32 %v10288_v42, %v4791_v39 }
 0x63a   : > { %v10746_v43 = vmax.f32 %v4250_v34, 0.0  ;;  %v4178_v6 = vmul.f32 %v10361_v14, %v4108_v21 }
 0x63b   : > { %4757 = vadd.xlane.f32.xlu0 %v10744_v52  ;;  %v4686_v23 = vpop.xlane.xlu0 %4685  ;;  %v4692_v2 = vpop.xlane.xlu1 %4691 }
 0x63c   : > { %4763 = vadd.xlane.f32.xlu1 %v10746_v43  ;;  %v7026_v38 = vpack.c.bf16 %v10746_v43, %v10730_v36  ;;  %v4248_v45 = vadd.f32 %v10372_v24, %v4178_v6  ;;  %v4789_v16 = vmul.f32 0.015625, %v4686_v23  ;;  %v4792_v53 = vmul.f32 0.015625, %v4692_v2 }
 0x63d   : > { %v10773_v6 = vsel %vm3598_vm0, %v4855_v54, 0.0 }
 0x63e   : > { %7218 = vst [vmem:[%s9984_s16 + $0xf8] sm:$0xff] %v7026_v38   ;;  %v10755_v19 = vmax.f32 %v4248_v45, 0.0  ;;  %v4853_v14 = vsub.f32 %v10296_v8, %v4789_v16  ;;  %v4856_v42 = vsub.f32 %v10298_v33, %v4792_v53  ;;  %v4983_v2 = vmul.f32 %v10773_v6, %v10773_v6 }
 0x63f   : > { %v4688_v47 = vpop.xlane.xlu1 %4687 }
 0x640   : > { %4759 = vadd.xlane.f32.xlu1 %v10755_v19  ;;  %v7021_v34 = vpack.c.bf16 %v10755_v19, %v10744_v52  ;;  %v4790_v21 = vmul.f32 0.015625, %v4688_v47  ;;  %v10764_v25 = vsel %vm3598_vm0, %v4853_v14, 0.0 }
 0x641   : > { %v4981_v24 = vmul.f32 %v10764_v25, %v10764_v25 }
 0x642   : > { %7217 = vst [vmem:[%s9984_s16 + $0xf0] sm:$0xff] %v7021_v34   ;;  %v4854_v8 = vsub.f32 %v10308_v12, %v4790_v21  ;;  %v10785_v12 = vsel %vm3598_vm0, %v4856_v42, 0.0 }
 0x643   : > { %5069 = vadd.xlane.f32.xlu0 %v4981_v24  ;;  %v4698_v39 = vpop.xlane.xlu0 %4697  ;;  %v4984_v34 = vmul.f32 %v10785_v12, %v10785_v12 }
 0x644   : > { %v10777_v23 = vsel %vm3598_vm0, %v4854_v8, 0.0  ;;  %v4795_v33 = vmul.f32 0.015625, %v4698_v39  ;;  %v11600_v39 = vld [vmem:[#allocation35_spill] sm:$0xff] }
 0x645   : > { %v4700_v38 = vpop.xlane.xlu1 %4699  ;;  %v4982_v45 = vmul.f32 %v10777_v23, %v10777_v23 }
 0x646   : > { %v4796_v54 = vmul.f32 0.015625, %v4700_v38  ;;  %v4859_v47 = vsub.f32 %v10319_v62, %v4795_v33 }
 0x647   : > { %5073 = vadd.xlane.f32.xlu0 %v4983_v2  ;;  %5071 = vadd.xlane.f32.xlu1 %v4982_v45  ;;  %v4694_v16 = vpop.xlane.xlu0 %4693 }
 0x648   : > { %v4793_v14 = vmul.f32 0.015625, %v4694_v16  ;;  %v4860_v8 = vsub.f32 %v10325_v22, %v4796_v54  ;;  %v10805_v62 = vsel %vm3598_vm0, %v4859_v47, 0.0 }
 0x649   : > { %v4696_v53 = vpop.xlane.xlu1 %4695  ;;  %11602 = vst [vmem:[#allocation29_spill] sm:$0xff] %v10805_v62  ;;  %v4987_v33 = vmul.f32 %v10805_v62, %v10805_v62  ;;  %v11606_v62 = vld [vmem:[#allocation45_spill] sm:$0xff] }
 0x64a   : > { %v4857_v21 = vsub.f32 %v10332_v55, %v4793_v14  ;;  %v4794_v24 = vmul.f32 0.015625, %v4696_v53  ;;  %v10811_v55 = vsel %vm3598_vm0, %v4860_v8, 0.0  ;;  %v11604_v8 = vld [vmem:[#allocation44_spill] sm:$0xff] }
 0x64b   : > { %5075 = vadd.xlane.f32.xlu1 %v4984_v34  ;;  %11603 = vst [vmem:[#allocation30_spill] sm:$0xff] %v10811_v55  ;;  %v4988_v54 = vmul.f32 %v10811_v55, %v10811_v55 }
 0x64c   : > { %v10794_v42 = vsel %vm3598_vm0, %v4857_v21, 0.0  ;;  %v4858_v2 = vsub.f32 %v11600_v39, %v4794_v24 }
 0x64d   : > { %v4985_v38 = vmul.f32 %v10794_v42, %v10794_v42 }
 0x64e   : > { %v10801_v45 = vsel %vm3598_vm0, %v4858_v2, 0.0 }
 0x64f   : > { %11601 = vst [vmem:[#allocation28_spill] sm:$0xff] %v10801_v45  ;;  %5077 = vadd.xlane.f32.xlu0 %v4985_v38  ;;  %v4986_v22 = vmul.f32 %v10801_v45, %v10801_v45 }
 0x651   : > { %5079 = vadd.xlane.f32.xlu1 %v4986_v22  ;;  %v11605_v22 = vld [vmem:[#allocation36_spill] sm:$0xff] }
 0x653   : > { %5081 = vadd.xlane.f32.xlu0 %v4987_v33  ;;  %v4706_v16 = vpop.xlane.xlu0 %4705 }
 0x654   : > { %v4799_v53 = vmul.f32 0.015625, %v4706_v16 }
 0x655   : > { %5083 = vadd.xlane.f32.xlu1 %v4988_v54  ;;  %v4708_v14 = vpop.xlane.xlu1 %4707 }
 0x656   : > { %v4800_v47 = vmul.f32 0.015625, %v4708_v14  ;;  %v4863_v39 = vsub.f32 %v10349_v50, %v4799_v53 }
 0x657   : > { %v4702_v34 = vpop.xlane.xlu0 %4701 }
 0x658   : > { %v4797_v21 = vmul.f32 0.015625, %v4702_v34  ;;  %v4864_v45 = vsub.f32 %v11605_v22, %v4800_v47  ;;  %v10829_v54 = vsel %vm3598_vm0, %v4863_v39, 0.0 }
 0x659   : > { %v4704_v24 = vpop.xlane.xlu1 %4703 }
 0x65a   : > { %v4861_v2 = vsub.f32 %v11604_v8, %v4797_v21  ;;  %v4798_v38 = vmul.f32 0.015625, %v4704_v24  ;;  %v10839_v53 = vsel %vm3598_vm0, %v4864_v45, 0.0 }
 0x65b   : > { %11607 = vst [vmem:[#allocation31_spill] sm:$0xff] %v10839_v53  ;;  %v4992_v47 = vmul.f32 %v10839_v53, %v10839_v53 }
 0x65c   : > { %v10822_v33 = vsel %vm3598_vm0, %v4861_v2, 0.0  ;;  %v4862_v55 = vsub.f32 %v11606_v62, %v4798_v38  ;;  %v4991_v62 = vmul.f32 %v10829_v54, %v10829_v54 }
 0x65d   : > { %v4989_v16 = vmul.f32 %v10822_v33, %v10822_v33 }
 0x65e   : > { %v10833_v50 = vsel %vm3598_vm0, %v4862_v55, 0.0 }
 0x65f   : > { %5085 = vadd.xlane.f32.xlu0 %v4989_v16  ;;  %v4990_v14 = vmul.f32 %v10833_v50, %v10833_v50 }
 0x661   : > { %5087 = vadd.xlane.f32.xlu1 %v4990_v14 }
 0x663   : > { %5089 = vadd.xlane.f32.xlu0 %v4991_v62  ;;  %v4714_v34 = vpop.xlane.xlu0 %4713 }
 0x664   : > { %v4803_v21 = vmul.f32 0.015625, %v4714_v34 }
 0x665   : > { %5091 = vadd.xlane.f32.xlu1 %v4992_v47  ;;  %v4716_v55 = vpop.xlane.xlu1 %4715 }
 0x666   : > { %v4804_v39 = vmul.f32 0.015625, %v4716_v55  ;;  %v4867_v38 = vsub.f32 %v10389_v40, %v4803_v21 }
 0x667   : > { %v4710_v24 = vpop.xlane.xlu0 %4709 }
 0x668   : > { %v4801_v8 = vmul.f32 0.015625, %v4710_v24  ;;  %v4868_v14 = vsub.f32 %v10395_v56, %v4804_v39  ;;  %v10857_v40 = vsel %vm3598_vm0, %v4867_v38, 0.0 }
 0x669   : > { %v4712_v2 = vpop.xlane.xlu1 %4711  ;;  %11608 = vst [vmem:[#allocation32_spill] sm:$0xff] %v10857_v40  ;;  %v4995_v38 = vmul.f32 %v10857_v40, %v10857_v40 }
 0x66a   : > { %v4865_v45 = vsub.f32 %v10402_v30, %v4801_v8  ;;  %v4802_v22 = vmul.f32 0.015625, %v4712_v2  ;;  %v10867_v39 = vsel %vm3598_vm0, %v4868_v14, 0.0 }
 0x66b   : > { %v5026_v16 = vpop.xlane.xlu0 %5025 }
 0x66c   : > { %v10850_v62 = vsel %vm3598_vm0, %v4865_v45, 0.0  ;;  %v4866_v47 = vsub.f32 %v10408_v44, %v4802_v22  ;;  %v5151_v53 = vmul.f32 0.015625, %v5026_v16 }
 0x66d   : > { %v5028_v34 = vpop.xlane.xlu1 %5027  ;;  %v4993_v55 = vmul.f32 %v10850_v62, %v10850_v62 }
 0x66e   : > { %v10861_v30 = vsel %vm3598_vm0, %v4866_v47, 0.0  ;;  %v5215_v56 = vadd.f32 1e-05, %v5151_v53  ;;  %v5152_v21 = vmul.f32 0.015625, %v5028_v34  ;;  %v4996_v47 = vmul.f32 %v10867_v39, %v10867_v39 }
 0x66f   : > { %11609 = vst [vmem:[#allocation33_spill] sm:$0xff] %v10861_v30  ;;  %5093 = vadd.xlane.f32.xlu0 %v4993_v55  ;;  %v4994_v44 = vmul.f32 %v10861_v30, %v10861_v30 }
 0x670   : > { %v5022_v24 = vpop.xlane.xlu0 %5021  ;;  %8155 = vrsqrt.f32 %v5215_v56  ;;  %v5216_v8 = vadd.f32 1e-05, %v5152_v21 }
 0x671   : > { %v5149_v2 = vmul.f32 0.015625, %v5022_v24  ;;  %5095 = vadd.xlane.f32.xlu1 %v4994_v44 }
 0x672   : > { %8157 = vrsqrt.f32 %v5216_v8  ;;  %v5024_v53 = vpop.xlane.xlu1 %5023 }
 0x673   : > { %v5213_v45 = vadd.f32 1e-05, %v5149_v2  ;;  %v5150_v22 = vmul.f32 0.015625, %v5024_v53  ;;  %5097 = vadd.xlane.f32.xlu0 %v4995_v38 }
 0x674   : > { %v4722_v16 = vpop.xlane.xlu0 %4721 }
 0x675   : > { %8159 = vrsqrt.f32 %v5213_v45  ;;  %v4807_v34 = vmul.f32 0.015625, %v4722_v16  ;;  %v5214_v14 = vadd.f32 1e-05, %v5150_v22  ;;  %5099 = vadd.xlane.f32.xlu1 %v4996_v47 }
 0x676   : > { %v4724_v55 = vpop.xlane.xlu1 %4723 }
 0x677   : > { %8161 = vrsqrt.f32 %v5214_v14  ;;  %v4871_v21 = vsub.f32 %v10447_v20, %v4807_v34  ;;  %v4808_v24 = vmul.f32 0.015625, %v4724_v55 }
 0x678   : > { %v4718_v56 = vpop.xlane.xlu0 %4717 }
 0x679   : > { %v4805_v44 = vmul.f32 0.015625, %v4718_v56  ;;  %v10877_v45 = vsel %vm3598_vm0, %v4871_v21, 0.0  ;;  %v4872_v22 = vsub.f32 %v10453_v3, %v4808_v24  ;;  %v10892_v56 = vld [vmem:[%s11611_s24] ss:$0 sm:$0xff] }
 0x67a   : > { %v8156_v8 = vpop.eup %8155  ;;  %v4720_v53 = vpop.xlane.xlu1 %4719  ;;  %11610 = vst [vmem:[#allocation34_spill] sm:$0xff] %v10877_v45 }
 0x67b   : > { %v4869_v2 = vsub.f32 %v10459_v15, %v4805_v44  ;;  %v4806_v38 = vmul.f32 0.015625, %v4720_v53  ;;  %v5343_v47 = vmul.f32 %v8156_v8, %v10413_v9  ;;  %v4999_v44 = vmul.f32 %v10877_v45, %v10877_v45 }
 0x67c   : > { %v5034_v40 = vpop.xlane.xlu0 %5033  ;;  %v8158_v30 = vpop.eup %8157  ;;  %v10907_v53 = vsel %vm3598_vm0, %v4872_v22, 0.0 }
 0x67d   : > { %v10882_v16 = vsel %vm3598_vm0, %v4869_v2, 0.0  ;;  %v5155_v20 = vmul.f32 0.015625, %v5034_v40  ;;  %v5344_v34 = vmul.f32 %v8158_v30, %v10423_v28  ;;  %v4870_v15 = vsub.f32 %v10466_v63, %v4806_v38  ;;  %11613 = vst [vmem:[#allocation44_spill] sm:$0xff] %v10907_v53 }
 0x67e   : > { %v4997_v14 = vmul.f32 %v10882_v16, %v10882_v16  ;;  %v5413_v2 = vmul.f32 %v10892_v56, %v5343_v47 }
 0x67f   : > { %v8160_v55 = vpop.eup %8159  ;;  %v5219_v3 = vadd.f32 1e-05, %v5155_v20  ;;  %v5414_v21 = vmul.f32 %v10892_v56, %v5344_v34  ;;  %v10897_v40 = vsel %vm3598_vm0, %v4870_v15, 0.0  ;;  %v10913_v34 = vld [vmem:[%s11614_s28] ss:$0 sm:$0xff] }
 0x680   : > { %11612 = vst [vmem:[#allocation35_spill] sm:$0xff] %v10897_v40  ;;  %5101 = vadd.xlane.f32.xlu0 %v4997_v14  ;;  %v5030_v9 = vpop.xlane.xlu0 %5029  ;;  %v5341_v28 = vmul.f32 %v8160_v55, %v10431_v57  ;;  %v4998_v24 = vmul.f32 %v10897_v40, %v10897_v40 }
 0x681   : > { %v5153_v63 = vmul.f32 0.015625, %v5030_v9  ;;  %v5036_v30 = vpop.xlane.xlu1 %5035  ;;  %v8162_v8 = vpop.eup %8161  ;;  %8163 = vrsqrt.f32 %v5219_v3  ;;  %v5484_v55 = vadd.f32 %v10913_v34, %v5414_v21  ;;  %v5000_v9 = vmul.f32 %v10907_v53, %v10907_v53 }
 0x682   : > { %v5156_v38 = vmul.f32 0.015625, %v5036_v30  ;;  %v5411_v20 = vmul.f32 %v10892_v56, %v5341_v28  ;;  %5103 = vadd.xlane.f32.xlu1 %v4998_v24  ;;  %v5342_v15 = vmul.f32 %v8162_v8, %v10440_v17  ;;  %v5483_v30 = vadd.f32 %v10913_v34, %v5413_v2 }
 0x683   : > { %v5217_v57 = vadd.f32 1e-05, %v5153_v63  ;;  %v5548_v21 = vmax.f32 %v5484_v55, 0.0 }
 0x684   : > { %v5220_v14 = vadd.f32 1e-05, %v5156_v38  ;;  %5105 = vadd.xlane.f32.xlu0 %v4999_v44  ;;  %v4730_v47 = vpop.xlane.xlu0 %4729  ;;  %v5412_v3 = vmul.f32 %v10892_v56, %v5342_v15  ;;  %v5481_v28 = vadd.f32 %v10913_v34, %v5411_v20  ;;  %v5547_v53 = vmax.f32 %v5483_v30, 0.0 }
 0x685   : > { %8165 = vrsqrt.f32 %v5217_v57  ;;  %v5032_v22 = vpop.xlane.xlu1 %5031  ;;  %v4811_v24 = vmul.f32 0.015625, %v4730_v47 }
 0x686   : > { %8167 = vrsqrt.f32 %v5220_v14  ;;  %v5154_v63 = vmul.f32 0.015625, %v5032_v22  ;;  %5107 = vadd.xlane.f32.xlu1 %v5000_v9  ;;  %v5482_v17 = vadd.f32 %v10913_v34, %v5412_v3  ;;  %v5545_v45 = vmax.f32 %v5481_v28, 0.0 }
 0x687   : > { %v4875_v15 = vsub.f32 %v10498_v49, %v4811_v24  ;;  %v5610_v47 = vpack.c.bf16 %v5548_v21, %v5547_v53 }
 0x688   : > { %v5218_v44 = vadd.f32 1e-05, %v5154_v63  ;;  %v4726_v8 = vpop.xlane.xlu0 %4725  ;;  %v5546_v40 = vmax.f32 %v5482_v17, 0.0 }
 0x689   : > { %v4809_v38 = vmul.f32 0.015625, %v4726_v8  ;;  %v4732_v57 = vpop.xlane.xlu1 %4731  ;;  %v11615_v8 = vld [vmem:[#allocation37_spill] sm:$0xff] }
 0x68a   : > { %8169 = vrsqrt.f32 %v5218_v44  ;;  %v5609_v14 = vpack.c.bf16 %v5546_v40, %v5545_v45  ;;  %v4812_v22 = vmul.f32 0.015625, %v4732_v57 }
 0x68b   : > { %v4873_v20 = vsub.f32 %v10512_v41, %v4809_v38  ;;  %v8164_v9 = vpop.eup %8163  ;;  %v10933_v41 = vsel %vm3598_vm0, %v4875_v15, 0.0 }
 0x68c   : > { %v5042_v2 = vpop.xlane.xlu0 %5041  ;;  %7426 = vmatprep.mubr.bf16.mxu1 %v5609_v14  ;;  %v4876_v53 = vsub.f32 %v10515_v32, %v4812_v22  ;;  %v5347_v21 = vmul.f32 %v8164_v9, %v11615_v8  ;;  %v5003_v32 = vmul.f32 %v10933_v41, %v10933_v41 }
 0x68d   : > { %v10927_v3 = vsel %vm3598_vm0, %v4873_v20, 0.0  ;;  %v5159_v55 = vmul.f32 0.015625, %v5042_v2  ;;  %v4728_v63 = vpop.xlane.xlu1 %4727  ;;  %7427 = vmatmul.mubr.bf16.vlgmr.msra.gmra.mrb[192].mxu1 %v5610_v47  ;;  %v11616_v20 = vld [vmem:[#allocation38_spill] sm:$0xff] }
 0x68e   : > { %v4810_v28 = vmul.f32 0.015625, %v4728_v63  ;;  %v5001_v30 = vmul.f32 %v10927_v3, %v10927_v3 }
 0x68f   : > { %v8166_v49 = vpop.eup %8165  ;;  %v5223_v45 = vadd.f32 1e-05, %v5159_v55  ;;  %v10952_v55 = vsel %vm3598_vm0, %v4876_v53, 0.0 }
 0x690   : > { %v8168_v40 = vpop.eup %8167  ;;  %v4874_v24 = vsub.f32 %v10531_v29, %v4810_v28  ;;  %5109 = vadd.xlane.f32.xlu0 %v5001_v30  ;;  %v5038_v17 = vpop.xlane.xlu0 %5037  ;;  %v5345_v44 = vmul.f32 %v8166_v49, %v10483_v31  ;;  %v5417_v30 = vmul.f32 %v10892_v56, %v5347_v21  ;;  %v5004_v53 = vmul.f32 %v10952_v55, %v10952_v55 }
 0x691   : > { %v5157_v38 = vmul.f32 0.015625, %v5038_v17  ;;  %v5044_v57 = vpop.xlane.xlu1 %5043  ;;  %v5348_v14 = vmul.f32 %v8168_v40, %v11616_v20  ;;  %8171 = vrsqrt.f32 %v5223_v45 }
 0x692   : > { %v10942_v15 = vsel %vm3598_vm0, %v4874_v24, 0.0  ;;  %v5160_v2 = vmul.f32 0.015625, %v5044_v57  ;;  %v5415_v29 = vmul.f32 %v10892_v56, %v5345_v44  ;;  %v5487_v21 = vadd.f32 %v10913_v34, %v5417_v30 }
 0x693   : > { %v5221_v22 = vadd.f32 1e-05, %v5157_v38  ;;  %v5002_v31 = vmul.f32 %v10942_v15, %v10942_v15  ;;  %v5418_v47 = vmul.f32 %v10892_v56, %v5348_v14 }
 0x694   : > { %v8170_v9 = vpop.eup %8169  ;;  %v5224_v63 = vadd.f32 1e-05, %v5160_v2  ;;  %5113 = vadd.xlane.f32.xlu0 %v5003_v32  ;;  %v4738_v28 = vpop.xlane.xlu0 %4737  ;;  %v5485_v24 = vadd.f32 %v10913_v34, %v5415_v29 }
 0x695   : > { %8173 = vrsqrt.f32 %v5221_v22  ;;  %5111 = vadd.xlane.f32.xlu1 %v5002_v31  ;;  %v5040_v49 = vpop.xlane.xlu1 %5039  ;;  %v5346_v45 = vmul.f32 %v8170_v9, %v10502_v61  ;;  %v5488_v17 = vadd.f32 %v10913_v34, %v5418_v47  ;;  %v4815_v44 = vmul.f32 0.015625, %v4738_v28 }
 0x696   : > { %8175 = vrsqrt.f32 %v5224_v63  ;;  %v5158_v40 = vmul.f32 0.015625, %v5040_v49  ;;  %v5549_v2 = vmax.f32 %v5485_v24, 0.0  ;;  %v5551_v63 = vmax.f32 %v5487_v21, 0.0 }
 0x697   : > { %v5416_v8 = vmul.f32 %v10892_v56, %v5346_v45  ;;  %v5552_v32 = vmax.f32 %v5488_v17, 0.0  ;;  %v4879_v29 = vsub.f32 %v10556_v1, %v4815_v44 }
 0x698   : > { %v5222_v38 = vadd.f32 1e-05, %v5158_v40  ;;  %v4734_v57 = vpop.xlane.xlu0 %4733 }
 0x699   : > { %v4813_v20 = vmul.f32 0.015625, %v4734_v57  ;;  %5115 = vadd.xlane.f32.xlu1 %v5004_v53  ;;  %v4740_v14 = vpop.xlane.xlu1 %4739  ;;  %v5486_v61 = vadd.f32 %v10913_v34, %v5416_v8  ;;  %v5612_v8 = vpack.c.bf16 %v5552_v32, %v5551_v63  ;;  %v11617_v32 = vld [vmem:[#allocation39_spill] sm:$0xff] }
 0x69a   : > { %8177 = vrsqrt.f32 %v5222_v38  ;;  %v4816_v31 = vmul.f32 0.015625, %v4740_v14 }
 0x69b   : > { %v4877_v22 = vsub.f32 %v10570_v13, %v4813_v20  ;;  %v5550_v47 = vmax.f32 %v5486_v61, 0.0  ;;  %v8172_v28 = vpop.eup %8171  ;;  %v10973_v13 = vsel %vm3598_vm0, %v4879_v29, 0.0 }
 0x69c   : > { %v5050_v9 = vpop.xlane.xlu0 %5049  ;;  %v4880_v17 = vsub.f32 %v10573_v5, %v4816_v31  ;;  %v5351_v14 = vmul.f32 %v8172_v28, %v10524_v58  ;;  %v5007_v31 = vmul.f32 %v10973_v13, %v10973_v13 }
 0x69d   : > { %v10967_v30 = vsel %vm3598_vm0, %v4877_v22, 0.0  ;;  %v5163_v49 = vmul.f32 0.015625, %v5050_v9  ;;  %v4736_v45 = vpop.xlane.xlu1 %4735  ;;  %v5611_v40 = vpack.c.bf16 %v5550_v47, %v5549_v2 }
 0x69e   : > { %v4814_v53 = vmul.f32 0.015625, %v4736_v45  ;;  %v5005_v24 = vmul.f32 %v10967_v30, %v10967_v30  ;;  %v10992_v63 = vsel %vm3598_vm0, %v4880_v17, 0.0  ;;  %v5421_v45 = vmul.f32 %v10892_v56, %v5351_v14 }
 0x69f   : > { %v8174_v1 = vpop.eup %8173  ;;  %v5227_v44 = vadd.f32 1e-05, %v5163_v49  ;;  %7430 = vmatprep.mubr.bf16.mxu1 %v5611_v40  ;;  %v5008_v17 = vmul.f32 %v10992_v63, %v10992_v63 }
 0x6a0   : > { %v8176_v38 = vpop.eup %8175  ;;  %v4878_v57 = vsub.f32 %v10589_v26, %v4814_v53  ;;  %7431 = vmatmul.mubr.bf16.gmra.mrb[196].mxu1 %v5612_v8  ;;  %5117 = vadd.xlane.f32.xlu0 %v5005_v24  ;;  %v5046_v21 = vpop.xlane.xlu0 %5045  ;;  %v5349_v20 = vmul.f32 %v8174_v1, %v10540_v27 }
 0x6a1   : > { %v5161_v61 = vmul.f32 0.015625, %v5046_v21  ;;  %v5052_v2 = vpop.xlane.xlu1 %5051  ;;  %v5352_v22 = vmul.f32 %v8176_v38, %v11617_v32  ;;  %8179 = vrsqrt.f32 %v5227_v44 }
 0x6a2   : > { %v10982_v29 = vsel %vm3598_vm0, %v4878_v57, 0.0  ;;  %v5164_v5 = vmul.f32 0.015625, %v5052_v2  ;;  %v5419_v26 = vmul.f32 %v10892_v56, %v5349_v20  ;;  %v5491_v20 = vadd.f32 %v10913_v34, %v5421_v45 }
 0x6a3   : > { %v5225_v47 = vadd.f32 1e-05, %v5161_v61  ;;  %v5006_v27 = vmul.f32 %v10982_v29, %v10982_v29  ;;  %v5422_v58 = vmul.f32 %v10892_v56, %v5352_v22 }
 0x6a4   : > { %v8178_v9 = vpop.eup %8177  ;;  %v5228_v28 = vadd.f32 1e-05, %v5164_v5  ;;  %5121 = vadd.xlane.f32.xlu0 %v5007_v31  ;;  %v4746_v49 = vpop.xlane.xlu0 %4745  ;;  %v5489_v24 = vadd.f32 %v10913_v34, %v5419_v26 }
 0x6a5   : > { %8181 = vrsqrt.f32 %v5225_v47  ;;  %5119 = vadd.xlane.f32.xlu1 %v5006_v27  ;;  %v5048_v40 = vpop.xlane.xlu1 %5047  ;;  %v5350_v53 = vmul.f32 %v8178_v9, %v10560_v7  ;;  %v5492_v1 = vadd.f32 %v10913_v34, %v5422_v58  ;;  %v4819_v44 = vmul.f32 0.015625, %v4746_v49 }
 0x6a6   : > { %8183 = vrsqrt.f32 %v5228_v28  ;;  %v5162_v8 = vmul.f32 0.015625, %v5048_v40  ;;  %v5553_v2 = vmax.f32 %v5489_v24, 0.0  ;;  %v5555_v27 = vmax.f32 %v5491_v20, 0.0  ;;  %v11619_v20 = vld [vmem:[#allocation40_spill] sm:$0xff] }
 0x6a7   : > { %v5420_v38 = vmul.f32 %v10892_v56, %v5350_v53  ;;  %v5556_v32 = vmax.f32 %v5492_v1, 0.0  ;;  %v4883_v22 = vsub.f32 %v10614_v51, %v4819_v44 }
 0x6a8   : > { %v5226_v57 = vadd.f32 1e-05, %v5162_v8  ;;  %v4742_v21 = vpop.xlane.xlu0 %4741 }
 0x6a9   : > { %v4817_v14 = vmul.f32 0.015625, %v4742_v21  ;;  %5123 = vadd.xlane.f32.xlu1 %v5008_v17  ;;  %v4748_v61 = vpop.xlane.xlu1 %4747  ;;  %v5490_v7 = vadd.f32 %v10913_v34, %v5420_v38  ;;  %v5614_v53 = vpack.c.bf16 %v5556_v32, %v5555_v27 }
 0x6aa   : > { %8185 = vrsqrt.f32 %v5226_v57  ;;  %v4820_v31 = vmul.f32 0.015625, %v4748_v61  ;;  %v11618_v57 = vld [vmem:[#allocation41_spill] sm:$0xff] }
 0x6ab   : > { %v4881_v5 = vsub.f32 %v10628_v60, %v4817_v14  ;;  %v5554_v26 = vmax.f32 %v5490_v7, 0.0  ;;  %v8180_v58 = vpop.eup %8179  ;;  %v11013_v60 = vsel %vm3598_vm0, %v4883_v22, 0.0 }
 0x6ac   : > { %v5058_v47 = vpop.xlane.xlu0 %5057  ;;  %v4884_v24 = vsub.f32 %v10631_v37, %v4820_v31  ;;  %v5355_v14 = vmul.f32 %v8180_v58, %v11619_v20 }
 0x6ad   : > { %v11007_v9 = vsel %vm3598_vm0, %v4881_v5, 0.0  ;;  %v5167_v28 = vmul.f32 0.015625, %v5058_v47  ;;  %v4744_v49 = vpop.xlane.xlu1 %4743  ;;  %v5613_v45 = vpack.c.bf16 %v5554_v26, %v5553_v2  ;;  %v11620_v2 = vld [vmem:[#allocation42_spill] sm:$0xff]  ;;  %v5011_v5 = vmul.f32 %v11013_v60, %v11013_v60 }
 0x6ae   : > { %v4818_v40 = vmul.f32 0.015625, %v4744_v49  ;;  %v5009_v8 = vmul.f32 %v11007_v9, %v11007_v9  ;;  %v11032_v58 = vsel %vm3598_vm0, %v4884_v24, 0.0 }
 0x6af   : > { %v8182_v51 = vpop.eup %8181  ;;  %v5231_v1 = vadd.f32 1e-05, %v5167_v28  ;;  %7434 = vmatprep.mubr.bf16.mxu1 %v5613_v45  ;;  %v5425_v45 = vmul.f32 %v10892_v56, %v5355_v14  ;;  %v5012_v24 = vmul.f32 %v11032_v58, %v11032_v58 }
 0x6b0   : > { %v8184_v44 = vpop.eup %8183  ;;  %v4882_v17 = vsub.f32 %v10647_v10, %v4818_v40  ;;  %7435 = vmatmul.mubr.bf16.gmra.mrb[200].mxu1 %v5614_v53  ;;  %5125 = vadd.xlane.f32.xlu0 %v5009_v8  ;;  %v5054_v38 = vpop.xlane.xlu0 %5053  ;;  %v5353_v21 = vmul.f32 %v8182_v51, %v11618_v57  ;;  %v11621_v53 = vld [vmem:[#allocation23_spill] sm:$0xff] }
 0x6b1   : > { %v5165_v61 = vmul.f32 0.015625, %v5054_v38  ;;  %v5060_v7 = vpop.xlane.xlu1 %5059  ;;  %v5356_v32 = vmul.f32 %v8184_v44, %v11620_v2  ;;  %8187 = vrsqrt.f32 %v5231_v1  ;;  %v5495_v20 = vadd.f32 %v10913_v34, %v5425_v45 }
 0x6b2   : > { %v11022_v22 = vsel %vm3598_vm0, %v4882_v17, 0.0  ;;  %v5168_v37 = vmul.f32 0.015625, %v5060_v7  ;;  %v5423_v10 = vmul.f32 %v10892_v56, %v5353_v21 }
 0x6b3   : > { %v5229_v31 = vadd.f32 1e-05, %v5165_v61  ;;  %v5010_v26 = vmul.f32 %v11022_v22, %v11022_v22  ;;  %v5426_v47 = vmul.f32 %v10892_v56, %v5356_v32 }
 0x6b4   : > { %v8186_v27 = vpop.eup %8185  ;;  %v5232_v28 = vadd.f32 1e-05, %v5168_v37  ;;  %5129 = vadd.xlane.f32.xlu0 %v5011_v5  ;;  %v4754_v49 = vpop.xlane.xlu0 %4753  ;;  %v5493_v1 = vadd.f32 %v10913_v34, %v5423_v10 }
 0x6b5   : > { %8189 = vrsqrt.f32 %v5229_v31  ;;  %5127 = vadd.xlane.f32.xlu1 %v5010_v26  ;;  %v5056_v40 = vpop.xlane.xlu1 %5055  ;;  %v5354_v8 = vmul.f32 %v8186_v27, %v11621_v53  ;;  %v5496_v44 = vadd.f32 %v10913_v34, %v5426_v47  ;;  %v4823_v17 = vmul.f32 0.015625, %v4754_v49 }
 0x6b6   : > { %8191 = vrsqrt.f32 %v5232_v28  ;;  %v5166_v51 = vmul.f32 0.015625, %v5056_v40  ;;  %v5557_v2 = vmax.f32 %v5493_v1, 0.0  ;;  %v5559_v47 = vmax.f32 %v5495_v20, 0.0  ;;  %v11623_v20 = vld [vmem:[#allocation24_spill] sm:$0xff] }
 0x6b7   : > { %v5424_v38 = vmul.f32 %v10892_v56, %v5354_v8  ;;  %v5560_v32 = vmax.f32 %v5496_v44, 0.0  ;;  %v4887_v37 = vsub.f32 %v10672_v46, %v4823_v17 }
 0x6b8   : > { %v5230_v57 = vadd.f32 1e-05, %v5166_v51  ;;  %v4750_v21 = vpop.xlane.xlu0 %4749 }
 0x6b9   : > { %v4821_v14 = vmul.f32 0.015625, %v4750_v21  ;;  %5131 = vadd.xlane.f32.xlu1 %v5012_v24  ;;  %v4756_v61 = vpop.xlane.xlu1 %4755  ;;  %v5494_v7 = vadd.f32 %v10913_v34, %v5424_v38  ;;  %v5616_v8 = vpack.c.bf16 %v5560_v32, %v5559_v47 }
 0x6ba   : > { %8193 = vrsqrt.f32 %v5230_v57  ;;  %v4824_v10 = vmul.f32 0.015625, %v4756_v61  ;;  %v11622_v57 = vld [vmem:[#allocation25_spill] sm:$0xff] }
 0x6bb   : > { %v4885_v5 = vsub.f32 %v10686_v18, %v4821_v14  ;;  %v5558_v31 = vmax.f32 %v5494_v7, 0.0  ;;  %v8188_v27 = vpop.eup %8187  ;;  %v11053_v18 = vsel %vm3598_vm0, %v4887_v37, 0.0 }
 0x6bc   : > { %v5066_v26 = vpop.xlane.xlu0 %5065  ;;  %v4888_v1 = vsub.f32 %v10689_v59, %v4824_v10  ;;  %v5359_v14 = vmul.f32 %v8188_v27, %v11623_v20 }
 0x6bd   : > { %v11047_v28 = vsel %vm3598_vm0, %v4885_v5, 0.0  ;;  %v5171_v49 = vmul.f32 0.015625, %v5066_v26  ;;  %v4752_v45 = vpop.xlane.xlu1 %4751  ;;  %v5615_v40 = vpack.c.bf16 %v5558_v31, %v5557_v2  ;;  %v11624_v2 = vld [vmem:[#allocation43_spill] sm:$0xff]  ;;  %v5015_v5 = vmul.f32 %v11053_v18, %v11053_v18 }
 0x6be   : > { %v4822_v53 = vmul.f32 0.015625, %v4752_v45  ;;  %v5013_v51 = vmul.f32 %v11047_v28, %v11047_v28  ;;  %v11072_v27 = vsel %vm3598_vm0, %v4888_v1, 0.0 }
 0x6bf   : > { %v8190_v46 = vpop.eup %8189  ;;  %v5235_v44 = vadd.f32 1e-05, %v5171_v49  ;;  %7438 = vmatprep.mubr.bf16.mxu1 %v5615_v40  ;;  %v5429_v40 = vmul.f32 %v10892_v56, %v5359_v14  ;;  %v5016_v1 = vmul.f32 %v11072_v27, %v11072_v27 }
 0x6c0   : > { %v8192_v17 = vpop.eup %8191  ;;  %v4886_v24 = vsub.f32 %v10705_v48, %v4822_v53  ;;  %7439 = vmatmul.mubr.bf16.gmra.mrb[204].mxu1 %v5616_v8  ;;  %5133 = vadd.xlane.f32.xlu0 %v5013_v51  ;;  %v5062_v38 = vpop.xlane.xlu0 %5061  ;;  %v5357_v21 = vmul.f32 %v8190_v46, %v11622_v57 }
 0x6c1   : > { %v5169_v61 = vmul.f32 0.015625, %v5062_v38  ;;  %v5068_v7 = vpop.xlane.xlu1 %5067  ;;  %v5360_v32 = vmul.f32 %v8192_v17, %v11624_v2  ;;  %8195 = vrsqrt.f32 %v5235_v44 }
 0x6c2   : > { %v11062_v37 = vsel %vm3598_vm0, %v4886_v24, 0.0  ;;  %v5172_v59 = vmul.f32 0.015625, %v5068_v7  ;;  %v5427_v48 = vmul.f32 %v10892_v56, %v5357_v21  ;;  %v5499_v21 = vadd.f32 %v10913_v34, %v5429_v40 }
 0x6c3   : > { %v5233_v10 = vadd.f32 1e-05, %v5169_v61  ;;  %v5014_v31 = vmul.f32 %v11062_v37, %v11062_v37  ;;  %v5430_v26 = vmul.f32 %v10892_v56, %v5360_v32 }
 0x6c4   : > { %v8194_v47 = vpop.eup %8193  ;;  %v5236_v49 = vadd.f32 1e-05, %v5172_v59  ;;  %5137 = vadd.xlane.f32.xlu0 %v5015_v5  ;;  %v4762_v45 = vpop.xlane.xlu0 %4761  ;;  %v5497_v46 = vadd.f32 %v10913_v34, %v5427_v48  ;;  %v5563_v48 = vmax.f32 %v5499_v21, 0.0 }
 0x6c5   : > { %8197 = vrsqrt.f32 %v5233_v10  ;;  %5135 = vadd.xlane.f32.xlu1 %v5014_v31  ;;  %v5064_v53 = vpop.xlane.xlu1 %5063  ;;  %v5358_v8 = vmul.f32 %v8194_v47, %v10676_v4  ;;  %v5500_v44 = vadd.f32 %v10913_v34, %v5430_v26  ;;  %v4827_v17 = vmul.f32 0.015625, %v4762_v45 }
 0x6c6   : > { %8199 = vrsqrt.f32 %v5236_v49  ;;  %v5170_v51 = vmul.f32 0.015625, %v5064_v53  ;;  %v5561_v61 = vmax.f32 %v5497_v46, 0.0 }
 0x6c7   : > { %v5428_v24 = vmul.f32 %v10892_v56, %v5358_v8  ;;  %v5564_v7 = vmax.f32 %v5500_v44, 0.0  ;;  %v4891_v2 = vsub.f32 %v10730_v36, %v4827_v17 }
 0x6c8   : > { %v5234_v38 = vadd.f32 1e-05, %v5170_v51  ;;  %v4758_v57 = vpop.xlane.xlu0 %4757 }
 0x6c9   : > { %v4825_v20 = vmul.f32 0.015625, %v4758_v57  ;;  %5139 = vadd.xlane.f32.xlu1 %v5016_v1  ;;  %v4764_v14 = vpop.xlane.xlu1 %4763  ;;  %v5498_v4 = vadd.f32 %v10913_v34, %v5428_v24  ;;  %v5618_v45 = vpack.c.bf16 %v5564_v7, %v5563_v48  ;;  %v11093_v36 = vsel %vm3598_vm0, %v4891_v2, 0.0  ;;  %v11625_v1 = vld [vmem:[#allocation26_spill] sm:$0xff]  ;;  %v11626_v2 = vld [vmem:[#allocation27_spill] sm:$0xff] }
 0x6ca   : > { %8201 = vrsqrt.f32 %v5234_v38  ;;  %v4828_v59 = vmul.f32 0.015625, %v4764_v14 }
 0x6cb   : > { %v4889_v32 = vsub.f32 %v10744_v52, %v4825_v20  ;;  %v5562_v5 = vmax.f32 %v5498_v4, 0.0  ;;  %v8196_v10 = vpop.eup %8195 }
 0x6cc   : > { %v4892_v52 = vsub.f32 %v10746_v43, %v4828_v59  ;;  %v5363_v44 = vmul.f32 %v8196_v10, %v10698_v0  ;;  %v5019_v43 = vmul.f32 %v11093_v36, %v11093_v36 }
 0x6cd   : > { %v11087_v31 = vsel %vm3598_vm0, %v4889_v32, 0.0  ;;  %v4760_v26 = vpop.xlane.xlu1 %4759  ;;  %v5617_v47 = vpack.c.bf16 %v5562_v5, %v5561_v61 }
 0x6ce   : > { %v4826_v49 = vmul.f32 0.015625, %v4760_v26  ;;  %v5017_v40 = vmul.f32 %v11087_v31, %v11087_v31  ;;  %v11112_v0 = vsel %vm3598_vm0, %v4892_v52, 0.0  ;;  %v5433_v4 = vmul.f32 %v10892_v56, %v5363_v44 }
 0x6cf   : > { %v8198_v53 = vpop.eup %8197  ;;  %7442 = vmatprep.mubr.bf16.mxu1 %v5617_v47  ;;  %v5020_v10 = vmul.f32 %v11112_v0, %v11112_v0 }
 0x6d0   : > { %v8200_v8 = vpop.eup %8199  ;;  %v4890_v51 = vsub.f32 %v10755_v19, %v4826_v49  ;;  %7443 = vmatmul.mubr.bf16.gmra.mrb[208].mxu1 %v5618_v45  ;;  %5141 = vadd.xlane.f32.xlu0 %v5017_v40  ;;  %v5361_v46 = vmul.f32 %v8198_v53, %v10714_v35  ;;  %v5070_v17 = vpop.xlane.xlu0 %5069  ;;  %v5503_v45 = vadd.f32 %v10913_v34, %v5433_v4 }
 0x6d1   : > { %v5364_v24 = vmul.f32 %v8200_v8, %v11625_v1  ;;  %v5173_v57 = vmul.f32 0.015625, %v5070_v17 }
 0x6d2   : > { %v11102_v38 = vsel %vm3598_vm0, %v4890_v51, 0.0  ;;  %v5431_v21 = vmul.f32 %v10892_v56, %v5361_v46  ;;  %v5567_v17 = vmax.f32 %v5503_v45, 0.0 }
 0x6d3   : > { %v5018_v19 = vmul.f32 %v11102_v38, %v11102_v38  ;;  %v5434_v35 = vmul.f32 %v10892_v56, %v5364_v24  ;;  %v5237_v14 = vadd.f32 1e-05, %v5173_v57 }
 0x6d4   : > { %v8202_v20 = vpop.eup %8201  ;;  %5145 = vadd.xlane.f32.xlu0 %v5019_v43  ;;  %v5074_v61 = vpop.xlane.xlu0 %5073  ;;  %v5501_v26 = vadd.f32 %v10913_v34, %v5431_v21 }
 0x6d5   : > { %5143 = vadd.xlane.f32.xlu1 %v5018_v19  ;;  %v5072_v7 = vpop.xlane.xlu1 %5071  ;;  %v5362_v32 = vmul.f32 %v8202_v20, %v11626_v2  ;;  %8203 = vrsqrt.f32 %v5237_v14  ;;  %v5175_v59 = vmul.f32 0.015625, %v5074_v61  ;;  %v5504_v48 = vadd.f32 %v10913_v34, %v5434_v35 }
 0x6d6   : > { %v5174_v5 = vmul.f32 0.015625, %v5072_v7  ;;  %v5565_v51 = vmax.f32 %v5501_v26, 0.0 }
 0x6d7   : > { %v5432_v11 = vmul.f32 %v10892_v56, %v5362_v32  ;;  %v5239_v47 = vadd.f32 1e-05, %v5175_v59  ;;  %v5568_v8 = vmax.f32 %v5504_v48, 0.0 }
 0x6d8   : > { %v5238_v49 = vadd.f32 1e-05, %v5174_v5 }
 0x6d9   : > { %5147 = vadd.xlane.f32.xlu1 %v5020_v10  ;;  %v5076_v40 = vpop.xlane.xlu1 %5075  ;;  %v5502_v53 = vadd.f32 %v10913_v34, %v5432_v11  ;;  %8205 = vrsqrt.f32 %v5239_v47  ;;  %v5620_v43 = vpack.c.bf16 %v5568_v8, %v5567_v17 }
 0x6da   : > { %v5176_v52 = vmul.f32 0.015625, %v5076_v40  ;;  %8207 = vrsqrt.f32 %v5238_v49 }
 0x6db   : > { %v5566_v46 = vmax.f32 %v5502_v53, 0.0 }
 0x6dc   : > { %v5240_v44 = vadd.f32 1e-05, %v5176_v52  ;;  %v5078_v1 = vpop.xlane.xlu0 %5077 }
 0x6dd   : > { %v5619_v24 = vpack.c.bf16 %v5566_v46, %v5565_v51  ;;  %v5177_v57 = vmul.f32 0.015625, %v5078_v1 }
 0x6de   : > { %8209 = vrsqrt.f32 %v5240_v44  ;;  %v5080_v19 = vpop.xlane.xlu1 %5079 }
 0x6df   : > { %7446 = vmatprep.mubr.bf16.mxu1 %v5619_v24  ;;  %v8204_v21 = vpop.eup %8203  ;;  %v5241_v35 = vadd.f32 1e-05, %v5177_v57  ;;  %v5178_v20 = vmul.f32 0.015625, %v5080_v19 }
 0x6e0   : > { %7447 = vmatmul.mubr.bf16.gmra.mrb[212].mxu1 %v5620_v43  ;;  %v5082_v14 = vpop.xlane.xlu0 %5081  ;;  %v5365_v4 = vmul.f32 %v8204_v21, %v10764_v25 }
 0x6e1   : > { %8211 = vrsqrt.f32 %v5241_v35  ;;  %v5242_v61 = vadd.f32 1e-05, %v5178_v20  ;;  %v5179_v7 = vmul.f32 0.015625, %v5082_v14  ;;  %v11627_v35 = vld [vmem:[#allocation28_spill] sm:$0xff] }
 0x6e2   : > { %v5084_v2 = vpop.xlane.xlu1 %5083  ;;  %v5435_v48 = vmul.f32 %v10892_v56, %v5365_v4 }
 0x6e3   : > { %v8206_v32 = vpop.eup %8205  ;;  %8213 = vrsqrt.f32 %v5242_v61  ;;  %v5243_v59 = vadd.f32 1e-05, %v5179_v7  ;;  %v5180_v5 = vmul.f32 0.015625, %v5084_v2 }
 0x6e4   : > { %v8208_v10 = vpop.eup %8207  ;;  %v5367_v11 = vmul.f32 %v8206_v32, %v10773_v6  ;;  %v5505_v40 = vadd.f32 %v10913_v34, %v5435_v48 }
 0x6e5   : > { %8215 = vrsqrt.f32 %v5243_v59  ;;  %v5244_v26 = vadd.f32 1e-05, %v5180_v5  ;;  %v5366_v47 = vmul.f32 %v8208_v10, %v10777_v23  ;;  %v11628_v5 = vld [vmem:[#allocation29_spill] sm:$0xff] }
 0x6e6   : > { %v5437_v49 = vmul.f32 %v10892_v56, %v5367_v11  ;;  %v5569_v46 = vmax.f32 %v5505_v40, 0.0 }
 0x6e7   : > { %8217 = vrsqrt.f32 %v5244_v26  ;;  %v5436_v45 = vmul.f32 %v10892_v56, %v5366_v47 }
 0x6e8   : > { %v8210_v25 = vpop.eup %8209  ;;  %v5507_v6 = vadd.f32 %v10913_v34, %v5437_v49 }
 0x6e9   : > { %v5368_v53 = vmul.f32 %v8210_v25, %v10785_v12  ;;  %v5506_v52 = vadd.f32 %v10913_v34, %v5436_v45  ;;  %v11629_v25 = vld [vmem:[#allocation30_spill] sm:$0xff] }
 0x6ea   : > { %v5571_v21 = vmax.f32 %v5507_v6, 0.0 }
 0x6eb   : > { %v5438_v8 = vmul.f32 %v10892_v56, %v5368_v53  ;;  %v8212_v51 = vpop.eup %8211  ;;  %v5570_v44 = vmax.f32 %v5506_v52, 0.0 }
 0x6ec   : > { %v5086_v23 = vpop.xlane.xlu0 %5085  ;;  %v5369_v1 = vmul.f32 %v8212_v51, %v10794_v42 }
 0x6ed   : > { %v5508_v17 = vadd.f32 %v10913_v34, %v5438_v8  ;;  %v8214_v24 = vpop.eup %8213  ;;  %v5181_v57 = vmul.f32 0.015625, %v5086_v23  ;;  %v5621_v43 = vpack.c.bf16 %v5570_v44, %v5569_v46 }
 0x6ee   : > { %v5088_v19 = vpop.xlane.xlu1 %5087  ;;  %v5370_v20 = vmul.f32 %v8214_v24, %v11627_v35  ;;  %v5439_v14 = vmul.f32 %v10892_v56, %v5369_v1 }
 0x6ef   : > { %v5572_v12 = vmax.f32 %v5508_v17, 0.0  ;;  %v8216_v4 = vpop.eup %8215  ;;  %v5245_v61 = vadd.f32 1e-05, %v5181_v57  ;;  %v5182_v7 = vmul.f32 0.015625, %v5088_v19  ;;  %7450 = vmatprep.mubr.bf16.mxu1 %v5621_v43 }
 0x6f0   : > { %v5090_v2 = vpop.xlane.xlu0 %5089  ;;  %v5440_v59 = vmul.f32 %v10892_v56, %v5370_v20  ;;  %v5509_v42 = vadd.f32 %v10913_v34, %v5439_v14  ;;  %v5371_v48 = vmul.f32 %v8216_v4, %v11628_v5 }
 0x6f1   : > { %v5622_v32 = vpack.c.bf16 %v5572_v12, %v5571_v21  ;;  %v8218_v10 = vpop.eup %8217  ;;  %8219 = vrsqrt.f32 %v5245_v61  ;;  %v5246_v11 = vadd.f32 1e-05, %v5182_v7  ;;  %v5183_v26 = vmul.f32 0.015625, %v5090_v2 }
 0x6f2   : > { %v5092_v47 = vpop.xlane.xlu1 %5091  ;;  %v5510_v49 = vadd.f32 %v10913_v34, %v5440_v59  ;;  %v5372_v45 = vmul.f32 %v8218_v10, %v11629_v25  ;;  %v5441_v40 = vmul.f32 %v10892_v56, %v5371_v48  ;;  %v5573_v8 = vmax.f32 %v5509_v42, 0.0 }
 0x6f3   : > { %7451 = vmatmul.mubr.bf16.gmra.mrb[216].mxu1 %v5622_v32  ;;  %8221 = vrsqrt.f32 %v5246_v11  ;;  %v5247_v53 = vadd.f32 1e-05, %v5183_v26  ;;  %v5184_v52 = vmul.f32 0.015625, %v5092_v47 }
 0x6f4   : > { %v5574_v6 = vmax.f32 %v5510_v49, 0.0  ;;  %v5442_v51 = vmul.f32 %v10892_v56, %v5372_v45  ;;  %v5511_v46 = vadd.f32 %v10913_v34, %v5441_v40 }
 0x6f5   : > { %8223 = vrsqrt.f32 %v5247_v53  ;;  %v5248_v44 = vadd.f32 1e-05, %v5184_v52 }
 0x6f6   : > { %v5623_v23 = vpack.c.bf16 %v5574_v6, %v5573_v8  ;;  %v5512_v17 = vadd.f32 %v10913_v34, %v5442_v51  ;;  %v5575_v1 = vmax.f32 %v5511_v46, 0.0 }
 0x6f7   : > { %8225 = vrsqrt.f32 %v5248_v44 }
 0x6f8   : > { %7454 = vmatprep.mubr.bf16.mxu1 %v5623_v23  ;;  %v5576_v24 = vmax.f32 %v5512_v17, 0.0 }
 0x6fa   : > { %v5624_v57 = vpack.c.bf16 %v5576_v24, %v5575_v1 }
 0x6fb   : > { %v8220_v43 = vpop.eup %8219 }
 0x6fc   : > { %7455 = vmatmul.mubr.bf16.gmra.mrb[220].mxu1 %v5624_v57  ;;  %v5094_v19 = vpop.xlane.xlu0 %5093  ;;  %v5373_v21 = vmul.f32 %v8220_v43, %v10822_v33 }
 0x6fd   : > { %v8222_v12 = vpop.eup %8221  ;;  %v5185_v35 = vmul.f32 0.015625, %v5094_v19  ;;  %v11631_v19 = vld [vmem:[#allocation33_spill] sm:$0xff] }
 0x6fe   : > { %v5096_v20 = vpop.xlane.xlu1 %5095  ;;  %v5374_v14 = vmul.f32 %v8222_v12, %v10833_v50  ;;  %v5443_v4 = vmul.f32 %v10892_v56, %v5373_v21  ;;  %v11630_v50 = vld [vmem:[#allocation31_spill] sm:$0xff] }
 0x6ff   : > { %v8224_v61 = vpop.eup %8223  ;;  %v5249_v7 = vadd.f32 1e-05, %v5185_v35  ;;  %v5186_v2 = vmul.f32 0.015625, %v5096_v20 }
 0x700   : > { %v5098_v32 = vpop.xlane.xlu0 %5097  ;;  %v5444_v59 = vmul.f32 %v10892_v56, %v5374_v14  ;;  %v5513_v42 = vadd.f32 %v10913_v34, %v5443_v4  ;;  %v5375_v5 = vmul.f32 %v8224_v61, %v10829_v54 }
 0x701   : > { %v8226_v48 = vpop.eup %8225  ;;  %8227 = vrsqrt.f32 %v5249_v7  ;;  %v5250_v33 = vadd.f32 1e-05, %v5186_v2  ;;  %v5187_v10 = vmul.f32 0.015625, %v5098_v32  ;;  %v11632_v32 = vld [vmem:[#allocation32_spill] sm:$0xff] }
 0x702   : > { %v5100_v11 = vpop.xlane.xlu1 %5099  ;;  %v5514_v26 = vadd.f32 %v10913_v34, %v5444_v59  ;;  %v5376_v47 = vmul.f32 %v8226_v48, %v11630_v50  ;;  %v5445_v49 = vmul.f32 %v10892_v56, %v5375_v5  ;;  %v5577_v40 = vmax.f32 %v5513_v42, 0.0 }
 0x703   : > { %8229 = vrsqrt.f32 %v5250_v33  ;;  %v5251_v25 = vadd.f32 1e-05, %v5187_v10  ;;  %v5188_v45 = vmul.f32 0.015625, %v5100_v11 }
 0x704   : > { %v5578_v53 = vmax.f32 %v5514_v26, 0.0  ;;  %v5446_v52 = vmul.f32 %v10892_v56, %v5376_v47  ;;  %v5515_v54 = vadd.f32 %v10913_v34, %v5445_v49 }
 0x705   : > { %8231 = vrsqrt.f32 %v5251_v25  ;;  %v5252_v8 = vadd.f32 1e-05, %v5188_v45  ;;  %v11171_v25 = vld [vmem:[%s11611_s24] ss:$0 sm:$0xff] }
 0x706   : > { %v5625_v6 = vpack.c.bf16 %v5578_v53, %v5577_v40  ;;  %v5516_v51 = vadd.f32 %v10913_v34, %v5446_v52  ;;  %v5579_v46 = vmax.f32 %v5515_v54, 0.0 }
 0x707   : > { %8233 = vrsqrt.f32 %v5252_v8 }
 0x708   : > { %7458 = vmatprep.mubr.bf16.mxu1 %v5625_v6  ;;  %v5580_v44 = vmax.f32 %v5516_v51, 0.0 }
 0x70a   : > { %v5626_v23 = vpack.c.bf16 %v5580_v44, %v5579_v46 }
 0x70b   : > { %v8228_v17 = vpop.eup %8227 }
 0x70c   : > { %7459 = vmatmul.mubr.bf16.gmra.mrb[224].mxu1 %v5626_v23  ;;  %v5377_v24 = vmul.f32 %v8228_v17, %v10850_v62 }
 0x70d   : > { %v5102_v1 = vpop.xlane.xlu0 %5101  ;;  %v8230_v57 = vpop.eup %8229 }
 0x70e   : > { %v5189_v43 = vmul.f32 0.015625, %v5102_v1  ;;  %v5378_v21 = vmul.f32 %v8230_v57, %v11631_v19  ;;  %v5447_v12 = vmul.f32 %v10892_v56, %v5377_v24  ;;  %v11633_v57 = vld [vmem:[#allocation35_spill] sm:$0xff] }
 0x70f   : > { %v8232_v35 = vpop.eup %8231  ;;  %v5104_v14 = vpop.xlane.xlu1 %5103 }
 0x710   : > { %v5253_v20 = vadd.f32 1e-05, %v5189_v43  ;;  %v5190_v4 = vmul.f32 0.015625, %v5104_v14  ;;  %v5448_v7 = vmul.f32 %v10892_v56, %v5378_v21  ;;  %v5517_v2 = vadd.f32 %v10913_v34, %v5447_v12  ;;  %v11634_v12 = vld [vmem:[#allocation34_spill] sm:$0xff] }
 0x711   : > { %v5106_v61 = vpop.xlane.xlu0 %5105  ;;  %v5379_v59 = vmul.f32 %v8232_v35, %v11632_v32  ;;  %v8234_v42 = vpop.eup %8233 }
 0x712   : > { %8235 = vrsqrt.f32 %v5253_v20  ;;  %v5191_v62 = vmul.f32 0.015625, %v5106_v61  ;;  %v5254_v5 = vadd.f32 1e-05, %v5190_v4  ;;  %v5518_v48 = vadd.f32 %v10913_v34, %v5448_v7 }
 0x713   : > { %v5380_v33 = vmul.f32 %v8234_v42, %v10867_v39  ;;  %v5108_v11 = vpop.xlane.xlu1 %5107  ;;  %v5581_v26 = vmax.f32 %v5517_v2, 0.0  ;;  %v5449_v50 = vmul.f32 %v10892_v56, %v5379_v59  ;;  %v11635_v59 = vld [vmem:[#allocation44_spill] sm:$0xff] }
 0x714   : > { %v5255_v10 = vadd.f32 1e-05, %v5191_v62  ;;  %8237 = vrsqrt.f32 %v5254_v5  ;;  %v5192_v47 = vmul.f32 0.015625, %v5108_v11  ;;  %v5582_v49 = vmax.f32 %v5518_v48, 0.0 }
 0x715   : > { %v5450_v45 = vmul.f32 %v11171_v25, %v5380_v33  ;;  %v5519_v40 = vadd.f32 %v10913_v34, %v5449_v50 }
 0x716   : > { %8239 = vrsqrt.f32 %v5255_v10  ;;  %v5256_v53 = vadd.f32 1e-05, %v5192_v47  ;;  %v5627_v39 = vpack.c.bf16 %v5582_v49, %v5581_v26 }
 0x717   : > { %v5520_v52 = vadd.f32 %v10913_v34, %v5450_v45  ;;  %v5583_v56 = vmax.f32 %v5519_v40, 0.0  ;;  %v11182_v34 = vld [vmem:[%s11614_s28] ss:$0 sm:$0xff] }
 0x718   : > { %8241 = vrsqrt.f32 %v5256_v53  ;;  %7462 = vmatprep.mubr.bf16.mxu1 %v5627_v39 }
 0x719   : > { %v5584_v54 = vmax.f32 %v5520_v52, 0.0 }
 0x71b   : > { %v5628_v8 = vpack.c.bf16 %v5584_v54, %v5583_v56 }
 0x71c   : > { %v8236_v6 = vpop.eup %8235 }
 0x71d   : > { %7463 = vmatmul.mubr.bf16.gmra.mrb[228].mxu1 %v5628_v8  ;;  %v5110_v51 = vpop.xlane.xlu0 %5109  ;;  %v5381_v46 = vmul.f32 %v8236_v6, %v10882_v16 }
 0x71e   : > { %v5193_v44 = vmul.f32 0.015625, %v5110_v51  ;;  %v8238_v23 = vpop.eup %8237 }
 0x71f   : > { %v5451_v17 = vmul.f32 %v11171_v25, %v5381_v46  ;;  %v5382_v43 = vmul.f32 %v8238_v23, %v11633_v57 }
 0x720   : > { %v8240_v1 = vpop.eup %8239  ;;  %v5257_v24 = vadd.f32 1e-05, %v5193_v44 }
 0x721   : > { %v5114_v19 = vpop.xlane.xlu0 %5113  ;;  %v5521_v21 = vadd.f32 %v11182_v34, %v5451_v17  ;;  %v5383_v35 = vmul.f32 %v8240_v1, %v11634_v12  ;;  %v5452_v14 = vmul.f32 %v11171_v25, %v5382_v43 }
 0x722   : > { %8243 = vrsqrt.f32 %v5257_v24  ;;  %v5195_v16 = vmul.f32 0.015625, %v5114_v19  ;;  %v5112_v20 = vpop.xlane.xlu1 %5111  ;;  %v8242_v4 = vpop.eup %8241 }
 0x723   : > { %v5194_v61 = vmul.f32 0.015625, %v5112_v20  ;;  %v5453_v7 = vmul.f32 %v11171_v25, %v5383_v35  ;;  %v5522_v32 = vadd.f32 %v11182_v34, %v5452_v14  ;;  %v5384_v42 = vmul.f32 %v8242_v4, %v11635_v59 }
 0x724   : > { %v5259_v2 = vadd.f32 1e-05, %v5195_v16  ;;  %v5585_v5 = vmax.f32 %v5521_v21, 0.0 }
 0x725   : > { %v5258_v62 = vadd.f32 1e-05, %v5194_v61  ;;  %v5586_v33 = vmax.f32 %v5522_v32, 0.0  ;;  %v5454_v10 = vmul.f32 %v11171_v25, %v5384_v42  ;;  %v5523_v11 = vadd.f32 %v11182_v34, %v5453_v7 }
 0x726   : > { %8245 = vrsqrt.f32 %v5259_v2  ;;  %v5116_v48 = vpop.xlane.xlu1 %5115 }
 0x727   : > { %8247 = vrsqrt.f32 %v5258_v62  ;;  %v5196_v26 = vmul.f32 0.015625, %v5116_v48  ;;  %v5629_v50 = vpack.c.bf16 %v5586_v33, %v5585_v5  ;;  %v5524_v47 = vadd.f32 %v11182_v34, %v5454_v10 }
 0x728   : > { %v5587_v45 = vmax.f32 %v5523_v11, 0.0 }
 0x729   : > { %v5260_v49 = vadd.f32 1e-05, %v5196_v26  ;;  %7466 = vmatprep.mubr.bf16.mxu1 %v5629_v50  ;;  %v5588_v40 = vmax.f32 %v5524_v47, 0.0 }
 0x72b   : > { %8249 = vrsqrt.f32 %v5260_v49  ;;  %v5630_v39 = vpack.c.bf16 %v5588_v40, %v5587_v45 }
 0x72c   : > { %v8244_v53 = vpop.eup %8243 }
 0x72d   : > { %v5118_v52 = vpop.xlane.xlu0 %5117  ;;  %v5385_v56 = vmul.f32 %v8244_v53, %v10927_v3  ;;  %7467 = vmatmul.mubr.bf16.gmra.mrb[232].mxu1 %v5630_v39 }
 0x72e   : > { %v5197_v54 = vmul.f32 0.015625, %v5118_v52 }
 0x72f   : > { %v5455_v51 = vmul.f32 %v11171_v25, %v5385_v56 }
 0x730   : > { %v8246_v8 = vpop.eup %8245  ;;  %v5261_v6 = vadd.f32 1e-05, %v5197_v54 }
 0x731   : > { %v8248_v46 = vpop.eup %8247  ;;  %v5122_v44 = vpop.xlane.xlu0 %5121  ;;  %v5387_v23 = vmul.f32 %v8246_v8, %v10933_v41  ;;  %v5525_v3 = vadd.f32 %v11182_v34, %v5455_v51 }
 0x732   : > { %8251 = vrsqrt.f32 %v5261_v6  ;;  %v5199_v17 = vmul.f32 0.015625, %v5122_v44  ;;  %v5120_v1 = vpop.xlane.xlu1 %5119  ;;  %v5386_v24 = vmul.f32 %v8248_v46, %v10942_v15 }
 0x733   : > { %v5198_v57 = vmul.f32 0.015625, %v5120_v1  ;;  %v5457_v21 = vmul.f32 %v11171_v25, %v5387_v23  ;;  %v5589_v4 = vmax.f32 %v5525_v3, 0.0 }
 0x734   : > { %v5263_v43 = vadd.f32 1e-05, %v5199_v17  ;;  %v5456_v19 = vmul.f32 %v11171_v25, %v5386_v24 }
 0x735   : > { %v8250_v12 = vpop.eup %8249  ;;  %v5262_v35 = vadd.f32 1e-05, %v5198_v57  ;;  %v5527_v7 = vadd.f32 %v11182_v34, %v5457_v21 }
 0x736   : > { %8253 = vrsqrt.f32 %v5263_v43  ;;  %v5124_v16 = vpop.xlane.xlu1 %5123  ;;  %v5526_v20 = vadd.f32 %v11182_v34, %v5456_v19  ;;  %v5388_v41 = vmul.f32 %v8250_v12, %v10952_v55 }
 0x737   : > { %8255 = vrsqrt.f32 %v5262_v35  ;;  %v5200_v14 = vmul.f32 0.015625, %v5124_v16  ;;  %v5591_v62 = vmax.f32 %v5527_v7, 0.0 }
 0x738   : > { %v5590_v15 = vmax.f32 %v5526_v20, 0.0  ;;  %v5458_v61 = vmul.f32 %v11171_v25, %v5388_v41 }
 0x739   : > { %v5264_v2 = vadd.f32 1e-05, %v5200_v14 }
 0x73a   : > { %v5631_v32 = vpack.c.bf16 %v5590_v15, %v5589_v4  ;;  %v5528_v59 = vadd.f32 %v11182_v34, %v5458_v61 }
 0x73b   : > { %8257 = vrsqrt.f32 %v5264_v2 }
 0x73c   : > { %v8252_v42 = vpop.eup %8251  ;;  %7470 = vmatprep.mubr.bf16.mxu1 %v5631_v32  ;;  %v5592_v5 = vmax.f32 %v5528_v59, 0.0 }
 0x73d   : > { %v5126_v48 = vpop.xlane.xlu0 %5125  ;;  %v5389_v55 = vmul.f32 %v8252_v42, %v10967_v30 }
 0x73e   : > { %v5201_v33 = vmul.f32 0.015625, %v5126_v48  ;;  %v5632_v10 = vpack.c.bf16 %v5592_v5, %v5591_v62 }
 0x73f   : > { %v5459_v50 = vmul.f32 %v11171_v25, %v5389_v55 }
 0x740   : > { %v8254_v11 = vpop.eup %8253  ;;  %v5265_v26 = vadd.f32 1e-05, %v5201_v33  ;;  %7471 = vmatmul.mubr.bf16.gmra.mrb[236].mxu1 %v5632_v10 }
 0x741   : > { %v8256_v47 = vpop.eup %8255  ;;  %v5130_v49 = vpop.xlane.xlu0 %5129  ;;  %v5391_v45 = vmul.f32 %v8254_v11, %v10973_v13  ;;  %v5529_v54 = vadd.f32 %v11182_v34, %v5459_v50 }
 0x742   : > { %8259 = vrsqrt.f32 %v5265_v26  ;;  %v5203_v40 = vmul.f32 0.015625, %v5130_v49  ;;  %v5128_v53 = vpop.xlane.xlu1 %5127  ;;  %v5390_v39 = vmul.f32 %v8256_v47, %v10982_v29 }
 0x743   : > { %v5202_v52 = vmul.f32 0.015625, %v5128_v53  ;;  %v5461_v8 = vmul.f32 %v11171_v25, %v5391_v45  ;;  %v5593_v17 = vmax.f32 %v5529_v54, 0.0 }
 0x744   : > { %v5267_v56 = vadd.f32 1e-05, %v5203_v40  ;;  %v5460_v30 = vmul.f32 %v11171_v25, %v5390_v39 }
 0x745   : > { %v8258_v6 = vpop.eup %8257  ;;  %v5266_v51 = vadd.f32 1e-05, %v5202_v52  ;;  %v5531_v24 = vadd.f32 %v11182_v34, %v5461_v8 }
 0x746   : > { %8261 = vrsqrt.f32 %v5267_v56  ;;  %v5132_v46 = vpop.xlane.xlu1 %5131  ;;  %v5530_v44 = vadd.f32 %v11182_v34, %v5460_v30  ;;  %v5392_v13 = vmul.f32 %v8258_v6, %v10992_v63 }
 0x747   : > { %8263 = vrsqrt.f32 %v5266_v51  ;;  %v5204_v23 = vmul.f32 0.015625, %v5132_v46  ;;  %v5595_v21 = vmax.f32 %v5531_v24, 0.0 }
 0x748   : > { %v5594_v29 = vmax.f32 %v5530_v44, 0.0  ;;  %v5462_v1 = vmul.f32 %v11171_v25, %v5392_v13 }
 0x749   : > { %v5268_v57 = vadd.f32 1e-05, %v5204_v23 }
 0x74a   : > { %v5633_v43 = vpack.c.bf16 %v5594_v29, %v5593_v17  ;;  %v5532_v19 = vadd.f32 %v11182_v34, %v5462_v1 }
 0x74b   : > { %8265 = vrsqrt.f32 %v5268_v57 }
 0x74c   : > { %v8260_v3 = vpop.eup %8259  ;;  %7474 = vmatprep.mubr.bf16.mxu1 %v5633_v43  ;;  %v5596_v12 = vmax.f32 %v5532_v19, 0.0 }
 0x74d   : > { %v5134_v35 = vpop.xlane.xlu0 %5133  ;;  %v5393_v63 = vmul.f32 %v8260_v3, %v11007_v9 }
 0x74e   : > { %v5205_v16 = vmul.f32 0.015625, %v5134_v35  ;;  %v5634_v20 = vpack.c.bf16 %v5596_v12, %v5595_v21 }
 0x74f   : > { %v5463_v4 = vmul.f32 %v11171_v25, %v5393_v63 }
 0x750   : > { %v8262_v41 = vpop.eup %8261  ;;  %v5269_v14 = vadd.f32 1e-05, %v5205_v16  ;;  %7475 = vmatmul.mubr.bf16.gmra.mrb[240].mxu1 %v5634_v20 }
 0x751   : > { %v8264_v15 = vpop.eup %8263  ;;  %v5138_v61 = vpop.xlane.xlu0 %5137  ;;  %v5395_v7 = vmul.f32 %v8262_v41, %v11013_v60  ;;  %v5533_v5 = vadd.f32 %v11182_v34, %v5463_v4 }
 0x752   : > { %8267 = vrsqrt.f32 %v5269_v14  ;;  %v5207_v2 = vmul.f32 0.015625, %v5138_v61  ;;  %v5136_v32 = vpop.xlane.xlu1 %5135  ;;  %v5394_v59 = vmul.f32 %v8264_v15, %v11022_v22 }
 0x753   : > { %v5206_v42 = vmul.f32 0.015625, %v5136_v32  ;;  %v5465_v48 = vmul.f32 %v11171_v25, %v5395_v7  ;;  %v5597_v50 = vmax.f32 %v5533_v5, 0.0 }
 0x754   : > { %v5271_v62 = vadd.f32 1e-05, %v5207_v2  ;;  %v5464_v9 = vmul.f32 %v11171_v25, %v5394_v59 }
 0x755   : > { %v8266_v55 = vpop.eup %8265  ;;  %v5270_v33 = vadd.f32 1e-05, %v5206_v42  ;;  %v5535_v49 = vadd.f32 %v11182_v34, %v5465_v48 }
 0x756   : > { %8269 = vrsqrt.f32 %v5271_v62  ;;  %v5140_v10 = vpop.xlane.xlu1 %5139  ;;  %v5534_v11 = vadd.f32 %v11182_v34, %v5464_v9  ;;  %v5396_v60 = vmul.f32 %v8266_v55, %v11032_v58 }
 0x757   : > { %8271 = vrsqrt.f32 %v5270_v33  ;;  %v5208_v26 = vmul.f32 0.015625, %v5140_v10  ;;  %v5599_v52 = vmax.f32 %v5535_v49, 0.0 }
 0x758   : > { %v5598_v22 = vmax.f32 %v5534_v11, 0.0  ;;  %v5466_v47 = vmul.f32 %v11171_v25, %v5396_v60 }
 0x759   : > { %v5272_v45 = vadd.f32 1e-05, %v5208_v26 }
 0x75a   : > { %v5635_v40 = vpack.c.bf16 %v5598_v22, %v5597_v50  ;;  %v5536_v53 = vadd.f32 %v11182_v34, %v5466_v47 }
 0x75b   : > { %8273 = vrsqrt.f32 %v5272_v45 }
 0x75c   : > { %v8268_v39 = vpop.eup %8267  ;;  %7478 = vmatprep.mubr.bf16.mxu1 %v5635_v40  ;;  %v5600_v56 = vmax.f32 %v5536_v53, 0.0 }
 0x75d   : > { %v5142_v30 = vpop.xlane.xlu0 %5141  ;;  %v5397_v58 = vmul.f32 %v8268_v39, %v11047_v28 }
 0x75e   : > { %v5209_v54 = vmul.f32 0.015625, %v5142_v30  ;;  %v5636_v8 = vpack.c.bf16 %v5600_v56, %v5599_v52 }
 0x75f   : > { %v5467_v6 = vmul.f32 %v11171_v25, %v5397_v58 }
 0x760   : > { %v8270_v51 = vpop.eup %8269  ;;  %v5273_v46 = vadd.f32 1e-05, %v5209_v54  ;;  %7479 = vmatmul.mubr.bf16.gmra.mrb[244].mxu1 %v5636_v8  ;;  %v7428_v13 = vpop.f32.mrb[192].mxu1 }
 0x761   : > { %v8272_v44 = vpop.eup %8271  ;;  %v5146_v23 = vpop.xlane.xlu0 %5145  ;;  %v5399_v17 = vmul.f32 %v8270_v51, %v11053_v18  ;;  %v5537_v19 = vadd.f32 %v11182_v34, %v5467_v6 }
 0x762   : > { %8275 = vrsqrt.f32 %v5273_v46  ;;  %v5739_v29 = vpop.f32.mrb[193].mxu1  ;;  %v5211_v1 = vmul.f32 0.015625, %v5146_v23  ;;  %v5144_v24 = vpop.xlane.xlu1 %5143  ;;  %v5398_v57 = vmul.f32 %v8272_v44, %v11062_v37 }
 0x763   : > { %v5210_v28 = vmul.f32 0.015625, %v5144_v24  ;;  %v7429_v43 = vpop.f32.mrb[194].mxu1  ;;  %v5469_v63 = vmul.f32 %v11171_v25, %v5399_v17  ;;  %v5601_v15 = vmax.f32 %v5537_v19, 0.0 }
 0x764   : > { %v5275_v3 = vadd.f32 1e-05, %v5211_v1  ;;  %v7036_v21 = vpack.c.bf16 %v7429_v43, %v7428_v13  ;;  %v5742_v12 = vpop.f32.mrb[195].mxu1  ;;  %v5468_v35 = vmul.f32 %v11171_v25, %v5398_v57 }
 0x765   : > { %v8274_v16 = vpop.eup %8273  ;;  %v5274_v18 = vadd.f32 1e-05, %v5210_v28  ;;  %v7031_v20 = vpack.c.bf16 %v5742_v12, %v5739_v29  ;;  %v5539_v2 = vadd.f32 %v11182_v34, %v5469_v63 }
 0x766   : > { %8277 = vrsqrt.f32 %v5275_v3  ;;  %7219 = vst [vmem:[%s11238_s10 + $0x8] sm:$0xff] %v7036_v21   ;;  %v5148_v37 = vpop.xlane.xlu1 %5147  ;;  %v5538_v41 = vadd.f32 %v11182_v34, %v5468_v35  ;;  %v5400_v14 = vmul.f32 %v8274_v16, %v11072_v27 }
 0x767   : > { %8279 = vrsqrt.f32 %v5274_v18  ;;  %7032 = vst [vmem:[%s11238_s10] sm:$0xff] %v7031_v20   ;;  %v5212_v4 = vmul.f32 0.015625, %v5148_v37  ;;  %v5603_v9 = vmax.f32 %v5539_v2, 0.0 }
 0x768   : > { %v5602_v61 = vmax.f32 %v5538_v41, 0.0  ;;  %v5470_v7 = vmul.f32 %v11171_v25, %v5400_v14 }
 0x769   : > { %v5276_v32 = vadd.f32 1e-05, %v5212_v4 }
 0x76a   : > { %v5637_v59 = vpack.c.bf16 %v5602_v61, %v5601_v15  ;;  %v5540_v42 = vadd.f32 %v11182_v34, %v5470_v7 }
 0x76b   : > { %8281 = vrsqrt.f32 %v5276_v32 }
 0x76c   : > { %v8276_v62 = vpop.eup %8275  ;;  %7482 = vmatprep.mubr.bf16.mxu1 %v5637_v59  ;;  %v5604_v5 = vmax.f32 %v5540_v42, 0.0 }
 0x76d   : > { %v5401_v27 = vmul.f32 %v8276_v62, %v11087_v31 }
 0x76e   : > { %v5638_v48 = vpack.c.bf16 %v5604_v5, %v5603_v9 }
 0x76f   : > { %v5471_v33 = vmul.f32 %v11171_v25, %v5401_v27 }
 0x770   : > { %v8278_v55 = vpop.eup %8277  ;;  %7483 = vmatmul.mubr.bf16.gmra.mrb[248].mxu1 %v5638_v48 }
 0x771   : > { %v8280_v10 = vpop.eup %8279  ;;  %v5403_v11 = vmul.f32 %v8278_v55, %v11093_v36  ;;  %v5541_v47 = vadd.f32 %v11182_v34, %v5471_v33 }
 0x772   : > { %v5402_v60 = vmul.f32 %v8280_v10, %v11102_v38 }
 0x773   : > { %v7432_v26 = vpop.f32.mrb[196].mxu1  ;;  %v5473_v31 = vmul.f32 %v11171_v25, %v5403_v11  ;;  %v5605_v38 = vmax.f32 %v5541_v47, 0.0 }
 0x774   : > { %v5755_v50 = vpop.f32.mrb[197].mxu1  ;;  %v5472_v22 = vmul.f32 %v11171_v25, %v5402_v60 }
 0x775   : > { %v8282_v49 = vpop.eup %8281  ;;  %v7433_v45 = vpop.f32.mrb[198].mxu1  ;;  %v5543_v58 = vadd.f32 %v11182_v34, %v5473_v31 }
 0x776   : > { %v7046_v40 = vpack.c.bf16 %v7433_v45, %v7432_v26  ;;  %v5758_v53 = vpop.f32.mrb[199].mxu1  ;;  %v5542_v39 = vadd.f32 %v11182_v34, %v5472_v22  ;;  %v5404_v52 = vmul.f32 %v8282_v49, %v11112_v0 }
 0x777   : > { %v7041_v36 = vpack.c.bf16 %v5758_v53, %v5755_v50  ;;  %v5607_v6 = vmax.f32 %v5543_v58, 0.0 }
 0x778   : > { %7221 = vst [vmem:[%s11238_s10 + $0x18] sm:$0xff] %v7046_v40   ;;  %v5606_v56 = vmax.f32 %v5542_v39, 0.0  ;;  %v5474_v30 = vmul.f32 %v11171_v25, %v5404_v52 }
 0x779   : > { %7220 = vst [vmem:[%s11238_s10 + $0x10] sm:$0xff] %v7041_v36  }
 0x77a   : > { %v5639_v54 = vpack.c.bf16 %v5606_v56, %v5605_v38  ;;  %v5544_v8 = vadd.f32 %v11182_v34, %v5474_v30 }
 0x77c   : > { %7486 = vmatprep.mubr.bf16.mxu1 %v5639_v54  ;;  %v5608_v51 = vmax.f32 %v5544_v8, 0.0 }
 0x77e   : > { %v5640_v46 = vpack.c.bf16 %v5608_v51, %v5607_v6 }
 0x780   : > { %7487 = vmatmul.mubr.bf16.gmra.mrb[252].mxu1 %v5640_v46 }
 0x783   : > { %v7436_v0 = vpop.f32.mrb[200].mxu1 }
 0x784   : > { %v5771_v44 = vpop.f32.mrb[201].mxu1 }
 0x785   : > { %v7437_v13 = vpop.f32.mrb[202].mxu1 }
 0x786   : > { %v7056_v23 = vpack.c.bf16 %v7437_v13, %v7436_v0  ;;  %v5774_v25 = vpop.f32.mrb[203].mxu1 }
 0x787   : > { %v7051_v17 = vpack.c.bf16 %v5774_v25, %v5771_v44 }
 0x788   : > { %7223 = vst [vmem:[%s11238_s10 + $0x28] sm:$0xff] %v7056_v23  }
 0x789   : > { %7222 = vst [vmem:[%s11238_s10 + $0x20] sm:$0xff] %v7051_v17  }
 0x793   : > { %v7440_v29 = vpop.f32.mrb[204].mxu1 }
 0x794   : > { %v5787_v1 = vpop.f32.mrb[205].mxu1 }
 0x795   : > { %v7441_v34 = vpop.f32.mrb[206].mxu1 }
 0x796   : > { %v7066_v24 = vpack.c.bf16 %v7441_v34, %v7440_v29  ;;  %v5790_v57 = vpop.f32.mrb[207].mxu1 }
 0x797   : > { %v7061_v28 = vpack.c.bf16 %v5790_v57, %v5787_v1 }
 0x798   : > { %7225 = vst [vmem:[%s11238_s10 + $0x38] sm:$0xff] %v7066_v24  }
 0x799   : > { %7224 = vst [vmem:[%s11238_s10 + $0x30] sm:$0xff] %v7061_v28  }
 0x7a3   : > { %v7444_v43 = vpop.f32.mrb[208].mxu1 }
 0x7a4   : > { %v5803_v19 = vpop.f32.mrb[209].mxu1 }
 0x7a5   : > { %v7445_v3 = vpop.f32.mrb[210].mxu1 }
 0x7a6   : > { %v7076_v21 = vpack.c.bf16 %v7445_v3, %v7444_v43  ;;  %v5806_v12 = vpop.f32.mrb[211].mxu1 }
 0x7a7   : > { %v7071_v35 = vpack.c.bf16 %v5806_v12, %v5803_v19 }
 0x7a8   : > { %7227 = vst [vmem:[%s11238_s10 + $0x48] sm:$0xff] %v7076_v21  }
 0x7a9   : > { %7226 = vst [vmem:[%s11238_s10 + $0x40] sm:$0xff] %v7071_v35  }
 0x7b3   : > { %v7448_v63 = vpop.f32.mrb[212].mxu1 }
 0x7b4   : > { %v5819_v16 = vpop.f32.mrb[213].mxu1 }
 0x7b5   : > { %v7449_v18 = vpop.f32.mrb[214].mxu1 }
 0x7b6   : > { %v7086_v20 = vpack.c.bf16 %v7449_v18, %v7448_v63  ;;  %v5822_v37 = vpop.f32.mrb[215].mxu1 }
 0x7b7   : > { %v7081_v41 = vpack.c.bf16 %v5822_v37, %v5819_v16 }
 0x7b8   : > { %7229 = vst [vmem:[%s11238_s10 + $0x58] sm:$0xff] %v7086_v20  }
 0x7b9   : > { %7228 = vst [vmem:[%s11238_s10 + $0x50] sm:$0xff] %v7081_v41  }
 0x7c6   : > { %v7452_v14 = vpop.f32.mrb[216].mxu1 }
 0x7c7   : > { %v5835_v4 = vpop.f32.mrb[217].mxu1 }
 0x7c8   : > { %v7453_v15 = vpop.f32.mrb[218].mxu1 }
 0x7c9   : > { %v7096_v61 = vpack.c.bf16 %v7453_v15, %v7452_v14  ;;  %v5838_v7 = vpop.f32.mrb[219].mxu1 }
 0x7ca   : > { %v7091_v2 = vpack.c.bf16 %v5838_v7, %v5835_v4 }
 0x7cb   : > { %7231 = vst [vmem:[%s11238_s10 + $0x68] sm:$0xff] %v7096_v61  }
 0x7cc   : > { %7230 = vst [vmem:[%s11238_s10 + $0x60] sm:$0xff] %v7091_v2  }
 0x7cf   : > { %v7456_v32 = vpop.f32.mrb[220].mxu1 }
 0x7d0   : > { %v5851_v59 = vpop.f32.mrb[221].mxu1 }
 0x7d1   : > { %v7457_v42 = vpop.f32.mrb[222].mxu1 }
 0x7d2   : > { %v7106_v62 = vpack.c.bf16 %v7457_v42, %v7456_v32  ;;  %v5854_v9 = vpop.f32.mrb[223].mxu1 }
 0x7d3   : > { %v7101_v5 = vpack.c.bf16 %v5854_v9, %v5851_v59 }
 0x7d4   : > { %7233 = vst [vmem:[%s11238_s10 + $0x78] sm:$0xff] %v7106_v62  }
 0x7d5   : > { %7232 = vst [vmem:[%s11238_s10 + $0x70] sm:$0xff] %v7101_v5  }
 0x7d6   : > { %8414 = shalt.err (!%p8411_p0)
}
 0x7d7   : > { %s8415_s16 = scalar_lea.hbm %s11279_s18, 4096  ;;  %s8419_s29 = scalar_lea.hbm %s11637_s8, 8192 }
 0x7d8   : > { %p8416_p4 = scmp.ne.s32.totalorder %s11279_s18, %s8415_s16  ;;  %p8420_p12 = scmp.lt.u32.totalorder %s11279_s18, %s11637_s8 }
 0x7d9   : > { %p8421_p1 = scmp.lt.u32.totalorder %s8419_s29, %s8415_s16  ;;  %p8423_p13 = scmp.lt.u32.totalorder %s8415_s16, %s11279_s18 }
 0x7da   : > { %p8417_p2 = pnand %p8416_p4, %p8760_p10 }
 0x7db   : > { %p8422_p11 = por %p8421_p1, %p8420_p12 }
 0x7dc   : > { %p8418_p8 = pneg %p8417_p2 }
 0x7dd   : > { %p8424_p6 = por %p8423_p13, %p8422_p11 }
 0x7df   : > { %p8425_p3 = pnand %p8424_p6, %p8418_p8 }
 0x7e1   : > { %8428 = shalt.err (!%p8425_p3)
}
 0x7e2   : > { %s11469_s30 = smov 64   ;;  %s8535_s19 = smov 4   ;;  %v7460_v27 = vpop.f32.mrb[224].mxu1 }
 0x7e3   : > { %7856 = dma.vmem_to_hbm [thread:$0]  (%p8760_p10), %s11282_s12, 4096, %s11279_s18, %s6315_s26, %s11469_s30, %s11469_s30, %s8535_s19   ;;  %v5867_v48 = vpop.f32.mrb[225].mxu1 }
 0x7e4   : > { %v7461_v55 = vpop.f32.mrb[226].mxu1  ;;  %s6349_s15 = sshll.u32 %s11238_s10, 4  ;;  %s11638_s18 = sshll.u32 %s11636_s13, 12  ;;  %s11333_s15 = int_to_ptr.vmem [resolvable:$true] %s6349_s15 }
 0x7e5   : > { %v7116_v33 = vpack.c.bf16 %v7461_v55, %v7460_v27  ;;  %v5870_v10 = vpop.f32.mrb[227].mxu1  ;;  %s11639_s16 = sld [smem:[#allocation49_spill]]  ;;  %s6320_s11 = scalar_lea.sflag [#allocation14], %s8819_s22 }
 0x7e6   : > { %v7111_v11 = vpack.c.bf16 %v5870_v10, %v5867_v48  ;;  %s8429_s29 = scalar_lea.vmem %s11333_s15, 4096  ;;  %s8536_s27 = smov [#allocation13]  }
 0x7e7   : > { %7235 = vst [vmem:[%s11238_s10 + $0x88] sm:$0xff] %v7116_v33   ;;  %p8430_p5 = scmp.ne.s32.totalorder %s11333_s15, %s8429_s29  ;;  %s8433_s13 = sshll.u32 %s8536_s27, 4  ;;  %s8434_s13 = int_to_ptr.vmem [resolvable:$false] %s8433_s13 }
 0x7e8   : > { %7234 = vst [vmem:[%s11238_s10 + $0x80] sm:$0xff] %v7111_v11   ;;  %s8435_s30 = scalar_lea.vmem %s8434_s13, 8192  ;;  %p8436_p0 = scmp.lt.s32.totalorder %s11333_s15, %s8434_s13 }
 0x7e9   : > { %p8431_p7 = pnand %p8430_p5, %p8760_p10  ;;  %p8437_p4 = scmp.lt.s32.totalorder %s8435_s30, %s8429_s29 }
 0x7eb   : > { %s11331_s17 = scalar_lea.hbm %s11639_s16, %s11638_s18  ;;  %p8432_p9 = pneg %p8431_p7 }
 0x7ec   : > { %p8438_p2 = por %p8437_p4, %p8436_p0 }
 0x7ee   : > { %p8439_p8 = pnand %p8438_p2, %p8432_p9 }
 0x7f0   : > { %v7464_v60 = vpop.f32.mrb[228].mxu1 }
 0x7f1   : > { %v5883_v26 = vpop.f32.mrb[229].mxu1 }
 0x7f2   : > { %v7465_v50 = vpop.f32.mrb[230].mxu1 }
 0x7f3   : > { %v7126_v22 = vpack.c.bf16 %v7465_v50, %v7464_v60  ;;  %v5886_v47 = vpop.f32.mrb[231].mxu1 }
 0x7f4   : > { %v7121_v31 = vpack.c.bf16 %v5886_v47, %v5883_v26 }
 0x7f5   : > { %7237 = vst [vmem:[%s11238_s10 + $0x98] sm:$0xff] %v7126_v22  }
 0x7f6   : > { %7236 = vst [vmem:[%s11238_s10 + $0x90] sm:$0xff] %v7121_v31  }
 0x800   : > { %v7468_v49 = vpop.f32.mrb[232].mxu1 }
 0x801   : > { %v5899_v45 = vpop.f32.mrb[233].mxu1 }
 0x802   : > { %v7469_v40 = vpop.f32.mrb[234].mxu1 }
 0x803   : > { %v7136_v53 = vpack.c.bf16 %v7469_v40, %v7468_v49  ;;  %v5902_v39 = vpop.f32.mrb[235].mxu1 }
 0x804   : > { %v7131_v52 = vpack.c.bf16 %v5902_v39, %v5899_v45 }
 0x805   : > { %7239 = vst [vmem:[%s11238_s10 + $0xa8] sm:$0xff] %v7136_v53  }
 0x806   : > { %7238 = vst [vmem:[%s11238_s10 + $0xa0] sm:$0xff] %v7131_v52  }
 0x813   : > { %v7472_v36 = vpop.f32.mrb[236].mxu1 }
 0x814   : > { %v5915_v38 = vpop.f32.mrb[237].mxu1 }
 0x815   : > { %v7473_v56 = vpop.f32.mrb[238].mxu1 }
 0x816   : > { %v7146_v30 = vpack.c.bf16 %v7473_v56, %v7472_v36  ;;  %v5918_v58 = vpop.f32.mrb[239].mxu1 }
 0x817   : > { %v7141_v54 = vpack.c.bf16 %v5918_v58, %v5915_v38 }
 0x818   : > { %7241 = vst [vmem:[%s11238_s10 + $0xb8] sm:$0xff] %v7146_v30  }
 0x819   : > { %7240 = vst [vmem:[%s11238_s10 + $0xb0] sm:$0xff] %v7141_v54  }
 0x823   : > { %v7476_v8 = vpop.f32.mrb[240].mxu1 }
 0x824   : > { %v5931_v6 = vpop.f32.mrb[241].mxu1 }
 0x825   : > { %v7477_v51 = vpop.f32.mrb[242].mxu1 }
 0x826   : > { %v7156_v46 = vpack.c.bf16 %v7477_v51, %v7476_v8  ;;  %v5934_v0 = vpop.f32.mrb[243].mxu1 }
 0x827   : > { %v7151_v44 = vpack.c.bf16 %v5934_v0, %v5931_v6 }
 0x828   : > { %7243 = vst [vmem:[%s11238_s10 + $0xc8] sm:$0xff] %v7156_v46  }
 0x829   : > { %7242 = vst [vmem:[%s11238_s10 + $0xc0] sm:$0xff] %v7151_v44  }
 0x833   : > { %v7480_v13 = vpop.f32.mrb[244].mxu1 }
 0x834   : > { %v5947_v23 = vpop.f32.mrb[245].mxu1 }
 0x835   : > { %v7481_v25 = vpop.f32.mrb[246].mxu1 }
 0x836   : > { %v7166_v17 = vpack.c.bf16 %v7481_v25, %v7480_v13  ;;  %v5950_v29 = vpop.f32.mrb[247].mxu1 }
 0x837   : > { %v7161_v1 = vpack.c.bf16 %v5950_v29, %v5947_v23 }
 0x838   : > { %7245 = vst [vmem:[%s11238_s10 + $0xd8] sm:$0xff] %v7166_v17  }
 0x839   : > { %7244 = vst [vmem:[%s11238_s10 + $0xd0] sm:$0xff] %v7161_v1  }
 0x843   : > { %v7484_v34 = vpop.f32.mrb[248].mxu1 }
 0x844   : > { %v5963_v24 = vpop.f32.mrb[249].mxu1 }
 0x845   : > { %v7485_v57 = vpop.f32.mrb[250].mxu1 }
 0x846   : > { %v7176_v28 = vpack.c.bf16 %v7485_v57, %v7484_v34  ;;  %v5966_v43 = vpop.f32.mrb[251].mxu1 }
 0x847   : > { %v7171_v19 = vpack.c.bf16 %v5966_v43, %v5963_v24 }
 0x848   : > { %7247 = vst [vmem:[%s11238_s10 + $0xe8] sm:$0xff] %v7176_v28  }
 0x849   : > { %7246 = vst [vmem:[%s11238_s10 + $0xe0] sm:$0xff] %v7171_v19  }
 0x853   : > { %v7488_v3 = vpop.f32.mrb[252].mxu1 }
 0x854   : > { %v5979_v21 = vpop.f32.mrb[253].mxu1 }
 0x855   : > { %v7489_v12 = vpop.f32.mrb[254].mxu1 }
 0x856   : > { %v7186_v35 = vpack.c.bf16 %v7489_v12, %v7488_v3  ;;  %v5982_v63 = vpop.f32.mrb[255].mxu1 }
 0x857   : > { %v7181_v16 = vpack.c.bf16 %v5982_v63, %v5979_v21 }
 0x858   : > { %7249 = vst [vmem:[%s11238_s10 + $0xf8] sm:$0xff] %v7186_v35  }
 0x859   : > { %7248 = vst [vmem:[%s11238_s10 + $0xf0] sm:$0xff] %v7181_v16  }
 0x85a   : > { %8442 = shalt.err (!%p8439_p8)
}
 0x85b   : > { %s8443_s10 = scalar_lea.hbm %s11331_s17, 4096  ;;  %s8447_s26 = scalar_lea.hbm %s11639_s16, 8192 }
 0x85c   : > { %p8444_p12 = scmp.ne.s32.totalorder %s11331_s17, %s8443_s10  ;;  %p8448_p13 = scmp.lt.u32.totalorder %s11331_s17, %s11639_s16 }
 0x85d   : > { %p8449_p6 = scmp.lt.u32.totalorder %s8447_s26, %s8443_s10  ;;  %p8451_p5 = scmp.lt.u32.totalorder %s8443_s10, %s11331_s17 }
 0x85e   : > { %p8445_p1 = pnand %p8444_p12, %p8760_p10 }
 0x85f   : > { %p8450_p3 = por %p8449_p6, %p8448_p13 }
 0x860   : > { %p8446_p11 = pneg %p8445_p1 }
 0x861   : > { %p8452_p7 = por %p8451_p5, %p8450_p3 }
 0x863   : > { %p8453_p9 = pnand %p8452_p7, %p8446_p11 }
 0x865   : > { %8456 = shalt.err (!%p8453_p9)
}
 0x866   : > { %s11640_s30 = smov 64  }
 0x867   : > { %7857 = dma.vmem_to_hbm [thread:$0]  (%p8760_p10), %s11333_s15, 4096, %s11331_s17, %s6320_s11, %s11640_s30, %s11640_s30, %s8535_s19  }
 0x868 PF: > { %s11641_s29 = sld [smem:[#allocation20_spill]]  ;;  %s11642_s18 = sld [smem:[#allocation22_spill]] }
 0x869   : > { %p11644_p4 = scmp.ge.s32.totalorder %s8523_s2, 2 }
 0x86e   : > { %s6364_s12 = sand.u32 1, %s11641_s29   ;;  %p11643_p0 = scmp.ne.s32.totalorder %s11642_s18, 0 }
 0x86f   : > { %s6365_s10 = scalar_lea.sflag [#allocation6], %s6364_s12 }
 0x870   : > { %p7875_p2 = pnand %p11644_p4, %p11643_p0 }
 0x872   : > { %8494 = dma.done.wait (!%p7875_p2), %s6365_s10, 4096  }
 0x873   : > { %8496 = vsyncadd (!%p7875_p2), %s6365_s10, 4294963200  ;;  %s6374_s9 = scalar_lea.sflag [#allocation14], %s6364_s12 }
 0x874   : > { %8498 = dma.done.wait (!%p7875_p2), %s6374_s9, 4096  }
 0x875   : > { %8500 = vsyncadd (!%p7875_p2), %s6374_s9, 4294963200  ;;  %s35_s2 = sadd.s32 1, %s8523_s2   ;;  %s11645_s19 = smov %s8507_s20 }
 0x876   : > { %p32_p8 = scmp.ge.s32.totalorder %s35_s2, 4   ;;  %s11646_s20 = smov %s8511_s21 }
 0x877   : > { %s11647_s21 = smov %s8772_s25  ;;  %s11648_s22 = smov %s8519_s23 }
 0x878   : > { %s11649_s23 = smov %s11651_s14  ;;  %34 = sbr.rel (!%p32_p8) target bundleno = 15 (0xf), region = 143 }
 0x87f   :  { %6379 = vsyncpa [#allocation5], 1 }
 0x880   :  { %6381 = vsyncpa [#allocation5 + $0x1], 1 }
 0x881   :  { %6382 = vsyncpa [#allocation8], 1 }
 0x882   :  { %6383 = vsyncpa [#allocation11], 1 }
 0x883   :  { %6384 = vsyncpa [#allocation6], 1 }
 0x884   :  { %6386 = vsyncpa [#allocation6 + $0x1], 1 }
 0x885   :  { %6387 = vsyncpa [#allocation14], 1 }
 0x886   :  { %6389 = vsyncpa [#allocation14 + $0x1], 1 }

</bundles_post_ra>
